<compile_context>
chip_gen: v7x
topology: tpu7x:2x2x1
jax: 0.10.0
libtpu: 0.0.40
codegen_flags: <defaults>
</compile_context>

<pallas_src>
import jax
import jax.numpy as jnp
from jax import lax
from jax.experimental import pallas as pl
from jax.experimental.pallas import tpu as pltpu  # noqa: F401  (TPU backend namespace)


# ----------------------------------------------------------------------------
# Fused kernel: conv (as one im2col matmul) + 2x2 max-pool + BN(train) + ReLU.
# ----------------------------------------------------------------------------
def fused_conv_pool_bn_relu_kernel(patches_ref, w_ref, gamma_ref, beta_ref, o_ref):
    # patches: (N*H*W, 9*Cin)   w: (9*Cin, Cp)   gamma/beta: (1,1,1,Cp)
    # o:       (N, Ho, Wo, Cp)  with Cp a multiple of 128 (zero-padded channels)
    N, Ho, Wo, Cp = o_ref.shape

    # Conv as a single im2col matmul on the MXU (f32 accumulation, K = 9*Cin).
    acc = jnp.dot(patches_ref[...], w_ref[...],
                  preferred_element_type=jnp.float32)          # (N*H*W, Cp)

    # (N*H*W, Cp) -> (N, Ho, 2, Wo, 2, Cp); the lane dim (Cp) stays intact.
    y = acc.reshape(N, Ho, 2, Wo, 2, Cp)

    # 2x2 stride-2 max-pool: three VPU maxima over four lane-dense slabs.
    pooled = jnp.maximum(
        jnp.maximum(y[:, :, 0, :, 0, :], y[:, :, 0, :, 1, :]),
        jnp.maximum(y[:, :, 1, :, 0, :], y[:, :, 1, :, 1, :]))  # (N, Ho, Wo, Cp)

    # BatchNorm2d in training mode (batch statistics, biased variance, eps=1e-5).
    mean = jnp.mean(pooled, axis=(0, 1, 2), keepdims=True)      # (1,1,1,Cp)
    var = jnp.mean((pooled - mean) ** 2, axis=(0, 1, 2), keepdims=True)
    inv = lax.rsqrt(var + 1e-5)
    yn = (pooled - mean) * inv * gamma_ref[...] + beta_ref[...]

    # ReLU + lane-dense store (last dim = Cp = multiple of 128).
    o_ref[...] = jnp.maximum(yn, 0.0).astype(o_ref.dtype)


# ----------------------------------------------------------------------------
# Wrapper: NCHW in / NCHW out, parameters follow PyTorch shapes.
# ----------------------------------------------------------------------------
def highway_block(x_nchw, w_oihw, gamma, beta):
    N, Cin, H, W = x_nchw.shape
    Cout = w_oihw.shape[0]
    Ho, Wo = H // 2, W // 2
    Cp = ((Cout + 127) // 128) * 128            # channel pad -> lane-dense

    # One fused XLA pre-pass: NHWC + pad=1 + im2col patch extraction.
    x_nhwc = jnp.transpose(x_nchw, (0, 2, 3, 1))                       # NHWC
    x_pad = jnp.pad(x_nhwc, ((0, 0), (1, 1), (1, 1), (0, 0)))          # pad=1
    taps = [x_pad[:, kh:kh + H, kw:kw + W, :]                          # (N,H,W,Cin)
            for kh in range(3) for kw in range(3)]
    patches = jnp.stack(taps, axis=3).reshape(N * H * W, 9 * Cin)      # K=(kh,kw,cin)

    # Weight (O, I, kh, kw) -> (kh, kw, I, O) -> (9*Cin, Cout) -> pad Cout to Cp.
    w = jnp.transpose(w_oihw, (2, 3, 1, 0)).reshape(9 * Cin, Cout)
    w = jnp.pad(w, ((0, 0), (0, Cp - Cout)))
    gamma_p = jnp.pad(gamma, (0, Cp - Cout)).reshape(1, 1, 1, Cp)
    beta_p = jnp.pad(beta, (0, Cp - Cout)).reshape(1, 1, 1, Cp)

    out_nhwc = pl.pallas_call(
        fused_conv_pool_bn_relu_kernel,
        out_shape=jax.ShapeDtypeStruct((N, Ho, Wo, Cp), jnp.float32),
    )(patches, w, gamma_p, beta_p)

    # Drop padded channels and return to NCHW (PyTorch layout).
    return jnp.transpose(out_nhwc[..., :Cout], (0, 3, 1, 2))


# ----------------------------------------------------------------------------
# Pure-JAX reference for correctness checking.
# ----------------------------------------------------------------------------
def reference(x_nchw, w_oihw, gamma, beta):
    y = lax.conv_general_dilated(
        x_nchw, w_oihw, window_strides=(1, 1), padding=((1, 1), (1, 1)),
        dimension_numbers=('NCHW', 'OIHW', 'NCHW'))
    y = lax.reduce_window(y, -jnp.inf, lax.max,
                          (1, 1, 2, 2), (1, 1, 2, 2), 'VALID')
    mean = jnp.mean(y, axis=(0, 2, 3), keepdims=True)
    var = jnp.mean((y - mean) ** 2, axis=(0, 2, 3), keepdims=True)
    y = (y - mean) * lax.rsqrt(var + 1e-5) * gamma.reshape(1, -1, 1, 1) \
        + beta.reshape(1, -1, 1, 1)
    return jnp.maximum(y, 0.0)


if __name__ == "__main__":
    N, C_IN, C_OUT, HW = 2, 4, 8, 16

    key = jax.random.PRNGKey(0)
    kx, kw = jax.random.split(key)
    x = jax.random.normal(kx, (N, C_IN, HW, HW), dtype=jnp.float32)
    # Conv2d weight (out_channels, in_channels, 3, 3), bias=False.
    w = 0.1 * jax.random.normal(kw, (C_OUT, C_IN, 3, 3), dtype=jnp.float32)
    # BatchNorm2d defaults: weight=1, bias=0.
    gamma = jnp.ones((C_OUT,), jnp.float32)
    beta = jnp.zeros((C_OUT,), jnp.float32)

    out = jax.block_until_ready(highway_block(x, w, gamma, beta))
    ref = jax.block_until_ready(reference(x, w, gamma, beta))

    assert out.shape == (N, C_OUT, HW // 2, HW // 2), out.shape
    assert jnp.allclose(out, ref, rtol=1e-4, atol=1e-3), \
        f"max abs err {jnp.max(jnp.abs(out - ref))}"
    print("KERNEL_OK")
</pallas_src>

<mosaic_0001>
module attributes {stable_mosaic.version = 11 : i64} {
  func.func @fused_conv_pool_bn_relu_kernel(%arg0: memref<512x36xf32, #tpu.memory_space<vmem>>, %arg1: memref<36x128xf32, #tpu.memory_space<vmem>>, %arg2: memref<1x1x1x128xf32, #tpu.memory_space<vmem>>, %arg3: memref<1x1x1x128xf32, #tpu.memory_space<vmem>>, %arg4: memref<2x8x8x128xf32, #tpu.memory_space<vmem>>) attributes {dimension_semantics = [], scalar_prefetch = 0 : i64, scratch_operands = 0 : i64, tpu.core_type = #tpu.core_type<tc>} {
    %c0 = arith.constant 0 : index
    %c0_0 = arith.constant 0 : index
    %0 = vector.load %arg0[%c0, %c0_0] : memref<512x36xf32, #tpu.memory_space<vmem>>, vector<512x36xf32>
    %c0_1 = arith.constant 0 : index
    %c0_2 = arith.constant 0 : index
    %1 = vector.load %arg1[%c0_1, %c0_2] : memref<36x128xf32, #tpu.memory_space<vmem>>, vector<36x128xf32>
    %cst = arith.constant dense<0.000000e+00> : vector<512x128xf32>
    %2 = tpu.matmul %0, %1, %cst {dimension_numbers = #tpu.dot_dimension_numbers<[1], [0], [0], [1], [0, 0, 1, 1], [], []>} : vector<512x36xf32>, vector<36x128xf32>, vector<512x128xf32> -> vector<512x128xf32>
    %3 = vector.shape_cast %2 : vector<512x128xf32> to vector<2x8x2x8x2x128xf32>
    %4 = vector.extract_strided_slice %3 {offsets = [0, 0, 0, 0, 0, 0], sizes = [2, 8, 1, 8, 1, 128], strides = [1, 1, 1, 1, 1, 1]} : vector<2x8x2x8x2x128xf32> to vector<2x8x1x8x1x128xf32>
    %5 = vector.shape_cast %4 : vector<2x8x1x8x1x128xf32> to vector<2x8x8x128xf32>
    %6 = vector.extract_strided_slice %3 {offsets = [0, 0, 0, 0, 1, 0], sizes = [2, 8, 1, 8, 1, 128], strides = [1, 1, 1, 1, 1, 1]} : vector<2x8x2x8x2x128xf32> to vector<2x8x1x8x1x128xf32>
    %7 = vector.shape_cast %6 : vector<2x8x1x8x1x128xf32> to vector<2x8x8x128xf32>
    %8 = arith.maximumf %5, %7 : vector<2x8x8x128xf32>
    %9 = vector.extract_strided_slice %3 {offsets = [0, 0, 1, 0, 0, 0], sizes = [2, 8, 1, 8, 1, 128], strides = [1, 1, 1, 1, 1, 1]} : vector<2x8x2x8x2x128xf32> to vector<2x8x1x8x1x128xf32>
    %10 = vector.shape_cast %9 : vector<2x8x1x8x1x128xf32> to vector<2x8x8x128xf32>
    %11 = vector.extract_strided_slice %3 {offsets = [0, 0, 1, 0, 1, 0], sizes = [2, 8, 1, 8, 1, 128], strides = [1, 1, 1, 1, 1, 1]} : vector<2x8x2x8x2x128xf32> to vector<2x8x1x8x1x128xf32>
    %12 = vector.shape_cast %11 : vector<2x8x1x8x1x128xf32> to vector<2x8x8x128xf32>
    %13 = arith.maximumf %10, %12 : vector<2x8x8x128xf32>
    %14 = arith.maximumf %8, %13 : vector<2x8x8x128xf32>
    %cst_3 = arith.constant dense<0.000000e+00> : vector<128xf32>
    %15 = vector.multi_reduction <add>, %14, %cst_3 [0, 1, 2] : vector<2x8x8x128xf32> to vector<128xf32>
    %16 = vector.shape_cast %15 : vector<128xf32> to vector<1x1x1x128xf32>
    %cst_4 = arith.constant 1.280000e+02 : f32
    %17 = vector.broadcast %cst_4 : f32 to vector<1x1x1x128xf32>
    %18 = arith.divf %16, %17 : vector<1x1x1x128xf32>
    %19 = vector.broadcast %18 : vector<1x1x1x128xf32> to vector<2x8x8x128xf32>
    %20 = arith.subf %14, %19 : vector<2x8x8x128xf32>
    %21 = arith.mulf %20, %20 : vector<2x8x8x128xf32>
    %cst_5 = arith.constant dense<0.000000e+00> : vector<128xf32>
    %22 = vector.multi_reduction <add>, %21, %cst_5 [0, 1, 2] : vector<2x8x8x128xf32> to vector<128xf32>
    %23 = vector.shape_cast %22 : vector<128xf32> to vector<1x1x1x128xf32>
    %cst_6 = arith.constant 1.280000e+02 : f32
    %24 = vector.broadcast %cst_6 : f32 to vector<1x1x1x128xf32>
    %25 = arith.divf %23, %24 : vector<1x1x1x128xf32>
    %cst_7 = arith.constant 9.99999974E-6 : f32
    %26 = vector.broadcast %cst_7 : f32 to vector<1x1x1x128xf32>
    %27 = arith.addf %25, %26 : vector<1x1x1x128xf32>
    %28 = math.rsqrt %27 : vector<1x1x1x128xf32>
    %29 = vector.broadcast %18 : vector<1x1x1x128xf32> to vector<2x8x8x128xf32>
    %30 = arith.subf %14, %29 : vector<2x8x8x128xf32>
    %31 = vector.broadcast %28 : vector<1x1x1x128xf32> to vector<2x8x8x128xf32>
    %32 = arith.mulf %30, %31 : vector<2x8x8x128xf32>
    %c0_8 = arith.constant 0 : index
    %c0_9 = arith.constant 0 : index
    %c0_10 = arith.constant 0 : index
    %c0_11 = arith.constant 0 : index
    %33 = vector.load %arg2[%c0_8, %c0_9, %c0_10, %c0_11] : memref<1x1x1x128xf32, #tpu.memory_space<vmem>>, vector<1x1x1x128xf32>
    %34 = vector.broadcast %33 : vector<1x1x1x128xf32> to vector<2x8x8x128xf32>
    %35 = arith.mulf %32, %34 : vector<2x8x8x128xf32>
    %c0_12 = arith.constant 0 : index
    %c0_13 = arith.constant 0 : index
    %c0_14 = arith.constant 0 : index
    %c0_15 = arith.constant 0 : index
    %36 = vector.load %arg3[%c0_12, %c0_13, %c0_14, %c0_15] : memref<1x1x1x128xf32, #tpu.memory_space<vmem>>, vector<1x1x1x128xf32>
    %37 = vector.broadcast %36 : vector<1x1x1x128xf32> to vector<2x8x8x128xf32>
    %38 = arith.addf %35, %37 : vector<2x8x8x128xf32>
    %cst_16 = arith.constant 0.000000e+00 : f32
    %39 = vector.broadcast %cst_16 : f32 to vector<2x8x8x128xf32>
    %40 = arith.maximumf %38, %39 : vector<2x8x8x128xf32>
    %c0_17 = arith.constant 0 : index
    %c0_18 = arith.constant 0 : index
    %c0_19 = arith.constant 0 : index
    %c0_20 = arith.constant 0 : index
    %41 = vector.load %arg4[%c0_17, %c0_18, %c0_19, %c0_20] : memref<2x8x8x128xf32, #tpu.memory_space<vmem>>, vector<2x8x8x128xf32>
    tpu.vector_store %arg4[%c0_17, %c0_18, %c0_19, %c0_20], %40 {strides = array<i32>} : memref<2x8x8x128xf32, #tpu.memory_space<vmem>>, vector<2x8x8x128xf32>,
    return
  }
}

</mosaic_0001>

<bundles_post_ra>
// kernel: tpu_custom_call.1
= control target key start
LH: loop header
LB: loop body
LE: loop exit
PB: predicated region body
PF: predicated region fallthrough
CT: control target
= control target key end

     0   :  { %vm87_vm0 = vcmask 293888   ;;  %vm280_vm1 = vcmask 1043456   ;;  %s13053_s0 = inlined_call_operand.vmem [shape: f32[512,36], index: 0, kind: input, shape index: {}]   ;;  %s13054_s1 = inlined_call_operand.vmem [shape: f32[36,128], index: 1, kind: input, shape index: {}]   ;;  %s13055_s2 = inlined_call_operand.vmem [shape: f32[1,1,1,128], index: 2, kind: input, shape index: {}]   ;;  %s13056_s3 = inlined_call_operand.vmem [shape: f32[1,1,1,128], index: 3, kind: input, shape index: {}]   ;;  %s13057_s4 = inlined_call_operand.hbm [shape: f32[2,8,8,128], index: 4, kind: output, shape index: {}]  }
   0x1   :  { %v82_v0 = vld [vmem:[%s13054_s1] sm:$0xff]  ;;  %v83_v1 = vld [vmem:[%s13054_s1 + $0x8] sm:$0xff]  ;;  %v84_v2 = vld [vmem:[%s13054_s1 + $0x10] sm:$0xff] }
   0x2   :  { %v7023_v3 = vpack.c.bf16 %v83_v1, %v82_v0  ;;  %v85_v4 = vld [vmem:[%s13054_s1 + $0x18] sm:$0xff]  ;;  %v18_v5 = vld [vmem:[%s13053_s0] sm:$0xff]  ;;  %v19_v9 = vld [vmem:[%s13053_s0 + $0x8] sm:$0xff] }
   0x3   :  { %v7027_v6 = vpack.c.bf16 %v85_v4, %v84_v2  ;;  %6927 = vmatprep.mubr.msk.f32.mxu0 %vm87_vm0, %v18_v5  ;;  %v50_v7 = vld [vmem:[%s13053_s0 + $0x100] sm:$0xff]  ;;  %v51_v10 = vld [vmem:[%s13053_s0 + $0x108] sm:$0xff]  ;;  %v20_v11 = vld [vmem:[%s13053_s0 + $0x10] sm:$0xff] }
   0x4   :  { %7024 = vmatprep.subr.bf16.mxu0 %v7023_v3  ;;  %7031 = vmatprep.subr.bf16.mxu1 %v7023_v3  ;;  %v86_v8 = vld [vmem:[%s13054_s1 + $0x20] sm:$0xf]  ;;  %v52_v12 = vld [vmem:[%s13053_s0 + $0x110] sm:$0xff]  ;;  %v21_v13 = vld [vmem:[%s13053_s0 + $0x18] sm:$0xff] }
   0x5   :  { %7026 = vmatpush3.bf16.msra.mxu0 %v7023_v3  ;;  %7034 = vmatpush3.bf16.msra.mxu1 %v7023_v3  ;;  %v53_v14 = vld [vmem:[%s13053_s0 + $0x118] sm:$0xff]  ;;  %v22_v15 = vld [vmem:[%s13053_s0 + $0x20] sm:$0xff]  ;;  %v23_v17 = vld [vmem:[%s13053_s0 + $0x28] sm:$0xff] }
   0x6   :  { %7028 = vmatprep.subr.bf16.mxu0 %v7027_v6  ;;  %7032 = vmatprep.subr.bf16.mxu1 %v7027_v6  ;;  %v54_v16 = vld [vmem:[%s13053_s0 + $0x120] sm:$0xff]  ;;  %v55_v18 = vld [vmem:[%s13053_s0 + $0x128] sm:$0xff]  ;;  %v24_v19 = vld [vmem:[%s13053_s0 + $0x30] sm:$0xff] }
   0x7   :  { %6975 = vmatprep.mubr.msk.f32.mxu1 %vm87_vm0, %v50_v7  ;;  %v56_v20 = vld [vmem:[%s13053_s0 + $0x130] sm:$0xff]  ;;  %v25_v21 = vld [vmem:[%s13053_s0 + $0x38] sm:$0xff]  ;;  %v26_v23 = vld [vmem:[%s13053_s0 + $0x40] sm:$0xff] }
   0x8   :  { %v57_v22 = vld [vmem:[%s13053_s0 + $0x138] sm:$0xff]  ;;  %v58_v24 = vld [vmem:[%s13053_s0 + $0x140] sm:$0xff] }
   0x9   :  { %7030 = vmatpush3.bf16.msra.mxu0 %v7027_v6  ;;  %7035 = vmatpush3.bf16.msra.mxu1 %v7027_v6 }
   0xa   :  { %6925 = vmatprep.subr.msk.mxu0 %vm280_vm1, %v86_v8  ;;  %7033 = vmatprep.subr.msk.mxu1 %vm280_vm1, %v86_v8 }
   0xd   :  { %6926 = vmatpush3.msk.msra.mxu0 %vm280_vm1, %v86_v8  ;;  %7036 = vmatpush3.msk.msra.mxu1 %vm280_vm1, %v86_v8 }
   0xe   :  { %6928 = vmatmul.mubr.msk.f32.vlgmr.msra.gmra.mrb[0].mxu0 %vm87_vm0, %v19_v9  ;;  %6976 = vmatmul.mubr.msk.f32.vlgmr.msra.gmra.mrb[0].mxu1 %vm87_vm0, %v51_v10 }
   0xf   :  { %6930 = vmatprep.mubr.msk.f32.mxu0 %vm87_vm0, %v20_v11  ;;  %6978 = vmatprep.mubr.msk.f32.mxu1 %vm87_vm0, %v52_v12 }
  0x12   :  { %6931 = vmatmul.mubr.msk.f32.gmra.mrb[2].mxu0 %vm87_vm0, %v21_v13  ;;  %6979 = vmatmul.mubr.msk.f32.gmra.mrb[2].mxu1 %vm87_vm0, %v53_v14 }
  0x13   :  { %6933 = vmatprep.mubr.msk.f32.mxu0 %vm87_vm0, %v22_v15  ;;  %6981 = vmatprep.mubr.msk.f32.mxu1 %vm87_vm0, %v54_v16 }
  0x16   :  { %6934 = vmatmul.mubr.msk.f32.gmra.mrb[4].mxu0 %vm87_vm0, %v23_v17  ;;  %6982 = vmatmul.mubr.msk.f32.gmra.mrb[4].mxu1 %vm87_vm0, %v55_v18 }
  0x17   :  { %6936 = vmatprep.mubr.msk.f32.mxu0 %vm87_vm0, %v24_v19  ;;  %6984 = vmatprep.mubr.msk.f32.mxu1 %vm87_vm0, %v56_v20 }
  0x18   :  { %9 = vsyncpa [#allocation3], 0  ;;  %v27_v25 = vld [vmem:[%s13053_s0 + $0x48] sm:$0xff]  ;;  %v28_v27 = vld [vmem:[%s13053_s0 + $0x50] sm:$0xff]  ;;  %v7067_v7 = vmov 1983009808   ;;  %v737_v9 = vlaneseq }
  0x19   :  { %v59_v26 = vld [vmem:[%s13053_s0 + $0x148] sm:$0xff]  ;;  %v60_v28 = vld [vmem:[%s13053_s0 + $0x150] sm:$0xff]  ;;  %v29_v29 = vld [vmem:[%s13053_s0 + $0x58] sm:$0xff]  ;;  %v735_v8 = vunpack.c.l.s4 %v7067_v7  ;;  %vm3869_vm2 = vcmask 1041409   ;;  %vm3871_vm3 = vcmask 1042434   ;;  %vm3873_vm4 = vcmask 1043459  }
  0x1a   :  { %6937 = vmatmul.mubr.msk.f32.gmra.mrb[6].mxu0 %vm87_vm0, %v25_v21  ;;  %6985 = vmatmul.mubr.msk.f32.gmra.mrb[6].mxu1 %vm87_vm0, %v57_v22  ;;  %v61_v30 = vld [vmem:[%s13053_s0 + $0x158] sm:$0xff]  ;;  %v30_v31 = vld [vmem:[%s13053_s0 + $0x60] sm:$0xff]  ;;  %v31_v33 = vld [vmem:[%s13053_s0 + $0x68] sm:$0xff]  ;;  %v738_v11 = vshrl.u32 %v737_v9, 7  ;;  %vm3875_vm5 = vcmask 1044484   ;;  %vm3877_vm6 = vcmask 1045509  }
  0x1b   :  { %6939 = vmatprep.mubr.msk.f32.mxu0 %vm87_vm0, %v26_v23  ;;  %6987 = vmatprep.mubr.msk.f32.mxu1 %vm87_vm0, %v58_v24  ;;  %v62_v32 = vld [vmem:[%s13053_s0 + $0x160] sm:$0xff]  ;;  %v63_v34 = vld [vmem:[%s13053_s0 + $0x168] sm:$0xff]  ;;  %v32_v35 = vld [vmem:[%s13053_s0 + $0x70] sm:$0xff]  ;;  %v736_v10 = vunpack.c.0.s8 %v735_v8  ;;  %vm3879_vm7 = vcmask 1046534   ;;  %vm3881_vm8 = vcmask 1047559  }
  0x1c   :  { %v64_v36 = vld [vmem:[%s13053_s0 + $0x170] sm:$0xff]  ;;  %v33_v37 = vld [vmem:[%s13053_s0 + $0x78] sm:$0xff]  ;;  %v34_v39 = vld [vmem:[%s13053_s0 + $0x80] sm:$0xff] }
  0x1d   :  { %v65_v38 = vld [vmem:[%s13053_s0 + $0x178] sm:$0xff]  ;;  %v66_v40 = vld [vmem:[%s13053_s0 + $0x180] sm:$0xff]  ;;  %v35_v41 = vld [vmem:[%s13053_s0 + $0x88] sm:$0xff]  ;;  %v7367_v12 = vsub.s32 %v736_v10, %v738_v11 }
  0x1e   :  { %6940 = vmatmul.mubr.msk.f32.gmra.mrb[8].mxu0 %vm87_vm0, %v27_v25  ;;  %6988 = vmatmul.mubr.msk.f32.gmra.mrb[8].mxu1 %vm87_vm0, %v59_v26  ;;  %v67_v42 = vld [vmem:[%s13053_s0 + $0x188] sm:$0xff]  ;;  %v36_v43 = vld [vmem:[%s13053_s0 + $0x90] sm:$0xff]  ;;  %v37_v45 = vld [vmem:[%s13053_s0 + $0x98] sm:$0xff] }
  0x1f   :  { %6942 = vmatprep.mubr.msk.f32.mxu0 %vm87_vm0, %v28_v27  ;;  %6990 = vmatprep.mubr.msk.f32.mxu1 %vm87_vm0, %v60_v28  ;;  %v68_v44 = vld [vmem:[%s13053_s0 + $0x190] sm:$0xff]  ;;  %v69_v46 = vld [vmem:[%s13053_s0 + $0x198] sm:$0xff]  ;;  %v38_v47 = vld [vmem:[%s13053_s0 + $0xa0] sm:$0xff]  ;;  %13482 = vst [vmem:[#allocation5_spill] sm:$0xff] %v7367_v12 }
  0x20   :  { %v70_v48 = vld [vmem:[%s13053_s0 + $0x1a0] sm:$0xff]  ;;  %v39_v49 = vld [vmem:[%s13053_s0 + $0xa8] sm:$0xff]  ;;  %v40_v51 = vld [vmem:[%s13053_s0 + $0xb0] sm:$0xff] }
  0x21   :  { %v71_v50 = vld [vmem:[%s13053_s0 + $0x1a8] sm:$0xff]  ;;  %v72_v52 = vld [vmem:[%s13053_s0 + $0x1b0] sm:$0xff]  ;;  %v41_v53 = vld [vmem:[%s13053_s0 + $0xb8] sm:$0xff] }
  0x22   :  { %6943 = vmatmul.mubr.msk.f32.gmra.mrb[10].mxu0 %vm87_vm0, %v29_v29  ;;  %6991 = vmatmul.mubr.msk.f32.gmra.mrb[10].mxu1 %vm87_vm0, %v61_v30  ;;  %v73_v54 = vld [vmem:[%s13053_s0 + $0x1b8] sm:$0xff]  ;;  %v42_v55 = vld [vmem:[%s13053_s0 + $0xc0] sm:$0xff]  ;;  %v43_v57 = vld [vmem:[%s13053_s0 + $0xc8] sm:$0xff]  ;;  %v7380_v30 = vsub.s32 0, %v738_v11 }
  0x23   :  { %6945 = vmatprep.mubr.msk.f32.mxu0 %vm87_vm0, %v30_v31  ;;  %6993 = vmatprep.mubr.msk.f32.mxu1 %vm87_vm0, %v62_v32  ;;  %v74_v56 = vld [vmem:[%s13053_s0 + $0x1c0] sm:$0xff]  ;;  %v75_v58 = vld [vmem:[%s13053_s0 + $0x1c8] sm:$0xff]  ;;  %v44_v59 = vld [vmem:[%s13053_s0 + $0xd0] sm:$0xff] }
  0x24   :  { %v76_v60 = vld [vmem:[%s13053_s0 + $0x1d0] sm:$0xff]  ;;  %v45_v61 = vld [vmem:[%s13053_s0 + $0xd8] sm:$0xff]  ;;  %v46_v63 = vld [vmem:[%s13053_s0 + $0xe0] sm:$0xff]  ;;  %13483 = vst [vmem:[#allocation6_spill] sm:$0xff] %v7380_v30 }
  0x25   :  { %v77_v62 = vld [vmem:[%s13053_s0 + $0x1d8] sm:$0xff]  ;;  %v78_v0 = vld [vmem:[%s13053_s0 + $0x1e0] sm:$0xff]  ;;  %v47_v1 = vld [vmem:[%s13053_s0 + $0xe8] sm:$0xff] }
  0x26   :  { %6946 = vmatmul.mubr.msk.f32.gmra.mrb[12].mxu0 %vm87_vm0, %v31_v33  ;;  %6994 = vmatmul.mubr.msk.f32.gmra.mrb[12].mxu1 %vm87_vm0, %v63_v34  ;;  %v79_v2 = vld [vmem:[%s13053_s0 + $0x1e8] sm:$0xff]  ;;  %v48_v3 = vld [vmem:[%s13053_s0 + $0xf0] sm:$0xff]  ;;  %v49_v5 = vld [vmem:[%s13053_s0 + $0xf8] sm:$0xff] }
  0x27   :  { %6948 = vmatprep.mubr.msk.f32.mxu0 %vm87_vm0, %v32_v35  ;;  %6996 = vmatprep.mubr.msk.f32.mxu1 %vm87_vm0, %v64_v36  ;;  %v80_v4 = vld [vmem:[%s13053_s0 + $0x1f0] sm:$0xff]  ;;  %v81_v6 = vld [vmem:[%s13053_s0 + $0x1f8] sm:$0xff] }
  0x2a   :  { %6949 = vmatmul.mubr.msk.f32.gmra.mrb[14].mxu0 %vm87_vm0, %v33_v37  ;;  %6997 = vmatmul.mubr.msk.f32.gmra.mrb[14].mxu1 %vm87_vm0, %v65_v38 }
  0x2b   :  { %6951 = vmatprep.mubr.msk.f32.mxu0 %vm87_vm0, %v34_v39  ;;  %6999 = vmatprep.mubr.msk.f32.mxu1 %vm87_vm0, %v66_v40 }
  0x2e   :  { %6952 = vmatmul.mubr.msk.f32.gmra.mrb[16].mxu0 %vm87_vm0, %v35_v41  ;;  %7000 = vmatmul.mubr.msk.f32.gmra.mrb[16].mxu1 %vm87_vm0, %v67_v42 }
  0x2f   :  { %6954 = vmatprep.mubr.msk.f32.mxu0 %vm87_vm0, %v36_v43  ;;  %7002 = vmatprep.mubr.msk.f32.mxu1 %vm87_vm0, %v68_v44 }
  0x32   :  { %6955 = vmatmul.mubr.msk.f32.gmra.mrb[18].mxu0 %vm87_vm0, %v37_v45  ;;  %7003 = vmatmul.mubr.msk.f32.gmra.mrb[18].mxu1 %vm87_vm0, %v69_v46 }
  0x33   :  { %6957 = vmatprep.mubr.msk.f32.mxu0 %vm87_vm0, %v38_v47  ;;  %7005 = vmatprep.mubr.msk.f32.mxu1 %vm87_vm0, %v70_v48 }
  0x36   :  { %6958 = vmatmul.mubr.msk.f32.gmra.mrb[20].mxu0 %vm87_vm0, %v39_v49  ;;  %7006 = vmatmul.mubr.msk.f32.gmra.mrb[20].mxu1 %vm87_vm0, %v71_v50 }
  0x37   :  { %6960 = vmatprep.mubr.msk.f32.mxu0 %vm87_vm0, %v40_v51  ;;  %7008 = vmatprep.mubr.msk.f32.mxu1 %vm87_vm0, %v72_v52 }
  0x3a   :  { %6961 = vmatmul.mubr.msk.f32.gmra.mrb[22].mxu0 %vm87_vm0, %v41_v53  ;;  %7009 = vmatmul.mubr.msk.f32.gmra.mrb[22].mxu1 %vm87_vm0, %v73_v54 }
  0x3b   :  { %6963 = vmatprep.mubr.msk.f32.mxu0 %vm87_vm0, %v42_v55  ;;  %7011 = vmatprep.mubr.msk.f32.mxu1 %vm87_vm0, %v74_v56 }
  0x3e   :  { %6964 = vmatmul.mubr.msk.f32.gmra.mrb[24].mxu0 %vm87_vm0, %v43_v57  ;;  %7012 = vmatmul.mubr.msk.f32.gmra.mrb[24].mxu1 %vm87_vm0, %v75_v58 }
  0x3f   :  { %6966 = vmatprep.mubr.msk.f32.mxu0 %vm87_vm0, %v44_v59  ;;  %7014 = vmatprep.mubr.msk.f32.mxu1 %vm87_vm0, %v76_v60 }
  0x42   :  { %6967 = vmatmul.mubr.msk.f32.gmra.mrb[26].mxu0 %vm87_vm0, %v45_v61  ;;  %7015 = vmatmul.mubr.msk.f32.gmra.mrb[26].mxu1 %vm87_vm0, %v77_v62 }
  0x43   :  { %6969 = vmatprep.mubr.msk.f32.mxu0 %vm87_vm0, %v46_v63  ;;  %7017 = vmatprep.mubr.msk.f32.mxu1 %vm87_vm0, %v78_v0 }
  0x46   :  { %6970 = vmatmul.mubr.msk.f32.gmra.mrb[28].mxu0 %vm87_vm0, %v47_v1  ;;  %7018 = vmatmul.mubr.msk.f32.gmra.mrb[28].mxu1 %vm87_vm0, %v79_v2 }
  0x47   :  { %6972 = vmatprep.mubr.msk.f32.mxu0 %vm87_vm0, %v48_v3  ;;  %7020 = vmatprep.mubr.msk.f32.mxu1 %vm87_vm0, %v80_v4 }
  0x4a   :  { %6973 = vmatmul.mubr.msk.f32.gmra.mrb[30].mxu0 %vm87_vm0, %v49_v5  ;;  %7021 = vmatmul.mubr.msk.f32.gmra.mrb[30].mxu1 %vm87_vm0, %v81_v6 }
  0xe1   :  { %v6929_v13 = vpop.f32.mrb[0].mxu0  ;;  %v6977_v14 = vpop.f32.mrb[0].mxu1 }
  0xe2   :  { %v750_v15 = vcombine.high %v6929_v13, %v6929_v13  ;;  %v757_v16 = vrot.slane %v6929_v13, %v7367_v12  ;;  %v350_v17 = vpop.f32.mrb[1].mxu0  ;;  %v7370_v18 = vpop.f32.mrb[1].mxu1  ;;  %v1294_v21 = vcombine.high %v6977_v14, %v6977_v14  ;;  %v7375_v25 = vrot.slane %v6977_v14, %v7367_v12 }
  0xe3   :  { %v733_v19 = vcombine.high %v350_v17, %v350_v17  ;;  %v740_v20 = vrot.slane %v350_v17, %v7367_v12  ;;  %v1277_v36 = vcombine.high %v7370_v18, %v7370_v18  ;;  %v7395_v41 = vrot.slane %v7370_v18, %v7367_v12 }
  0xe4   :  { %v764_v22 = vrot.slane %v750_v15, %v7367_v12  ;;  %v765_v23 = vcombine.high %v757_v16, %v757_v16  ;;  %v6594_v24 = vrot.slane %v757_v16, 9  ;;  %v7391_v40 = vrot.slane %v1294_v21, %v7367_v12 }
  0xe5   :  { %v7378_v26 = vrot.slane %v733_v19, %v7367_v12  ;;  %v748_v27 = vcombine.high %v740_v20, %v740_v20  ;;  %v6590_v28 = vrot.slane %v740_v20, 9  ;;  %v6932_v29 = vpop.f32.mrb[2].mxu0  ;;  %v7382_v31 = vpop.f32.mrb[2].mxu1  ;;  %v7400_v45 = vcombine.high %v7375_v25, %v7375_v25 }
  0xe6   :  { %v766_v32 = vcombine.high %v764_v22, %v764_v22  ;;  %v6595_v33 = vrot.slane %v765_v23, 9  ;;  %v6596_v34 = vrot.slane %v764_v22, 9  ;;  %v360_v35 = vpop.f32.mrb[3].mxu0  ;;  %v7386_v37 = vpop.f32.mrb[3].mxu1  ;;  %v2465_v42 = vmax.f32 %v757_v16, %v6594_v24 }
  0xe7   :  { %v749_v38 = vcombine.high %v7378_v26, %v7378_v26  ;;  %v6591_v39 = vrot.slane %v748_v27, 9  ;;  %v6592_v43 = vrot.slane %v7378_v26, 9  ;;  %v784_v44 = vcombine.high %v6932_v29, %v6932_v29 }
  0xe8   :  { %v6597_v46 = vrot.slane %v766_v32, 9  ;;  %v2466_v47 = vmax.f32 %v765_v23, %v6595_v33  ;;  %v2461_v48 = vmax.f32 %v740_v20, %v6590_v28  ;;  %v791_v49 = vrot.slane %v6932_v29, %v7367_v12 }
  0xe9   :  { %v7403_v50 = vpop.f32.mrb[4].mxu0  ;;  %v7405_v51 = vpop.f32.mrb[4].mxu1  ;;  %v2467_v52 = vmax.f32 %v764_v22, %v6596_v34  ;;  %v798_v53 = vrot.slane %v784_v44, %v7367_v12  ;;  %v767_v54 = vcombine.high %v360_v35, %v360_v35  ;;  %v774_v55 = vrot.slane %v360_v35, %v7367_v12 }
  0xea   :  { %v7409_v56 = vpop.f32.mrb[5].mxu0  ;;  %v7411_v57 = vpop.f32.mrb[5].mxu1  ;;  %v6593_v58 = vrot.slane %v749_v38, 9  ;;  %v2462_v59 = vmax.f32 %v748_v27, %v6591_v39  ;;  %v799_v60 = vcombine.high %v791_v49, %v791_v49  ;;  %v6722_v61 = vrot.slane %v791_v49, 9 }
  0xeb   :  { %v800_v62 = vcombine.high %v798_v53, %v798_v53  ;;  %v6724_v63 = vrot.slane %v798_v53, 9  ;;  %v781_v0 = vrot.slane %v767_v54, %v7367_v12  ;;  %v782_v1 = vcombine.high %v774_v55, %v774_v55 }
  0xec   :  { %v2468_v2 = vmax.f32 %v766_v32, %v6597_v46  ;;  %v6723_v3 = vrot.slane %v799_v60, 9  ;;  %v2977_v4 = vmax.f32 %v791_v49, %v6722_v61  ;;  %v6718_v5 = vrot.slane %v774_v55, 9 }
  0xed   :  { %v7414_v6 = vpop.f32.mrb[6].mxu0  ;;  %v7416_v7 = vpop.f32.mrb[6].mxu1  ;;  %v6725_v8 = vrot.slane %v800_v62, 9  ;;  %v2979_v9 = vmax.f32 %v798_v53, %v6724_v63  ;;  %v783_v10 = vcombine.high %v781_v0, %v781_v0  ;;  %v6719_v11 = vrot.slane %v782_v1, 9 }
  0xee   :  { %v7418_v13 = vpop.f32.mrb[7].mxu0  ;;  %v7420_v14 = vpop.f32.mrb[7].mxu1  ;;  %v2978_v15 = vmax.f32 %v799_v60, %v6723_v3  ;;  %v7422_v16 = vmax.f32 %v2465_v42, %v2977_v4  ;;  %v6720_v17 = vrot.slane %v781_v0, 9  ;;  %v2973_v19 = vmax.f32 %v774_v55, %v6718_v5 }
  0xef   :  { %v2980_v20 = vmax.f32 %v800_v62, %v6725_v8  ;;  %v7424_v21 = vmax.f32 %v2467_v52, %v2979_v9  ;;  %v6721_v22 = vrot.slane %v783_v10, 9  ;;  %v2974_v23 = vmax.f32 %v782_v1, %v6719_v11 }
  0xf0   :  { %13484 = vst [vmem:[#allocation7_spill] sm:$0xff] %v7422_v16  ;;  %v2463_v24 = vmax.f32 %v7378_v26, %v6592_v43  ;;  %v7427_v27 = vmax.f32 %v2466_v47, %v2978_v15  ;;  %v2975_v28 = vmax.f32 %v781_v0, %v6720_v17  ;;  %v7429_v29 = vmax.f32 %v2461_v48, %v2973_v19 }
  0xf1   :  { %13485 = vst [vmem:[#allocation8_spill] sm:$0xff] %v7424_v21  ;;  %v7431_v32 = vpop.f32.mrb[8].mxu0  ;;  %v7433_v33 = vpop.f32.mrb[8].mxu1  ;;  %v2464_v34 = vmax.f32 %v749_v38, %v6593_v58  ;;  %v7435_v35 = vmax.f32 %v2468_v2, %v2980_v20  ;;  %v2976_v39 = vmax.f32 %v783_v10, %v6721_v22  ;;  %v7437_v42 = vmax.f32 %v2462_v59, %v2974_v23 }
  0xf2   :  { %13486 = vst [vmem:[#allocation9_spill] sm:$0xff] %v7427_v27  ;;  %13487 = vst [vmem:[#allocation10_spill] sm:$0xff] %v7429_v29  ;;  %v7439_v44 = vpop.f32.mrb[9].mxu0  ;;  %v7441_v46 = vpop.f32.mrb[9].mxu1  ;;  %v3376_v26 = vrot.slane %v7422_v16, %v7380_v30  ;;  %v7445_v43 = vmax.f32 %v2463_v24, %v2975_v28  ;;  %v1310_v47 = vcombine.high %v7391_v40, %v7391_v40  ;;  %v6658_v48 = vrot.slane %v7375_v25, 9 }
  0xf3   :  { %13488 = vst [vmem:[#allocation11_spill] sm:$0xff] %v7435_v35  ;;  %13489 = vst [vmem:[#allocation12_spill] sm:$0xff] %v7437_v42  ;;  %v3384_v38 = vrot.slane %v7424_v21, %v7380_v30  ;;  %v7452_v49 = vmax.f32 %v2464_v34, %v2976_v39  ;;  %v3360_v52 = vrot.slane %v7429_v29, %v7380_v30  ;;  %v6659_v59 = vrot.slane %v7400_v45, 9 }
  0xf4   :  { %13490 = vst [vmem:[#allocation13_spill] sm:$0xff] %v7445_v43  ;;  %v3364_v53 = vrot.slane %v7437_v42, %v7380_v30  ;;  %v3380_v54 = vrot.slane %v7427_v27, %v7380_v30  ;;  %v3388_v55 = vrot.slane %v7435_v35, %v7380_v30  ;;  %v3368_v58 = vrot.slane %v7445_v43, %v7380_v30 }
  0xf5   :  { %13491 = vst [vmem:[#allocation14_spill] sm:$0xff] %v7452_v49  ;;  %v7465_v60 = vpop.f32.mrb[10].mxu0  ;;  %v7467_v61 = vpop.f32.mrb[10].mxu1  ;;  %v3372_v62 = vrot.slane %v7452_v49, %v7380_v30  ;;  %v6660_v0 = vrot.slane %v7391_v40, 9  ;;  %v1291_v1 = vrot.slane %v1277_v36, %v7367_v12  ;;  %v6661_v5 = vrot.slane %v1310_v47, 9 }
  0xf6   :  { %v3870_v63 = vsel %vm3869_vm2, %v3364_v53, %v3360_v52  ;;  %v7477_v2 = vpop.f32.mrb[11].mxu0  ;;  %v7479_v3 = vpop.f32.mrb[11].mxu1  ;;  %v1292_v8 = vcombine.high %v7395_v41, %v7395_v41  ;;  %v6654_v9 = vrot.slane %v7395_v41, 9  ;;  %v818_v18 = vcombine.high %v7403_v50, %v7403_v50 }
  0xf7   :  { %v3872_v4 = vsel %vm3871_vm3, %v3368_v58, %v3870_v63  ;;  %v1293_v11 = vcombine.high %v1291_v1, %v1291_v1  ;;  %v6656_v15 = vrot.slane %v1291_v1, 9  ;;  %v2529_v17 = vmax.f32 %v7375_v25, %v6658_v48 }
  0xf8   :  { %v3874_v10 = vsel %vm3873_vm4, %v3372_v62, %v3872_v4  ;;  %v6655_v19 = vrot.slane %v1292_v8, 9  ;;  %v825_v20 = vrot.slane %v7403_v50, %v7367_v12  ;;  %v2530_v28 = vmax.f32 %v7400_v45, %v6659_v59 }
  0xf9   :  { %v3876_v36 = vsel %vm3875_vm5, %v3376_v26, %v3874_v10  ;;  %v7492_v22 = vpop.f32.mrb[12].mxu0  ;;  %v7494_v23 = vpop.f32.mrb[12].mxu1  ;;  %v6657_v34 = vrot.slane %v1293_v11, 9  ;;  %v832_v39 = vrot.slane %v818_v18, %v7367_v12  ;;  %v2531_v48 = vmax.f32 %v7391_v40, %v6660_v0 }
  0xfa   :  { %13492 = vst [vmem:[#allocation15_spill] sm:$0xff] %v7494_v23  ;;  %v3878_v24 = vsel %vm3877_vm6, %v3380_v54, %v3876_v36  ;;  %v7499_v52 = vpop.f32.mrb[13].mxu0  ;;  %v7501_v26 = vpop.f32.mrb[13].mxu1  ;;  %v2532_v50 = vmax.f32 %v1310_v47, %v6661_v5  ;;  %v833_v53 = vcombine.high %v825_v20, %v825_v20  ;;  %v7509_v54 = vmax.f32 %v7395_v41, %v6654_v9 }
  0xfb   :  { %13493 = vst [vmem:[#allocation16_spill] sm:$0xff] %v7501_v26  ;;  %v3880_v25 = vsel %vm3879_vm7, %v3384_v38, %v3878_v24  ;;  %v7511_v45 = vmax.f32 %v1291_v1, %v6656_v15  ;;  %v834_v59 = vcombine.high %v832_v39, %v832_v39  ;;  %v7513_v62 = vmax.f32 %v1292_v8, %v6655_v19 }
  0xfc   :  { %v7506_v58 = vsel %vm3881_vm8, %v3388_v55, %v3880_v25  ;;  %v6602_v63 = vrot.slane %v825_v20, 9  ;;  %v1328_v4 = vcombine.high %v7382_v31, %v7382_v31  ;;  %v1335_v40 = vrot.slane %v7382_v31, %v7367_v12 }
  0xfd   :  { %v7519_v47 = vpop.f32.mrb[14].mxu0  ;;  %v7521_v38 = vpop.f32.mrb[14].mxu1  ;;  %v7523_v55 = vmax.f32 %v1293_v11, %v6657_v34  ;;  %v6604_v41 = vrot.slane %v832_v39, 9  ;;  %v801_v0 = vcombine.high %v7409_v56, %v7409_v56  ;;  %v808_v1 = vrot.slane %v7409_v56, %v7367_v12 }
  0xfe   :  { %13494 = vst [vmem:[#allocation17_spill] sm:$0xff] %v7521_v38  ;;  %v7529_v5 = vpop.f32.mrb[15].mxu0  ;;  %v7531_v8 = vpop.f32.mrb[15].mxu1  ;;  %v6603_v9 = vrot.slane %v833_v53, 9  ;;  %v1342_v31 = vrot.slane %v1328_v4, %v7367_v12  ;;  %v1343_v10 = vcombine.high %v1335_v40, %v1335_v40  ;;  %v6786_v15 = vrot.slane %v1335_v40, 9 }
  0xff   :  { %13495 = vst [vmem:[#allocation18_spill] sm:$0xff] %v7531_v8  ;;  %v6605_v18 = vrot.slane %v834_v59, 9  ;;  %v815_v11 = vrot.slane %v801_v0, %v7367_v12  ;;  %v816_v36 = vcombine.high %v808_v1, %v808_v1  ;;  %v6598_v19 = vrot.slane %v808_v1, 9 }
 0x100   :  { %v1344_v24 = vcombine.high %v1342_v31, %v1342_v31  ;;  %v6787_v34 = vrot.slane %v1343_v10, 9  ;;  %v6788_v25 = vrot.slane %v1342_v31, 9  ;;  %v3041_v35 = vmax.f32 %v1335_v40, %v6786_v15 }
 0x101   :  { %v7535_v21 = vpop.f32.mrb[16].mxu0  ;;  %v2473_v56 = vmax.f32 %v825_v20, %v6602_v63  ;;  %v817_v27 = vcombine.high %v815_v11, %v815_v11  ;;  %v6599_v49 = vrot.slane %v816_v36, 9  ;;  %v6600_v16 = vrot.slane %v815_v11, 9  ;;  %v7539_v4 = vpop.f32.mrb[16].mxu1 }
 0x102   :  { %13496 = vst [vmem:[#allocation19_spill] sm:$0xff] %v7535_v21  ;;  %v7537_v43 = vpop.f32.mrb[17].mxu0  ;;  %13498 = vst [vmem:[#allocation21_spill] sm:$0xff] %v7539_v4  ;;  %v6789_v42 = vrot.slane %v1344_v24, 9  ;;  %v3042_v29 = vmax.f32 %v1343_v10, %v6787_v34  ;;  %v3043_v8 = vmax.f32 %v1342_v31, %v6788_v25  ;;  %v7541_v0 = vmax.f32 %v2529_v17, %v3041_v35  ;;  %v7543_v38 = vpop.f32.mrb[17].mxu1 }
 0x103   :  { %13497 = vst [vmem:[#allocation20_spill] sm:$0xff] %v7537_v43  ;;  %13500 = vst [vmem:[#allocation23_spill] sm:$0xff] %v7543_v38  ;;  %v2474_v26 = vmax.f32 %v833_v53, %v6603_v9  ;;  %v2475_v23 = vmax.f32 %v832_v39, %v6604_v41  ;;  %v2476_v40 = vmax.f32 %v834_v59, %v6605_v18  ;;  %v6601_v31 = vrot.slane %v817_v27, 9 }
 0x104   :  { %13499 = vst [vmem:[#allocation22_spill] sm:$0xff] %v7541_v0  ;;  %v1311_v20 = vcombine.high %v7386_v37, %v7386_v37  ;;  %v3044_v63 = vmax.f32 %v1344_v24, %v6789_v42  ;;  %v7547_v15 = vmax.f32 %v2530_v28, %v3042_v29  ;;  %v7549_v21 = vmax.f32 %v2531_v48, %v3043_v8 }
 0x105   :  { %v7551_v43 = vmax.f32 %v808_v1, %v6598_v19  ;;  %v7553_v4 = vpop.f32.mrb[18].mxu0  ;;  %v1318_v35 = vrot.slane %v7386_v37, %v7367_v12  ;;  %v852_v39 = vcombine.high %v7414_v6, %v7414_v6  ;;  %v7564_v29 = vmax.f32 %v816_v36, %v6599_v49 }
 0x106   :  { %13501 = vst [vmem:[#allocation24_spill] sm:$0xff] %v7547_v15  ;;  %13502 = vst [vmem:[#allocation25_spill] sm:$0xff] %v7549_v21  ;;  %v1325_v17 = vrot.slane %v1311_v20, %v7367_v12  ;;  %v7560_v53 = vpop.f32.mrb[19].mxu0  ;;  %v7562_v42 = vmax.f32 %v2532_v50, %v3044_v63  ;;  %v7566_v28 = vmax.f32 %v815_v11, %v6600_v16 }
 0x107   :  { %13503 = vst [vmem:[#allocation26_spill] sm:$0xff] %v7553_v4  ;;  %13504 = vst [vmem:[#allocation27_spill] sm:$0xff] %v7560_v53  ;;  %v859_v48 = vrot.slane %v7414_v6, %v7367_v12  ;;  %v1326_v59 = vcombine.high %v1318_v35, %v1318_v35  ;;  %v6782_v1 = vrot.slane %v1318_v35, 9  ;;  %v3632_v8 = vrot.slane %v7541_v0, %v7380_v30 }
 0x108   :  { %13505 = vst [vmem:[#allocation28_spill] sm:$0xff] %v7562_v42  ;;  %v1327_v41 = vcombine.high %v1325_v17, %v1325_v17  ;;  %v6784_v37 = vrot.slane %v1325_v17, 9  ;;  %v866_v9 = vrot.slane %v852_v39, %v7367_v12  ;;  %v2472_v4 = vmax.f32 %v817_v27, %v6601_v31  ;;  %v7605_v31 = vpop.f32.mrb[18].mxu1 }
 0x109   :  { %v867_v10 = vcombine.high %v859_v48, %v859_v48  ;;  %v6730_v18 = vrot.slane %v859_v48, 9  ;;  %v7573_v50 = vpop.f32.mrb[20].mxu0  ;;  %v6783_v49 = vrot.slane %v1326_v59, 9  ;;  %v3037_v16 = vmax.f32 %v1318_v35, %v6782_v1 }
 0x10a   :  { %13506 = vst [vmem:[#allocation29_spill] sm:$0xff] %v7573_v50  ;;  %v6785_v36 = vrot.slane %v1327_v41, 9  ;;  %v3039_v11 = vmax.f32 %v1325_v17, %v6784_v37  ;;  %v868_v19 = vcombine.high %v866_v9, %v866_v9  ;;  %v6732_v6 = vrot.slane %v866_v9, 9  ;;  %v7615_v1 = vpop.f32.mrb[21].mxu0 }
 0x10b   :  { %v6731_v24 = vrot.slane %v867_v10, 9  ;;  %v2985_v34 = vmax.f32 %v859_v48, %v6730_v18  ;;  %v3038_v25 = vmax.f32 %v1326_v59, %v6783_v49  ;;  %v7576_v63 = vmax.f32 %v7509_v54, %v3037_v16 }
 0x10c   :  { %v3040_v20 = vmax.f32 %v1327_v41, %v6785_v36  ;;  %v7579_v0 = vmax.f32 %v7511_v45, %v3039_v11  ;;  %v6733_v39 = vrot.slane %v868_v19, 9  ;;  %v2987_v53 = vmax.f32 %v866_v9, %v6732_v6 }
 0x10d   :  { %13507 = vst [vmem:[#allocation30_spill] sm:$0xff] %v7576_v63  ;;  %v2986_v38 = vmax.f32 %v867_v10, %v6731_v24  ;;  %v7581_v50 = vmax.f32 %v2473_v56, %v2985_v34  ;;  %v7584_v35 = vmax.f32 %v7513_v62, %v3038_v25  ;;  %v3616_v48 = vrot.slane %v7576_v63, %v7380_v30 }
 0x10e   :  { %13508 = vst [vmem:[#allocation31_spill] sm:$0xff] %v7579_v0  ;;  %v7587_v17 = vmax.f32 %v7523_v55, %v3040_v20  ;;  %v3624_v54 = vrot.slane %v7579_v0, %v7380_v30  ;;  %v2988_v45 = vmax.f32 %v868_v19, %v6733_v39  ;;  %v7595_v41 = vmax.f32 %v2475_v23, %v2987_v53 }
 0x10f   :  { %13509 = vst [vmem:[#allocation32_spill] sm:$0xff] %v7581_v50  ;;  %13510 = vst [vmem:[#allocation33_spill] sm:$0xff] %v7584_v35  ;;  %v7593_v59 = vmax.f32 %v2474_v26, %v2986_v38  ;;  %v3620_v27 = vrot.slane %v7584_v35, %v7380_v30  ;;  %v835_v55 = vcombine.high %v7418_v13, %v7418_v13 }
 0x110   :  { %13511 = vst [vmem:[#allocation34_spill] sm:$0xff] %v7587_v17  ;;  %13513 = vst [vmem:[#allocation36_spill] sm:$0xff] %v7595_v41  ;;  %v3628_v62 = vrot.slane %v7587_v17, %v7380_v30  ;;  %v842_v56 = vrot.slane %v7418_v13, %v7367_v12  ;;  %v3636_v26 = vrot.slane %v7547_v15, %v7380_v30 }
 0x111   :  { %13512 = vst [vmem:[#allocation35_spill] sm:$0xff] %v7593_v59  ;;  %v3640_v23 = vrot.slane %v7549_v21, %v7380_v30  ;;  %v7611_v38 = vmax.f32 %v2476_v40, %v2988_v45  ;;  %v1362_v53 = vcombine.high %v7405_v51, %v7405_v51  ;;  %v3932_v37 = vsel %vm3869_vm2, %v3620_v27, %v3616_v48  ;;  %v7674_v21 = vpop.f32.mrb[22].mxu0 }
 0x112   :  { %v849_v9 = vrot.slane %v835_v55, %v7367_v12  ;;  %v850_v13 = vcombine.high %v842_v56, %v842_v56  ;;  %v6726_v10 = vrot.slane %v842_v56, 9  ;;  %v3644_v18 = vrot.slane %v7562_v42, %v7380_v30 }
 0x113   :  { %13514 = vst [vmem:[#allocation37_spill] sm:$0xff] %v7611_v38  ;;  %v3933_v49 = vsel %vm3871_vm3, %v3624_v54, %v3932_v37  ;;  %v1369_v40 = vrot.slane %v7405_v51, %v7367_v12  ;;  %v1376_v36 = vrot.slane %v1362_v53, %v7367_v12  ;;  %v3408_v34 = vrot.slane %v7581_v50, %v7380_v30 }
 0x114   :  { %v3934_v16 = vsel %vm3873_vm4, %v3628_v62, %v3933_v49  ;;  %v851_v11 = vcombine.high %v849_v9, %v849_v9  ;;  %v6727_v19 = vrot.slane %v850_v13, 9  ;;  %v6728_v24 = vrot.slane %v849_v9, 9 }
 0x115   :  { %v3935_v6 = vsel %vm3875_vm5, %v3632_v8, %v3934_v16  ;;  %v2981_v25 = vmax.f32 %v842_v56, %v6726_v10  ;;  %v1377_v20 = vcombine.high %v1369_v40, %v1369_v40  ;;  %v3412_v27 = vrot.slane %v7593_v59, %v7380_v30  ;;  %v7636_v8 = vpop.f32.mrb[19].mxu1 }
 0x116   :  { %v3936_v39 = vsel %vm3877_vm6, %v3636_v26, %v3935_v6  ;;  %v6729_v48 = vrot.slane %v851_v11, 9  ;;  %v2982_v54 = vmax.f32 %v850_v13, %v6727_v19  ;;  %v2983_v45 = vmax.f32 %v849_v9, %v6728_v24 }
 0x117   :  { %v3937_v51 = vsel %vm3879_vm7, %v3640_v23, %v3936_v39  ;;  %v7634_v62 = vmax.f32 %v7551_v43, %v2981_v25  ;;  %v1378_v55 = vcombine.high %v1376_v36, %v1376_v36  ;;  %v3416_v23 = vrot.slane %v7595_v41, %v7380_v30 }
 0x118   :  { %v7639_v53 = vsel %vm3881_vm8, %v3644_v18, %v3937_v51  ;;  %v2984_v56 = vmax.f32 %v851_v11, %v6729_v48  ;;  %v7642_v26 = vmax.f32 %v7564_v29, %v2982_v54  ;;  %v7645_v37 = vmax.f32 %v7566_v28, %v2983_v45 }
 0x119   :  { %13515 = vst [vmem:[#allocation38_spill] sm:$0xff] %v7634_v62  ;;  %13516 = vst [vmem:[#allocation39_spill] sm:$0xff] %v7639_v53  ;;  %v3420_v43 = vrot.slane %v7611_v38, %v7380_v30  ;;  %v6666_v9 = vrot.slane %v1369_v40, 9  ;;  %v6667_v13 = vrot.slane %v1377_v20, 9  ;;  %v3392_v18 = vrot.slane %v7634_v62, %v7380_v30 }
 0x11a   :  { %13517 = vst [vmem:[#allocation40_spill] sm:$0xff] %v7642_v26  ;;  %13518 = vst [vmem:[#allocation41_spill] sm:$0xff] %v7645_v37  ;;  %v7651_v10 = vmax.f32 %v2472_v4, %v2984_v56  ;;  %v3396_v29 = vrot.slane %v7642_v26, %v7380_v30  ;;  %v3400_v28 = vrot.slane %v7645_v37, %v7380_v30  ;;  %v6668_v49 = vrot.slane %v1376_v36, 9 }
 0x11b   :  { %v6669_v16 = vrot.slane %v1378_v55, 9  ;;  %v1345_v11 = vcombine.high %v7411_v57, %v7411_v57  ;;  %v1352_v19 = vrot.slane %v7411_v57, %v7367_v12  ;;  %v886_v6 = vcombine.high %v7431_v32, %v7431_v32 }
 0x11c   :  { %13519 = vst [vmem:[#allocation42_spill] sm:$0xff] %v7651_v10  ;;  %v3404_v4 = vrot.slane %v7651_v10, %v7380_v30  ;;  %v3883_v24 = vsel %vm3869_vm2, %v3396_v29, %v3392_v18  ;;  %v893_v25 = vrot.slane %v7431_v32, %v7367_v12  ;;  %v2537_v48 = vmax.f32 %v1369_v40, %v6666_v9 }
 0x11d   :  { %v3884_v39 = vsel %vm3871_vm3, %v3400_v28, %v3883_v24  ;;  %v1359_v54 = vrot.slane %v1345_v11, %v7367_v12  ;;  %v1360_v45 = vcombine.high %v1352_v19, %v1352_v19  ;;  %v6662_v57 = vrot.slane %v1352_v19, 9  ;;  %v7678_v11 = vpop.f32.mrb[23].mxu0 }
 0x11e   :  { %v3885_v51 = vsel %vm3873_vm4, %v3404_v4, %v3884_v39  ;;  %v900_v56 = vrot.slane %v886_v6, %v7367_v12  ;;  %v901_v42 = vcombine.high %v893_v25, %v893_v25  ;;  %v2538_v28 = vmax.f32 %v1377_v20, %v6667_v13 }
 0x11f   :  { %v3886_v18 = vsel %vm3875_vm5, %v3408_v34, %v3885_v51  ;;  %v1361_v29 = vcombine.high %v1359_v54, %v1359_v54  ;;  %v6663_v15 = vrot.slane %v1360_v45, 9  ;;  %v6664_v17 = vrot.slane %v1359_v54, 9 }
 0x120   :  { %v3887_v32 = vsel %vm3877_vm6, %v3412_v27, %v3886_v18  ;;  %v902_v40 = vcombine.high %v900_v56, %v900_v56  ;;  %v6610_v9 = vrot.slane %v893_v25, 9  ;;  %v2539_v24 = vmax.f32 %v1376_v36, %v6668_v49 }
 0x121   :  { %v3888_v4 = vsel %vm3879_vm7, %v3416_v23, %v3887_v32  ;;  %v6665_v39 = vrot.slane %v1361_v29, 9  ;;  %v6611_v6 = vrot.slane %v901_v42, 9  ;;  %v2540_v35 = vmax.f32 %v1378_v55, %v6669_v16 }
 0x122   :  { %v3889_v0 = vsel %vm3881_vm8, %v3420_v43, %v3888_v4  ;;  %v2533_v63 = vmax.f32 %v1352_v19, %v6662_v57  ;;  %v7682_v34 = vmax.f32 %v1360_v45, %v6663_v15  ;;  %v7687_v27 = vmax.f32 %v1359_v54, %v6664_v17 }
 0x123   :  { %v7685_v51 = vadd.f32 %v3889_v0, %v7506_v58  ;;  %v6612_v20 = vrot.slane %v900_v56, 9  ;;  %v1396_v13 = vcombine.high %v7416_v7, %v7416_v7  ;;  %v6613_v18 = vrot.slane %v902_v40, 9 }
 0x124   :  { %v7691_v23 = vmax.f32 %v893_v25, %v6610_v9  ;;  %v1403_v36 = vrot.slane %v7416_v7, %v7367_v12  ;;  %v869_v55 = vcombine.high %v7439_v44, %v7439_v44  ;;  %v2536_v15 = vmax.f32 %v1361_v29, %v6665_v39 }
 0x125   :  { %v7697_v43 = vmax.f32 %v901_v42, %v6611_v6  ;;  %v1410_v58 = vrot.slane %v1396_v13, %v7367_v12  ;;  %v876_v0 = vrot.slane %v7439_v44, %v7367_v12  ;;  %v1379_v19 = vcombine.high %v7420_v14, %v7420_v14  ;;  %v7707_v42 = vpop.f32.mrb[20].mxu1 }
 0x126   :  { %v1411_v17 = vcombine.high %v1403_v36, %v1403_v36  ;;  %v6794_v49 = vrot.slane %v1403_v36, 9  ;;  %v883_v16 = vrot.slane %v869_v55, %v7367_v12  ;;  %v1386_v45 = vrot.slane %v7420_v14, %v7367_v12  ;;  %v7711_v9 = vpop.f32.mrb[21].mxu1 }
 0x127   :  { %v1412_v25 = vcombine.high %v1410_v58, %v1410_v58  ;;  %v6796_v7 = vrot.slane %v1410_v58, 9  ;;  %v884_v54 = vcombine.high %v876_v0, %v876_v0  ;;  %v6606_v44 = vrot.slane %v876_v0, 9 }
 0x128   :  { %v6795_v57 = vrot.slane %v1411_v17, 9  ;;  %v3049_v29 = vmax.f32 %v1403_v36, %v6794_v49  ;;  %v7709_v32 = vcombine.high %v883_v16, %v883_v16  ;;  %v2483_v4 = vmax.f32 %v900_v56, %v6612_v20 }
 0x129   :  { %v6797_v39 = vrot.slane %v1412_v25, 9  ;;  %v3051_v6 = vmax.f32 %v1410_v58, %v6796_v7  ;;  %v6608_v13 = vrot.slane %v883_v16, 9  ;;  %v2484_v55 = vmax.f32 %v902_v40, %v6613_v18 }
 0x12a   :  { %v3050_v38 = vmax.f32 %v1411_v17, %v6795_v57  ;;  %v7713_v41 = vmax.f32 %v2537_v48, %v3049_v29  ;;  %v6607_v59 = vrot.slane %v884_v54, 9  ;;  %v1393_v10 = vrot.slane %v1379_v19, %v7367_v12 }
 0x12b   :  { %v3052_v50 = vmax.f32 %v1412_v25, %v6797_v39  ;;  %v7715_v14 = vmax.f32 %v2539_v24, %v3051_v6  ;;  %v920_v36 = vcombine.high %v7465_v60, %v7465_v60  ;;  %v6609_v56 = vrot.slane %v7709_v32, 9 }
 0x12c   :  { %13520 = vst [vmem:[#allocation43_spill] sm:$0xff] %v7713_v41  ;;  %v7720_v49 = vmax.f32 %v2538_v28, %v3050_v38  ;;  %v7723_v20 = vmax.f32 %v876_v0, %v6606_v44  ;;  %v1394_v58 = vcombine.high %v1386_v45, %v1386_v45  ;;  %v7727_v48 = vmax.f32 %v883_v16, %v6608_v13  ;;  %v7736_v44 = vpop.f32.mrb[24].mxu0 }
 0x12d   :  { %13521 = vst [vmem:[#allocation44_spill] sm:$0xff] %v7715_v14  ;;  %v7725_v40 = vmax.f32 %v2540_v35, %v3052_v50  ;;  %v1395_v18 = vcombine.high %v1393_v10, %v1393_v10  ;;  %v6790_v17 = vrot.slane %v1386_v45, 9  ;;  %v7729_v24 = vmax.f32 %v884_v54, %v6607_v59 }
 0x12e   :  { %13522 = vst [vmem:[#allocation45_spill] sm:$0xff] %v7720_v49  ;;  %v6791_v25 = vrot.slane %v1394_v58, 9  ;;  %v6792_v19 = vrot.slane %v1393_v10, 9  ;;  %v927_v7 = vrot.slane %v7465_v60, %v7367_v12  ;;  %v3664_v38 = vrot.slane %v7713_v41, %v7380_v30 }
 0x12f   :  { %13523 = vst [vmem:[#allocation46_spill] sm:$0xff] %v7725_v40  ;;  %v6793_v28 = vrot.slane %v1395_v18, 9  ;;  %v3045_v0 = vmax.f32 %v1386_v45, %v6790_v17  ;;  %v934_v57 = vrot.slane %v920_v36, %v7367_v12 }
 0x130   :  { %v3046_v50 = vmax.f32 %v1394_v58, %v6791_v25  ;;  %v3047_v35 = vmax.f32 %v1393_v10, %v6792_v19  ;;  %v935_v16 = vcombine.high %v927_v7, %v927_v7  ;;  %v6738_v29 = vrot.slane %v927_v7, 9 }
 0x131   :  { %v3048_v59 = vmax.f32 %v1395_v18, %v6793_v28  ;;  %v7738_v54 = vmax.f32 %v2533_v63, %v3045_v0  ;;  %v936_v39 = vcombine.high %v934_v57, %v934_v57  ;;  %v6740_v6 = vrot.slane %v934_v57, 9  ;;  %v7763_v0 = vpop.f32.mrb[22].mxu1 }
 0x132   :  { %v7741_v60 = vmax.f32 %v7682_v34, %v3046_v50  ;;  %v7744_v13 = vmax.f32 %v7687_v27, %v3047_v35  ;;  %v6739_v45 = vrot.slane %v935_v16, 9  ;;  %v2993_v17 = vmax.f32 %v927_v7, %v6738_v29 }
 0x133   :  { %13524 = vst [vmem:[#allocation47_spill] sm:$0xff] %v7738_v54  ;;  %v7746_v36 = vmax.f32 %v2536_v15, %v3048_v59  ;;  %v3648_v10 = vrot.slane %v7738_v54, %v7380_v30  ;;  %v6741_v58 = vrot.slane %v936_v39, 9  ;;  %v2995_v25 = vmax.f32 %v934_v57, %v6740_v6 }
 0x134   :  { %13525 = vst [vmem:[#allocation48_spill] sm:$0xff] %v7741_v60  ;;  %13526 = vst [vmem:[#allocation49_spill] sm:$0xff] %v7744_v13  ;;  %v3652_v63 = vrot.slane %v7741_v60, %v7380_v30  ;;  %v3656_v18 = vrot.slane %v7744_v13, %v7380_v30  ;;  %v2994_v34 = vmax.f32 %v935_v16, %v6739_v45  ;;  %v7773_v16 = vpop.f32.mrb[25].mxu0 }
 0x135   :  { %13527 = vst [vmem:[#allocation50_spill] sm:$0xff] %v7746_v36  ;;  %v7755_v19 = vmax.f32 %v7691_v23, %v2993_v17  ;;  %v3660_v27 = vrot.slane %v7746_v36, %v7380_v30  ;;  %v2996_v15 = vmax.f32 %v936_v39, %v6741_v58  ;;  %v7759_v7 = vmax.f32 %v2483_v4, %v2995_v25  ;;  %v7837_v36 = vpop.f32.mrb[26].mxu0 }
 0x136   :  { %v903_v28 = vcombine.high %v7477_v2, %v7477_v2  ;;  %v3668_v57 = vrot.slane %v7720_v49, %v7380_v30  ;;  %v3939_v50 = vsel %vm3869_vm2, %v3652_v63, %v3648_v10  ;;  %v7769_v35 = vmax.f32 %v7697_v43, %v2994_v34 }
 0x137   :  { %13528 = vst [vmem:[#allocation51_spill] sm:$0xff] %v7755_v19  ;;  %13529 = vst [vmem:[#allocation52_spill] sm:$0xff] %v7759_v7  ;;  %v910_v23 = vrot.slane %v7477_v2, %v7367_v12  ;;  %v3672_v4 = vrot.slane %v7715_v14, %v7380_v30  ;;  %v3940_v29 = vsel %vm3871_vm3, %v3656_v18, %v3939_v50 }
 0x138   :  { %13530 = vst [vmem:[#allocation53_spill] sm:$0xff] %v7769_v35  ;;  %v7778_v59 = vmax.f32 %v2484_v55, %v2996_v15  ;;  %v917_v39 = vrot.slane %v903_v28, %v7367_v12  ;;  %v3676_v6 = vrot.slane %v7725_v40, %v7380_v30  ;;  %v3941_v43 = vsel %vm3873_vm4, %v3660_v27, %v3940_v29  ;;  %v7789_v15 = vpop.f32.mrb[23].mxu1 }
 0x139   :  { %v918_v45 = vcombine.high %v910_v23, %v910_v23  ;;  %v6734_v17 = vrot.slane %v910_v23, 9  ;;  %v2480_v2 = vmax.f32 %v7709_v32, %v6609_v56  ;;  %v3942_v10 = vsel %vm3875_vm5, %v3664_v38, %v3941_v43 }
 0x13a   :  { %13531 = vst [vmem:[#allocation54_spill] sm:$0xff] %v7778_v59  ;;  %v919_v58 = vcombine.high %v917_v39, %v917_v39  ;;  %v6736_v25 = vrot.slane %v917_v39, 9  ;;  %v3943_v63 = vsel %vm3877_vm6, %v3668_v57, %v3942_v10  ;;  %v1430_v34 = vcombine.high %v7433_v33, %v7433_v33 }
 0x13b   :  { %v6735_v18 = vrot.slane %v918_v45, 9  ;;  %v2989_v55 = vmax.f32 %v910_v23, %v6734_v17  ;;  %v3944_v28 = vsel %vm3879_vm7, %v3672_v4, %v3943_v63  ;;  %v1437_v32 = vrot.slane %v7433_v33, %v7367_v12 }
 0x13c   :  { %v6737_v27 = vrot.slane %v919_v58, 9  ;;  %v2991_v50 = vmax.f32 %v917_v39, %v6736_v25  ;;  %v7795_v56 = vsel %vm3881_vm8, %v3676_v6, %v3944_v28  ;;  %v1444_v23 = vrot.slane %v1430_v34, %v7367_v12 }
 0x13d   :  { %13532 = vst [vmem:[#allocation55_spill] sm:$0xff] %v7795_v56  ;;  %v2990_v38 = vmax.f32 %v918_v45, %v6735_v18  ;;  %v7798_v57 = vmax.f32 %v7723_v20, %v2989_v55  ;;  %v3440_v29 = vrot.slane %v7755_v19, %v7380_v30  ;;  %v1445_v39 = vcombine.high %v1437_v32, %v1437_v32 }
 0x13e   :  { %v2992_v43 = vmax.f32 %v919_v58, %v6737_v27  ;;  %v7804_v4 = vmax.f32 %v7727_v48, %v2991_v50  ;;  %v3444_v33 = vrot.slane %v7769_v35, %v7380_v30  ;;  %v3448_v6 = vrot.slane %v7759_v7, %v7380_v30  ;;  %v7842_v35 = vpop.f32.mrb[27].mxu0 }
 0x13f   :  { %13533 = vst [vmem:[#allocation56_spill] sm:$0xff] %v7798_v57  ;;  %v7811_v45 = vmax.f32 %v7729_v24, %v2990_v38  ;;  %v1446_v20 = vcombine.high %v1444_v23, %v1444_v23  ;;  %v3452_v17 = vrot.slane %v7778_v59, %v7380_v30  ;;  %v6674_v58 = vrot.slane %v1437_v32, 9 }
 0x140   :  { %13534 = vst [vmem:[#allocation57_spill] sm:$0xff] %v7804_v4  ;;  %v7815_v10 = vmax.f32 %v2480_v2, %v2992_v43  ;;  %v3432_v48 = vrot.slane %v7804_v4, %v7380_v30  ;;  %v3424_v25 = vrot.slane %v7798_v57, %v7380_v30  ;;  %v6676_v18 = vrot.slane %v1444_v23, 9 }
 0x141   :  { %13535 = vst [vmem:[#allocation58_spill] sm:$0xff] %v7811_v45  ;;  %v3428_v63 = vrot.slane %v7811_v45, %v7380_v30  ;;  %v1413_v24 = vcombine.high %v7441_v46, %v7441_v46  ;;  %v6675_v34 = vrot.slane %v1445_v39, 9  ;;  %v1420_v2 = vrot.slane %v7441_v46, %v7367_v12 }
 0x142   :  { %13536 = vst [vmem:[#allocation59_spill] sm:$0xff] %v7815_v10  ;;  %v3436_v55 = vrot.slane %v7815_v10, %v7380_v30  ;;  %v954_v28 = vcombine.high %v7492_v22, %v7492_v22  ;;  %v6677_v50 = vrot.slane %v1446_v20, 9  ;;  %v961_v43 = vrot.slane %v7492_v22, %v7367_v12 }
 0x143   :  { %v3890_v27 = vsel %vm3869_vm2, %v3428_v63, %v3424_v25  ;;  %v1427_v38 = vrot.slane %v1413_v24, %v7367_v12  ;;  %v1428_v14 = vcombine.high %v1420_v2, %v1420_v2  ;;  %v6670_v49 = vrot.slane %v1420_v2, 9 }
 0x144   :  { %v3891_v40 = vsel %vm3871_vm3, %v3432_v48, %v3890_v27  ;;  %v968_v41 = vrot.slane %v954_v28, %v7367_v12  ;;  %v969_v54 = vcombine.high %v961_v43, %v961_v43  ;;  %v2545_v63 = vmax.f32 %v1437_v32, %v6674_v58 }
 0x145   :  { %v3892_v46 = vsel %vm3873_vm4, %v3436_v55, %v3891_v40  ;;  %v1429_v13 = vcombine.high %v1427_v38, %v1427_v38  ;;  %v6672_v60 = vrot.slane %v1427_v38, 9  ;;  %v2547_v24 = vmax.f32 %v1444_v23, %v6676_v18 }
 0x146   :  { %v3893_v25 = vsel %vm3875_vm5, %v3440_v29, %v3892_v46  ;;  %v6671_v59 = vrot.slane %v1428_v14, 9  ;;  %v2546_v7 = vmax.f32 %v1445_v39, %v6675_v34  ;;  %v970_v27 = vcombine.high %v968_v41, %v968_v41 }
 0x147   :  { %v3894_v22 = vsel %vm3877_vm6, %v3444_v33, %v3893_v25  ;;  %v6673_v48 = vrot.slane %v1429_v13, 9  ;;  %v2548_v19 = vmax.f32 %v1446_v20, %v6677_v50  ;;  %v6618_v10 = vrot.slane %v961_v43, 9 }
 0x148   :  { %v3895_v28 = vsel %vm3879_vm7, %v3448_v6, %v3894_v22  ;;  %v6619_v40 = vrot.slane %v969_v54, 9  ;;  %v2541_v4 = vmax.f32 %v1420_v2, %v6670_v49  ;;  %v2542_v45 = vmax.f32 %v1428_v14, %v6671_v59 }
 0x149   :  { %v3896_v55 = vsel %vm3881_vm8, %v3452_v17, %v3895_v28  ;;  %v7846_v29 = vmax.f32 %v1427_v38, %v6672_v60  ;;  %v7851_v23 = vmax.f32 %v1429_v13, %v6673_v48  ;;  %v6620_v39 = vrot.slane %v968_v41, 9 }
 0x14a   :  { %v7849_v32 = vadd.f32 %v7685_v51, %v3896_v55  ;;  %v1464_v33 = vcombine.high %v7467_v61, %v7467_v61  ;;  %v6621_v58 = vrot.slane %v970_v27, 9  ;;  %v1471_v6 = vrot.slane %v7467_v61, %v7367_v12 }
 0x14b   :  { %v937_v20 = vcombine.high %v7499_v52, %v7499_v52  ;;  %v944_v14 = vrot.slane %v7499_v52, %v7367_v12  ;;  %v7861_v49 = vmax.f32 %v961_v43, %v6618_v10  ;;  %v7863_v51 = vmax.f32 %v969_v54, %v6619_v40  ;;  %v7873_v10 = vpop.f32.mrb[24].mxu1 }
 0x14c   :  { %v1478_v60 = vrot.slane %v1464_v33, %v7367_v12  ;;  %v1447_v13 = vcombine.high %v7479_v3, %v7479_v3  ;;  %v1479_v59 = vcombine.high %v1471_v6, %v1471_v6  ;;  %v6802_v17 = vrot.slane %v1471_v6, 9  ;;  %v7880_v25 = vpop.f32.mrb[25].mxu1 }
 0x14d   :  { %v7869_v18 = vrot.slane %v937_v20, %v7367_v12  ;;  %v952_v61 = vcombine.high %v944_v14, %v944_v14  ;;  %v6614_v50 = vrot.slane %v944_v14, 9  ;;  %v1454_v52 = vrot.slane %v7479_v3, %v7367_v12 }
 0x14e   :  { %v1480_v34 = vcombine.high %v1478_v60, %v1478_v60  ;;  %v6804_v2 = vrot.slane %v1478_v60, 9  ;;  %v6803_v54 = vrot.slane %v1479_v59, 9  ;;  %v3057_v38 = vmax.f32 %v1471_v6, %v6802_v17 }
 0x14f   :  { %v7877_v43 = vcombine.high %v7869_v18, %v7869_v18  ;;  %v1461_v46 = vrot.slane %v1447_v13, %v7367_v12  ;;  %v2491_v22 = vmax.f32 %v968_v41, %v6620_v39  ;;  %v6615_v40 = vrot.slane %v952_v61, 9 }
 0x150   :  { %v6805_v48 = vrot.slane %v1480_v34, 9  ;;  %v3059_v28 = vmax.f32 %v1478_v60, %v6804_v2  ;;  %v2492_v55 = vmax.f32 %v970_v27, %v6621_v58  ;;  %v3058_v33 = vmax.f32 %v1479_v59, %v6803_v54 }
 0x151   :  { %v7882_v20 = vmax.f32 %v2545_v63, %v3057_v38  ;;  %v988_v3 = vcombine.high %v7519_v47, %v7519_v47  ;;  %v6616_v37 = vrot.slane %v7869_v18, 9  ;;  %v1462_v26 = vcombine.high %v1454_v52, %v1454_v52  ;;  %v7905_v38 = vpop.f32.mrb[28].mxu0 }
 0x152   :  { %v3060_v6 = vmax.f32 %v1480_v34, %v6805_v48  ;;  %v7886_v17 = vmax.f32 %v2547_v24, %v3059_v28  ;;  %v7889_v13 = vmax.f32 %v2546_v7, %v3058_v33  ;;  %v6617_v41 = vrot.slane %v7877_v43, 9 }
 0x153   :  { %13537 = vst [vmem:[#allocation60_spill] sm:$0xff] %v7882_v20  ;;  %v7892_v39 = vmax.f32 %v944_v14, %v6614_v50  ;;  %v1463_v60 = vcombine.high %v1461_v46, %v1461_v46  ;;  %v7896_v63 = vmax.f32 %v952_v61, %v6615_v40  ;;  %v6798_v58 = vrot.slane %v1454_v52, 9 }
 0x154   :  { %13538 = vst [vmem:[#allocation61_spill] sm:$0xff] %v7886_v17  ;;  %13539 = vst [vmem:[#allocation62_spill] sm:$0xff] %v7889_v13  ;;  %v7894_v27 = vmax.f32 %v2548_v19, %v3060_v6  ;;  %v6799_v59 = vrot.slane %v1462_v26, 9  ;;  %v3696_v24 = vrot.slane %v7882_v20, %v7380_v30  ;;  %v6800_v34 = vrot.slane %v1461_v46, 9 }
 0x155   :  { %v6801_v2 = vrot.slane %v1463_v60, 9  ;;  %v995_v7 = vrot.slane %v7519_v47, %v7367_v12  ;;  %v3700_v54 = vrot.slane %v7889_v13, %v7380_v30  ;;  %v3053_v14 = vmax.f32 %v1454_v52, %v6798_v58 }
 0x156   :  { %13540 = vst [vmem:[#allocation63_spill] sm:$0xff] %v7894_v27  ;;  %v3054_v50 = vmax.f32 %v1462_v26, %v6799_v59  ;;  %v1002_v19 = vrot.slane %v988_v3, %v7367_v12  ;;  %v3055_v61 = vmax.f32 %v1461_v46, %v6800_v34 }
 0x157   :  { %v3056_v48 = vmax.f32 %v1463_v60, %v6801_v2  ;;  %v1003_v28 = vcombine.high %v995_v7, %v995_v7  ;;  %v6746_v40 = vrot.slane %v995_v7, 9  ;;  %v7907_v33 = vmax.f32 %v2541_v4, %v3053_v14 }
 0x158   :  { %v7909_v6 = vmax.f32 %v2542_v45, %v3054_v50  ;;  %v1004_v20 = vcombine.high %v1002_v19, %v1002_v19  ;;  %v6748_v57 = vrot.slane %v1002_v19, 9  ;;  %v7912_v47 = vmax.f32 %v7846_v29, %v3055_v61  ;;  %v7933_v50 = vpop.f32.mrb[26].mxu1 }
 0x159   :  { %13541 = vst [vmem:[#allocation64_spill] sm:$0xff] %v7907_v33  ;;  %v7915_v52 = vmax.f32 %v7851_v23, %v3056_v48  ;;  %v6747_v26 = vrot.slane %v1003_v28, 9  ;;  %v3001_v3 = vmax.f32 %v995_v7, %v6746_v40  ;;  %v3680_v46 = vrot.slane %v7907_v33, %v7380_v30  ;;  %v7943_v48 = vpop.f32.mrb[29].mxu0 }
 0x15a   :  { %13542 = vst [vmem:[#allocation65_spill] sm:$0xff] %v7909_v6  ;;  %13543 = vst [vmem:[#allocation66_spill] sm:$0xff] %v7912_v47  ;;  %v3684_v60 = vrot.slane %v7909_v6, %v7380_v30  ;;  %v6749_v4 = vrot.slane %v1004_v20, 9  ;;  %v3003_v58 = vmax.f32 %v1002_v19, %v6748_v57  ;;  %v3688_v45 = vrot.slane %v7912_v47, %v7380_v30  ;;  %v8003_v6 = vpop.f32.mrb[30].mxu0 }
 0x15b   :  { %13544 = vst [vmem:[#allocation67_spill] sm:$0xff] %v7915_v52  ;;  %v3692_v29 = vrot.slane %v7915_v52, %v7380_v30  ;;  %v3002_v59 = vmax.f32 %v1003_v28, %v6747_v26  ;;  %v7926_v23 = vmax.f32 %v7861_v49, %v3001_v3  ;;  %v971_v14 = vcombine.high %v7529_v5, %v7529_v5 }
 0x15c   :  { %v3946_v34 = vsel %vm3869_vm2, %v3684_v60, %v3680_v46  ;;  %v3004_v2 = vmax.f32 %v1004_v20, %v6749_v4  ;;  %v7929_v7 = vmax.f32 %v2491_v22, %v3003_v58  ;;  %v3704_v57 = vrot.slane %v7886_v17, %v7380_v30 }
 0x15d   :  { %13545 = vst [vmem:[#allocation68_spill] sm:$0xff] %v7926_v23  ;;  %v3947_v19 = vsel %vm3871_vm3, %v3688_v45, %v3946_v34  ;;  %v7939_v61 = vmax.f32 %v7863_v51, %v3002_v59  ;;  %v978_v49 = vrot.slane %v7529_v5, %v7367_v12  ;;  %v3708_v22 = vrot.slane %v7894_v27, %v7380_v30 }
 0x15e   :  { %13546 = vst [vmem:[#allocation69_spill] sm:$0xff] %v7929_v7  ;;  %v3948_v20 = vsel %vm3873_vm4, %v3692_v29, %v3947_v19  ;;  %v7948_v28 = vmax.f32 %v2492_v55, %v3004_v2  ;;  %v985_v40 = vrot.slane %v971_v14, %v7367_v12  ;;  %v2487_v26 = vmax.f32 %v7869_v18, %v6616_v37  ;;  %v13549_v55 = vld [vmem:[#allocation15_spill] sm:$0xff] }
 0x15f   :  { %13547 = vst [vmem:[#allocation70_spill] sm:$0xff] %v7939_v61  ;;  %v3949_v3 = vsel %vm3875_vm5, %v3696_v24, %v3948_v20  ;;  %v986_v51 = vcombine.high %v978_v49, %v978_v49  ;;  %v6742_v46 = vrot.slane %v978_v49, 9  ;;  %v2488_v60 = vmax.f32 %v7877_v43, %v6617_v41  ;;  %v7963_v43 = vpop.f32.mrb[27].mxu1  ;;  %v13553_v20 = vld [vmem:[#allocation16_spill] sm:$0xff] }
 0x160   :  { %13548 = vst [vmem:[#allocation71_spill] sm:$0xff] %v7948_v28  ;;  %v3950_v5 = vsel %vm3877_vm6, %v3700_v54, %v3949_v3  ;;  %v987_v4 = vcombine.high %v985_v40, %v985_v40  ;;  %v6744_v58 = vrot.slane %v985_v40, 9  ;;  %v1498_v34 = vcombine.high %v13549_v55, %v13549_v55 }
 0x161   :  { %v3951_v45 = vsel %vm3879_vm7, %v3704_v57, %v3950_v5  ;;  %v6743_v59 = vrot.slane %v986_v51, 9  ;;  %v2997_v29 = vmax.f32 %v978_v49, %v6742_v46  ;;  %v1505_v24 = vrot.slane %v13549_v55, %v7367_v12 }
 0x162   :  { %v7959_v2 = vsel %vm3881_vm8, %v3708_v22, %v3951_v45  ;;  %v6745_v37 = vrot.slane %v987_v4, 9  ;;  %v2999_v18 = vmax.f32 %v985_v40, %v6744_v58  ;;  %v3472_v41 = vrot.slane %v7926_v23, %v7380_v30 }
 0x163   :  { %13550 = vst [vmem:[#allocation15_spill] sm:$0xff] %v7959_v2  ;;  %v2998_v54 = vmax.f32 %v986_v51, %v6743_v59  ;;  %v7968_v14 = vmax.f32 %v7892_v39, %v2997_v29  ;;  %v1512_v57 = vrot.slane %v1498_v34, %v7367_v12  ;;  %v1513_v22 = vcombine.high %v1505_v24, %v1505_v24 }
 0x164   :  { %v3000_v19 = vmax.f32 %v987_v4, %v6745_v37  ;;  %v7971_v49 = vmax.f32 %v2487_v26, %v2999_v18  ;;  %v1481_v40 = vcombine.high %v13553_v20, %v13553_v20  ;;  %v3476_v3 = vrot.slane %v7939_v61, %v7380_v30  ;;  %v13556_v37 = vld [vmem:[#allocation19_spill] sm:$0xff] }
 0x165   :  { %13551 = vst [vmem:[#allocation72_spill] sm:$0xff] %v7968_v14  ;;  %v3480_v46 = vrot.slane %v7929_v7, %v7380_v30  ;;  %v7980_v51 = vmax.f32 %v7896_v63, %v2998_v54  ;;  %v1514_v39 = vcombine.high %v1512_v57, %v1512_v57  ;;  %v3484_v5 = vrot.slane %v7948_v28, %v7380_v30 }
 0x166   :  { %13552 = vst [vmem:[#allocation73_spill] sm:$0xff] %v7971_v49  ;;  %v7984_v4 = vmax.f32 %v2488_v60, %v3000_v19  ;;  %v3464_v26 = vrot.slane %v7971_v49, %v7380_v30  ;;  %v6682_v58 = vrot.slane %v1505_v24, 9  ;;  %v3456_v45 = vrot.slane %v7968_v14, %v7380_v30  ;;  %13557 = vst [vmem:[#allocation19_spill] sm:$0xff] %v8003_v6 }
 0x167   :  { %13554 = vst [vmem:[#allocation16_spill] sm:$0xff] %v7980_v51  ;;  %v3460_v59 = vrot.slane %v7980_v51, %v7380_v30  ;;  %v6684_v29 = vrot.slane %v1512_v57, 9  ;;  %v1488_v63 = vrot.slane %v13553_v20, %v7367_v12  ;;  %v6683_v34 = vrot.slane %v1513_v22, 9  ;;  %v8009_v51 = vpop.f32.mrb[31].mxu0 }
 0x168   :  { %13555 = vst [vmem:[#allocation74_spill] sm:$0xff] %v7984_v4  ;;  %v3468_v55 = vrot.slane %v7984_v4, %v7380_v30  ;;  %v1495_v60 = vrot.slane %v1481_v40, %v7367_v12  ;;  %v1022_v18 = vcombine.high %v13556_v37, %v13556_v37  ;;  %v6685_v19 = vrot.slane %v1514_v39, 9  ;;  %13558 = vst [vmem:[#allocation75_spill] sm:$0xff] %v8009_v51 }
 0x169   :  { %v3897_v54 = vsel %vm3869_vm2, %v3460_v59, %v3456_v45  ;;  %v1496_v27 = vcombine.high %v1488_v63, %v1488_v63  ;;  %v6678_v17 = vrot.slane %v1488_v63, 9  ;;  %v1029_v20 = vrot.slane %v13556_v37, %v7367_v12 }
 0x16a   :  { %v3898_v13 = vsel %vm3871_vm3, %v3464_v26, %v3897_v54  ;;  %v1497_v52 = vcombine.high %v1495_v60, %v1495_v60  ;;  %v6680_v47 = vrot.slane %v1495_v60, 9  ;;  %v2553_v40 = vmax.f32 %v1505_v24, %v6682_v58 }
 0x16b   :  { %v3899_v33 = vsel %vm3873_vm4, %v3468_v55, %v3898_v13  ;;  %v6679_v28 = vrot.slane %v1496_v27, 9  ;;  %v1036_v7 = vrot.slane %v1022_v18, %v7367_v12  ;;  %v2555_v59 = vmax.f32 %v1512_v57, %v6684_v29  ;;  %v13559_v57 = vld [vmem:[#allocation17_spill] sm:$0xff] }
 0x16c   :  { %v3900_v45 = vsel %vm3875_vm5, %v3472_v41, %v3899_v33  ;;  %v6681_v61 = vrot.slane %v1497_v52, 9  ;;  %v1037_v23 = vcombine.high %v1029_v20, %v1029_v20  ;;  %v2554_v54 = vmax.f32 %v1513_v22, %v6683_v34 }
 0x16d   :  { %v3901_v26 = vsel %vm3877_vm6, %v3476_v3, %v3900_v45  ;;  %v2556_v4 = vmax.f32 %v1514_v39, %v6685_v19  ;;  %v1038_v49 = vcombine.high %v1036_v7, %v1036_v7  ;;  %v8012_v14 = vmax.f32 %v1488_v63, %v6678_v17  ;;  %v13560_v63 = vld [vmem:[#allocation20_spill] sm:$0xff] }
 0x16e   :  { %v3902_v37 = vsel %vm3879_vm7, %v3480_v46, %v3901_v26  ;;  %v8014_v13 = vmax.f32 %v1495_v60, %v6680_v47  ;;  %v6626_v24 = vrot.slane %v1029_v20, 9  ;;  %v8017_v33 = vmax.f32 %v1496_v27, %v6679_v28 }
 0x16f   :  { %v3903_v58 = vsel %vm3881_vm8, %v3484_v5, %v3902_v37  ;;  %v8019_v41 = vmax.f32 %v1497_v52, %v6681_v61  ;;  %v1532_v22 = vcombine.high %v13559_v57, %v13559_v57  ;;  %v6627_v39 = vrot.slane %v1037_v23, 9 }
 0x170   :  { %v8024_v3 = vadd.f32 %v7849_v32, %v3903_v58  ;;  %v6628_v29 = vrot.slane %v1036_v7, 9  ;;  %v1539_v17 = vrot.slane %v13559_v57, %v7367_v12  ;;  %v6629_v47 = vrot.slane %v1038_v49, 9  ;;  %v13561_v32 = vld [vmem:[#allocation18_spill] sm:$0xff] }
 0x171   :  { %v1546_v46 = vrot.slane %v1532_v22, %v7367_v12  ;;  %v1005_v27 = vcombine.high %v13560_v63, %v13560_v63  ;;  %v1012_v52 = vrot.slane %v13560_v63, %v7367_v12  ;;  %v8033_v61 = vmax.f32 %v1029_v20, %v6626_v24  ;;  %v8044_v20 = vpop.f32.mrb[28].mxu1 }
 0x172   :  { %v1547_v28 = vcombine.high %v1539_v17, %v1539_v17  ;;  %v6810_v5 = vrot.slane %v1539_v17, 9  ;;  %v1515_v55 = vcombine.high %v13561_v32, %v13561_v32  ;;  %v1522_v58 = vrot.slane %v13561_v32, %v7367_v12  ;;  %13562 = vst [vmem:[#allocation17_spill] sm:$0xff] %v8044_v20 }
 0x173   :  { %v1548_v34 = vcombine.high %v1546_v46, %v1546_v46  ;;  %v6812_v60 = vrot.slane %v1546_v46, 9  ;;  %v8038_v18 = vrot.slane %v1005_v27, %v7367_v12  ;;  %v8040_v19 = vcombine.high %v1012_v52, %v1012_v52  ;;  %v8051_v27 = vpop.f32.mrb[29].mxu1 }
 0x174   :  { %v6811_v45 = vrot.slane %v1547_v28, 9  ;;  %v3065_v26 = vmax.f32 %v1539_v17, %v6810_v5  ;;  %v6622_v37 = vrot.slane %v1012_v52, 9  ;;  %v1529_v63 = vrot.slane %v1515_v55, %v7367_v12  ;;  %13563 = vst [vmem:[#allocation20_spill] sm:$0xff] %v8051_v27 }
 0x175   :  { %v6813_v24 = vrot.slane %v1548_v34, 9  ;;  %v3067_v57 = vmax.f32 %v1546_v46, %v6812_v60  ;;  %v8048_v22 = vcombine.high %v8038_v18, %v8038_v18  ;;  %v2498_v62 = vmax.f32 %v1037_v23, %v6627_v39 }
 0x176   :  { %v2499_v2 = vmax.f32 %v1036_v7, %v6628_v29  ;;  %v3066_v56 = vmax.f32 %v1547_v28, %v6811_v45  ;;  %v8053_v17 = vmax.f32 %v2553_v40, %v3065_v26  ;;  %v2500_v5 = vmax.f32 %v1038_v49, %v6629_v47  ;;  %v13568_v47 = vld [vmem:[#allocation26_spill] sm:$0xff]  ;;  %v13569_v45 = vld [vmem:[#allocation27_spill] sm:$0xff] }
 0x177   :  { %v3068_v53 = vmax.f32 %v1548_v34, %v6813_v24  ;;  %v8055_v32 = vmax.f32 %v2555_v59, %v3067_v57  ;;  %v6623_v20 = vrot.slane %v8040_v19, 9  ;;  %v6624_v60 = vrot.slane %v8038_v18, 9 }
 0x178   :  { %13564 = vst [vmem:[#allocation18_spill] sm:$0xff] %v8053_v17  ;;  %v8058_v46 = vmax.f32 %v2554_v54, %v3066_v56  ;;  %v8061_v51 = vmax.f32 %v1012_v52, %v6622_v37  ;;  %v1530_v55 = vcombine.high %v1522_v58, %v1522_v58  ;;  %v3728_v23 = vrot.slane %v8053_v17, %v7380_v30  ;;  %v8078_v37 = vpop.f32.mrb[30].mxu1 }
 0x179   :  { %13565 = vst [vmem:[#allocation76_spill] sm:$0xff] %v8055_v32  ;;  %v8063_v6 = vmax.f32 %v2556_v4, %v3068_v53  ;;  %v6625_v7 = vrot.slane %v8048_v22, 9  ;;  %v1531_v49 = vcombine.high %v1529_v63, %v1529_v63  ;;  %v3736_v40 = vrot.slane %v8055_v32, %v7380_v30  ;;  %v8081_v17 = vpop.f32.mrb[31].mxu1 }
 0x17a   :  { %13566 = vst [vmem:[#allocation77_spill] sm:$0xff] %v8058_v46  ;;  %v6806_v59 = vrot.slane %v1522_v58, 9  ;;  %v6807_v39 = vrot.slane %v1530_v55, 9  ;;  %v6808_v56 = vrot.slane %v1529_v63, 9  ;;  %v3732_v54 = vrot.slane %v8058_v46, %v7380_v30  ;;  %13570 = vst [vmem:[#allocation26_spill] sm:$0xff] %v8081_v17 }
 0x17b   :  { %13567 = vst [vmem:[#allocation78_spill] sm:$0xff] %v8063_v6  ;;  %v6809_v29 = vrot.slane %v1531_v49, 9  ;;  %v1056_v53 = vcombine.high %v13568_v47, %v13568_v47  ;;  %v1063_v4 = vrot.slane %v13568_v47, %v7367_v12  ;;  %v1039_v26 = vcombine.high %v13569_v45, %v13569_v45 }
 0x17c   :  { %v3061_v52 = vmax.f32 %v1522_v58, %v6806_v59  ;;  %v3062_v28 = vmax.f32 %v1530_v55, %v6807_v39  ;;  %v3063_v34 = vmax.f32 %v1529_v63, %v6808_v56  ;;  %v1046_v63 = vrot.slane %v13569_v45, %v7367_v12 }
 0x17d   :  { %v3064_v24 = vmax.f32 %v1531_v49, %v6809_v29  ;;  %v1070_v57 = vrot.slane %v1056_v53, %v7367_v12  ;;  %v1071_v32 = vcombine.high %v1063_v4, %v1063_v4  ;;  %v6754_v46 = vrot.slane %v1063_v4, 9 }
 0x17e   :  { %v8084_v27 = vmax.f32 %v8012_v14, %v3061_v52  ;;  %v8087_v47 = vmax.f32 %v8017_v33, %v3062_v28  ;;  %v8090_v58 = vmax.f32 %v8014_v13, %v3063_v34  ;;  %v1053_v45 = vrot.slane %v1039_v26, %v7367_v12 }
 0x17f   :  { %v8095_v55 = vmax.f32 %v8019_v41, %v3064_v24  ;;  %v1072_v49 = vcombine.high %v1070_v57, %v1070_v57  ;;  %v6755_v59 = vrot.slane %v1071_v32, 9  ;;  %v6756_v39 = vrot.slane %v1070_v57, 9 }
 0x180   :  { %13571 = vst [vmem:[#allocation27_spill] sm:$0xff] %v8084_v27  ;;  %13572 = vst [vmem:[#allocation79_spill] sm:$0xff] %v8087_v47  ;;  %v3712_v56 = vrot.slane %v8084_v27, %v7380_v30  ;;  %v3716_v14 = vrot.slane %v8087_v47, %v7380_v30  ;;  %v3720_v33 = vrot.slane %v8090_v58, %v7380_v30 }
 0x181   :  { %13573 = vst [vmem:[#allocation80_spill] sm:$0xff] %v8090_v58  ;;  %13574 = vst [vmem:[#allocation81_spill] sm:$0xff] %v8095_v55  ;;  %v3009_v13 = vmax.f32 %v1063_v4, %v6754_v46  ;;  %v3724_v29 = vrot.slane %v8095_v55, %v7380_v30  ;;  %v6757_v53 = vrot.slane %v1072_v49, 9  ;;  %v3010_v52 = vmax.f32 %v1071_v32, %v6755_v59 }
 0x182   :  { %v3011_v41 = vmax.f32 %v1070_v57, %v6756_v39  ;;  %v3953_v28 = vsel %vm3869_vm2, %v3716_v14, %v3712_v56  ;;  %v1054_v24 = vcombine.high %v1046_v63, %v1046_v63  ;;  %v3740_v4 = vrot.slane %v8063_v6, %v7380_v30  ;;  %v13582_v6 = vld [vmem:[#allocation29_spill] sm:$0xff] }
 0x183   :  { %v8107_v34 = vmax.f32 %v8033_v61, %v3009_v13  ;;  %v3954_v47 = vsel %vm3871_vm3, %v3720_v33, %v3953_v28  ;;  %v3012_v27 = vmax.f32 %v1072_v49, %v6757_v53  ;;  %v8111_v17 = vmax.f32 %v2498_v62, %v3010_v52 }
 0x184   :  { %v8113_v46 = vmax.f32 %v2499_v2, %v3011_v41  ;;  %v3955_v32 = vsel %vm3873_vm4, %v3724_v29, %v3954_v47  ;;  %v1055_v57 = vcombine.high %v1053_v45, %v1053_v45  ;;  %v6750_v59 = vrot.slane %v1046_v63, 9  ;;  %v13579_v29 = vld [vmem:[#allocation21_spill] sm:$0xff] }
 0x185   :  { %13575 = vst [vmem:[#allocation82_spill] sm:$0xff] %v8107_v34  ;;  %13576 = vst [vmem:[#allocation83_spill] sm:$0xff] %v8111_v17  ;;  %v2494_v61 = vmax.f32 %v8040_v19, %v6623_v20  ;;  %v2495_v39 = vmax.f32 %v8038_v18, %v6624_v60  ;;  %v3956_v26 = vsel %vm3875_vm5, %v3728_v23, %v3955_v32  ;;  %v6751_v49 = vrot.slane %v1054_v24, 9  ;;  %v13580_v23 = vld [vmem:[#allocation23_spill] sm:$0xff] }
 0x186   :  { %13577 = vst [vmem:[#allocation84_spill] sm:$0xff] %v8113_v46  ;;  %v8121_v56 = vmax.f32 %v2500_v5, %v3012_v27  ;;  %v3957_v62 = vsel %vm3877_vm6, %v3732_v54, %v3956_v26  ;;  %v6752_v2 = vrot.slane %v1053_v45, 9  ;;  %v6753_v14 = vrot.slane %v1055_v57, 9 }
 0x187   :  { %v2496_v33 = vmax.f32 %v8048_v22, %v6625_v7  ;;  %v3958_v13 = vsel %vm3879_vm7, %v3736_v40, %v3957_v62  ;;  %v3005_v47 = vmax.f32 %v1046_v63, %v6750_v59  ;;  %v1566_v53 = vcombine.high %v13579_v29, %v13579_v29 }
 0x188   :  { %13578 = vst [vmem:[#allocation85_spill] sm:$0xff] %v8121_v56  ;;  %v8129_v19 = vsel %vm3881_vm8, %v3740_v4, %v3958_v13  ;;  %v3006_v18 = vmax.f32 %v1054_v24, %v6751_v49  ;;  %v3007_v20 = vmax.f32 %v1053_v45, %v6752_v2  ;;  %v3008_v27 = vmax.f32 %v1055_v57, %v6753_v14 }
 0x189   :  { %v8132_v5 = vmax.f32 %v8061_v51, %v3005_v47  ;;  %v1573_v60 = vrot.slane %v13579_v29, %v7367_v12  ;;  %v1580_v22 = vrot.slane %v1566_v53, %v7367_v12  ;;  %v1549_v7 = vcombine.high %v13580_v23, %v13580_v23 }
 0x18a   :  { %v8139_v40 = vmax.f32 %v2494_v61, %v3006_v18  ;;  %v8141_v54 = vmax.f32 %v2495_v39, %v3007_v20  ;;  %v8143_v63 = vmax.f32 %v2496_v33, %v3008_v27  ;;  %v1556_v52 = vrot.slane %v13580_v23, %v7367_v12 }
 0x18b   :  { %v3488_v51 = vrot.slane %v8132_v5, %v7380_v30  ;;  %v1581_v41 = vcombine.high %v1573_v60, %v1573_v60  ;;  %v1582_v28 = vcombine.high %v1580_v22, %v1580_v22  ;;  %v6690_v45 = vrot.slane %v1573_v60, 9 }
 0x18c   :  { %13581 = vst [vmem:[#allocation21_spill] sm:$0xff] %v8143_v63  ;;  %v3492_v24 = vrot.slane %v8139_v40, %v7380_v30  ;;  %v3496_v4 = vrot.slane %v8141_v54, %v7380_v30  ;;  %v3500_v32 = vrot.slane %v8143_v63, %v7380_v30  ;;  %v6692_v57 = vrot.slane %v1580_v22, 9 }
 0x18d   :  { %v3504_v59 = vrot.slane %v8107_v34, %v7380_v30  ;;  %v3508_v61 = vrot.slane %v8111_v17, %v7380_v30  ;;  %v3512_v39 = vrot.slane %v8113_v46, %v7380_v30  ;;  %v1563_v26 = vrot.slane %v1549_v7, %v7367_v12 }
 0x18e   :  { %v3516_v62 = vrot.slane %v8121_v56, %v7380_v30  ;;  %v3904_v49 = vsel %vm3869_vm2, %v3492_v24, %v3488_v51  ;;  %v6691_v2 = vrot.slane %v1581_v41, 9  ;;  %v1564_v14 = vcombine.high %v1556_v52, %v1556_v52 }
 0x18f   :  { %v3905_v33 = vsel %vm3871_vm3, %v3496_v4, %v3904_v49  ;;  %v6693_v13 = vrot.slane %v1582_v28, 9  ;;  %v2561_v47 = vmax.f32 %v1573_v60, %v6690_v45  ;;  %v1565_v29 = vcombine.high %v1563_v26, %v1563_v26 }
 0x190   :  { %v3906_v53 = vsel %vm3873_vm4, %v3500_v32, %v3905_v33  ;;  %v2563_v18 = vmax.f32 %v1580_v22, %v6692_v57  ;;  %v6686_v20 = vrot.slane %v1556_v52, 9  ;;  %v6687_v27 = vrot.slane %v1564_v14, 9 }
 0x191   :  { %v3907_v23 = vsel %vm3875_vm5, %v3504_v59, %v3906_v53  ;;  %v6688_v7 = vrot.slane %v1563_v26, 9  ;;  %v1090_v55 = vcombine.high %v13582_v6, %v13582_v6  ;;  %v1097_v51 = vrot.slane %v13582_v6, %v7367_v12 }
 0x192   :  { %v3908_v24 = vsel %vm3877_vm6, %v3508_v61, %v3907_v23  ;;  %v2562_v4 = vmax.f32 %v1581_v41, %v6691_v2  ;;  %v6689_v49 = vrot.slane %v1565_v29, 9  ;;  %v1600_v60 = vcombine.high %v7605_v31, %v7605_v31 }
 0x193   :  { %v3909_v22 = vsel %vm3879_vm7, %v3512_v39, %v3908_v24  ;;  %v2564_v45 = vmax.f32 %v1582_v28, %v6693_v13  ;;  %v1104_v32 = vrot.slane %v1090_v55, %v7367_v12  ;;  %v1105_v57 = vcombine.high %v1097_v51, %v1097_v51 }
 0x194   :  { %v3910_v59 = vsel %vm3881_vm8, %v3516_v62, %v3909_v22  ;;  %v2557_v33 = vmax.f32 %v1556_v52, %v6686_v20  ;;  %v1607_v53 = vrot.slane %v7605_v31, %v7367_v12  ;;  %v1614_v6 = vrot.slane %v1600_v60, %v7367_v12 }
 0x195   :  { %v8182_v41 = vadd.f32 %v8024_v3, %v3910_v59  ;;  %v8184_v61 = vmax.f32 %v1564_v14, %v6687_v27  ;;  %v2559_v2 = vmax.f32 %v1563_v26, %v6688_v7  ;;  %v1106_v23 = vcombine.high %v1104_v32, %v1104_v32 }
 0x196   :  { %v8186_v39 = vmax.f32 %v1565_v29, %v6689_v49  ;;  %v1615_v28 = vcombine.high %v1607_v53, %v1607_v53  ;;  %v1616_v55 = vcombine.high %v1614_v6, %v1614_v6  ;;  %v6818_v13 = vrot.slane %v1607_v53, 9 }
 0x197   :  { %v6634_v24 = vrot.slane %v1097_v51, 9  ;;  %v6635_v62 = vrot.slane %v1105_v57, 9  ;;  %v6636_v52 = vrot.slane %v1104_v32, 9  ;;  %v6820_v20 = vrot.slane %v1614_v6, 9 }
 0x198   :  { %v6819_v22 = vrot.slane %v1615_v28, 9  ;;  %v6821_v31 = vrot.slane %v1616_v55, 9  ;;  %v3073_v58 = vmax.f32 %v1607_v53, %v6818_v13  ;;  %v1073_v3 = vcombine.high %v7615_v1, %v7615_v1 }
 0x199   :  { %v6637_v60 = vrot.slane %v1106_v23, 9  ;;  %v3075_v14 = vmax.f32 %v1614_v6, %v6820_v20  ;;  %v1080_v26 = vrot.slane %v7615_v1, %v7367_v12  ;;  %v1583_v29 = vcombine.high %v7636_v8, %v7636_v8 }
 0x19a   :  { %v3074_v27 = vmax.f32 %v1615_v28, %v6819_v22  ;;  %v3076_v7 = vmax.f32 %v1616_v55, %v6821_v31  ;;  %v8194_v49 = vmax.f32 %v2561_v47, %v3073_v58  ;;  %v8197_v59 = vrot.slane %v1073_v3, %v7367_v12 }
 0x19b   :  { %v8199_v56 = vmax.f32 %v2563_v18, %v3075_v14  ;;  %v1088_v53 = vcombine.high %v1080_v26, %v1080_v26  ;;  %v6630_v13 = vrot.slane %v1080_v26, 9  ;;  %v1590_v6 = vrot.slane %v7636_v8, %v7367_v12 }
 0x19c   :  { %13583 = vst [vmem:[#allocation23_spill] sm:$0xff] %v8194_v49  ;;  %v2505_v20 = vmax.f32 %v1097_v51, %v6634_v24  ;;  %v8203_v46 = vmax.f32 %v2562_v4, %v3074_v27  ;;  %v8205_v1 = vmax.f32 %v2564_v45, %v3076_v7  ;;  %v1089_v28 = vcombine.high %v8197_v59, %v8197_v59 }
 0x19d   :  { %13584 = vst [vmem:[#allocation29_spill] sm:$0xff] %v8199_v56  ;;  %v2506_v58 = vmax.f32 %v1105_v57, %v6635_v62  ;;  %v2507_v47 = vmax.f32 %v1104_v32, %v6636_v52  ;;  %v2508_v55 = vmax.f32 %v1106_v23, %v6637_v60  ;;  %v3760_v18 = vrot.slane %v8194_v49, %v7380_v30 }
 0x19e   :  { %13585 = vst [vmem:[#allocation86_spill] sm:$0xff] %v8203_v46  ;;  %13586 = vst [vmem:[#allocation87_spill] sm:$0xff] %v8205_v1  ;;  %v6631_v31 = vrot.slane %v1088_v53, 9  ;;  %v6632_v8 = vrot.slane %v8197_v59, 9  ;;  %v1597_v51 = vrot.slane %v1583_v29, %v7367_v12  ;;  %v3764_v4 = vrot.slane %v8203_v46, %v7380_v30 }
 0x19f   :  { %v2501_v45 = vmax.f32 %v1080_v26, %v6630_v13  ;;  %v1598_v24 = vcombine.high %v1590_v6, %v1590_v6  ;;  %v6814_v3 = vrot.slane %v1590_v6, 9  ;;  %v6633_v57 = vrot.slane %v1089_v28, 9 }
 0x1a0   :  { %v1599_v32 = vcombine.high %v1597_v51, %v1597_v51  ;;  %v6816_v23 = vrot.slane %v1597_v51, 9  ;;  %v1124_v62 = vcombine.high %v7674_v21, %v7674_v21  ;;  %v1131_v14 = vrot.slane %v7674_v21, %v7367_v12 }
 0x1a1   :  { %v6815_v52 = vrot.slane %v1598_v24, 9  ;;  %v3069_v60 = vmax.f32 %v1590_v6, %v6814_v3  ;;  %v1107_v29 = vcombine.high %v7678_v11, %v7678_v11  ;;  %v1114_v13 = vrot.slane %v7678_v11, %v7367_v12 }
 0x1a2   :  { %v6817_v27 = vrot.slane %v1599_v32, 9  ;;  %v3071_v7 = vmax.f32 %v1597_v51, %v6816_v23  ;;  %v1138_v26 = vrot.slane %v1124_v62, %v7367_v12  ;;  %v1139_v49 = vcombine.high %v1131_v14, %v1131_v14 }
 0x1a3   :  { %v3070_v22 = vmax.f32 %v1598_v24, %v6815_v52  ;;  %v8226_v46 = vmax.f32 %v2557_v33, %v3069_v60  ;;  %v6762_v17 = vrot.slane %v1131_v14, 9 }
 0x1a4   :  { %v3072_v34 = vmax.f32 %v1599_v32, %v6817_v27  ;;  %v8228_v6 = vmax.f32 %v2559_v2, %v3071_v7  ;;  %v1140_v3 = vcombine.high %v1138_v26, %v1138_v26  ;;  %v6764_v21 = vrot.slane %v1138_v26, 9 }
 0x1a5   :  { %13587 = vst [vmem:[#allocation88_spill] sm:$0xff] %v8226_v46  ;;  %v8231_v63 = vmax.f32 %v8184_v61, %v3070_v22  ;;  %v3744_v51 = vrot.slane %v8226_v46, %v7380_v30  ;;  %v6763_v23 = vrot.slane %v1139_v49, 9  ;;  %v3017_v62 = vmax.f32 %v1131_v14, %v6762_v17 }
 0x1a6   :  { %13588 = vst [vmem:[#allocation89_spill] sm:$0xff] %v8228_v6  ;;  %v8236_v11 = vmax.f32 %v8186_v39, %v3072_v34  ;;  %v3752_v33 = vrot.slane %v8228_v6, %v7380_v30  ;;  %v6765_v24 = vrot.slane %v1140_v3, 9  ;;  %v3019_v32 = vmax.f32 %v1138_v26, %v6764_v21 }
 0x1a7   :  { %13589 = vst [vmem:[#allocation90_spill] sm:$0xff] %v8231_v63  ;;  %v3748_v2 = vrot.slane %v8231_v63, %v7380_v30  ;;  %v3018_v52 = vmax.f32 %v1139_v49, %v6763_v23  ;;  %v8242_v60 = vmax.f32 %v2505_v20, %v3017_v62  ;;  %v1121_v61 = vrot.slane %v1107_v29, %v7367_v12 }
 0x1a8   :  { %13590 = vst [vmem:[#allocation91_spill] sm:$0xff] %v8236_v11  ;;  %v3756_v22 = vrot.slane %v8236_v11, %v7380_v30  ;;  %v3020_v17 = vmax.f32 %v1140_v3, %v6765_v24  ;;  %v8247_v14 = vmax.f32 %v2507_v47, %v3019_v32  ;;  %v1122_v34 = vcombine.high %v1114_v13, %v1114_v13 }
 0x1a9   :  { %v3772_v39 = vrot.slane %v8205_v1, %v7380_v30  ;;  %v3960_v27 = vsel %vm3869_vm2, %v3748_v2, %v3744_v51  ;;  %v8252_v7 = vmax.f32 %v2506_v58, %v3018_v52  ;;  %v1123_v26 = vcombine.high %v1121_v61, %v1121_v61 }
 0x1aa   :  { %13591 = vst [vmem:[#allocation92_spill] sm:$0xff] %v8247_v14  ;;  %v2502_v49 = vmax.f32 %v1088_v53, %v6631_v31  ;;  %v3961_v20 = vsel %vm3871_vm3, %v3752_v33, %v3960_v27  ;;  %v8255_v21 = vmax.f32 %v2508_v55, %v3020_v17  ;;  %v6758_v29 = vrot.slane %v1114_v13, 9 }
 0x1ab   :  { %v2503_v23 = vmax.f32 %v8197_v59, %v6632_v8  ;;  %v3962_v47 = vsel %vm3873_vm4, %v3756_v22, %v3961_v20  ;;  %v6759_v3 = vrot.slane %v1122_v34, 9  ;;  %v6760_v62 = vrot.slane %v1121_v61, 9 }
 0x1ac   :  { %13592 = vst [vmem:[#allocation93_spill] sm:$0xff] %v8255_v21  ;;  %v2504_v24 = vmax.f32 %v1089_v28, %v6633_v57  ;;  %v3963_v32 = vsel %vm3875_vm5, %v3760_v18, %v3962_v47  ;;  %v6761_v1 = vrot.slane %v1123_v26, 9  ;;  %v3013_v51 = vmax.f32 %v1114_v13, %v6758_v29 }
 0x1ad   :  { %v3964_v58 = vsel %vm3877_vm6, %v3764_v4, %v3963_v32  ;;  %v3014_v2 = vmax.f32 %v1122_v34, %v6759_v3  ;;  %v3015_v53 = vmax.f32 %v1121_v61, %v6760_v62  ;;  %v1634_v55 = vcombine.high %v7707_v42, %v7707_v42 }
 0x1ae   :  { %v13593_v31 = vrot.slane %v8199_v56, %v7380_v30  ;;  %v3016_v8 = vmax.f32 %v1123_v26, %v6761_v1  ;;  %v8267_v33 = vmax.f32 %v2501_v45, %v3013_v51  ;;  %v1641_v28 = vrot.slane %v7707_v42, %v7367_v12 }
 0x1af   :  { %v8274_v4 = vmax.f32 %v2502_v49, %v3014_v2  ;;  %v8276_v57 = vmax.f32 %v2503_v23, %v3015_v53  ;;  %v1648_v13 = vrot.slane %v1634_v55, %v7367_v12  ;;  %v3536_v52 = vrot.slane %v8242_v60, %v7380_v30 }
 0x1b0   :  { %v3965_v59 = vsel %vm3879_vm7, %v13593_v31, %v3964_v58  ;;  %v3544_v1 = vrot.slane %v8247_v14, %v7380_v30  ;;  %v8283_v45 = vmax.f32 %v2504_v24, %v3016_v8  ;;  %v1649_v61 = vcombine.high %v1641_v28, %v1641_v28 }
 0x1b1   :  { %v8272_v18 = vsel %vm3881_vm8, %v3772_v39, %v3965_v59  ;;  %v3520_v42 = vrot.slane %v8267_v33, %v7380_v30  ;;  %v3524_v22 = vrot.slane %v8274_v4, %v7380_v30  ;;  %v3528_v17 = vrot.slane %v8276_v57, %v7380_v30 }
 0x1b2   :  { %v1650_v34 = vcombine.high %v1648_v13, %v1648_v13  ;;  %v3540_v39 = vrot.slane %v8252_v7, %v7380_v30  ;;  %v3548_v27 = vrot.slane %v8255_v21, %v7380_v30  ;;  %v3532_v26 = vrot.slane %v8283_v45, %v7380_v30 }
 0x1b3   :  { %v1617_v49 = vcombine.high %v7711_v9, %v7711_v9  ;;  %v3911_v20 = vsel %vm3869_vm2, %v3524_v22, %v3520_v42  ;;  %v6698_v29 = vrot.slane %v1641_v28, 9  ;;  %v6700_v23 = vrot.slane %v1648_v13, 9 }
 0x1b4   :  { %v1624_v47 = vrot.slane %v7711_v9, %v7367_v12  ;;  %v3912_v3 = vsel %vm3871_vm3, %v3528_v17, %v3911_v20  ;;  %v6699_v62 = vrot.slane %v1649_v61, 9  ;;  %v1158_v32 = vcombine.high %v7736_v44, %v7736_v44 }
 0x1b5   :  { %v1631_v24 = vrot.slane %v1617_v49, %v7367_v12  ;;  %v3913_v51 = vsel %vm3873_vm4, %v3532_v26, %v3912_v3  ;;  %v6701_v58 = vrot.slane %v1650_v34, 9  ;;  %v1165_v9 = vrot.slane %v7736_v44, %v7367_v12 }
 0x1b6   :  { %v1632_v2 = vcombine.high %v1624_v47, %v1624_v47  ;;  %v6694_v53 = vrot.slane %v1624_v47, 9  ;;  %v3914_v55 = vsel %vm3875_vm5, %v3536_v52, %v3913_v51  ;;  %v2569_v42 = vmax.f32 %v1641_v28, %v6698_v29 }
 0x1b7   :  { %v1633_v31 = vcombine.high %v1631_v24, %v1631_v24  ;;  %v6696_v59 = vrot.slane %v1631_v24, 9  ;;  %v3915_v8 = vsel %vm3877_vm6, %v3540_v39, %v3914_v55  ;;  %v1172_v17 = vrot.slane %v1158_v32, %v7367_v12 }
 0x1b8   :  { %v6695_v22 = vrot.slane %v1632_v2, 9  ;;  %v3916_v49 = vsel %vm3879_vm7, %v3544_v1, %v3915_v8  ;;  %v2571_v20 = vmax.f32 %v1648_v13, %v6700_v23  ;;  %v1173_v3 = vcombine.high %v1165_v9, %v1165_v9 }
 0x1b9   :  { %v6697_v26 = vrot.slane %v1633_v31, 9  ;;  %v3917_v56 = vsel %vm3881_vm8, %v3548_v27, %v3916_v49  ;;  %v2570_v11 = vmax.f32 %v1649_v61, %v6699_v62  ;;  %v2572_v52 = vmax.f32 %v1650_v34, %v6701_v58 }
 0x1ba   :  { %v1174_v51 = vcombine.high %v1172_v17, %v1172_v17  ;;  %v8315_v6 = vadd.f32 %v8182_v41, %v3917_v56  ;;  %v2565_v44 = vmax.f32 %v1624_v47, %v6694_v53  ;;  %v8317_v63 = vmax.f32 %v1631_v24, %v6696_v59 }
 0x1bb   :  { %v6642_v28 = vrot.slane %v1165_v9, 9  ;;  %v2566_v39 = vmax.f32 %v1632_v2, %v6695_v22  ;;  %v8319_v29 = vmax.f32 %v1633_v31, %v6697_v26  ;;  %v1668_v13 = vcombine.high %v7763_v0, %v7763_v0 }
 0x1bc   :  { %v1675_v1 = vrot.slane %v7763_v0, %v7367_v12  ;;  %v6643_v27 = vrot.slane %v1173_v3, 9  ;;  %v6644_v61 = vrot.slane %v1172_v17, 9  ;;  %v1141_v34 = vcombine.high %v7773_v16, %v7773_v16 }
 0x1bd   :  { %v1148_v56 = vrot.slane %v7773_v16, %v7367_v12  ;;  %v6645_v41 = vrot.slane %v1174_v51, 9  ;;  %v1682_v23 = vrot.slane %v1668_v13, %v7367_v12  ;;  %v2513_v24 = vmax.f32 %v1165_v9, %v6642_v28 }
 0x1be   :  { %v1683_v47 = vcombine.high %v1675_v1, %v1675_v1  ;;  %v6826_v62 = vrot.slane %v1675_v1, 9  ;;  %v8331_v32 = vrot.slane %v1141_v34, %v7367_v12  ;;  %v8333_v59 = vmax.f32 %v1173_v3, %v6643_v27 }
 0x1bf   :  { %v1156_v58 = vcombine.high %v1148_v56, %v1148_v56  ;;  %v6638_v2 = vrot.slane %v1148_v56, 9  ;;  %v1684_v0 = vcombine.high %v1682_v23, %v1682_v23  ;;  %v6828_v55 = vrot.slane %v1682_v23, 9 }
 0x1c0   :  { %v6827_v53 = vrot.slane %v1683_v47, 9  ;;  %v3081_v31 = vmax.f32 %v1675_v1, %v6826_v62  ;;  %v8337_v16 = vcombine.high %v8331_v32, %v8331_v32  ;;  %v1651_v22 = vcombine.high %v7789_v15, %v7789_v15 }
 0x1c1   :  { %v6639_v8 = vrot.slane %v1156_v58, 9  ;;  %v6829_v9 = vrot.slane %v1684_v0, 9  ;;  %v3083_v26 = vmax.f32 %v1682_v23, %v6828_v55  ;;  %v2515_v13 = vmax.f32 %v1172_v17, %v6644_v61 }
 0x1c2   :  { %v3082_v49 = vmax.f32 %v1683_v47, %v6827_v53  ;;  %v8341_v28 = vmax.f32 %v2569_v42, %v3081_v31  ;;  %v2516_v34 = vmax.f32 %v1174_v51, %v6645_v41  ;;  %v6640_v46 = vrot.slane %v8331_v32, 9 }
 0x1c3   :  { %v1658_v3 = vrot.slane %v7789_v15, %v7367_v12  ;;  %v3084_v1 = vmax.f32 %v1684_v0, %v6829_v9  ;;  %v8348_v62 = vmax.f32 %v2571_v20, %v3083_v26  ;;  %v8350_v21 = vmax.f32 %v1148_v56, %v6638_v2 }
 0x1c4   :  { %13594 = vst [vmem:[#allocation94_spill] sm:$0xff] %v8341_v28  ;;  %v8346_v27 = vmax.f32 %v2570_v11, %v3082_v49  ;;  %v6641_v14 = vrot.slane %v8337_v16, 9  ;;  %v1665_v23 = vrot.slane %v1651_v22, %v7367_v12  ;;  %v3792_v51 = vrot.slane %v8341_v28, %v7380_v30 }
 0x1c5   :  { %13596 = vst [vmem:[#allocation96_spill] sm:$0xff] %v8348_v62  ;;  %v1666_v42 = vcombine.high %v1658_v3, %v1658_v3  ;;  %v6822_v47 = vrot.slane %v1658_v3, 9  ;;  %v8354_v17 = vmax.f32 %v2572_v52, %v3084_v1  ;;  %v8358_v61 = vmax.f32 %v1156_v58, %v6639_v8 }
 0x1c6   :  { %13595 = vst [vmem:[#allocation95_spill] sm:$0xff] %v8346_v27  ;;  %v1192_v15 = vcombine.high %v7837_v36, %v7837_v36  ;;  %v1667_v11 = vcombine.high %v1665_v23, %v1665_v23  ;;  %v6824_v56 = vrot.slane %v1665_v23, 9  ;;  %v3796_v2 = vrot.slane %v8346_v27, %v7380_v30 }
 0x1c7   :  { %13597 = vst [vmem:[#allocation97_spill] sm:$0xff] %v8354_v17  ;;  %v6823_v20 = vrot.slane %v1666_v42, 9  ;;  %v3077_v41 = vmax.f32 %v1658_v3, %v6822_v47  ;;  %v1199_v0 = vrot.slane %v7837_v36, %v7367_v12  ;;  %v1175_v53 = vcombine.high %v7842_v35, %v7842_v35 }
 0x1c8   :  { %v1206_v52 = vrot.slane %v1192_v15, %v7367_v12  ;;  %v6825_v58 = vrot.slane %v1667_v11, 9  ;;  %v3079_v31 = vmax.f32 %v1665_v23, %v6824_v56 }
 0x1c9   :  { %v3078_v55 = vmax.f32 %v1666_v42, %v6823_v20  ;;  %v8369_v8 = vmax.f32 %v2565_v44, %v3077_v41  ;;  %v1207_v22 = vcombine.high %v1199_v0, %v1199_v0  ;;  %v6770_v49 = vrot.slane %v1199_v0, 9 }
 0x1ca   :  { %v1208_v9 = vcombine.high %v1206_v52, %v1206_v52  ;;  %v6772_v26 = vrot.slane %v1206_v52, 9  ;;  %v3080_v3 = vmax.f32 %v1667_v11, %v6825_v58  ;;  %v8374_v47 = vmax.f32 %v8317_v63, %v3079_v31 }
 0x1cb   :  { %13598 = vst [vmem:[#allocation98_spill] sm:$0xff] %v8369_v8  ;;  %v8371_v1 = vmax.f32 %v2566_v39, %v3078_v55  ;;  %v3776_v36 = vrot.slane %v8369_v8, %v7380_v30  ;;  %v6771_v15 = vrot.slane %v1207_v22, 9  ;;  %v3025_v28 = vmax.f32 %v1199_v0, %v6770_v49 }
 0x1cc   :  { %13600 = vst [vmem:[#allocation100_spill] sm:$0xff] %v8374_v47  ;;  %v6773_v27 = vrot.slane %v1208_v9, 9  ;;  %v3027_v42 = vmax.f32 %v1206_v52, %v6772_v26  ;;  %v8379_v44 = vmax.f32 %v8319_v29, %v3080_v3  ;;  %v3784_v39 = vrot.slane %v8374_v47, %v7380_v30 }
 0x1cd   :  { %13599 = vst [vmem:[#allocation99_spill] sm:$0xff] %v8371_v1  ;;  %v3780_v23 = vrot.slane %v8371_v1, %v7380_v30  ;;  %v1182_v63 = vrot.slane %v7842_v35, %v7367_v12  ;;  %v3026_v11 = vmax.f32 %v1207_v22, %v6771_v15  ;;  %v8387_v56 = vmax.f32 %v2513_v24, %v3025_v28 }
 0x1ce   :  { %13601 = vst [vmem:[#allocation101_spill] sm:$0xff] %v8379_v44  ;;  %v3028_v20 = vmax.f32 %v1208_v9, %v6773_v27  ;;  %v8389_v41 = vmax.f32 %v2515_v13, %v3027_v42  ;;  %v3788_v0 = vrot.slane %v8379_v44, %v7380_v30  ;;  %v1189_v52 = vrot.slane %v1175_v53, %v7367_v12 }
 0x1cf   :  { %v3967_v29 = vsel %vm3869_vm2, %v3780_v23, %v3776_v36  ;;  %v1190_v58 = vcombine.high %v1182_v63, %v1182_v63  ;;  %v3800_v55 = vrot.slane %v8348_v62, %v7380_v30  ;;  %v8399_v35 = vmax.f32 %v8333_v59, %v3026_v11 }
 0x1d0   :  { %13602 = vst [vmem:[#allocation102_spill] sm:$0xff] %v8389_v41  ;;  %v3968_v31 = vsel %vm3871_vm3, %v3784_v39, %v3967_v29  ;;  %v8401_v24 = vmax.f32 %v2516_v34, %v3028_v20  ;;  %v3804_v28 = vrot.slane %v8354_v17, %v7380_v30  ;;  %v1191_v27 = vcombine.high %v1189_v52, %v1189_v52 }
 0x1d1   :  { %13603 = vst [vmem:[#allocation103_spill] sm:$0xff] %v8399_v35  ;;  %v3969_v13 = vsel %vm3873_vm4, %v3788_v0, %v3968_v31  ;;  %v6766_v22 = vrot.slane %v1182_v63, 9  ;;  %v2511_v53 = vmax.f32 %v8331_v32, %v6640_v46  ;;  %v2512_v9 = vmax.f32 %v8337_v16, %v6641_v14 }
 0x1d2   :  { %13604 = vst [vmem:[#allocation104_spill] sm:$0xff] %v8401_v24  ;;  %v3970_v49 = vsel %vm3875_vm5, %v3792_v51, %v3969_v13  ;;  %v6767_v26 = vrot.slane %v1190_v58, 9  ;;  %v6768_v59 = vrot.slane %v1189_v52, 9  ;;  %v6769_v36 = vrot.slane %v1191_v27, 9 }
 0x1d3   :  { %v3971_v3 = vsel %vm3877_vm6, %v3796_v2, %v3970_v49  ;;  %v3021_v34 = vmax.f32 %v1182_v63, %v6766_v22  ;;  %v1702_v23 = vcombine.high %v7873_v10, %v7873_v10  ;;  %v1709_v39 = vrot.slane %v7873_v10, %v7367_v12 }
 0x1d4   :  { %v3972_v15 = vsel %vm3879_vm7, %v3800_v55, %v3971_v3  ;;  %v3022_v42 = vmax.f32 %v1190_v58, %v6767_v26  ;;  %v3023_v14 = vmax.f32 %v1189_v52, %v6768_v59  ;;  %v3024_v32 = vmax.f32 %v1191_v27, %v6769_v36 }
 0x1d5   :  { %v8416_v46 = vsel %vm3881_vm8, %v3804_v28, %v3972_v15  ;;  %v8419_v16 = vmax.f32 %v8350_v21, %v3021_v34  ;;  %v3568_v51 = vrot.slane %v8387_v56, %v7380_v30  ;;  %v1716_v63 = vrot.slane %v1702_v23, %v7367_v12 }
 0x1d6   :  { %v8424_v2 = vmax.f32 %v8358_v61, %v3022_v42  ;;  %v1717_v11 = vcombine.high %v1709_v39, %v1709_v39  ;;  %v3576_v10 = vrot.slane %v8389_v41, %v7380_v30  ;;  %v8429_v20 = vmax.f32 %v2511_v53, %v3023_v14 }
 0x1d7   :  { %v8431_v0 = vmax.f32 %v2512_v9, %v3024_v32  ;;  %v1685_v21 = vcombine.high %v7880_v25, %v7880_v25  ;;  %v3572_v29 = vrot.slane %v8399_v35, %v7380_v30  ;;  %v3552_v61 = vrot.slane %v8419_v16, %v7380_v30 }
 0x1d8   :  { %v3556_v52 = vrot.slane %v8424_v2, %v7380_v30  ;;  %v1718_v58 = vcombine.high %v1716_v63, %v1716_v63  ;;  %v3580_v55 = vrot.slane %v8401_v24, %v7380_v30  ;;  %v3560_v31 = vrot.slane %v8429_v20, %v7380_v30 }
 0x1d9   :  { %v3564_v28 = vrot.slane %v8431_v0, %v7380_v30  ;;  %v1692_v13 = vrot.slane %v7880_v25, %v7367_v12  ;;  %v6706_v22 = vrot.slane %v1709_v39, 9  ;;  %v6707_v53 = vrot.slane %v1717_v11, 9 }
 0x1da   :  { %v3918_v27 = vsel %vm3869_vm2, %v3556_v52, %v3552_v61  ;;  %v6708_v9 = vrot.slane %v1716_v63, 9  ;;  %v6709_v26 = vrot.slane %v1718_v58, 9  ;;  %v1699_v3 = vrot.slane %v1685_v21, %v7367_v12 }
 0x1db   :  { %v3919_v49 = vsel %vm3871_vm3, %v3560_v31, %v3918_v27  ;;  %v1700_v59 = vcombine.high %v1692_v13, %v1692_v13  ;;  %v6702_v34 = vrot.slane %v1692_v13, 9  ;;  %v1226_v15 = vcombine.high %v7905_v38, %v7905_v38 }
 0x1dc   :  { %v3920_v36 = vsel %vm3873_vm4, %v3564_v28, %v3919_v49  ;;  %v1233_v25 = vrot.slane %v7905_v38, %v7367_v12  ;;  %v1701_v23 = vcombine.high %v1699_v3, %v1699_v3  ;;  %v6704_v32 = vrot.slane %v1699_v3, 9 }
 0x1dd   :  { %v3921_v42 = vsel %vm3875_vm5, %v3568_v51, %v3920_v36  ;;  %v6703_v14 = vrot.slane %v1700_v59, 9  ;;  %v2577_v52 = vmax.f32 %v1709_v39, %v6706_v22  ;;  %v1240_v21 = vrot.slane %v1226_v15, %v7367_v12 }
 0x1de   :  { %v3922_v61 = vsel %vm3877_vm6, %v3572_v29, %v3921_v42  ;;  %v1241_v31 = vcombine.high %v1233_v25, %v1233_v25  ;;  %v2578_v27 = vmax.f32 %v1717_v11, %v6707_v53  ;;  %v2579_v49 = vmax.f32 %v1716_v63, %v6708_v9 }
 0x1df   :  { %v3923_v28 = vsel %vm3879_vm7, %v3576_v10, %v3922_v61  ;;  %v6705_v17 = vrot.slane %v1701_v23, 9  ;;  %v2580_v44 = vmax.f32 %v1718_v58, %v6709_v26  ;;  %v8462_v38 = vmax.f32 %v1692_v13, %v6702_v34 }
 0x1e0   :  { %v3924_v62 = vsel %vm3881_vm8, %v3580_v55, %v3923_v28  ;;  %v1242_v51 = vcombine.high %v1240_v21, %v1240_v21  ;;  %v8467_v47 = vmax.f32 %v1700_v59, %v6703_v14  ;;  %v2575_v39 = vmax.f32 %v1699_v3, %v6704_v32 }
 0x1e1   :  { %v8465_v36 = vadd.f32 %v8315_v6, %v3924_v62  ;;  %v1736_v29 = vcombine.high %v7933_v50, %v7933_v50  ;;  %v8471_v22 = vmax.f32 %v1701_v23, %v6705_v17  ;;  %v6650_v11 = vrot.slane %v1233_v25, 9 }
 0x1e2   :  { %v6651_v63 = vrot.slane %v1241_v31, 9  ;;  %v1743_v10 = vrot.slane %v7933_v50, %v7367_v12  ;;  %v6652_v58 = vrot.slane %v1240_v21, 9  ;;  %v1209_v6 = vcombine.high %v7943_v48, %v7943_v48 }
 0x1e3   :  { %v1750_v55 = vrot.slane %v1736_v29, %v7367_v12  ;;  %v1216_v62 = vrot.slane %v7943_v48, %v7367_v12  ;;  %v6653_v13 = vrot.slane %v1242_v51, 9  ;;  %v1719_v17 = vcombine.high %v7963_v43, %v7963_v43 }
 0x1e4   :  { %v1751_v53 = vcombine.high %v1743_v10, %v1743_v10  ;;  %v6834_v9 = vrot.slane %v1743_v10, 9  ;;  %v8483_v59 = vrot.slane %v1209_v6, %v7367_v12  ;;  %v1726_v23 = vrot.slane %v7963_v43, %v7367_v12 }
 0x1e5   :  { %v1752_v26 = vcombine.high %v1750_v55, %v1750_v55  ;;  %v6836_v3 = vrot.slane %v1750_v55, 9  ;;  %v1224_v50 = vcombine.high %v1216_v62, %v1216_v62  ;;  %v6646_v42 = vrot.slane %v1216_v62, 9 }
 0x1e6   :  { %v6835_v34 = vrot.slane %v1751_v53, 9  ;;  %v3089_v15 = vmax.f32 %v1743_v10, %v6834_v9  ;;  %v8489_v32 = vcombine.high %v8483_v59, %v8483_v59  ;;  %v2521_v28 = vmax.f32 %v1233_v25, %v6650_v11 }
 0x1e7   :  { %v6837_v14 = vrot.slane %v1752_v26, 9  ;;  %v3091_v48 = vmax.f32 %v1750_v55, %v6836_v3  ;;  %v6647_v61 = vrot.slane %v1224_v50, 9  ;;  %v2522_v29 = vmax.f32 %v1241_v31, %v6651_v63  ;;  %v13609_v63 = vld [vmem:[#allocation19_spill] sm:$0xff] }
 0x1e8   :  { %v3090_v1 = vmax.f32 %v1751_v53, %v6835_v34  ;;  %v8491_v8 = vmax.f32 %v2577_v52, %v3089_v15  ;;  %v2523_v6 = vmax.f32 %v1240_v21, %v6652_v58  ;;  %v2524_v24 = vmax.f32 %v1242_v51, %v6653_v13  ;;  %v13610_v53 = vld [vmem:[#allocation75_spill] sm:$0xff] }
 0x1e9   :  { %v3092_v41 = vmax.f32 %v1752_v26, %v6837_v14  ;;  %v8493_v10 = vmax.f32 %v2579_v49, %v3091_v48  ;;  %v6648_v43 = vrot.slane %v8483_v59, 9  ;;  %v8498_v55 = vmax.f32 %v1216_v62, %v6646_v42 }
 0x1ea   :  { %13605 = vst [vmem:[#allocation105_spill] sm:$0xff] %v8491_v8  ;;  %v8495_v9 = vmax.f32 %v2578_v27, %v3090_v1  ;;  %v1733_v3 = vrot.slane %v1719_v17, %v7367_v12  ;;  %v6649_v25 = vrot.slane %v8489_v32, 9  ;;  %v8504_v31 = vmax.f32 %v1224_v50, %v6647_v61 }
 0x1eb   :  { %13606 = vst [vmem:[#allocation106_spill] sm:$0xff] %v8493_v10  ;;  %v8501_v35 = vmax.f32 %v2580_v44, %v3092_v41  ;;  %v1734_v52 = vcombine.high %v1726_v23, %v1726_v23  ;;  %v3824_v21 = vrot.slane %v8491_v8, %v7380_v30  ;;  %v6830_v51 = vrot.slane %v1726_v23, 9 }
 0x1ec   :  { %13607 = vst [vmem:[#allocation107_spill] sm:$0xff] %v8495_v9  ;;  %v1735_v49 = vcombine.high %v1733_v3, %v1733_v3  ;;  %v6832_v1 = vrot.slane %v1733_v3, 9  ;;  %v3828_v27 = vrot.slane %v8495_v9, %v7380_v30  ;;  %v1260_v58 = vcombine.high %v13609_v63, %v13609_v63 }
 0x1ed   :  { %13608 = vst [vmem:[#allocation108_spill] sm:$0xff] %v8501_v35  ;;  %v6831_v11 = vrot.slane %v1734_v52, 9  ;;  %v1267_v44 = vrot.slane %v13609_v63, %v7367_v12  ;;  %v3085_v62 = vmax.f32 %v1726_v23, %v6830_v51  ;;  %v1243_v17 = vcombine.high %v13610_v53, %v13610_v53 }
 0x1ee   :  { %v6833_v41 = vrot.slane %v1735_v49, 9  ;;  %v3087_v13 = vmax.f32 %v1733_v3, %v6832_v1  ;;  %v1274_v50 = vrot.slane %v1260_v58, %v7367_v12  ;;  %v1250_v61 = vrot.slane %v13610_v53, %v7367_v12 }
 0x1ef   :  { %v3086_v26 = vmax.f32 %v1734_v52, %v6831_v11  ;;  %v1275_v34 = vcombine.high %v1267_v44, %v1267_v44  ;;  %v6778_v15 = vrot.slane %v1267_v44, 9  ;;  %v8518_v14 = vmax.f32 %v8462_v38, %v3085_v62 }
 0x1f0   :  { %v3088_v42 = vmax.f32 %v1735_v49, %v6833_v41  ;;  %v8520_v48 = vmax.f32 %v2575_v39, %v3087_v13  ;;  %v1276_v3 = vcombine.high %v1274_v50, %v1274_v50  ;;  %v6780_v1 = vrot.slane %v1274_v50, 9 }
 0x1f1   :  { %13611 = vst [vmem:[#allocation19_spill] sm:$0xff] %v8518_v14  ;;  %v8525_v23 = vmax.f32 %v8467_v47, %v3086_v26  ;;  %v6779_v51 = vrot.slane %v1275_v34, 9  ;;  %v3808_v49 = vrot.slane %v8518_v14, %v7380_v30  ;;  %v3033_v39 = vmax.f32 %v1267_v44, %v6778_v15 }
 0x1f2   :  { %13612 = vst [vmem:[#allocation75_spill] sm:$0xff] %v8520_v48  ;;  %v8528_v52 = vmax.f32 %v8471_v22, %v3088_v42  ;;  %v3816_v38 = vrot.slane %v8520_v48, %v7380_v30  ;;  %v6781_v63 = vrot.slane %v1276_v3, 9  ;;  %v3035_v47 = vmax.f32 %v1274_v50, %v6780_v1 }
 0x1f3   :  { %13613 = vst [vmem:[#allocation109_spill] sm:$0xff] %v8525_v23  ;;  %v3812_v11 = vrot.slane %v8525_v23, %v7380_v30  ;;  %v3034_v58 = vmax.f32 %v1275_v34, %v6779_v51  ;;  %v8538_v62 = vmax.f32 %v2521_v28, %v3033_v39  ;;  %v1257_v22 = vrot.slane %v1243_v17, %v7367_v12 }
 0x1f4   :  { %13614 = vst [vmem:[#allocation110_spill] sm:$0xff] %v8528_v52  ;;  %v3820_v41 = vrot.slane %v8528_v52, %v7380_v30  ;;  %v1258_v13 = vcombine.high %v1250_v61, %v1250_v61  ;;  %v3036_v26 = vmax.f32 %v1276_v3, %v6781_v63  ;;  %v8544_v44 = vmax.f32 %v2523_v6, %v3035_v47 }
 0x1f5   :  { %v3974_v53 = vsel %vm3869_vm2, %v3812_v11, %v3808_v49  ;;  %v8542_v42 = vmax.f32 %v2522_v29, %v3034_v58  ;;  %v3832_v15 = vrot.slane %v8493_v10, %v7380_v30  ;;  %v1259_v34 = vcombine.high %v1257_v22, %v1257_v22  ;;  %v13617_v58 = vld [vmem:[#allocation17_spill] sm:$0xff] }
 0x1f6   :  { %13615 = vst [vmem:[#allocation111_spill] sm:$0xff] %v8544_v44  ;;  %v3975_v50 = vsel %vm3871_vm3, %v3816_v38, %v3974_v53  ;;  %v6774_v51 = vrot.slane %v1250_v61, 9  ;;  %v3836_v28 = vrot.slane %v8501_v35, %v7380_v30  ;;  %v2519_v17 = vmax.f32 %v8483_v59, %v6648_v43 }
 0x1f7   :  { %v3976_v1 = vsel %vm3873_vm4, %v3820_v41, %v3975_v50  ;;  %v8553_v49 = vmax.f32 %v2524_v24, %v3036_v26  ;;  %v6775_v6 = vrot.slane %v1258_v13, 9  ;;  %v6776_v3 = vrot.slane %v1257_v22, 9 }
 0x1f8   :  { %v3977_v29 = vsel %vm3875_vm5, %v3824_v21, %v3976_v1  ;;  %v6777_v39 = vrot.slane %v1259_v34, 9  ;;  %v2520_v11 = vmax.f32 %v8489_v32, %v6649_v25  ;;  %v3029_v63 = vmax.f32 %v1250_v61, %v6774_v51 }
 0x1f9   :  { %13616 = vst [vmem:[#allocation112_spill] sm:$0xff] %v8553_v49  ;;  %v3978_v38 = vsel %vm3877_vm6, %v3828_v27, %v3977_v29  ;;  %v1770_v47 = vcombine.high %v13617_v58, %v13617_v58  ;;  %v3030_v59 = vmax.f32 %v1258_v13, %v6775_v6  ;;  %v3031_v43 = vmax.f32 %v1257_v22, %v6776_v3  ;;  %v13618_v22 = vld [vmem:[#allocation20_spill] sm:$0xff] }
 0x1fa   :  { %v3979_v53 = vsel %vm3879_vm7, %v3832_v15, %v3978_v38  ;;  %v3032_v41 = vmax.f32 %v1259_v34, %v6777_v39  ;;  %v8565_v21 = vmax.f32 %v8498_v55, %v3029_v63  ;;  %v1777_v32 = vrot.slane %v13617_v58, %v7367_v12 }
 0x1fb   :  { %v8562_v24 = vsel %vm3881_vm8, %v3836_v28, %v3979_v53  ;;  %v1784_v25 = vrot.slane %v1770_v47, %v7367_v12  ;;  %v8571_v27 = vmax.f32 %v8504_v31, %v3030_v59  ;;  %v8573_v61 = vmax.f32 %v2519_v17, %v3031_v43 }
 0x1fc   :  { %v8575_v26 = vmax.f32 %v2520_v11, %v3032_v41  ;;  %v1753_v13 = vcombine.high %v13618_v22, %v13618_v22  ;;  %v3584_v15 = vrot.slane %v8565_v21, %v7380_v30  ;;  %v1785_v55 = vcombine.high %v1777_v32, %v1777_v32 }
 0x1fd   :  { %v1786_v50 = vcombine.high %v1784_v25, %v1784_v25  ;;  %v6714_v34 = vrot.slane %v1777_v32, 9  ;;  %v3588_v51 = vrot.slane %v8571_v27, %v7380_v30  ;;  %v3592_v31 = vrot.slane %v8573_v61, %v7380_v30 }
 0x1fe   :  { %v3596_v28 = vrot.slane %v8575_v26, %v7380_v30  ;;  %v6716_v17 = vrot.slane %v1784_v25, 9  ;;  %v3600_v1 = vrot.slane %v8538_v62, %v7380_v30  ;;  %v3604_v29 = vrot.slane %v8542_v42, %v7380_v30 }
 0x1ff   :  { %v6715_v6 = vrot.slane %v1785_v55, 9  ;;  %v1760_v3 = vrot.slane %v13618_v22, %v7367_v12  ;;  %v3925_v39 = vsel %vm3869_vm2, %v3588_v51, %v3584_v15  ;;  %v6717_v11 = vrot.slane %v1786_v50, 9 }
 0x200   :  { %v1767_v38 = vrot.slane %v1753_v13, %v7367_v12  ;;  %v1804_v63 = vcombine.high %v8078_v37, %v8078_v37  ;;  %v3608_v58 = vrot.slane %v8544_v44, %v7380_v30  ;;  %v3612_v47 = vrot.slane %v8553_v49, %v7380_v30  ;;  %v13621_v49 = vld [vmem:[#allocation55_spill] sm:$0xff] }
 0x201   :  { %v3926_v53 = vsel %vm3871_vm3, %v3592_v31, %v3925_v39  ;;  %v1768_v59 = vcombine.high %v1760_v3, %v1760_v3  ;;  %v2585_v41 = vmax.f32 %v1777_v32, %v6714_v34  ;;  %v2587_v22 = vmax.f32 %v1784_v25, %v6716_v17 }
 0x202   :  { %v3927_v43 = vsel %vm3873_vm4, %v3596_v28, %v3926_v53  ;;  %v1769_v15 = vcombine.high %v1767_v38, %v1767_v38  ;;  %v2586_v13 = vmax.f32 %v1785_v55, %v6715_v6  ;;  %v1811_v35 = vrot.slane %v8078_v37, %v7367_v12 }
 0x203   :  { %v3928_v51 = vsel %vm3875_vm5, %v3600_v1, %v3927_v43  ;;  %v1818_v10 = vrot.slane %v1804_v63, %v7367_v12  ;;  %v2588_v8 = vmax.f32 %v1786_v50, %v6717_v11  ;;  %v6710_v52 = vrot.slane %v1760_v3, 9  ;;  %v13619_v63 = vld [vmem:[#allocation26_spill] sm:$0xff] }
 0x204   :  { %v3929_v9 = vsel %vm3877_vm6, %v3604_v29, %v3928_v51  ;;  %v6712_v48 = vrot.slane %v1767_v38, 9  ;;  %v6711_v39 = vrot.slane %v1768_v59, 9  ;;  %v1819_v28 = vcombine.high %v1811_v35, %v1811_v35 }
 0x205   :  { %v3930_v31 = vsel %vm3879_vm7, %v3608_v58, %v3929_v9  ;;  %v1820_v32 = vcombine.high %v1818_v10, %v1818_v10  ;;  %v6713_v34 = vrot.slane %v1769_v15, 9  ;;  %v6842_v17 = vrot.slane %v1811_v35, 9  ;;  %v13620_v58 = vld [vmem:[#allocation39_spill] sm:$0xff] }
 0x206   :  { %v3931_v25 = vsel %vm3881_vm8, %v3612_v47, %v3930_v31  ;;  %v6844_v55 = vrot.slane %v1818_v10, 9  ;;  %v6843_v37 = vrot.slane %v1819_v28, 9  ;;  %v1787_v29 = vcombine.high %v13619_v63, %v13619_v63 }
 0x207   :  { %v4010_v1 = vadd.f32 %v8465_v36, %v3931_v25  ;;  %v6845_v6 = vrot.slane %v1820_v32, 9  ;;  %v2581_v50 = vmax.f32 %v1760_v3, %v6710_v52  ;;  %v3097_v11 = vmax.f32 %v1811_v35, %v6842_v17 }
 0x208   :  { %v3099_v53 = vmax.f32 %v1818_v10, %v6844_v55  ;;  %v1794_v9 = vrot.slane %v13619_v63, %v7367_v12  ;;  %v3098_v51 = vmax.f32 %v1819_v28, %v6843_v37  ;;  %v1801_v31 = vrot.slane %v1787_v29, %v7367_v12 }
 0x209   :  { %v4011_v43 = vadd.f32 %v4010_v1, %v13620_v58  ;;  %v3100_v47 = vmax.f32 %v1820_v32, %v6845_v6  ;;  %v8617_v23 = vmax.f32 %v2585_v41, %v3097_v11  ;;  %v2582_v3 = vmax.f32 %v1768_v59, %v6711_v39  ;;  %v13622_v32 = vld [vmem:[#allocation15_spill] sm:$0xff] }
 0x20a   :  { %v8619_v36 = vmax.f32 %v2587_v22, %v3099_v53  ;;  %v1802_v25 = vcombine.high %v1794_v9, %v1794_v9  ;;  %v6838_v14 = vrot.slane %v1794_v9, 9  ;;  %v8622_v52 = vmax.f32 %v2586_v13, %v3098_v51 }
 0x20b   :  { %v4012_v44 = vadd.f32 %v4011_v43, %v13621_v49  ;;  %v8624_v35 = vmax.f32 %v2588_v8, %v3100_v47  ;;  %v1803_v10 = vcombine.high %v1801_v31, %v1801_v31  ;;  %v2583_v17 = vmax.f32 %v1767_v38, %v6712_v48 }
 0x20c   :  { %v6839_v55 = vrot.slane %v1802_v25, 9  ;;  %v6840_v28 = vrot.slane %v1801_v31, 9  ;;  %v2584_v37 = vmax.f32 %v1769_v15, %v6713_v34  ;;  %v3093_v6 = vmax.f32 %v1794_v9, %v6838_v14 }
 0x20d   :  { %v4013_v1 = vadd.f32 %v4012_v44, %v13622_v32  ;;  %v6841_v41 = vrot.slane %v1803_v10, 9  ;;  %v3868_v58 = vrot.slane %v8624_v35, %v7380_v30 }
 0x20e   :  { %v3094_v22 = vmax.f32 %v1802_v25, %v6839_v55  ;;  %v3095_v63 = vmax.f32 %v1801_v31, %v6840_v28  ;;  %v8628_v49 = vmax.f32 %v2581_v50, %v3093_v6  ;;  %v3864_v50 = vrot.slane %v8619_v36, %v7380_v30 }
 0x20f   :  { %v3096_v29 = vmax.f32 %v1803_v10, %v6841_v41  ;;  %v4014_v11 = vadd.f32 %v4013_v1, %v8129_v19  ;;  %v3856_v19 = vrot.slane %v8617_v23, %v7380_v30 }
 0x210   :  { %v8630_v13 = vmax.f32 %v2582_v3, %v3094_v22  ;;  %v8632_v8 = vmax.f32 %v2583_v17, %v3095_v63  ;;  %v3840_v44 = vrot.slane %v8628_v49, %v7380_v30 }
 0x211   :  { %v8634_v59 = vmax.f32 %v2584_v37, %v3096_v29  ;;  %v4015_v48 = vadd.f32 %v4014_v11, %v8272_v18  ;;  %v3860_v18 = vrot.slane %v8622_v52, %v7380_v30  ;;  %v13623_v29 = vld [vmem:[#allocation10_spill] sm:$0xff] }
 0x212   :  { %v3844_v14 = vrot.slane %v8630_v13, %v7380_v30  ;;  %v3848_v38 = vrot.slane %v8632_v8, %v7380_v30 }
 0x213   :  { %v3852_v15 = vrot.slane %v8634_v59, %v7380_v30  ;;  %v4016_v39 = vadd.f32 %v4015_v48, %v8416_v46  ;;  %v13625_v48 = vld [vmem:[#allocation38_spill] sm:$0xff] }
 0x214   :  { %v3981_v34 = vsel %vm3869_vm2, %v3844_v14, %v3840_v44  ;;  %v13627_v14 = vld [vmem:[#allocation56_spill] sm:$0xff] }
 0x215   :  { %v3982_v53 = vsel %vm3871_vm3, %v3848_v38, %v3981_v34  ;;  %v4017_v9 = vadd.f32 %v4016_v39, %v8562_v24 }
 0x216   :  { %v3983_v43 = vsel %vm3873_vm4, %v3852_v15, %v3982_v53  ;;  %v13632_v53 = vld [vmem:[#allocation12_spill] sm:$0xff] }
 0x217   :  { %v3984_v51 = vsel %vm3875_vm5, %v3856_v19, %v3983_v43  ;;  %v13629_v19 = vld [vmem:[#allocation72_spill] sm:$0xff] }
 0x218   :  { %v3985_v46 = vsel %vm3877_vm6, %v3860_v18, %v3984_v51 }
 0x219   :  { %v3986_v47 = vsel %vm3879_vm7, %v3864_v50, %v3985_v46  ;;  %v13638_v46 = vld [vmem:[#allocation40_spill] sm:$0xff] }
 0x21a   :  { %v3987_v31 = vsel %vm3881_vm8, %v3868_v58, %v3986_v47  ;;  %v13634_v58 = vld [vmem:[#allocation13_spill] sm:$0xff] }
 0x21b   :  { %v4018_v25 = vadd.f32 %v4017_v9, %v3987_v31  ;;  %v13640_v31 = vld [vmem:[#allocation41_spill] sm:$0xff] }
 0x21d   :  { %v4019_v10 = vrot.slane %v4018_v25, 4 }
 0x21f   :  { %v4020_v3 = vadd.f32 %v4019_v10, %v4018_v25 }
 0x221   :  { %v4021_v17 = vrot.slane %v4020_v3, 2 }
 0x223   :  { %v4022_v55 = vadd.f32 %v4021_v17, %v4020_v3  ;;  %v13642_v3 = vld [vmem:[#allocation14_spill] sm:$0xff] }
 0x225   :  { %v4023_v28 = vrot.slane %v4022_v55, 1 }
 0x227   :  { %v4024_v24 = vadd.f32 %v4023_v28, %v4022_v55  ;;  %v13644_v55 = vld [vmem:[#allocation9_spill] sm:$0xff] }
 0x229   :  { %v4026_v32 = vmul.f32 0.0078125, %v4024_v24  ;;  %v13646_v24 = vld [vmem:[#allocation8_spill] sm:$0xff] }
 0x22b   :  { %v4030_v1 = vrot.slane %v4026_v32, %v7380_v30  ;;  %v13668_v30 = vld [vmem:[#allocation53_spill] sm:$0xff] }
 0x22d   :  { %v4032_v37 = vcombine.high %v4030_v1, %v4030_v1  ;;  %v8664_v41 = vrot.slane %v4030_v1, %v7367_v12  ;;  %v13648_v1 = vld [vmem:[#allocation42_spill] sm:$0xff] }
 0x22f   :  { %v8667_v6 = vrot.slane %v4032_v37, %v7367_v12  ;;  %v8671_v22 = vcombine.high %v8664_v41, %v8664_v41  ;;  %v8674_v63 = vrot.slane %v8664_v41, 1  ;;  %v8678_v11 = vsub.f32 %v13623_v29, %v8664_v41  ;;  %v13650_v29 = vld [vmem:[#allocation32_spill] sm:$0xff]  ;;  %v13666_v12 = vld [vmem:[#allocation51_spill] sm:$0xff] }
 0x230   :  { %v8682_v44 = vsub.f32 %v13625_v48, %v8664_v41  ;;  %v8686_v38 = vsub.f32 %v13627_v14, %v8664_v41  ;;  %v8690_v15 = vsub.f32 %v13629_v19, %v8664_v41  ;;  %v8694_v39 = vsub.f32 %v8132_v5, %v8664_v41  ;;  %v13636_v5 = vld [vmem:[#allocation7_spill] sm:$0xff] }
 0x231   :  { %13624 = vst [vmem:[#allocation17_spill] sm:$0xff] %v8678_v11  ;;  %v8698_v18 = vcombine.high %v8667_v6, %v8667_v6  ;;  %v8701_v34 = vrot.slane %v8671_v22, 1  ;;  %v8704_v50 = vrot.slane %v8667_v6, 1  ;;  %v8708_v9 = vsub.f32 %v13632_v53, %v8674_v63  ;;  %v13652_v14 = vld [vmem:[#allocation35_spill] sm:$0xff]  ;;  %v13654_v53 = vld [vmem:[#allocation36_spill] sm:$0xff] }
 0x232   :  { %13626 = vst [vmem:[#allocation20_spill] sm:$0xff] %v8682_v44  ;;  %13628 = vst [vmem:[#allocation26_spill] sm:$0xff] %v8686_v38  ;;  %v8712_v43 = vsub.f32 %v13634_v58, %v8671_v22  ;;  %v8716_v51 = vsub.f32 %v13636_v5, %v8667_v6  ;;  %v8720_v47 = vsub.f32 %v13638_v46, %v8674_v63  ;;  %v13656_v5 = vld [vmem:[#allocation11_spill] sm:$0xff] }
 0x233   :  { %13630 = vst [vmem:[#allocation39_spill] sm:$0xff] %v8690_v15  ;;  %13631 = vst [vmem:[#allocation55_spill] sm:$0xff] %v8694_v39  ;;  %v8724_v25 = vsub.f32 %v13640_v31, %v8671_v22  ;;  %v8727_v10 = vrot.slane %v8698_v18, 1  ;;  %v8731_v17 = vsub.f32 %v13642_v3, %v8701_v34  ;;  %v8735_v28 = vsub.f32 %v13644_v55, %v8704_v50  ;;  %v13658_v31 = vld [vmem:[#allocation37_spill] sm:$0xff]  ;;  %v13660_v55 = vld [vmem:[#allocation58_spill] sm:$0xff] }
 0x234   :  { %13633 = vst [vmem:[#allocation15_spill] sm:$0xff] %v8708_v9  ;;  %13635 = vst [vmem:[#allocation10_spill] sm:$0xff] %v8712_v43  ;;  %v8739_v32 = vsub.f32 %v13646_v24, %v8698_v18  ;;  %v8743_v37 = vsub.f32 %v13648_v1, %v8701_v34  ;;  %v8747_v48 = vsub.f32 %v13650_v29, %v8667_v6  ;;  %v13662_v1 = vld [vmem:[#allocation57_spill] sm:$0xff]  ;;  %v13670_v39 = vld [vmem:[#allocation52_spill] sm:$0xff] }
 0x235   :  { %13637 = vst [vmem:[#allocation38_spill] sm:$0xff] %v8716_v51  ;;  %13639 = vst [vmem:[#allocation56_spill] sm:$0xff] %v8720_v47  ;;  %v8751_v19 = vsub.f32 %v13652_v14, %v8704_v50  ;;  %v8755_v58 = vsub.f32 %v13654_v53, %v8698_v18  ;;  %v8759_v46 = vsub.f32 %v13656_v5, %v8727_v10  ;;  %v13664_v14 = vld [vmem:[#allocation59_spill] sm:$0xff]  ;;  %v13672_v15 = vld [vmem:[#allocation54_spill] sm:$0xff] }
 0x236   :  { %13641 = vst [vmem:[#allocation72_spill] sm:$0xff] %v8724_v25  ;;  %13643 = vst [vmem:[#allocation12_spill] sm:$0xff] %v8731_v17  ;;  %v8763_v3 = vsub.f32 %v13658_v31, %v8727_v10  ;;  %v8767_v24 = vsub.f32 %v13660_v55, %v8674_v63  ;;  %v8771_v29 = vsub.f32 %v13662_v1, %v8671_v22 }
 0x237   :  { %13645 = vst [vmem:[#allocation13_spill] sm:$0xff] %v8735_v28  ;;  %13647 = vst [vmem:[#allocation7_spill] sm:$0xff] %v8739_v32  ;;  %v8775_v53 = vsub.f32 %v13664_v14, %v8701_v34  ;;  %v8779_v5 = vsub.f32 %v13666_v12, %v8667_v6  ;;  %v8783_v31 = vsub.f32 %v13668_v30, %v8704_v50 }
 0x238   :  { %13649 = vst [vmem:[#allocation40_spill] sm:$0xff] %v8743_v37  ;;  %13651 = vst [vmem:[#allocation41_spill] sm:$0xff] %v8747_v48  ;;  %v8787_v55 = vsub.f32 %v13670_v39, %v8698_v18  ;;  %v8791_v1 = vsub.f32 %v13672_v15, %v8727_v10 }
 0x239   :  { %13653 = vst [vmem:[#allocation14_spill] sm:$0xff] %v8751_v19  ;;  %13655 = vst [vmem:[#allocation9_spill] sm:$0xff] %v8755_v58 }
 0x23a   :  { %13657 = vst [vmem:[#allocation8_spill] sm:$0xff] %v8759_v46  ;;  %13659 = vst [vmem:[#allocation42_spill] sm:$0xff] %v8763_v3 }
 0x23b   :  { %13661 = vst [vmem:[#allocation32_spill] sm:$0xff] %v8767_v24  ;;  %13663 = vst [vmem:[#allocation35_spill] sm:$0xff] %v8771_v29  ;;  %v13674_v29 = vld [vmem:[#allocation16_spill] sm:$0xff] }
 0x23c   :  { %13665 = vst [vmem:[#allocation36_spill] sm:$0xff] %v8775_v53  ;;  %13667 = vst [vmem:[#allocation11_spill] sm:$0xff] %v8779_v5  ;;  %v8795_v14 = vsub.f32 %v13674_v29, %v8674_v63  ;;  %v13676_v53 = vld [vmem:[#allocation73_spill] sm:$0xff]  ;;  %v13678_v5 = vld [vmem:[#allocation74_spill] sm:$0xff] }
 0x23d   :  { %13669 = vst [vmem:[#allocation37_spill] sm:$0xff] %v8783_v31  ;;  %13671 = vst [vmem:[#allocation58_spill] sm:$0xff] %v8787_v55  ;;  %v8799_v12 = vsub.f32 %v13676_v53, %v8671_v22  ;;  %v8803_v30 = vsub.f32 %v13678_v5, %v8701_v34  ;;  %v13680_v31 = vld [vmem:[#allocation68_spill] sm:$0xff]  ;;  %v13682_v55 = vld [vmem:[#allocation70_spill] sm:$0xff]  ;;  %v8823_v5 = vsub.f32 %v8139_v40, %v8674_v63 }
 0x23e   :  { %13673 = vst [vmem:[#allocation57_spill] sm:$0xff] %v8791_v1  ;;  %13675 = vst [vmem:[#allocation59_spill] sm:$0xff] %v8795_v14  ;;  %v8807_v39 = vsub.f32 %v13680_v31, %v8667_v6  ;;  %v8811_v15 = vsub.f32 %v13682_v55, %v8704_v50  ;;  %v13684_v1 = vld [vmem:[#allocation69_spill] sm:$0xff]  ;;  %v13686_v14 = vld [vmem:[#allocation71_spill] sm:$0xff]  ;;  %v8827_v31 = vsub.f32 %v8141_v54, %v8671_v22 }
 0x23f   :  { %13677 = vst [vmem:[#allocation51_spill] sm:$0xff] %v8799_v12  ;;  %13679 = vst [vmem:[#allocation53_spill] sm:$0xff] %v8803_v30  ;;  %v8815_v29 = vsub.f32 %v13684_v1, %v8698_v18  ;;  %v8819_v53 = vsub.f32 %v13686_v14, %v8727_v10 }
 0x240   :  { %13681 = vst [vmem:[#allocation52_spill] sm:$0xff] %v8807_v39  ;;  %13683 = vst [vmem:[#allocation54_spill] sm:$0xff] %v8811_v15  ;;  %v13690_v39 = vld [vmem:[#allocation21_spill] sm:$0xff]  ;;  %v13692_v15 = vld [vmem:[#allocation82_spill] sm:$0xff] }
 0x241   :  { %13685 = vst [vmem:[#allocation16_spill] sm:$0xff] %v8815_v29  ;;  %13687 = vst [vmem:[#allocation73_spill] sm:$0xff] %v8819_v53  ;;  %v8831_v55 = vsub.f32 %v13690_v39, %v8701_v34  ;;  %v8835_v1 = vsub.f32 %v13692_v15, %v8667_v6  ;;  %v13694_v29 = vld [vmem:[#allocation83_spill] sm:$0xff]  ;;  %v13696_v53 = vld [vmem:[#allocation84_spill] sm:$0xff]  ;;  %v8851_v39 = vsub.f32 %v8267_v33, %v8664_v41 }
 0x242   :  { %13688 = vst [vmem:[#allocation74_spill] sm:$0xff] %v8823_v5  ;;  %13689 = vst [vmem:[#allocation68_spill] sm:$0xff] %v8827_v31  ;;  %v8839_v14 = vsub.f32 %v13694_v29, %v8704_v50  ;;  %v8843_v40 = vsub.f32 %v13696_v53, %v8698_v18  ;;  %v13698_v5 = vld [vmem:[#allocation85_spill] sm:$0xff]  ;;  %v8855_v15 = vsub.f32 %v8274_v4, %v8674_v63 }
 0x243   :  { %13691 = vst [vmem:[#allocation70_spill] sm:$0xff] %v8831_v55  ;;  %13693 = vst [vmem:[#allocation69_spill] sm:$0xff] %v8835_v1  ;;  %v8847_v54 = vsub.f32 %v13698_v5, %v8727_v10  ;;  %v8859_v29 = vsub.f32 %v8276_v57, %v8671_v22  ;;  %v8863_v53 = vsub.f32 %v8283_v45, %v8701_v34 }
 0x244   :  { %13695 = vst [vmem:[#allocation71_spill] sm:$0xff] %v8839_v14  ;;  %13697 = vst [vmem:[#allocation21_spill] sm:$0xff] %v8843_v40  ;;  %v8867_v5 = vsub.f32 %v8242_v60, %v8667_v6  ;;  %v8871_v33 = vsub.f32 %v8252_v7, %v8704_v50  ;;  %v8883_v45 = vsub.f32 %v8419_v16, %v8664_v41 }
 0x245   :  { %13699 = vst [vmem:[#allocation82_spill] sm:$0xff] %v8847_v54  ;;  %13700 = vst [vmem:[#allocation83_spill] sm:$0xff] %v8851_v39  ;;  %v13706_v39 = vld [vmem:[#allocation92_spill] sm:$0xff]  ;;  %v8887_v60 = vsub.f32 %v8424_v2, %v8674_v63  ;;  %v8891_v7 = vsub.f32 %v8429_v20, %v8671_v22 }
 0x246   :  { %13701 = vst [vmem:[#allocation84_spill] sm:$0xff] %v8855_v15  ;;  %13702 = vst [vmem:[#allocation85_spill] sm:$0xff] %v8859_v29  ;;  %v8875_v4 = vsub.f32 %v13706_v39, %v8698_v18  ;;  %v13708_v15 = vld [vmem:[#allocation93_spill] sm:$0xff]  ;;  %v8895_v39 = vsub.f32 %v8431_v0, %v8701_v34  ;;  %v8915_v0 = vsub.f32 %v8565_v21, %v8664_v41 }
 0x247   :  { %13703 = vst [vmem:[#allocation113_spill] sm:$0xff] %v8863_v53  ;;  %13704 = vst [vmem:[#allocation114_spill] sm:$0xff] %v8867_v5  ;;  %v8879_v57 = vsub.f32 %v13708_v15, %v8727_v10  ;;  %v8899_v15 = vsub.f32 %v8387_v56, %v8667_v6  ;;  %v8919_v56 = vsub.f32 %v8571_v27, %v8674_v63 }
 0x248   :  { %13705 = vst [vmem:[#allocation115_spill] sm:$0xff] %v8871_v33  ;;  %13707 = vst [vmem:[#allocation92_spill] sm:$0xff] %v8875_v4  ;;  %v8935_v21 = vsub.f32 %v8542_v42, %v8704_v50 }
 0x249   :  { %13709 = vst [vmem:[#allocation93_spill] sm:$0xff] %v8879_v57  ;;  %13710 = vst [vmem:[#allocation116_spill] sm:$0xff] %v8883_v45  ;;  %v13715_v57 = vld [vmem:[#allocation103_spill] sm:$0xff]  ;;  %v13717_v45 = vld [vmem:[#allocation102_spill] sm:$0xff] }
 0x24a   :  { %13711 = vst [vmem:[#allocation117_spill] sm:$0xff] %v8887_v60  ;;  %13712 = vst [vmem:[#allocation118_spill] sm:$0xff] %v8891_v7  ;;  %v8903_v16 = vsub.f32 %v13715_v57, %v8704_v50  ;;  %v8907_v2 = vsub.f32 %v13717_v45, %v8698_v18  ;;  %v13719_v60 = vld [vmem:[#allocation104_spill] sm:$0xff]  ;;  %v8923_v57 = vsub.f32 %v8573_v61, %v8671_v22 }
 0x24b   :  { %13713 = vst [vmem:[#allocation119_spill] sm:$0xff] %v8895_v39  ;;  %13714 = vst [vmem:[#allocation120_spill] sm:$0xff] %v8899_v15  ;;  %v8911_v20 = vsub.f32 %v13719_v60, %v8727_v10  ;;  %v8927_v45 = vsub.f32 %v8575_v26, %v8701_v34  ;;  %v8931_v60 = vsub.f32 %v8538_v62, %v8667_v6 }
 0x24c   :  { %13716 = vst [vmem:[#allocation103_spill] sm:$0xff] %v8903_v16  ;;  %13718 = vst [vmem:[#allocation102_spill] sm:$0xff] %v8907_v2 }
 0x24d   :  { %13720 = vst [vmem:[#allocation104_spill] sm:$0xff] %v8911_v20  ;;  %13721 = vst [vmem:[#allocation121_spill] sm:$0xff] %v8915_v0  ;;  %v13727_v0 = vld [vmem:[#allocation111_spill] sm:$0xff] }
 0x24e   :  { %13722 = vst [vmem:[#allocation122_spill] sm:$0xff] %v8919_v56  ;;  %13723 = vst [vmem:[#allocation123_spill] sm:$0xff] %v8923_v57  ;;  %v8939_v27 = vsub.f32 %v13727_v0, %v8698_v18  ;;  %v13729_v56 = vld [vmem:[#allocation112_spill] sm:$0xff]  ;;  %v13731_v57 = vld [vmem:[#allocation30_spill] sm:$0xff] }
 0x24f   :  { %13724 = vst [vmem:[#allocation124_spill] sm:$0xff] %v8927_v45  ;;  %13725 = vst [vmem:[#allocation125_spill] sm:$0xff] %v8931_v60  ;;  %v8943_v61 = vsub.f32 %v13729_v56, %v8727_v10  ;;  %v8947_v26 = vsub.f32 %v13731_v57, %v8664_v41  ;;  %v13733_v45 = vld [vmem:[#allocation33_spill] sm:$0xff]  ;;  %v13735_v60 = vld [vmem:[#allocation31_spill] sm:$0xff] }
 0x250   :  { %13726 = vst [vmem:[#allocation126_spill] sm:$0xff] %v8935_v21  ;;  %13728 = vst [vmem:[#allocation111_spill] sm:$0xff] %v8939_v27  ;;  %v8951_v62 = vsub.f32 %v13733_v45, %v8674_v63  ;;  %v8955_v42 = vsub.f32 %v13735_v60, %v8671_v22  ;;  %v13737_v21 = vld [vmem:[#allocation34_spill] sm:$0xff] }
 0x251   :  { %13730 = vst [vmem:[#allocation112_spill] sm:$0xff] %v8943_v61  ;;  %13732 = vst [vmem:[#allocation30_spill] sm:$0xff] %v8947_v26  ;;  %v8959_v0 = vsub.f32 %v13737_v21, %v8701_v34  ;;  %v13739_v27 = vld [vmem:[#allocation22_spill] sm:$0xff]  ;;  %v13741_v61 = vld [vmem:[#allocation24_spill] sm:$0xff] }
 0x252   :  { %13734 = vst [vmem:[#allocation33_spill] sm:$0xff] %v8951_v62  ;;  %13736 = vst [vmem:[#allocation31_spill] sm:$0xff] %v8955_v42  ;;  %v8963_v56 = vsub.f32 %v13739_v27, %v8667_v6  ;;  %v8967_v57 = vsub.f32 %v13741_v61, %v8704_v50  ;;  %v13743_v26 = vld [vmem:[#allocation25_spill] sm:$0xff]  ;;  %v13745_v62 = vld [vmem:[#allocation28_spill] sm:$0xff] }
 0x253   :  { %13738 = vst [vmem:[#allocation34_spill] sm:$0xff] %v8959_v0  ;;  %v8971_v45 = vsub.f32 %v13743_v26, %v8698_v18  ;;  %v8975_v60 = vsub.f32 %v13745_v62, %v8727_v10  ;;  %v13747_v42 = vld [vmem:[#allocation47_spill] sm:$0xff]  ;;  %v13749_v0 = vld [vmem:[#allocation48_spill] sm:$0xff] }
 0x254   :  { %13740 = vst [vmem:[#allocation22_spill] sm:$0xff] %v8963_v56  ;;  %13742 = vst [vmem:[#allocation24_spill] sm:$0xff] %v8967_v57  ;;  %v8979_v21 = vsub.f32 %v13747_v42, %v8664_v41  ;;  %v8983_v27 = vsub.f32 %v13749_v0, %v8674_v63  ;;  %v13751_v56 = vld [vmem:[#allocation49_spill] sm:$0xff]  ;;  %v13753_v57 = vld [vmem:[#allocation50_spill] sm:$0xff] }
 0x255   :  { %13744 = vst [vmem:[#allocation25_spill] sm:$0xff] %v8971_v45  ;;  %13746 = vst [vmem:[#allocation28_spill] sm:$0xff] %v8975_v60  ;;  %v8987_v61 = vsub.f32 %v13751_v56, %v8671_v22  ;;  %v8991_v26 = vsub.f32 %v13753_v57, %v8701_v34  ;;  %v13755_v45 = vld [vmem:[#allocation43_spill] sm:$0xff]  ;;  %v13757_v60 = vld [vmem:[#allocation45_spill] sm:$0xff] }
 0x256   :  { %13748 = vst [vmem:[#allocation47_spill] sm:$0xff] %v8979_v21  ;;  %13750 = vst [vmem:[#allocation48_spill] sm:$0xff] %v8983_v27  ;;  %v8995_v62 = vsub.f32 %v13755_v45, %v8667_v6  ;;  %v8999_v42 = vsub.f32 %v13757_v60, %v8704_v50  ;;  %v13759_v21 = vld [vmem:[#allocation44_spill] sm:$0xff]  ;;  %v13761_v27 = vld [vmem:[#allocation46_spill] sm:$0xff] }
 0x257   :  { %13752 = vst [vmem:[#allocation49_spill] sm:$0xff] %v8987_v61  ;;  %13754 = vst [vmem:[#allocation50_spill] sm:$0xff] %v8991_v26  ;;  %v9003_v0 = vsub.f32 %v13759_v21, %v8698_v18  ;;  %v9007_v56 = vsub.f32 %v13761_v27, %v8727_v10  ;;  %v13763_v61 = vld [vmem:[#allocation64_spill] sm:$0xff]  ;;  %v13765_v26 = vld [vmem:[#allocation65_spill] sm:$0xff] }
 0x258   :  { %13756 = vst [vmem:[#allocation43_spill] sm:$0xff] %v8995_v62  ;;  %13758 = vst [vmem:[#allocation45_spill] sm:$0xff] %v8999_v42  ;;  %v9011_v57 = vsub.f32 %v13763_v61, %v8664_v41  ;;  %v9015_v45 = vsub.f32 %v13765_v26, %v8674_v63  ;;  %v13767_v62 = vld [vmem:[#allocation66_spill] sm:$0xff]  ;;  %v13769_v42 = vld [vmem:[#allocation67_spill] sm:$0xff] }
 0x259   :  { %13760 = vst [vmem:[#allocation44_spill] sm:$0xff] %v9003_v0  ;;  %13762 = vst [vmem:[#allocation46_spill] sm:$0xff] %v9007_v56  ;;  %v9019_v60 = vsub.f32 %v13767_v62, %v8671_v22  ;;  %v9023_v21 = vsub.f32 %v13769_v42, %v8701_v34  ;;  %v13771_v0 = vld [vmem:[#allocation60_spill] sm:$0xff]  ;;  %v13773_v56 = vld [vmem:[#allocation62_spill] sm:$0xff] }
 0x25a   :  { %13764 = vst [vmem:[#allocation64_spill] sm:$0xff] %v9011_v57  ;;  %13766 = vst [vmem:[#allocation65_spill] sm:$0xff] %v9015_v45  ;;  %v9027_v27 = vsub.f32 %v13771_v0, %v8667_v6  ;;  %v9031_v61 = vsub.f32 %v13773_v56, %v8704_v50  ;;  %v13775_v57 = vld [vmem:[#allocation61_spill] sm:$0xff]  ;;  %v13777_v45 = vld [vmem:[#allocation63_spill] sm:$0xff] }
 0x25b   :  { %13768 = vst [vmem:[#allocation66_spill] sm:$0xff] %v9019_v60  ;;  %13770 = vst [vmem:[#allocation67_spill] sm:$0xff] %v9023_v21  ;;  %v9035_v26 = vsub.f32 %v13775_v57, %v8698_v18  ;;  %v9039_v62 = vsub.f32 %v13777_v45, %v8727_v10  ;;  %v13779_v60 = vld [vmem:[#allocation27_spill] sm:$0xff] }
 0x25c   :  { %13772 = vst [vmem:[#allocation60_spill] sm:$0xff] %v9027_v27  ;;  %13774 = vst [vmem:[#allocation62_spill] sm:$0xff] %v9031_v61  ;;  %v9043_v42 = vsub.f32 %v13779_v60, %v8664_v41  ;;  %v13781_v21 = vld [vmem:[#allocation79_spill] sm:$0xff]  ;;  %v13783_v27 = vld [vmem:[#allocation80_spill] sm:$0xff] }
 0x25d   :  { %13776 = vst [vmem:[#allocation61_spill] sm:$0xff] %v9035_v26  ;;  %13778 = vst [vmem:[#allocation63_spill] sm:$0xff] %v9039_v62  ;;  %v9047_v0 = vsub.f32 %v13781_v21, %v8674_v63  ;;  %v9051_v56 = vsub.f32 %v13783_v27, %v8671_v22  ;;  %v13785_v61 = vld [vmem:[#allocation81_spill] sm:$0xff]  ;;  %v13787_v26 = vld [vmem:[#allocation18_spill] sm:$0xff] }
 0x25e   :  { %13780 = vst [vmem:[#allocation27_spill] sm:$0xff] %v9043_v42  ;;  %v9055_v57 = vsub.f32 %v13785_v61, %v8701_v34  ;;  %v9059_v45 = vsub.f32 %v13787_v26, %v8667_v6  ;;  %v13789_v62 = vld [vmem:[#allocation77_spill] sm:$0xff]  ;;  %v13791_v42 = vld [vmem:[#allocation76_spill] sm:$0xff] }
 0x25f   :  { %13782 = vst [vmem:[#allocation79_spill] sm:$0xff] %v9047_v0  ;;  %13784 = vst [vmem:[#allocation80_spill] sm:$0xff] %v9051_v56  ;;  %v9063_v60 = vsub.f32 %v13789_v62, %v8704_v50  ;;  %v9067_v21 = vsub.f32 %v13791_v42, %v8698_v18  ;;  %v13793_v0 = vld [vmem:[#allocation78_spill] sm:$0xff]  ;;  %v13795_v56 = vld [vmem:[#allocation88_spill] sm:$0xff] }
 0x260   :  { %13786 = vst [vmem:[#allocation81_spill] sm:$0xff] %v9055_v57  ;;  %13788 = vst [vmem:[#allocation18_spill] sm:$0xff] %v9059_v45  ;;  %v9071_v27 = vsub.f32 %v13793_v0, %v8727_v10  ;;  %v9075_v61 = vsub.f32 %v13795_v56, %v8664_v41  ;;  %v13797_v57 = vld [vmem:[#allocation90_spill] sm:$0xff]  ;;  %v13799_v45 = vld [vmem:[#allocation89_spill] sm:$0xff] }
 0x261   :  { %13790 = vst [vmem:[#allocation77_spill] sm:$0xff] %v9063_v60  ;;  %13792 = vst [vmem:[#allocation76_spill] sm:$0xff] %v9067_v21  ;;  %v9079_v26 = vsub.f32 %v13797_v57, %v8674_v63  ;;  %v9083_v62 = vsub.f32 %v13799_v45, %v8671_v22  ;;  %v13801_v60 = vld [vmem:[#allocation91_spill] sm:$0xff] }
 0x262   :  { %13794 = vst [vmem:[#allocation78_spill] sm:$0xff] %v9071_v27  ;;  %13796 = vst [vmem:[#allocation88_spill] sm:$0xff] %v9075_v61  ;;  %v9087_v42 = vsub.f32 %v13801_v60, %v8701_v34  ;;  %v13803_v21 = vld [vmem:[#allocation23_spill] sm:$0xff]  ;;  %v13805_v27 = vld [vmem:[#allocation86_spill] sm:$0xff] }
 0x263   :  { %13798 = vst [vmem:[#allocation90_spill] sm:$0xff] %v9079_v26  ;;  %13800 = vst [vmem:[#allocation89_spill] sm:$0xff] %v9083_v62  ;;  %v9091_v0 = vsub.f32 %v13803_v21, %v8667_v6  ;;  %v9095_v56 = vsub.f32 %v13805_v27, %v8704_v50  ;;  %v13807_v61 = vld [vmem:[#allocation29_spill] sm:$0xff]  ;;  %v13809_v26 = vld [vmem:[#allocation87_spill] sm:$0xff] }
 0x264   :  { %13802 = vst [vmem:[#allocation91_spill] sm:$0xff] %v9087_v42  ;;  %v9099_v57 = vsub.f32 %v13807_v61, %v8698_v18  ;;  %v9103_v45 = vsub.f32 %v13809_v26, %v8727_v10  ;;  %v13811_v62 = vld [vmem:[#allocation98_spill] sm:$0xff]  ;;  %v13813_v42 = vld [vmem:[#allocation99_spill] sm:$0xff] }
 0x265   :  { %13804 = vst [vmem:[#allocation23_spill] sm:$0xff] %v9091_v0  ;;  %13806 = vst [vmem:[#allocation86_spill] sm:$0xff] %v9095_v56  ;;  %v9107_v60 = vsub.f32 %v13811_v62, %v8664_v41  ;;  %v9111_v21 = vsub.f32 %v13813_v42, %v8674_v63  ;;  %v13815_v0 = vld [vmem:[#allocation100_spill] sm:$0xff]  ;;  %v13817_v56 = vld [vmem:[#allocation101_spill] sm:$0xff] }
 0x266   :  { %13808 = vst [vmem:[#allocation29_spill] sm:$0xff] %v9099_v57  ;;  %13810 = vst [vmem:[#allocation87_spill] sm:$0xff] %v9103_v45  ;;  %v9115_v27 = vsub.f32 %v13815_v0, %v8671_v22  ;;  %v9119_v61 = vsub.f32 %v13817_v56, %v8701_v34  ;;  %v13819_v57 = vld [vmem:[#allocation94_spill] sm:$0xff]  ;;  %v13821_v45 = vld [vmem:[#allocation95_spill] sm:$0xff] }
 0x267   :  { %13812 = vst [vmem:[#allocation98_spill] sm:$0xff] %v9107_v60  ;;  %13814 = vst [vmem:[#allocation99_spill] sm:$0xff] %v9111_v21  ;;  %v9123_v26 = vsub.f32 %v13819_v57, %v8667_v6  ;;  %v9127_v62 = vsub.f32 %v13821_v45, %v8704_v50  ;;  %v13823_v60 = vld [vmem:[#allocation96_spill] sm:$0xff]  ;;  %v13825_v21 = vld [vmem:[#allocation97_spill] sm:$0xff] }
 0x268   :  { %13816 = vst [vmem:[#allocation100_spill] sm:$0xff] %v9115_v27  ;;  %13818 = vst [vmem:[#allocation101_spill] sm:$0xff] %v9119_v61  ;;  %v9131_v42 = vsub.f32 %v13823_v60, %v8698_v18  ;;  %v9135_v0 = vsub.f32 %v13825_v21, %v8727_v10  ;;  %v13827_v27 = vld [vmem:[#allocation19_spill] sm:$0xff]  ;;  %v13829_v61 = vld [vmem:[#allocation109_spill] sm:$0xff] }
 0x269   :  { %13820 = vst [vmem:[#allocation94_spill] sm:$0xff] %v9123_v26  ;;  %13822 = vst [vmem:[#allocation95_spill] sm:$0xff] %v9127_v62  ;;  %v9139_v56 = vsub.f32 %v13827_v27, %v8664_v41  ;;  %v9143_v57 = vsub.f32 %v13829_v61, %v8674_v63  ;;  %v13831_v26 = vld [vmem:[#allocation75_spill] sm:$0xff]  ;;  %v13833_v62 = vld [vmem:[#allocation110_spill] sm:$0xff] }
 0x26a   :  { %13824 = vst [vmem:[#allocation96_spill] sm:$0xff] %v9131_v42  ;;  %13826 = vst [vmem:[#allocation97_spill] sm:$0xff] %v9135_v0  ;;  %v9147_v45 = vsub.f32 %v13831_v26, %v8671_v22  ;;  %v9151_v60 = vsub.f32 %v13833_v62, %v8701_v34  ;;  %v13835_v42 = vld [vmem:[#allocation105_spill] sm:$0xff]  ;;  %v13837_v0 = vld [vmem:[#allocation107_spill] sm:$0xff]  ;;  %v9171_v62 = vsub.f32 %v8628_v49, %v8664_v41 }
 0x26b   :  { %13828 = vst [vmem:[#allocation19_spill] sm:$0xff] %v9139_v56  ;;  %13830 = vst [vmem:[#allocation109_spill] sm:$0xff] %v9143_v57  ;;  %v9155_v21 = vsub.f32 %v13835_v42, %v8667_v6  ;;  %v9159_v27 = vsub.f32 %v13837_v0, %v8704_v50  ;;  %v13839_v56 = vld [vmem:[#allocation106_spill] sm:$0xff]  ;;  %v13841_v57 = vld [vmem:[#allocation108_spill] sm:$0xff]  ;;  %v9175_v42 = vsub.f32 %v8630_v13, %v8674_v63 }
 0x26c   :  { %13832 = vst [vmem:[#allocation75_spill] sm:$0xff] %v9147_v45  ;;  %13834 = vst [vmem:[#allocation110_spill] sm:$0xff] %v9151_v60  ;;  %v9163_v61 = vsub.f32 %v13839_v56, %v8698_v18  ;;  %v9167_v26 = vsub.f32 %v13841_v57, %v8727_v10  ;;  %v9179_v0 = vsub.f32 %v8632_v8, %v8671_v22 }
 0x26d   :  { %13836 = vst [vmem:[#allocation105_spill] sm:$0xff] %v9155_v21  ;;  %13838 = vst [vmem:[#allocation107_spill] sm:$0xff] %v9159_v27  ;;  %v9183_v56 = vsub.f32 %v8634_v59, %v8701_v34  ;;  %v9187_v57 = vsub.f32 %v8617_v23, %v8667_v6  ;;  %v9191_v49 = vsub.f32 %v8622_v52, %v8704_v50 }
 0x26e   :  { %13840 = vst [vmem:[#allocation106_spill] sm:$0xff] %v9163_v61  ;;  %13842 = vst [vmem:[#allocation108_spill] sm:$0xff] %v9167_v26  ;;  %v9195_v13 = vsub.f32 %v8619_v36, %v8698_v18  ;;  %v9199_v8 = vsub.f32 %v8624_v35, %v8727_v10  ;;  %v9203_v59 = vmul.f32 %v8678_v11, %v8678_v11  ;;  %v13863_v11 = vld [vmem:[#allocation59_spill] sm:$0xff] }
 0x26f   :  { %13843 = vst [vmem:[#allocation127_spill] sm:$0xff] %v9171_v62  ;;  %13844 = vst [vmem:[#allocation128_spill] sm:$0xff] %v9175_v42  ;;  %v9207_v23 = vmul.f32 %v8708_v9, %v8708_v9  ;;  %v9211_v52 = vmul.f32 %v8712_v43, %v8712_v43  ;;  %v9215_v36 = vmul.f32 %v8731_v17, %v8731_v17  ;;  %v13853_v17 = vld [vmem:[#allocation35_spill] sm:$0xff]  ;;  %v13857_v9 = vld [vmem:[#allocation58_spill] sm:$0xff] }
 0x270   :  { %13845 = vst [vmem:[#allocation129_spill] sm:$0xff] %v9179_v0  ;;  %13846 = vst [vmem:[#allocation130_spill] sm:$0xff] %v9183_v56  ;;  %v9219_v35 = vmul.f32 %v8716_v51, %v8716_v51  ;;  %v9223_v41 = vmul.f32 %v8735_v28, %v8735_v28  ;;  %v9227_v6 = vmul.f32 %v8739_v32, %v8739_v32  ;;  %v13856_v51 = vld [vmem:[#allocation37_spill] sm:$0xff] }
 0x271   :  { %13847 = vst [vmem:[#allocation131_spill] sm:$0xff] %v9187_v57  ;;  %13848 = vst [vmem:[#allocation132_spill] sm:$0xff] %v9191_v49  ;;  %v9231_v22 = vmul.f32 %v8759_v46, %v8759_v46  ;;  %v9235_v63 = vmul.f32 %v8682_v44, %v8682_v44  ;;  %v9239_v18 = vmul.f32 %v8720_v47, %v8720_v47  ;;  %v13855_v47 = vld [vmem:[#allocation11_spill] sm:$0xff] }
 0x272   :  { %13849 = vst [vmem:[#allocation133_spill] sm:$0xff] %v9195_v13  ;;  %13850 = vst [vmem:[#allocation134_spill] sm:$0xff] %v9199_v8  ;;  %v9243_v34 = vmul.f32 %v8724_v25, %v8724_v25  ;;  %v9247_v50 = vmul.f32 %v8743_v37, %v8743_v37  ;;  %v9251_v10 = vmul.f32 %v8747_v48, %v8747_v48  ;;  %v13854_v25 = vld [vmem:[#allocation36_spill] sm:$0xff]  ;;  %v13861_v44 = vld [vmem:[#allocation39_spill] sm:$0xff] }
 0x273   :  { %13851 = vst [vmem:[#allocation135_spill] sm:$0xff] %v9231_v22  ;;  %v9255_v46 = vmul.f32 %v8751_v19, %v8751_v19  ;;  %v9259_v32 = vmul.f32 %v8755_v58, %v8755_v58  ;;  %v9263_v28 = vmul.f32 %v8763_v3, %v8763_v3  ;;  %v9267_v37 = vmul.f32 %v8686_v38, %v8686_v38  ;;  %v13859_v38 = vld [vmem:[#allocation57_spill] sm:$0xff]  ;;  %v13867_v8 = vld [vmem:[#allocation52_spill] sm:$0xff] }
 0x274   :  { %v9271_v48 = vmul.f32 %v8767_v24, %v8767_v24  ;;  %v9275_v19 = vmul.f32 %v13853_v17, %v13853_v17  ;;  %v9279_v58 = vmul.f32 %v13854_v25, %v13854_v25  ;;  %v9283_v3 = vmul.f32 %v13855_v47, %v13855_v47 }
 0x275   :  { %13852 = vst [vmem:[#allocation136_spill] sm:$0xff] %v9263_v28  ;;  %v9287_v43 = vmul.f32 %v13856_v51, %v13856_v51  ;;  %v9291_v24 = vmul.f32 %v13857_v9, %v13857_v9  ;;  %v9295_v17 = vmul.f32 %v13859_v38, %v13859_v38  ;;  %v9299_v25 = vmul.f32 %v13861_v44, %v13861_v44 }
 0x276   :  { %v9303_v47 = vmul.f32 %v13863_v11, %v13863_v11  ;;  %v9307_v51 = vmul.f32 %v8799_v12, %v8799_v12  ;;  %v9311_v9 = vmul.f32 %v8803_v30, %v8803_v30  ;;  %v9315_v38 = vmul.f32 %v13867_v8, %v13867_v8 }
 0x277   :  { %13858 = vst [vmem:[#allocation137_spill] sm:$0xff] %v9291_v24  ;;  %13860 = vst [vmem:[#allocation138_spill] sm:$0xff] %v9295_v17  ;;  %v13868_v17 = vld [vmem:[#allocation54_spill] sm:$0xff] }
 0x278   :  { %13862 = vst [vmem:[#allocation139_spill] sm:$0xff] %v9299_v25  ;;  %13864 = vst [vmem:[#allocation140_spill] sm:$0xff] %v9303_v47  ;;  %v9319_v44 = vmul.f32 %v13868_v17, %v13868_v17  ;;  %v13869_v25 = vld [vmem:[#allocation16_spill] sm:$0xff]  ;;  %v13871_v47 = vld [vmem:[#allocation73_spill] sm:$0xff]  ;;  %v9339_v17 = vmul.f32 %v8827_v31, %v8827_v31  ;;  %v9359_v31 = vmul.f32 %v8847_v54, %v8847_v54 }
 0x279   :  { %13865 = vst [vmem:[#allocation141_spill] sm:$0xff] %v9307_v51  ;;  %13866 = vst [vmem:[#allocation142_spill] sm:$0xff] %v9311_v9  ;;  %v9323_v11 = vmul.f32 %v13869_v25, %v13869_v25  ;;  %v9327_v12 = vmul.f32 %v13871_v47, %v13871_v47  ;;  %v13873_v51 = vld [vmem:[#allocation55_spill] sm:$0xff]  ;;  %v13874_v9 = vld [vmem:[#allocation74_spill] sm:$0xff]  ;;  %v9343_v25 = vmul.f32 %v8831_v55, %v8831_v55 }
 0x27a   :  { %v9331_v30 = vmul.f32 %v13873_v51, %v13873_v51  ;;  %v9335_v8 = vmul.f32 %v13874_v9, %v13874_v9  ;;  %13875 = vst [vmem:[#allocation145_spill] sm:$0xff] %v9339_v17  ;;  %v9347_v47 = vmul.f32 %v8835_v1, %v8835_v1  ;;  %v9351_v51 = vmul.f32 %v8839_v14, %v8839_v14  ;;  %v13880_v17 = vld [vmem:[#allocation83_spill] sm:$0xff] }
 0x27b   :  { %13870 = vst [vmem:[#allocation143_spill] sm:$0xff] %v9323_v11  ;;  %13872 = vst [vmem:[#allocation144_spill] sm:$0xff] %v9327_v12  ;;  %v9355_v9 = vmul.f32 %v8843_v40, %v8843_v40  ;;  %v9363_v55 = vmul.f32 %v13880_v17, %v13880_v17  ;;  %v9371_v14 = vmul.f32 %v8859_v29, %v8859_v29 }
 0x27c   :  { %13876 = vst [vmem:[#allocation146_spill] sm:$0xff] %v9343_v25  ;;  %13877 = vst [vmem:[#allocation147_spill] sm:$0xff] %v9351_v51  ;;  %v13881_v25 = vld [vmem:[#allocation84_spill] sm:$0xff]  ;;  %v9375_v40 = vmul.f32 %v8863_v53, %v8863_v53  ;;  %v9379_v54 = vmul.f32 %v8867_v5, %v8867_v5  ;;  %v9383_v17 = vmul.f32 %v8871_v33, %v8871_v33 }
 0x27d   :  { %13878 = vst [vmem:[#allocation148_spill] sm:$0xff] %v9355_v9  ;;  %13879 = vst [vmem:[#allocation149_spill] sm:$0xff] %v9359_v31  ;;  %v9367_v1 = vmul.f32 %v13881_v25, %v13881_v25  ;;  %v9387_v25 = vmul.f32 %v8875_v4, %v8875_v4  ;;  %v9403_v33 = vmul.f32 %v8891_v7, %v8891_v7 }
 0x27e   :  { %13883 = vst [vmem:[#allocation151_spill] sm:$0xff] %v9371_v14  ;;  %13884 = vst [vmem:[#allocation152_spill] sm:$0xff] %v9375_v40  ;;  %v13890_v14 = vld [vmem:[#allocation116_spill] sm:$0xff]  ;;  %v13891_v40 = vld [vmem:[#allocation117_spill] sm:$0xff]  ;;  %v9407_v4 = vmul.f32 %v8895_v39, %v8895_v39  ;;  %v9423_v7 = vmul.f32 %v8911_v20, %v8911_v20 }
 0x27f   :  { %13882 = vst [vmem:[#allocation150_spill] sm:$0xff] %v9367_v1  ;;  %13885 = vst [vmem:[#allocation153_spill] sm:$0xff] %v9379_v54  ;;  %v13888_v1 = vld [vmem:[#allocation93_spill] sm:$0xff]  ;;  %v9395_v53 = vmul.f32 %v13890_v14, %v13890_v14  ;;  %v9399_v5 = vmul.f32 %v13891_v40, %v13891_v40  ;;  %v9415_v14 = vmul.f32 %v8903_v16, %v8903_v16 }
 0x280   :  { %13886 = vst [vmem:[#allocation154_spill] sm:$0xff] %v9383_v17  ;;  %13887 = vst [vmem:[#allocation155_spill] sm:$0xff] %v9387_v25  ;;  %v9391_v29 = vmul.f32 %v13888_v1, %v13888_v1  ;;  %v9411_v1 = vmul.f32 %v8899_v15, %v8899_v15  ;;  %v9419_v40 = vmul.f32 %v8907_v2, %v8907_v2 }
 0x281   :  { %13892 = vst [vmem:[#allocation157_spill] sm:$0xff] %v9403_v33  ;;  %13893 = vst [vmem:[#allocation158_spill] sm:$0xff] %v9407_v4  ;;  %v13898_v33 = vld [vmem:[#allocation121_spill] sm:$0xff]  ;;  %v13900_v4 = vld [vmem:[#allocation122_spill] sm:$0xff] }
 0x282   :  { %13889 = vst [vmem:[#allocation156_spill] sm:$0xff] %v9391_v29  ;;  %13894 = vst [vmem:[#allocation159_spill] sm:$0xff] %v9411_v1  ;;  %v9427_v39 = vmul.f32 %v13898_v33, %v13898_v33  ;;  %v9431_v15 = vmul.f32 %v13900_v4, %v13900_v4  ;;  %v13902_v1 = vld [vmem:[#allocation123_spill] sm:$0xff] }
 0x283   :  { %13895 = vst [vmem:[#allocation160_spill] sm:$0xff] %v9415_v14  ;;  %13896 = vst [vmem:[#allocation161_spill] sm:$0xff] %v9419_v40  ;;  %v9435_v16 = vmul.f32 %v13902_v1, %v13902_v1  ;;  %v13904_v14 = vld [vmem:[#allocation124_spill] sm:$0xff]  ;;  %v13906_v40 = vld [vmem:[#allocation125_spill] sm:$0xff] }
 0x284   :  { %13897 = vst [vmem:[#allocation162_spill] sm:$0xff] %v9423_v7  ;;  %13899 = vst [vmem:[#allocation163_spill] sm:$0xff] %v9427_v39  ;;  %v9439_v2 = vmul.f32 %v13904_v14, %v13904_v14  ;;  %v9443_v20 = vmul.f32 %v13906_v40, %v13906_v40  ;;  %v13908_v7 = vld [vmem:[#allocation126_spill] sm:$0xff]  ;;  %v13910_v39 = vld [vmem:[#allocation111_spill] sm:$0xff] }
 0x285   :  { %13901 = vst [vmem:[#allocation164_spill] sm:$0xff] %v9431_v15  ;;  %13903 = vst [vmem:[#allocation165_spill] sm:$0xff] %v9435_v16  ;;  %v9447_v33 = vmul.f32 %v13908_v7, %v13908_v7  ;;  %v9451_v4 = vmul.f32 %v13910_v39, %v13910_v39  ;;  %v13912_v15 = vld [vmem:[#allocation112_spill] sm:$0xff]  ;;  %v13914_v16 = vld [vmem:[#allocation30_spill] sm:$0xff] }
 0x286   :  { %13905 = vst [vmem:[#allocation166_spill] sm:$0xff] %v9439_v2  ;;  %13907 = vst [vmem:[#allocation167_spill] sm:$0xff] %v9443_v20  ;;  %v9455_v1 = vmul.f32 %v13912_v15, %v13912_v15  ;;  %v9459_v14 = vmul.f32 %v13914_v16, %v13914_v16  ;;  %v13916_v2 = vld [vmem:[#allocation33_spill] sm:$0xff]  ;;  %v13918_v20 = vld [vmem:[#allocation31_spill] sm:$0xff] }
 0x287   :  { %13909 = vst [vmem:[#allocation168_spill] sm:$0xff] %v9447_v33  ;;  %13911 = vst [vmem:[#allocation169_spill] sm:$0xff] %v9451_v4  ;;  %v9463_v40 = vmul.f32 %v13916_v2, %v13916_v2  ;;  %v9467_v7 = vmul.f32 %v13918_v20, %v13918_v20  ;;  %v13920_v33 = vld [vmem:[#allocation34_spill] sm:$0xff] }
 0x288   :  { %13913 = vst [vmem:[#allocation170_spill] sm:$0xff] %v9455_v1  ;;  %13915 = vst [vmem:[#allocation171_spill] sm:$0xff] %v9459_v14  ;;  %v9471_v39 = vmul.f32 %v13920_v33, %v13920_v33  ;;  %v13922_v4 = vld [vmem:[#allocation22_spill] sm:$0xff]  ;;  %v13924_v1 = vld [vmem:[#allocation24_spill] sm:$0xff] }
 0x289   :  { %13917 = vst [vmem:[#allocation172_spill] sm:$0xff] %v9463_v40  ;;  %13919 = vst [vmem:[#allocation173_spill] sm:$0xff] %v9467_v7  ;;  %v9475_v15 = vmul.f32 %v13922_v4, %v13922_v4  ;;  %v9479_v16 = vmul.f32 %v13924_v1, %v13924_v1  ;;  %v13926_v14 = vld [vmem:[#allocation25_spill] sm:$0xff]  ;;  %v13928_v40 = vld [vmem:[#allocation28_spill] sm:$0xff] }
 0x28a   :  { %13921 = vst [vmem:[#allocation174_spill] sm:$0xff] %v9471_v39  ;;  %v9483_v2 = vmul.f32 %v13926_v14, %v13926_v14  ;;  %v9487_v20 = vmul.f32 %v13928_v40, %v13928_v40  ;;  %v13930_v7 = vld [vmem:[#allocation47_spill] sm:$0xff]  ;;  %v13932_v39 = vld [vmem:[#allocation48_spill] sm:$0xff] }
 0x28b   :  { %13923 = vst [vmem:[#allocation175_spill] sm:$0xff] %v9475_v15  ;;  %13925 = vst [vmem:[#allocation176_spill] sm:$0xff] %v9479_v16  ;;  %v9491_v33 = vmul.f32 %v13930_v7, %v13930_v7  ;;  %v9495_v4 = vmul.f32 %v13932_v39, %v13932_v39  ;;  %v13934_v15 = vld [vmem:[#allocation49_spill] sm:$0xff]  ;;  %v13936_v16 = vld [vmem:[#allocation50_spill] sm:$0xff] }
 0x28c   :  { %13927 = vst [vmem:[#allocation177_spill] sm:$0xff] %v9483_v2  ;;  %13929 = vst [vmem:[#allocation178_spill] sm:$0xff] %v9487_v20  ;;  %v9499_v1 = vmul.f32 %v13934_v15, %v13934_v15  ;;  %v9503_v14 = vmul.f32 %v13936_v16, %v13936_v16  ;;  %v13938_v2 = vld [vmem:[#allocation43_spill] sm:$0xff]  ;;  %v13940_v20 = vld [vmem:[#allocation45_spill] sm:$0xff] }
 0x28d   :  { %13931 = vst [vmem:[#allocation179_spill] sm:$0xff] %v9491_v33  ;;  %13933 = vst [vmem:[#allocation180_spill] sm:$0xff] %v9495_v4  ;;  %v9507_v40 = vmul.f32 %v13938_v2, %v13938_v2  ;;  %v9511_v7 = vmul.f32 %v13940_v20, %v13940_v20  ;;  %v13942_v33 = vld [vmem:[#allocation44_spill] sm:$0xff]  ;;  %v13944_v4 = vld [vmem:[#allocation46_spill] sm:$0xff] }
 0x28e   :  { %13935 = vst [vmem:[#allocation181_spill] sm:$0xff] %v9499_v1  ;;  %13937 = vst [vmem:[#allocation182_spill] sm:$0xff] %v9503_v14  ;;  %v9515_v39 = vmul.f32 %v13942_v33, %v13942_v33  ;;  %v9519_v15 = vmul.f32 %v13944_v4, %v13944_v4  ;;  %v13946_v1 = vld [vmem:[#allocation64_spill] sm:$0xff]  ;;  %v13948_v14 = vld [vmem:[#allocation65_spill] sm:$0xff] }
 0x28f   :  { %13939 = vst [vmem:[#allocation183_spill] sm:$0xff] %v9507_v40  ;;  %13941 = vst [vmem:[#allocation184_spill] sm:$0xff] %v9511_v7  ;;  %v9523_v16 = vmul.f32 %v13946_v1, %v13946_v1  ;;  %v9527_v2 = vmul.f32 %v13948_v14, %v13948_v14  ;;  %v13950_v40 = vld [vmem:[#allocation66_spill] sm:$0xff]  ;;  %v13952_v7 = vld [vmem:[#allocation67_spill] sm:$0xff] }
 0x290   :  { %13943 = vst [vmem:[#allocation185_spill] sm:$0xff] %v9515_v39  ;;  %13945 = vst [vmem:[#allocation186_spill] sm:$0xff] %v9519_v15  ;;  %v9531_v20 = vmul.f32 %v13950_v40, %v13950_v40  ;;  %v9535_v33 = vmul.f32 %v13952_v7, %v13952_v7  ;;  %v13954_v39 = vld [vmem:[#allocation60_spill] sm:$0xff]  ;;  %v13956_v15 = vld [vmem:[#allocation62_spill] sm:$0xff] }
 0x291   :  { %13947 = vst [vmem:[#allocation187_spill] sm:$0xff] %v9523_v16  ;;  %13949 = vst [vmem:[#allocation188_spill] sm:$0xff] %v9527_v2  ;;  %v9539_v4 = vmul.f32 %v13954_v39, %v13954_v39  ;;  %v9543_v1 = vmul.f32 %v13956_v15, %v13956_v15  ;;  %v13958_v16 = vld [vmem:[#allocation61_spill] sm:$0xff]  ;;  %v13960_v2 = vld [vmem:[#allocation63_spill] sm:$0xff] }
 0x292   :  { %13951 = vst [vmem:[#allocation189_spill] sm:$0xff] %v9531_v20  ;;  %13953 = vst [vmem:[#allocation190_spill] sm:$0xff] %v9535_v33  ;;  %v9547_v14 = vmul.f32 %v13958_v16, %v13958_v16  ;;  %v9551_v40 = vmul.f32 %v13960_v2, %v13960_v2  ;;  %v13962_v20 = vld [vmem:[#allocation27_spill] sm:$0xff]  ;;  %v14039_v31 = vld [vmem:[#allocation164_spill] sm:$0xff] }
 0x293   :  { %13955 = vst [vmem:[#allocation191_spill] sm:$0xff] %v9539_v4  ;;  %13957 = vst [vmem:[#allocation192_spill] sm:$0xff] %v9543_v1  ;;  %v9555_v7 = vmul.f32 %v13962_v20, %v13962_v20  ;;  %v13964_v33 = vld [vmem:[#allocation79_spill] sm:$0xff]  ;;  %v13966_v4 = vld [vmem:[#allocation80_spill] sm:$0xff] }
 0x294   :  { %13959 = vst [vmem:[#allocation193_spill] sm:$0xff] %v9547_v14  ;;  %13961 = vst [vmem:[#allocation194_spill] sm:$0xff] %v9551_v40  ;;  %v9559_v39 = vmul.f32 %v13964_v33, %v13964_v33  ;;  %v9563_v15 = vmul.f32 %v13966_v4, %v13966_v4  ;;  %v13968_v1 = vld [vmem:[#allocation81_spill] sm:$0xff]  ;;  %v13970_v14 = vld [vmem:[#allocation18_spill] sm:$0xff] }
 0x295   :  { %13963 = vst [vmem:[#allocation195_spill] sm:$0xff] %v9555_v7  ;;  %v9567_v16 = vmul.f32 %v13968_v1, %v13968_v1  ;;  %v9571_v2 = vmul.f32 %v13970_v14, %v13970_v14  ;;  %v13972_v40 = vld [vmem:[#allocation77_spill] sm:$0xff]  ;;  %v13974_v7 = vld [vmem:[#allocation76_spill] sm:$0xff]  ;;  %v14038_v12 = vld [vmem:[#allocation163_spill] sm:$0xff] }
 0x296   :  { %13965 = vst [vmem:[#allocation196_spill] sm:$0xff] %v9559_v39  ;;  %13967 = vst [vmem:[#allocation197_spill] sm:$0xff] %v9563_v15  ;;  %v9575_v20 = vmul.f32 %v13972_v40, %v13972_v40  ;;  %v9579_v33 = vmul.f32 %v13974_v7, %v13974_v7  ;;  %v13976_v39 = vld [vmem:[#allocation78_spill] sm:$0xff]  ;;  %v13978_v15 = vld [vmem:[#allocation88_spill] sm:$0xff] }
 0x297   :  { %13969 = vst [vmem:[#allocation198_spill] sm:$0xff] %v9567_v16  ;;  %13971 = vst [vmem:[#allocation199_spill] sm:$0xff] %v9571_v2  ;;  %v9583_v4 = vmul.f32 %v13976_v39, %v13976_v39  ;;  %v9587_v1 = vmul.f32 %v13978_v15, %v13978_v15  ;;  %v13980_v16 = vld [vmem:[#allocation90_spill] sm:$0xff]  ;;  %v13982_v2 = vld [vmem:[#allocation89_spill] sm:$0xff] }
 0x298   :  { %13973 = vst [vmem:[#allocation200_spill] sm:$0xff] %v9575_v20  ;;  %13975 = vst [vmem:[#allocation201_spill] sm:$0xff] %v9579_v33  ;;  %v9591_v14 = vmul.f32 %v13980_v16, %v13980_v16  ;;  %v9595_v40 = vmul.f32 %v13982_v2, %v13982_v2  ;;  %v13984_v20 = vld [vmem:[#allocation91_spill] sm:$0xff]  ;;  %v14040_v9 = vld [vmem:[#allocation165_spill] sm:$0xff] }
 0x299   :  { %13977 = vst [vmem:[#allocation202_spill] sm:$0xff] %v9583_v4  ;;  %13979 = vst [vmem:[#allocation203_spill] sm:$0xff] %v9587_v1  ;;  %v9599_v7 = vmul.f32 %v13984_v20, %v13984_v20  ;;  %v13986_v33 = vld [vmem:[#allocation23_spill] sm:$0xff]  ;;  %v13988_v4 = vld [vmem:[#allocation86_spill] sm:$0xff] }
 0x29a   :  { %13981 = vst [vmem:[#allocation204_spill] sm:$0xff] %v9591_v14  ;;  %13983 = vst [vmem:[#allocation205_spill] sm:$0xff] %v9595_v40  ;;  %v9603_v39 = vmul.f32 %v13986_v33, %v13986_v33  ;;  %v9607_v15 = vmul.f32 %v13988_v4, %v13988_v4  ;;  %v13990_v1 = vld [vmem:[#allocation29_spill] sm:$0xff]  ;;  %v13992_v14 = vld [vmem:[#allocation87_spill] sm:$0xff] }
 0x29b   :  { %13985 = vst [vmem:[#allocation206_spill] sm:$0xff] %v9599_v7  ;;  %v9611_v16 = vmul.f32 %v13990_v1, %v13990_v1  ;;  %v9615_v2 = vmul.f32 %v13992_v14, %v13992_v14  ;;  %v13994_v40 = vld [vmem:[#allocation98_spill] sm:$0xff]  ;;  %v13996_v7 = vld [vmem:[#allocation99_spill] sm:$0xff]  ;;  %v14047_v54 = vld [vmem:[#allocation172_spill] sm:$0xff] }
 0x29c   :  { %13987 = vst [vmem:[#allocation207_spill] sm:$0xff] %v9603_v39  ;;  %13989 = vst [vmem:[#allocation208_spill] sm:$0xff] %v9607_v15  ;;  %v9619_v20 = vmul.f32 %v13994_v40, %v13994_v40  ;;  %v9623_v33 = vmul.f32 %v13996_v7, %v13996_v7  ;;  %v13998_v39 = vld [vmem:[#allocation100_spill] sm:$0xff]  ;;  %v14000_v15 = vld [vmem:[#allocation101_spill] sm:$0xff] }
 0x29d   :  { %13991 = vst [vmem:[#allocation209_spill] sm:$0xff] %v9611_v16  ;;  %13993 = vst [vmem:[#allocation210_spill] sm:$0xff] %v9615_v2  ;;  %v9627_v4 = vmul.f32 %v13998_v39, %v13998_v39  ;;  %v9631_v1 = vmul.f32 %v14000_v15, %v14000_v15  ;;  %v14002_v16 = vld [vmem:[#allocation94_spill] sm:$0xff]  ;;  %v14003_v2 = vld [vmem:[#allocation95_spill] sm:$0xff] }
 0x29e   :  { %13995 = vst [vmem:[#allocation211_spill] sm:$0xff] %v9619_v20  ;;  %13997 = vst [vmem:[#allocation212_spill] sm:$0xff] %v9623_v33  ;;  %v9635_v14 = vmul.f32 %v14002_v16, %v14002_v16  ;;  %v9639_v40 = vmul.f32 %v14003_v2, %v14003_v2  ;;  %v14005_v20 = vld [vmem:[#allocation96_spill] sm:$0xff]  ;;  %v14007_v33 = vld [vmem:[#allocation97_spill] sm:$0xff]  ;;  %v9659_v2 = vmul.f32 %v9147_v45, %v9147_v45 }
 0x29f   :  { %13999 = vst [vmem:[#allocation213_spill] sm:$0xff] %v9627_v4  ;;  %14001 = vst [vmem:[#allocation214_spill] sm:$0xff] %v9631_v1  ;;  %v9643_v7 = vmul.f32 %v14005_v20, %v14005_v20  ;;  %v9647_v39 = vmul.f32 %v14007_v33, %v14007_v33  ;;  %v14009_v4 = vld [vmem:[#allocation19_spill] sm:$0xff]  ;;  %v14010_v1 = vld [vmem:[#allocation109_spill] sm:$0xff]  ;;  %v9663_v20 = vmul.f32 %v9151_v60, %v9151_v60 }
 0x2a0   :  { %14004 = vst [vmem:[#allocation215_spill] sm:$0xff] %v9639_v40  ;;  %v9651_v15 = vmul.f32 %v14009_v4, %v14009_v4  ;;  %v9655_v16 = vmul.f32 %v14010_v1, %v14010_v1  ;;  %v9667_v33 = vmul.f32 %v9155_v21, %v9155_v21  ;;  %v9671_v4 = vmul.f32 %v9159_v27, %v9159_v27  ;;  %v14029_v40 = vld [vmem:[#allocation150_spill] sm:$0xff]  ;;  %v14055_v17 = vld [vmem:[#allocation180_spill] sm:$0xff]  ;;  %v14066_v25 = vld [vmem:[#allocation187_spill] sm:$0xff] }
 0x2a1   :  { %14006 = vst [vmem:[#allocation216_spill] sm:$0xff] %v9643_v7  ;;  %14008 = vst [vmem:[#allocation217_spill] sm:$0xff] %v9647_v39  ;;  %v9675_v1 = vmul.f32 %v9163_v61, %v9163_v61  ;;  %v9679_v45 = vmul.f32 %v9167_v26, %v9167_v26  ;;  %v9683_v60 = vmul.f32 %v9171_v62, %v9171_v62  ;;  %v14031_v39 = vld [vmem:[#allocation152_spill] sm:$0xff] }
 0x2a2   :  { %14011 = vst [vmem:[#allocation218_spill] sm:$0xff] %v9667_v33  ;;  %14012 = vst [vmem:[#allocation219_spill] sm:$0xff] %v9671_v4  ;;  %v9687_v21 = vmul.f32 %v9175_v42, %v9175_v42  ;;  %v9691_v27 = vmul.f32 %v9179_v0, %v9179_v0  ;;  %v9695_v61 = vmul.f32 %v9183_v56, %v9183_v56  ;;  %v14028_v0 = vld [vmem:[#allocation146_spill] sm:$0xff]  ;;  %v14030_v33 = vld [vmem:[#allocation151_spill] sm:$0xff] }
 0x2a3   :  { %14013 = vst [vmem:[#allocation220_spill] sm:$0xff] %v9675_v1  ;;  %14014 = vst [vmem:[#allocation221_spill] sm:$0xff] %v9679_v45  ;;  %v9699_v26 = vmul.f32 %v9187_v57, %v9187_v57  ;;  %v9703_v62 = vmul.f32 %v9191_v49, %v9191_v49  ;;  %v9707_v42 = vmul.f32 %v9195_v13, %v9195_v13  ;;  %v14021_v45 = vld [vmem:[#allocation6_spill] sm:$0xff]  ;;  %v14023_v57 = vld [vmem:[#allocation139_spill] sm:$0xff] }
 0x2a4   :  { %14015 = vst [vmem:[#allocation222_spill] sm:$0xff] %v9687_v21  ;;  %14016 = vst [vmem:[#allocation223_spill] sm:$0xff] %v9691_v27  ;;  %v14024_v49 = vld [vmem:[#allocation140_spill] sm:$0xff]  ;;  %v14025_v1 = vld [vmem:[#allocation141_spill] sm:$0xff]  ;;  %v14057_v29 = vrot.slane %v9203_v59, %v14021_v45  ;;  %v14058_v11 = vrot.slane %v9207_v23, %v14021_v45  ;;  %v14059_v28 = vrot.slane %v9235_v63, %v14021_v45 }
 0x2a5   :  { %14017 = vst [vmem:[#allocation224_spill] sm:$0xff] %v9695_v61  ;;  %14018 = vst [vmem:[#allocation225_spill] sm:$0xff] %v9699_v26  ;;  %v14026_v13 = vld [vmem:[#allocation142_spill] sm:$0xff]  ;;  %v14027_v26 = vld [vmem:[#allocation145_spill] sm:$0xff]  ;;  %v14060_v22 = vrot.slane %v9239_v18, %v14021_v45  ;;  %v14072_v18 = vrot.slane %v9243_v34, %v14021_v45  ;;  %v14076_v59 = vrot.slane %v9267_v37, %v14021_v45 }
 0x2a6   :  { %14019 = vst [vmem:[#allocation226_spill] sm:$0xff] %v9703_v62  ;;  %14020 = vst [vmem:[#allocation227_spill] sm:$0xff] %v9707_v42  ;;  %v14032_v56 = vld [vmem:[#allocation157_spill] sm:$0xff]  ;;  %v14046_v27 = vld [vmem:[#allocation171_spill] sm:$0xff]  ;;  %v4957_v51 = vsel %vm3869_vm2, %v14058_v11, %v14057_v29  ;;  %v14071_v11 = vrot.slane %v9211_v52, %v14021_v45  ;;  %v14081_v61 = vrot.slane %v14023_v57, %v14021_v45 }
 0x2a7   :  { %v14054_v42 = vld [vmem:[#allocation179_spill] sm:$0xff]  ;;  %v4964_v21 = vsel %vm3869_vm2, %v14060_v22, %v14059_v28  ;;  %v14067_v28 = vld [vmem:[#allocation188_spill] sm:$0xff]  ;;  %v14080_v23 = vld [vmem:[#allocation197_spill] sm:$0xff]  ;;  %v14082_v37 = vrot.slane %v14024_v49, %v14021_v45  ;;  %v14086_v24 = vrot.slane %v9247_v50, %v14021_v45  ;;  %v14095_v4 = vrot.slane %v9335_v8, %v14021_v45 }
 0x2a8   :  { %v4958_v63 = vsel %vm3871_vm3, %v14071_v11, %v4957_v51  ;;  %v4965_v29 = vsel %vm3871_vm3, %v14072_v18, %v4964_v21  ;;  %v14077_v51 = vrot.slane %v9271_v48, %v14021_v45  ;;  %v14078_v34 = vld [vmem:[#allocation195_spill] sm:$0xff]  ;;  %v14079_v11 = vld [vmem:[#allocation196_spill] sm:$0xff]  ;;  %v14083_v48 = vld [vmem:[#allocation198_spill] sm:$0xff]  ;;  %v14085_v18 = vrot.slane %v9215_v36, %v14021_v45 }
 0x2a9   :  { %v4978_v7 = vsel %vm3869_vm2, %v14082_v37, %v14081_v61  ;;  %v4966_v57 = vsel %vm3873_vm4, %v14086_v24, %v4965_v29  ;;  %v14087_v49 = vld [vmem:[#allocation200_spill] sm:$0xff]  ;;  %v14090_v21 = vrot.slane %v9275_v19, %v14021_v45  ;;  %v14092_v50 = vld [vmem:[#allocation205_spill] sm:$0xff]  ;;  %v14093_v29 = vrot.slane %v14025_v1, %v14021_v45 }
 0x2aa   :  { %v4971_v52 = vsel %vm3869_vm2, %v14077_v51, %v14076_v59  ;;  %v14084_v51 = vld [vmem:[#allocation199_spill] sm:$0xff]  ;;  %v4959_v62 = vsel %vm3873_vm4, %v14085_v18, %v4958_v63  ;;  %v14091_v63 = vld [vmem:[#allocation204_spill] sm:$0xff]  ;;  %v14094_v37 = vrot.slane %v9331_v30, %v14021_v45  ;;  %v14098_v24 = vrot.slane %v9219_v35, %v14021_v45 }
 0x2ab   :  { %v14089_v59 = vld [vmem:[#allocation203_spill] sm:$0xff]  ;;  %v4972_v36 = vsel %vm3871_vm3, %v14090_v21, %v4971_v52  ;;  %v4979_v22 = vsel %vm3871_vm3, %v14093_v29, %v4978_v7  ;;  %v14096_v52 = vld [vmem:[#allocation206_spill] sm:$0xff]  ;;  %v14099_v7 = vrot.slane %v9251_v10, %v14021_v45  ;;  %v14100_v8 = vld [vmem:[#allocation208_spill] sm:$0xff]  ;;  %v14102_v21 = vrot.slane %v9279_v58, %v14021_v45 }
 0x2ac   :  { %v4985_v19 = vsel %vm3869_vm2, %v14095_v4, %v14094_v37  ;;  %v14097_v18 = vld [vmem:[#allocation207_spill] sm:$0xff]  ;;  %v4960_v1 = vsel %vm3875_vm5, %v14098_v24, %v4959_v62  ;;  %v14103_v35 = vrot.slane %v9363_v55, %v14021_v45  ;;  %v14104_v62 = vrot.slane %v14029_v40, %v14021_v45  ;;  %v14109_v40 = vld [vmem:[#allocation214_spill] sm:$0xff] }
 0x2ad   :  { %v4967_v30 = vsel %vm3875_vm5, %v14099_v7, %v4966_v57  ;;  %v14101_v4 = vld [vmem:[#allocation211_spill] sm:$0xff]  ;;  %v4973_v61 = vsel %vm3873_vm4, %v14102_v21, %v4972_v36  ;;  %v14105_v57 = vld [vmem:[#allocation212_spill] sm:$0xff]  ;;  %v14106_v7 = vld [vmem:[#allocation213_spill] sm:$0xff]  ;;  %v14107_v37 = vrot.slane %v14026_v13, %v14021_v45  ;;  %v14108_v36 = vrot.slane %v14027_v26, %v14021_v45 }
 0x2ae   :  { %v4992_v10 = vsel %vm3869_vm2, %v14104_v62, %v14103_v35  ;;  %v4868_v24 = vrot.slane %v14105_v57, %v14021_v45  ;;  %v4876_v21 = vrot.slane %v14109_v40, %v14021_v45  ;;  %v14110_v35 = vrot.slane %v9223_v41, %v14021_v45 }
 0x2af   :  { %v4980_v58 = vsel %vm3873_vm4, %v14107_v37, %v4979_v22  ;;  %v4986_v55 = vsel %vm3871_vm3, %v14108_v36, %v4985_v19  ;;  %v14111_v29 = vrot.slane %v9255_v46, %v14021_v45  ;;  %v14112_v22 = vrot.slane %v9395_v53, %v14021_v45 }
 0x2b0   :  { %v4961_v62 = vsel %vm3877_vm6, %v14110_v35, %v4960_v1  ;;  %v14113_v26 = vrot.slane %v9399_v5, %v14021_v45  ;;  %v4880_v37 = vrot.slane %v9635_v14, %v14021_v45  ;;  %v4896_v41 = vrot.slane %v9651_v15, %v14021_v45  ;;  %v14234_v14 = vld [vmem:[#allocation225_spill] sm:$0xff] }
 0x2b1   :  { %v4968_v13 = vsel %vm3877_vm6, %v14111_v29, %v4967_v30  ;;  %v14114_v1 = vrot.slane %v9283_v3, %v14021_v45  ;;  %v14115_v30 = vrot.slane %v14030_v33, %v14021_v45  ;;  %v4900_v5 = vrot.slane %v9655_v16, %v14021_v45 }
 0x2b2   :  { %v4999_v19 = vsel %vm3869_vm2, %v14113_v26, %v14112_v22  ;;  %v14116_v29 = vrot.slane %v9315_v38, %v14021_v45  ;;  %v14117_v35 = vrot.slane %v14028_v0, %v14021_v45  ;;  %v14119_v33 = vrot.slane %v14039_v31, %v14021_v45 }
 0x2b3   :  { %v4974_v46 = vsel %vm3875_vm5, %v14114_v1, %v4973_v61  ;;  %v4993_v53 = vsel %vm3871_vm3, %v14115_v30, %v4992_v10  ;;  %v14118_v61 = vrot.slane %v14038_v12, %v14021_v45  ;;  %v4904_v16 = vrot.slane %v9659_v2, %v14021_v45 }
 0x2b4   :  { %v4981_v36 = vsel %vm3875_vm5, %v14116_v29, %v4980_v58  ;;  %v4987_v3 = vsel %vm3873_vm4, %v14117_v35, %v4986_v55  ;;  %v14120_v38 = vrot.slane %v9227_v6, %v14021_v45  ;;  %v14121_v0 = vrot.slane %v9259_v32, %v14021_v45  ;;  %v14132_v35 = vld [vmem:[#allocation136_spill] sm:$0xff] }
 0x2b5   :  { %v5006_v10 = vsel %vm3869_vm2, %v14119_v33, %v14118_v61  ;;  %v14122_v12 = vrot.slane %v14032_v56, %v14021_v45  ;;  %v4908_v22 = vrot.slane %v9663_v20, %v14021_v45  ;;  %v14123_v26 = vrot.slane %v9287_v43, %v14021_v45  ;;  %v14134_v61 = vld [vmem:[#allocation158_spill] sm:$0xff] }
 0x2b6   :  { %v4962_v58 = vsel %vm3879_vm7, %v14120_v38, %v4961_v62  ;;  %v4969_v55 = vsel %vm3879_vm7, %v14121_v0, %v4968_v13  ;;  %v14124_v62 = vrot.slane %v14031_v39, %v14021_v45  ;;  %v14125_v13 = vrot.slane %v14046_v27, %v14021_v45  ;;  %v14138_v38 = vld [vmem:[#allocation222_spill] sm:$0xff]  ;;  %v14139_v0 = vld [vmem:[#allocation137_spill] sm:$0xff] }
 0x2b7   :  { %v5000_v31 = vsel %vm3871_vm3, %v14122_v12, %v4999_v19  ;;  %v4975_v6 = vsel %vm3877_vm6, %v14123_v26, %v4974_v46  ;;  %v14126_v56 = vrot.slane %v14047_v54, %v14021_v45  ;;  %v4928_v1 = vrot.slane %v9683_v60, %v14021_v45  ;;  %v14141_v26 = vld [vmem:[#allocation153_spill] sm:$0xff]  ;;  %v14231_v20 = vld [vmem:[#allocation186_spill] sm:$0xff] }
 0x2b8   :  { %v4994_v32 = vsel %vm3873_vm4, %v14124_v62, %v4993_v53  ;;  %v14127_v43 = vrot.slane %v9319_v44, %v14021_v45  ;;  %v14128_v39 = vrot.slane %v9347_v47, %v14021_v45  ;;  %v14129_v27 = vrot.slane %v14040_v9, %v14021_v45  ;;  %v14130_v53 = vld [vmem:[#allocation135_spill] sm:$0xff] }
 0x2b9   :  { %v5013_v19 = vsel %vm3869_vm2, %v14126_v56, %v14125_v13  ;;  %v14131_v29 = vrot.slane %v14130_v53, %v14021_v45  ;;  %v14133_v44 = vrot.slane %v14132_v35, %v14021_v45  ;;  %v14135_v47 = vrot.slane %v14134_v61, %v14021_v45  ;;  %v14143_v13 = vld [vmem:[#allocation173_spill] sm:$0xff]  ;;  %v14145_v56 = vld [vmem:[#allocation223_spill] sm:$0xff] }
 0x2ba   :  { %v4982_v46 = vsel %vm3877_vm6, %v14127_v43, %v4981_v36  ;;  %v4988_v30 = vsel %vm3875_vm5, %v14128_v39, %v4987_v3  ;;  %v5007_v54 = vsel %vm3871_vm3, %v14129_v27, %v5006_v10  ;;  %v14136_v9 = vrot.slane %v14054_v42, %v14021_v45  ;;  %v14146_v39 = vld [vmem:[#allocation147_spill] sm:$0xff] }
 0x2bb   :  { %v4963_v60 = vsel %vm3881_vm8, %v14131_v29, %v4962_v58  ;;  %v4970_v36 = vsel %vm3881_vm8, %v14133_v44, %v4969_v55  ;;  %v5001_v3 = vsel %vm3873_vm4, %v14135_v47, %v5000_v31  ;;  %v14137_v33 = vrot.slane %v14055_v17, %v14021_v45  ;;  %v14148_v29 = vld [vmem:[#allocation166_spill] sm:$0xff]  ;;  %v14152_v61 = vld [vmem:[#allocation143_spill] sm:$0xff] }
 0x2bc   :  { %v4932_v58 = vrot.slane %v14138_v38, %v14021_v45  ;;  %v14140_v12 = vrot.slane %v14139_v0, %v14021_v45  ;;  %v14142_v62 = vrot.slane %v14141_v26, %v14021_v45  ;;  %v14144_v42 = vrot.slane %v14143_v13, %v14021_v45  ;;  %v14156_v0 = vld [vmem:[#allocation181_spill] sm:$0xff]  ;;  %v14158_v26 = vld [vmem:[#allocation138_spill] sm:$0xff] }
 0x2bd   :  { %v5020_v10 = vsel %vm3869_vm2, %v14137_v33, %v14136_v9  ;;  %v4936_v43 = vrot.slane %v14145_v56, %v14021_v45  ;;  %v14147_v27 = vrot.slane %v14146_v39, %v14021_v45  ;;  %v14151_v44 = vrot.slane %v14067_v28, %v14021_v45  ;;  %v14154_v33 = vld [vmem:[#allocation159_spill] sm:$0xff]  ;;  %v14160_v13 = vld [vmem:[#allocation154_spill] sm:$0xff] }
 0x2be   :  { %v4976_v55 = vsel %vm3879_vm7, %v14140_v12, %v4975_v6  ;;  %v4995_v31 = vsel %vm3875_vm5, %v14142_v62, %v4994_v32  ;;  %v5014_v17 = vsel %vm3871_vm3, %v14144_v42, %v5013_v19  ;;  %v14149_v6 = vrot.slane %v14148_v29, %v14021_v45  ;;  %v14162_v56 = vld [vmem:[#allocation174_spill] sm:$0xff] }
 0x2bf   :  { %v4989_v53 = vsel %vm3877_vm6, %v14147_v27, %v4988_v30  ;;  %v14150_v32 = vrot.slane %v14066_v25, %v14021_v45  ;;  %v14153_v47 = vrot.slane %v14152_v61, %v14021_v45  ;;  %v14155_v30 = vrot.slane %v14154_v33, %v14021_v45 }
 0x2c0   :  { %v5008_v35 = vsel %vm3873_vm4, %v14149_v6, %v5007_v54  ;;  %v14157_v54 = vrot.slane %v14156_v0, %v14021_v45  ;;  %v5085_v12 = vadd.f32 %v4970_v36, %v4963_v60  ;;  %v14159_v28 = vrot.slane %v14158_v26, %v14021_v45  ;;  %v14168_v6 = vld [vmem:[#allocation167_spill] sm:$0xff] }
 0x2c1   :  { %v5027_v19 = vsel %vm3869_vm2, %v14151_v44, %v14150_v32  ;;  %v4983_v9 = vsel %vm3879_vm7, %v14153_v47, %v4982_v46  ;;  %v5002_v38 = vsel %vm3875_vm5, %v14155_v30, %v5001_v3  ;;  %v14161_v42 = vrot.slane %v14160_v13, %v14021_v45  ;;  %v14170_v44 = vld [vmem:[#allocation189_spill] sm:$0xff]  ;;  %v14172_v47 = vld [vmem:[#allocation144_spill] sm:$0xff] }
 0x2c2   :  { %v5021_v25 = vsel %vm3871_vm3, %v14157_v54, %v5020_v10  ;;  %v4977_v62 = vsel %vm3881_vm8, %v14159_v28, %v4976_v55  ;;  %v14163_v39 = vrot.slane %v14162_v56, %v14021_v45  ;;  %v14164_v27 = vrot.slane %v14078_v34, %v14021_v45  ;;  %v14166_v10 = vld [vmem:[#allocation148_spill] sm:$0xff]  ;;  %v14176_v54 = vld [vmem:[#allocation182_spill] sm:$0xff] }
 0x2c3   :  { %v4996_v46 = vsel %vm3877_vm6, %v14161_v42, %v4995_v31  ;;  %v14165_v60 = vrot.slane %v14079_v11, %v14021_v45  ;;  %v14167_v55 = vrot.slane %v14166_v10, %v14021_v45  ;;  %v14169_v31 = vrot.slane %v14168_v6, %v14021_v45  ;;  %v14174_v30 = vld [vmem:[#allocation160_spill] sm:$0xff]  ;;  %v14182_v42 = vld [vmem:[#allocation175_spill] sm:$0xff]  ;;  %v14189_v6 = vld [vmem:[#allocation190_spill] sm:$0xff] }
 0x2c4   :  { %v5015_v3 = vsel %vm3873_vm4, %v14163_v39, %v5014_v17  ;;  %v14171_v17 = vrot.slane %v14170_v44, %v14021_v45  ;;  %v5086_v61 = vadd.f32 %v5085_v12, %v4977_v62  ;;  %v14173_v11 = vrot.slane %v14172_v47, %v14021_v45  ;;  %v14180_v62 = vld [vmem:[#allocation155_spill] sm:$0xff]  ;;  %v14187_v10 = vld [vmem:[#allocation168_spill] sm:$0xff]  ;;  %v14192_v44 = vld [vmem:[#allocation161_spill] sm:$0xff] }
 0x2c5   :  { %v5034_v36 = vsel %vm3869_vm2, %v14165_v60, %v14164_v27  ;;  %v4990_v29 = vsel %vm3879_vm7, %v14167_v55, %v4989_v53  ;;  %v5009_v32 = vsel %vm3875_vm5, %v14169_v31, %v5008_v35  ;;  %v14175_v0 = vrot.slane %v14174_v30, %v14021_v45  ;;  %v14185_v27 = vld [vmem:[#allocation149_spill] sm:$0xff]  ;;  %v14199_v30 = vld [vmem:[#allocation176_spill] sm:$0xff] }
 0x2c6   :  { %v5028_v34 = vsel %vm3871_vm3, %v14171_v17, %v5027_v19  ;;  %v4984_v33 = vsel %vm3881_vm8, %v14173_v11, %v4983_v9  ;;  %v14177_v26 = vrot.slane %v14176_v54, %v14021_v45  ;;  %v14178_v28 = vrot.slane %v14089_v59, %v14021_v45 }
 0x2c7   :  { %v5003_v53 = vsel %vm3877_vm6, %v14175_v0, %v5002_v38  ;;  %v14179_v19 = vrot.slane %v14091_v63, %v14021_v45  ;;  %v14181_v9 = vrot.slane %v14180_v62, %v14021_v45  ;;  %v14183_v38 = vrot.slane %v14182_v42, %v14021_v45 }
 0x2c8   :  { %v5022_v35 = vsel %vm3873_vm4, %v14177_v26, %v5021_v25  ;;  %v14184_v25 = vrot.slane %v14080_v23, %v14021_v45  ;;  %v5087_v39 = vadd.f32 %v5086_v61, %v4984_v33  ;;  %v14186_v63 = vrot.slane %v14185_v27, %v14021_v45  ;;  %v14194_v61 = vld [vmem:[#allocation183_spill] sm:$0xff]  ;;  %v14197_v33 = vld [vmem:[#allocation156_spill] sm:$0xff]  ;;  %v14212_v27 = vld [vmem:[#allocation177_spill] sm:$0xff] }
 0x2c9   :  { %v5041_v12 = vsel %vm3869_vm2, %v14179_v19, %v14178_v28  ;;  %v4997_v13 = vsel %vm3879_vm7, %v14181_v9, %v4996_v46  ;;  %v5016_v56 = vsel %vm3875_vm5, %v14183_v38, %v5015_v3  ;;  %v14188_v55 = vrot.slane %v14187_v10, %v14021_v45  ;;  %v14207_v38 = vld [vmem:[#allocation162_spill] sm:$0xff] }
 0x2ca   :  { %v5035_v59 = vsel %vm3871_vm3, %v14184_v25, %v5034_v36  ;;  %v4991_v60 = vsel %vm3881_vm8, %v14186_v63, %v4990_v29  ;;  %v14190_v31 = vrot.slane %v14189_v6, %v14021_v45  ;;  %v14191_v23 = vrot.slane %v14101_v4, %v14021_v45  ;;  %v14215_v6 = vld [vmem:[#allocation224_spill] sm:$0xff] }
 0x2cb   :  { %v5010_v46 = vsel %vm3877_vm6, %v14188_v55, %v5009_v32  ;;  %v14193_v29 = vrot.slane %v14192_v44, %v14021_v45  ;;  %v14195_v32 = vrot.slane %v14194_v61, %v14021_v45  ;;  %v5088_v11 = vadd.f32 %v5087_v39, %v4991_v60 }
 0x2cc   :  { %v5029_v3 = vsel %vm3873_vm4, %v14190_v31, %v5028_v34  ;;  %v5048_v36 = vsel %vm3869_vm2, %v4868_v24, %v14191_v23  ;;  %v14196_v34 = vrot.slane %v14092_v50, %v14021_v45  ;;  %v14198_v57 = vrot.slane %v14197_v33, %v14021_v45  ;;  %v14218_v23 = vld [vmem:[#allocation192_spill] sm:$0xff] }
 0x2cd   :  { %v5004_v17 = vsel %vm3879_vm7, %v14193_v29, %v5003_v53  ;;  %v5023_v47 = vsel %vm3875_vm5, %v14195_v32, %v5022_v35  ;;  %v14200_v0 = vrot.slane %v14199_v30, %v14021_v45  ;;  %v14201_v54 = vrot.slane %v14083_v48, %v14021_v45  ;;  %v14202_v35 = vld [vmem:[#allocation169_spill] sm:$0xff] }
 0x2ce   :  { %v5042_v4 = vsel %vm3871_vm3, %v14196_v34, %v5041_v12  ;;  %v4998_v24 = vsel %vm3881_vm8, %v14198_v57, %v4997_v13  ;;  %v5055_v50 = vsel %vm3869_vm2, %v4900_v5, %v4896_v41  ;;  %v14203_v28 = vrot.slane %v14202_v35, %v14021_v45  ;;  %v14204_v12 = vld [vmem:[#allocation191_spill] sm:$0xff]  ;;  %v14209_v5 = vld [vmem:[#allocation184_spill] sm:$0xff]  ;;  %v14223_v34 = vld [vmem:[#allocation209_spill] sm:$0xff] }
 0x2cf   :  { %v5017_v53 = vsel %vm3877_vm6, %v14200_v0, %v5016_v56  ;;  %v5036_v26 = vsel %vm3873_vm4, %v14201_v54, %v5035_v59  ;;  %v14205_v62 = vrot.slane %v14204_v12, %v14021_v45  ;;  %v14206_v48 = vrot.slane %v14106_v7, %v14021_v45  ;;  %v14228_v30 = vld [vmem:[#allocation193_spill] sm:$0xff] }
 0x2d0   :  { %v5011_v19 = vsel %vm3879_vm7, %v14203_v28, %v5010_v46  ;;  %v5089_v42 = vadd.f32 %v5088_v11, %v4998_v24  ;;  %v14208_v15 = vrot.slane %v14207_v38, %v14021_v45  ;;  %v14210_v56 = vrot.slane %v14209_v5, %v14021_v45  ;;  %v14224_v11 = vld [vmem:[#allocation178_spill] sm:$0xff] }
 0x2d1   :  { %v5030_v9 = vsel %vm3875_vm5, %v14205_v62, %v5029_v3  ;;  %v5049_v13 = vsel %vm3871_vm3, %v14206_v48, %v5048_v36  ;;  %v14211_v59 = vrot.slane %v14096_v52, %v14021_v45  ;;  %v5062_v7 = vsel %vm3869_vm2, %v4932_v58, %v4928_v1  ;;  %v14216_v1 = vld [vmem:[#allocation170_spill] sm:$0xff] }
 0x2d2   :  { %v5005_v41 = vsel %vm3881_vm8, %v14208_v15, %v5004_v17  ;;  %v5024_v25 = vsel %vm3877_vm6, %v14210_v56, %v5023_v47  ;;  %v14213_v63 = vrot.slane %v14212_v27, %v14021_v45  ;;  %v14214_v10 = vrot.slane %v14084_v51, %v14021_v45  ;;  %v14237_v38 = vld [vmem:[#allocation202_spill] sm:$0xff] }
 0x2d3   :  { %v5043_v39 = vsel %vm3873_vm4, %v14211_v59, %v5042_v4  ;;  %v5056_v46 = vsel %vm3871_vm3, %v4904_v16, %v5055_v50  ;;  %v5090_v52 = vadd.f32 %v5089_v42, %v5005_v41  ;;  %v4940_v31 = vrot.slane %v14215_v6, %v14021_v45  ;;  %v14220_v16 = vld [vmem:[#allocation185_spill] sm:$0xff]  ;;  %v14239_v5 = vld [vmem:[#allocation194_spill] sm:$0xff] }
 0x2d4   :  { %v5018_v60 = vsel %vm3879_vm7, %v14213_v63, %v5017_v53  ;;  %v5037_v55 = vsel %vm3875_vm5, %v14214_v10, %v5036_v26  ;;  %v14217_v58 = vrot.slane %v14216_v1, %v14021_v45  ;;  %v14219_v36 = vrot.slane %v14218_v23, %v14021_v45  ;;  %v14230_v26 = vld [vmem:[#allocation215_spill] sm:$0xff]  ;;  %v14242_v10 = vld [vmem:[#allocation210_spill] sm:$0xff]  ;;  %v14244_v1 = vld [vmem:[#allocation220_spill] sm:$0xff] }
 0x2d5   :  { %v5050_v2 = vsel %vm3873_vm4, %v4876_v21, %v5049_v13  ;;  %v14221_v44 = vrot.slane %v14220_v16, %v14021_v45  ;;  %v14222_v17 = vrot.slane %v14097_v18, %v14021_v45  ;;  %v5063_v32 = vsel %vm3871_vm3, %v4936_v43, %v5062_v7  ;;  %v14227_v43 = vld [vmem:[#allocation218_spill] sm:$0xff] }
 0x2d6   :  { %v5012_v3 = vsel %vm3881_vm8, %v14217_v58, %v5011_v19  ;;  %v5031_v51 = vsel %vm3877_vm6, %v14219_v36, %v5030_v9  ;;  %v4856_v4 = vrot.slane %v14223_v34, %v14021_v45  ;;  %v14225_v40 = vrot.slane %v14224_v11, %v14021_v45  ;;  %v14245_v36 = vld [vmem:[#allocation134_spill] sm:$0xff]  ;;  %v14248_v34 = vld [vmem:[#allocation221_spill] sm:$0xff] }
 0x2d7   :  { %v5025_v29 = vsel %vm3879_vm7, %v14221_v44, %v5024_v25  ;;  %v5044_v61 = vsel %vm3875_vm5, %v14222_v17, %v5043_v39  ;;  %v5091_v47 = vadd.f32 %v5090_v52, %v5012_v3  ;;  %v14226_v33 = vrot.slane %v14087_v49, %v14021_v45  ;;  %v14241_v39 = vld [vmem:[#allocation216_spill] sm:$0xff]  ;;  %v14247_v17 = vld [vmem:[#allocation227_spill] sm:$0xff] }
 0x2d8   :  { %v5019_v21 = vsel %vm3881_vm8, %v14225_v40, %v5018_v60  ;;  %v5057_v18 = vsel %vm3873_vm4, %v4908_v22, %v5056_v46  ;;  %v4912_v24 = vrot.slane %v14227_v43, %v14021_v45  ;;  %v14229_v0 = vrot.slane %v14228_v30, %v14021_v45  ;;  %v14243_v46 = vld [vmem:[#allocation226_spill] sm:$0xff] }
 0x2d9   :  { %v5038_v57 = vsel %vm3877_vm6, %v14226_v33, %v5037_v55  ;;  %v5051_v49 = vsel %vm3875_vm5, %v4880_v37, %v5050_v2  ;;  %v5092_v54 = vadd.f32 %v5091_v47, %v5019_v21  ;;  %v4884_v50 = vrot.slane %v14230_v26, %v14021_v45  ;;  %v14235_v37 = vld [vmem:[#allocation201_spill] sm:$0xff] }
 0x2da   :  { %v5032_v53 = vsel %vm3879_vm7, %v14229_v0, %v5031_v51  ;;  %v14232_v22 = vrot.slane %v14231_v20, %v14021_v45  ;;  %v14233_v28 = vrot.slane %v14100_v8, %v14021_v45  ;;  %v5064_v12 = vsel %vm3873_vm4, %v4940_v31, %v5063_v32  ;;  %v14238_v8 = vld [vmem:[#allocation219_spill] sm:$0xff]  ;;  %v14246_v2 = vld [vmem:[#allocation217_spill] sm:$0xff] }
 0x2db   :  { %v4944_v62 = vrot.slane %v14234_v14, %v14021_v45  ;;  %v14236_v9 = vrot.slane %v14235_v37, %v14021_v45  ;;  %v5058_v13 = vsel %vm3875_vm5, %v4912_v24, %v5057_v18  ;;  %v4828_v15 = vrot.slane %v14237_v38, %v14021_v45 }
 0x2dc   :  { %v5026_v35 = vsel %vm3881_vm8, %v14232_v22, %v5025_v29  ;;  %v5045_v19 = vsel %vm3877_vm6, %v14233_v28, %v5044_v61  ;;  %v4916_v41 = vrot.slane %v14238_v8, %v14021_v45  ;;  %v14240_v56 = vrot.slane %v14239_v5, %v14021_v45  ;;  %v6846_v22 = vld [vmem:[%s13055_s2] ss:$0 sm:$0xff]  ;;  %s7068_s2 = smov [#allocation2]  }
 0x2dd   :  { %v5039_v48 = vsel %vm3879_vm7, %v14236_v9, %v5038_v57  ;;  %v5093_v42 = vadd.f32 %v5092_v54, %v5026_v35  ;;  %v5052_v59 = vsel %vm3877_vm6, %v4884_v50, %v5051_v49  ;;  %v4888_v7 = vrot.slane %v14241_v39, %v14021_v45  ;;  %v6847_v35 = vld [vmem:[%s13056_s3] ss:$0 sm:$0xff]  ;;  %s6514_s3 = sshll.u32 %s7068_s2, 4  ;;  %s13020_s3 = int_to_ptr.vmem [resolvable:$true] %s6514_s3 }
 0x2de   :  { %v5033_v25 = vsel %vm3881_vm8, %v14240_v56, %v5032_v53  ;;  %v5046_v27 = vsel %vm3879_vm7, %v4856_v4, %v5045_v19  ;;  %v5065_v63 = vsel %vm3875_vm5, %v4944_v62, %v5064_v12  ;;  %v4860_v55 = vrot.slane %v14242_v10, %v14021_v45  ;;  %v14249_v12 = vld [vmem:[#allocation5_spill] sm:$0xff]  ;;  %s7043_s21 = scalar_lea.vmem %s13020_s3, 2048  ;;  %p7048_p1 = scmp.lt.s32.totalorder %s13020_s3, %s13020_s3 }
 0x2df   :  { %v5094_v60 = vadd.f32 %v5093_v42, %v5033_v25  ;;  %v4948_v52 = vrot.slane %v14243_v46, %v14021_v45  ;;  %v5040_v6 = vsel %vm3881_vm8, %v4828_v15, %v5039_v48  ;;  %v5059_v31 = vsel %vm3877_vm6, %v4916_v41, %v5058_v13  ;;  %p7044_p0 = scmp.ne.s32.totalorder %s13020_s3, %s7043_s21  ;;  %p7049_p2 = scmp.lt.s32.totalorder %s7043_s21, %s7043_s21 }
 0x2e0   :  { %v4920_v58 = vrot.slane %v14244_v1, %v14021_v45  ;;  %v5053_v3 = vsel %vm3879_vm7, %v4888_v7, %v5052_v59  ;;  %v4316_v51 = vmul.f32 %v14245_v36, %v14245_v36  ;;  %v4892_v16 = vrot.slane %v14246_v2, %v14021_v45  ;;  %v14262_v2 = vld [vmem:[#allocation55_spill] sm:$0xff] }
 0x2e1   :  { %v5095_v23 = vadd.f32 %v5094_v60, %v5040_v6  ;;  %v5047_v44 = vsel %vm3881_vm8, %v4860_v55, %v5046_v27  ;;  %v5066_v29 = vsel %vm3877_vm6, %v4948_v52, %v5065_v63  ;;  %v4952_v61 = vrot.slane %v14247_v17, %v14021_v45  ;;  %v14258_v52 = vld [vmem:[#allocation17_spill] sm:$0xff]  ;;  %p7050_p3 = por %p7049_p2, %p7048_p1 }
 0x2e2   :  { %v5060_v32 = vsel %vm3879_vm7, %v4920_v58, %v5059_v31  ;;  %v4924_v4 = vrot.slane %v14248_v34, %v14021_v45  ;;  %v5054_v11 = vsel %vm3881_vm8, %v4892_v16, %v5053_v3  ;;  %v4956_v33 = vrot.slane %v4316_v51, %v14021_v45  ;;  %v14259_v31 = vld [vmem:[#allocation20_spill] sm:$0xff]  ;;  %v14260_v58 = vld [vmem:[#allocation26_spill] sm:$0xff] }
 0x2e3   :  { %v5096_v47 = vadd.f32 %v5095_v23, %v5047_v44  ;;  %v5067_v40 = vsel %vm3879_vm7, %v4952_v61, %v5066_v29  ;;  %v5277_v28 = vcombine.high %v6846_v22, %v6846_v22  ;;  %v5440_v19 = vcombine.high %v6847_v35, %v6847_v35  ;;  %v14261_v23 = vld [vmem:[#allocation39_spill] sm:$0xff]  ;;  %p7051_p4 = pnand %p7050_p3, %p7044_p0 }
 0x2e4   :  { %v5061_v57 = vsel %vm3881_vm8, %v4924_v4, %v5060_v32  ;;  %v5068_v43 = vsel %vm3881_vm8, %v4956_v33, %v5067_v40  ;;  %v10412_v14 = vrot.slane %v6846_v22, %v14249_v12  ;;  %v10418_v37 = vrot.slane %v6847_v35, %v14249_v12  ;;  %v14263_v61 = vld [vmem:[#allocation15_spill] sm:$0xff]  ;;  %v14265_v4 = vld [vmem:[#allocation38_spill] sm:$0xff]  ;;  %v14266_v40 = vld [vmem:[#allocation56_spill] sm:$0xff] }
 0x2e5   :  { %v5097_v21 = vadd.f32 %v5096_v47, %v5054_v11  ;;  %v10415_v62 = vrot.slane %v5277_v28, %v14249_v12  ;;  %v10421_v9 = vrot.slane %v5440_v19, %v14249_v12  ;;  %v14264_v47 = vld [vmem:[#allocation10_spill] sm:$0xff]  ;;  %v14267_v33 = vld [vmem:[#allocation72_spill] sm:$0xff]  ;;  %v14274_v28 = vld [vmem:[#allocation9_spill] sm:$0xff] }
 0x2e6   :  { %14250 = vst [vmem:[#allocation139_spill] sm:$0xff] %v10418_v37  ;;  %v10425_v48 = vcombine.high %v10412_v14, %v10412_v14  ;;  %v10433_v38 = vcombine.high %v10418_v37, %v10418_v37  ;;  %v10441_v41 = vrot.slane %v10412_v14, 1  ;;  %v10444_v5 = vrot.slane %v10418_v37, 1  ;;  %v14273_v22 = vld [vmem:[#allocation14_spill] sm:$0xff]  ;;  %v14304_v37 = vld [vmem:[#allocation84_spill] sm:$0xff] }
 0x2e7   :  { %v5098_v18 = vadd.f32 %v5097_v21, %v5061_v57  ;;  %14251 = vst [vmem:[#allocation140_spill] sm:$0xff] %v10421_v9  ;;  %v10429_v42 = vcombine.high %v10415_v62, %v10415_v62  ;;  %v10437_v15 = vcombine.high %v10421_v9, %v10421_v9  ;;  %v10453_v39 = vrot.slane %v10415_v62, 1 }
 0x2e8   :  { %14252 = vst [vmem:[#allocation141_spill] sm:$0xff] %v10433_v38  ;;  %14254 = vst [vmem:[#allocation145_spill] sm:$0xff] %v10444_v5  ;;  %v10450_v59 = vrot.slane %v10425_v48, 1  ;;  %v10459_v27 = vrot.slane %v10433_v38, 1  ;;  %v10462_v63 = vrot.slane %v10421_v9, 1  ;;  %v14296_v9 = vld [vmem:[#allocation71_spill] sm:$0xff] }
 0x2e9   :  { %v5099_v24 = vadd.f32 %v5098_v18, %v5068_v43  ;;  %14253 = vst [vmem:[#allocation142_spill] sm:$0xff] %v10437_v15  ;;  %v10456_v7 = vrot.slane %v10429_v42, 1  ;;  %v10465_v60 = vrot.slane %v10437_v15, 1  ;;  %v14268_v43 = vld [vmem:[#allocation12_spill] sm:$0xff]  ;;  %v14293_v15 = vld [vmem:[#allocation70_spill] sm:$0xff]  ;;  %v14302_v5 = vld [vmem:[#allocation83_spill] sm:$0xff] }
 0x2ea   :  { %14255 = vst [vmem:[#allocation146_spill] sm:$0xff] %v10459_v27  ;;  %14256 = vst [vmem:[#allocation150_spill] sm:$0xff] %v10462_v63  ;;  %v14294_v63 = vld [vmem:[#allocation69_spill] sm:$0xff]  ;;  %v14300_v38 = vld [vmem:[#allocation82_spill] sm:$0xff] }
 0x2eb   :  { %v5100_v30 = vrot.slane %v5099_v24, 4  ;;  %14257 = vst [vmem:[#allocation151_spill] sm:$0xff] %v10465_v60  ;;  %v14292_v60 = vld [vmem:[#allocation68_spill] sm:$0xff]  ;;  %v14298_v27 = vld [vmem:[#allocation21_spill] sm:$0xff] }
 0x2ed   :  { %v5101_v0 = vadd.f32 %v5100_v30, %v5099_v24  ;;  %v14269_v30 = vld [vmem:[#allocation13_spill] sm:$0xff] }
 0x2ef   :  { %v5102_v53 = vrot.slane %v5101_v0, 2 }
 0x2f1   :  { %v5103_v49 = vadd.f32 %v5102_v53, %v5101_v0  ;;  %v14270_v53 = vld [vmem:[#allocation7_spill] sm:$0xff] }
 0x2f3   :  { %v5104_v54 = vrot.slane %v5103_v49, 1 }
 0x2f5   :  { %v5105_v26 = vadd.f32 %v5104_v54, %v5103_v49  ;;  %v14271_v54 = vld [vmem:[#allocation40_spill] sm:$0xff] }
 0x2f7   :  { %v5106_v50 = vmul.f32 0.0078125, %v5105_v26 }
 0x2f9   :  { %v5107_v20 = vadd.f32 1e-05, %v5106_v50  ;;  %v14272_v50 = vld [vmem:[#allocation41_spill] sm:$0xff] }
 0x2fb   :  { %7041 = vrsqrt.f32 %v5107_v20 }
 0x305   :  { %v7042_v13 = vpop.eup %7041 }
 0x306   :  { %v5112_v8 = vrot.slane %v7042_v13, %v14021_v45  ;;  %v14291_v45 = vld [vmem:[#allocation74_spill] sm:$0xff] }
 0x308   :  { %v5114_v56 = vcombine.high %v5112_v8, %v5112_v8  ;;  %v10447_v25 = vrot.slane %v5112_v8, %v14249_v12  ;;  %v14276_v8 = vld [vmem:[#allocation42_spill] sm:$0xff] }
 0x30a   :  { %v10468_v10 = vrot.slane %v5114_v56, %v14249_v12  ;;  %v10472_v55 = vcombine.high %v10447_v25, %v10447_v25  ;;  %v10475_v46 = vrot.slane %v10447_v25, 1  ;;  %v10479_v6 = vmul.f32 %v10447_v25, %v14258_v52  ;;  %v14275_v12 = vld [vmem:[#allocation8_spill] sm:$0xff] }
 0x30b   :  { %v10483_v1 = vmul.f32 %v10447_v25, %v14259_v31  ;;  %v10487_v3 = vmul.f32 %v10447_v25, %v14260_v58  ;;  %v10491_v51 = vmul.f32 %v10447_v25, %v14261_v23  ;;  %v10495_v16 = vmul.f32 %v10447_v25, %v14262_v2  ;;  %v14277_v52 = vld [vmem:[#allocation32_spill] sm:$0xff]  ;;  %v14278_v58 = vld [vmem:[#allocation35_spill] sm:$0xff] }
 0x30c   :  { %v10499_v44 = vcombine.high %v10468_v10, %v10468_v10  ;;  %v10502_v29 = vrot.slane %v10472_v55, 1  ;;  %v10505_v17 = vrot.slane %v10468_v10, 1  ;;  %v10509_v32 = vmul.f32 %v10475_v46, %v14263_v61  ;;  %v14279_v2 = vld [vmem:[#allocation36_spill] sm:$0xff] }
 0x30d   :  { %v10513_v34 = vmul.f32 %v10472_v55, %v14264_v47  ;;  %v10517_v11 = vmul.f32 %v10468_v10, %v14265_v4  ;;  %v10521_v21 = vmul.f32 %v10475_v46, %v14266_v40  ;;  %v10525_v57 = vmul.f32 %v10472_v55, %v14267_v33  ;;  %v14280_v47 = vld [vmem:[#allocation11_spill] sm:$0xff]  ;;  %v14281_v40 = vld [vmem:[#allocation37_spill] sm:$0xff] }
 0x30e   :  { %v10528_v18 = vrot.slane %v10499_v44, 1  ;;  %v10532_v24 = vmul.f32 %v10502_v29, %v14268_v43  ;;  %v10536_v0 = vmul.f32 %v10505_v17, %v14269_v30  ;;  %v10540_v49 = vmul.f32 %v10499_v44, %v14270_v53  ;;  %v14282_v43 = vld [vmem:[#allocation58_spill] sm:$0xff]  ;;  %v14283_v53 = vld [vmem:[#allocation57_spill] sm:$0xff] }
 0x30f   :  { %v10544_v26 = vmul.f32 %v10502_v29, %v14271_v54  ;;  %v10548_v20 = vmul.f32 %v10468_v10, %v14272_v50  ;;  %v10552_v35 = vmul.f32 %v10505_v17, %v14273_v22  ;;  %v10556_v19 = vmul.f32 %v10499_v44, %v14274_v28  ;;  %v14284_v50 = vld [vmem:[#allocation59_spill] sm:$0xff] }
 0x310   :  { %v10560_v13 = vmul.f32 %v10528_v18, %v14275_v12  ;;  %v10564_v56 = vmul.f32 %v10528_v18, %v14276_v8  ;;  %v10568_v31 = vmul.f32 %v10475_v46, %v14277_v52  ;;  %v10572_v23 = vmul.f32 %v10472_v55, %v14278_v58  ;;  %v14285_v28 = vld [vmem:[#allocation51_spill] sm:$0xff]  ;;  %v14286_v8 = vld [vmem:[#allocation53_spill] sm:$0xff]  ;;  %v14287_v58 = vld [vmem:[#allocation52_spill] sm:$0xff] }
 0x311   :  { %v10576_v61 = vmul.f32 %v10502_v29, %v14279_v2  ;;  %v10580_v4 = vmul.f32 %v10468_v10, %v14280_v47  ;;  %v10584_v33 = vmul.f32 %v10505_v17, %v14281_v40  ;;  %v10588_v30 = vmul.f32 %v10499_v44, %v14282_v43  ;;  %v14288_v47 = vld [vmem:[#allocation54_spill] sm:$0xff]  ;;  %v14289_v43 = vld [vmem:[#allocation16_spill] sm:$0xff] }
 0x312   :  { %v10592_v54 = vmul.f32 %v10528_v18, %v14283_v53  ;;  %v10596_v22 = vmul.f32 %v10475_v46, %v14284_v50  ;;  %v10600_v12 = vmul.f32 %v10472_v55, %v14285_v28  ;;  %v10604_v52 = vmul.f32 %v10502_v29, %v14286_v8  ;;  %v14290_v50 = vld [vmem:[#allocation73_spill] sm:$0xff] }
 0x313   :  { %v10608_v2 = vmul.f32 %v10468_v10, %v14287_v58  ;;  %v10612_v40 = vmul.f32 %v10505_v17, %v14288_v47  ;;  %v10616_v53 = vmul.f32 %v10499_v44, %v14289_v43  ;;  %v10620_v28 = vmul.f32 %v10528_v18, %v14290_v50 }
 0x314   :  { %v10624_v8 = vmul.f32 %v10475_v46, %v14291_v45  ;;  %v10628_v58 = vmul.f32 %v10472_v55, %v14292_v60  ;;  %v10632_v47 = vmul.f32 %v10502_v29, %v14293_v15  ;;  %v10636_v43 = vmul.f32 %v10468_v10, %v14294_v63 }
 0x315   :  { %v10640_v50 = vmul.f32 %v10505_v17, %v14296_v9  ;;  %v10644_v45 = vmul.f32 %v10499_v44, %v14298_v27  ;;  %v10648_v60 = vmul.f32 %v10528_v18, %v14300_v38  ;;  %v10652_v15 = vmul.f32 %v10447_v25, %v14302_v5 }
 0x316   :  { %14295 = vst [vmem:[#allocation152_spill] sm:$0xff] %v10636_v43  ;;  %v10656_v63 = vmul.f32 %v10475_v46, %v14304_v37  ;;  %v14306_v43 = vld [vmem:[#allocation85_spill] sm:$0xff] }
 0x317   :  { %14297 = vst [vmem:[#allocation157_spill] sm:$0xff] %v10640_v50  ;;  %14299 = vst [vmem:[#allocation163_spill] sm:$0xff] %v10644_v45  ;;  %v10660_v9 = vmul.f32 %v10472_v55, %v14306_v43  ;;  %v14308_v50 = vld [vmem:[#allocation113_spill] sm:$0xff]  ;;  %v14310_v45 = vld [vmem:[#allocation114_spill] sm:$0xff] }
 0x318   :  { %14301 = vst [vmem:[#allocation164_spill] sm:$0xff] %v10648_v60  ;;  %14303 = vst [vmem:[#allocation165_spill] sm:$0xff] %v10652_v15  ;;  %v10664_v27 = vmul.f32 %v10502_v29, %v14308_v50  ;;  %v10668_v38 = vmul.f32 %v10468_v10, %v14310_v45  ;;  %v14312_v60 = vld [vmem:[#allocation115_spill] sm:$0xff]  ;;  %v14314_v15 = vld [vmem:[#allocation92_spill] sm:$0xff] }
 0x319   :  { %14305 = vst [vmem:[#allocation171_spill] sm:$0xff] %v10656_v63  ;;  %14307 = vst [vmem:[#allocation172_spill] sm:$0xff] %v10660_v9  ;;  %v10672_v5 = vmul.f32 %v10505_v17, %v14312_v60  ;;  %v10676_v37 = vmul.f32 %v10499_v44, %v14314_v15  ;;  %v14316_v63 = vld [vmem:[#allocation93_spill] sm:$0xff]  ;;  %v14318_v9 = vld [vmem:[#allocation116_spill] sm:$0xff] }
 0x31a   :  { %14309 = vst [vmem:[#allocation179_spill] sm:$0xff] %v10664_v27  ;;  %14311 = vst [vmem:[#allocation180_spill] sm:$0xff] %v10668_v38  ;;  %v10680_v43 = vmul.f32 %v10528_v18, %v14316_v63  ;;  %v10684_v50 = vmul.f32 %v10447_v25, %v14318_v9  ;;  %v14320_v27 = vld [vmem:[#allocation117_spill] sm:$0xff]  ;;  %v14322_v38 = vld [vmem:[#allocation118_spill] sm:$0xff] }
 0x31b   :  { %14313 = vst [vmem:[#allocation187_spill] sm:$0xff] %v10672_v5  ;;  %14315 = vst [vmem:[#allocation188_spill] sm:$0xff] %v10676_v37  ;;  %v10688_v45 = vmul.f32 %v10475_v46, %v14320_v27  ;;  %v10692_v60 = vmul.f32 %v10472_v55, %v14322_v38  ;;  %v14324_v5 = vld [vmem:[#allocation119_spill] sm:$0xff]  ;;  %v14326_v37 = vld [vmem:[#allocation120_spill] sm:$0xff] }
 0x31c   :  { %14317 = vst [vmem:[#allocation195_spill] sm:$0xff] %v10680_v43  ;;  %14319 = vst [vmem:[#allocation196_spill] sm:$0xff] %v10684_v50  ;;  %v10696_v15 = vmul.f32 %v10502_v29, %v14324_v5  ;;  %v10700_v63 = vmul.f32 %v10468_v10, %v14326_v37  ;;  %v14328_v43 = vld [vmem:[#allocation103_spill] sm:$0xff]  ;;  %v14330_v50 = vld [vmem:[#allocation102_spill] sm:$0xff] }
 0x31d   :  { %14321 = vst [vmem:[#allocation197_spill] sm:$0xff] %v10688_v45  ;;  %14323 = vst [vmem:[#allocation198_spill] sm:$0xff] %v10692_v60  ;;  %v10704_v9 = vmul.f32 %v10505_v17, %v14328_v43  ;;  %v10708_v27 = vmul.f32 %v10499_v44, %v14330_v50  ;;  %v14332_v45 = vld [vmem:[#allocation104_spill] sm:$0xff]  ;;  %v14334_v60 = vld [vmem:[#allocation121_spill] sm:$0xff] }
 0x31e   :  { %14325 = vst [vmem:[#allocation199_spill] sm:$0xff] %v10696_v15  ;;  %14327 = vst [vmem:[#allocation200_spill] sm:$0xff] %v10700_v63  ;;  %v10712_v38 = vmul.f32 %v10528_v18, %v14332_v45  ;;  %v10716_v5 = vmul.f32 %v10447_v25, %v14334_v60  ;;  %v14336_v15 = vld [vmem:[#allocation122_spill] sm:$0xff]  ;;  %v14338_v63 = vld [vmem:[#allocation123_spill] sm:$0xff] }
 0x31f   :  { %14329 = vst [vmem:[#allocation203_spill] sm:$0xff] %v10704_v9  ;;  %14331 = vst [vmem:[#allocation204_spill] sm:$0xff] %v10708_v27  ;;  %v10720_v37 = vmul.f32 %v10475_v46, %v14336_v15  ;;  %v10724_v43 = vmul.f32 %v10472_v55, %v14338_v63  ;;  %v14340_v9 = vld [vmem:[#allocation124_spill] sm:$0xff]  ;;  %v14342_v27 = vld [vmem:[#allocation125_spill] sm:$0xff] }
 0x320   :  { %14333 = vst [vmem:[#allocation205_spill] sm:$0xff] %v10712_v38  ;;  %14335 = vst [vmem:[#allocation206_spill] sm:$0xff] %v10716_v5  ;;  %v10728_v50 = vmul.f32 %v10502_v29, %v14340_v9  ;;  %v10732_v45 = vmul.f32 %v10468_v10, %v14342_v27  ;;  %v14344_v38 = vld [vmem:[#allocation126_spill] sm:$0xff]  ;;  %v14346_v5 = vld [vmem:[#allocation111_spill] sm:$0xff] }
 0x321   :  { %14337 = vst [vmem:[#allocation207_spill] sm:$0xff] %v10720_v37  ;;  %14339 = vst [vmem:[#allocation208_spill] sm:$0xff] %v10724_v43  ;;  %v10736_v60 = vmul.f32 %v10505_v17, %v14344_v38  ;;  %v10740_v15 = vmul.f32 %v10499_v44, %v14346_v5  ;;  %v14348_v37 = vld [vmem:[#allocation112_spill] sm:$0xff]  ;;  %v14350_v43 = vld [vmem:[#allocation30_spill] sm:$0xff] }
 0x322   :  { %14341 = vst [vmem:[#allocation211_spill] sm:$0xff] %v10728_v50  ;;  %14343 = vst [vmem:[#allocation212_spill] sm:$0xff] %v10732_v45  ;;  %v10744_v63 = vmul.f32 %v10528_v18, %v14348_v37  ;;  %v10748_v9 = vmul.f32 %v10447_v25, %v14350_v43  ;;  %v14352_v50 = vld [vmem:[#allocation33_spill] sm:$0xff]  ;;  %v14354_v45 = vld [vmem:[#allocation31_spill] sm:$0xff] }
 0x323   :  { %14345 = vst [vmem:[#allocation213_spill] sm:$0xff] %v10736_v60  ;;  %14347 = vst [vmem:[#allocation214_spill] sm:$0xff] %v10740_v15  ;;  %v10752_v27 = vmul.f32 %v10475_v46, %v14352_v50  ;;  %v10756_v38 = vmul.f32 %v10472_v55, %v14354_v45  ;;  %v14356_v60 = vld [vmem:[#allocation34_spill] sm:$0xff] }
 0x324   :  { %14349 = vst [vmem:[#allocation135_spill] sm:$0xff] %v10744_v63  ;;  %14351 = vst [vmem:[#allocation136_spill] sm:$0xff] %v10748_v9  ;;  %v10760_v5 = vmul.f32 %v10502_v29, %v14356_v60  ;;  %v14358_v15 = vld [vmem:[#allocation22_spill] sm:$0xff]  ;;  %v14360_v63 = vld [vmem:[#allocation24_spill] sm:$0xff] }
 0x325   :  { %14353 = vst [vmem:[#allocation158_spill] sm:$0xff] %v10752_v27  ;;  %14355 = vst [vmem:[#allocation222_spill] sm:$0xff] %v10756_v38  ;;  %v10764_v37 = vmul.f32 %v10468_v10, %v14358_v15  ;;  %v10768_v43 = vmul.f32 %v10505_v17, %v14360_v63  ;;  %v14362_v9 = vld [vmem:[#allocation25_spill] sm:$0xff]  ;;  %v14364_v27 = vld [vmem:[#allocation28_spill] sm:$0xff] }
 0x326   :  { %14357 = vst [vmem:[#allocation137_spill] sm:$0xff] %v10760_v5  ;;  %v10772_v50 = vmul.f32 %v10499_v44, %v14362_v9  ;;  %v10776_v45 = vmul.f32 %v10528_v18, %v14364_v27  ;;  %v14366_v38 = vld [vmem:[#allocation47_spill] sm:$0xff]  ;;  %v14368_v5 = vld [vmem:[#allocation48_spill] sm:$0xff] }
 0x327   :  { %14359 = vst [vmem:[#allocation153_spill] sm:$0xff] %v10764_v37  ;;  %14361 = vst [vmem:[#allocation173_spill] sm:$0xff] %v10768_v43  ;;  %v10780_v60 = vmul.f32 %v10447_v25, %v14366_v38  ;;  %v10784_v15 = vmul.f32 %v10475_v46, %v14368_v5  ;;  %v14370_v37 = vld [vmem:[#allocation49_spill] sm:$0xff]  ;;  %v14372_v43 = vld [vmem:[#allocation50_spill] sm:$0xff] }
 0x328   :  { %14363 = vst [vmem:[#allocation223_spill] sm:$0xff] %v10772_v50  ;;  %14365 = vst [vmem:[#allocation147_spill] sm:$0xff] %v10776_v45  ;;  %v10788_v63 = vmul.f32 %v10472_v55, %v14370_v37  ;;  %v10792_v9 = vmul.f32 %v10502_v29, %v14372_v43  ;;  %v14374_v50 = vld [vmem:[#allocation43_spill] sm:$0xff]  ;;  %v14376_v45 = vld [vmem:[#allocation45_spill] sm:$0xff] }
 0x329   :  { %14367 = vst [vmem:[#allocation166_spill] sm:$0xff] %v10780_v60  ;;  %14369 = vst [vmem:[#allocation143_spill] sm:$0xff] %v10784_v15  ;;  %v10796_v27 = vmul.f32 %v10468_v10, %v14374_v50  ;;  %v10800_v38 = vmul.f32 %v10505_v17, %v14376_v45  ;;  %v14378_v60 = vld [vmem:[#allocation44_spill] sm:$0xff]  ;;  %v14380_v15 = vld [vmem:[#allocation46_spill] sm:$0xff] }
 0x32a   :  { %14371 = vst [vmem:[#allocation159_spill] sm:$0xff] %v10788_v63  ;;  %14373 = vst [vmem:[#allocation181_spill] sm:$0xff] %v10792_v9  ;;  %v10804_v5 = vmul.f32 %v10499_v44, %v14378_v60  ;;  %v10808_v37 = vmul.f32 %v10528_v18, %v14380_v15  ;;  %v14382_v63 = vld [vmem:[#allocation64_spill] sm:$0xff]  ;;  %v14384_v9 = vld [vmem:[#allocation65_spill] sm:$0xff] }
 0x32b   :  { %14375 = vst [vmem:[#allocation138_spill] sm:$0xff] %v10796_v27  ;;  %14377 = vst [vmem:[#allocation154_spill] sm:$0xff] %v10800_v38  ;;  %v10812_v43 = vmul.f32 %v10447_v25, %v14382_v63  ;;  %v10816_v50 = vmul.f32 %v10475_v46, %v14384_v9  ;;  %v14386_v27 = vld [vmem:[#allocation66_spill] sm:$0xff]  ;;  %v14388_v38 = vld [vmem:[#allocation67_spill] sm:$0xff] }
 0x32c   :  { %14379 = vst [vmem:[#allocation174_spill] sm:$0xff] %v10804_v5  ;;  %14381 = vst [vmem:[#allocation148_spill] sm:$0xff] %v10808_v37  ;;  %v10820_v45 = vmul.f32 %v10472_v55, %v14386_v27  ;;  %v10824_v60 = vmul.f32 %v10502_v29, %v14388_v38  ;;  %v14390_v5 = vld [vmem:[#allocation60_spill] sm:$0xff]  ;;  %v14392_v37 = vld [vmem:[#allocation62_spill] sm:$0xff] }
 0x32d   :  { %14383 = vst [vmem:[#allocation167_spill] sm:$0xff] %v10812_v43  ;;  %14385 = vst [vmem:[#allocation189_spill] sm:$0xff] %v10816_v50  ;;  %v10828_v15 = vmul.f32 %v10468_v10, %v14390_v5  ;;  %v10832_v63 = vmul.f32 %v10505_v17, %v14392_v37  ;;  %v14394_v43 = vld [vmem:[#allocation61_spill] sm:$0xff]  ;;  %v14396_v50 = vld [vmem:[#allocation63_spill] sm:$0xff] }
 0x32e   :  { %14387 = vst [vmem:[#allocation144_spill] sm:$0xff] %v10820_v45  ;;  %14389 = vst [vmem:[#allocation160_spill] sm:$0xff] %v10824_v60  ;;  %v10836_v9 = vmul.f32 %v10499_v44, %v14394_v43  ;;  %v10840_v27 = vmul.f32 %v10528_v18, %v14396_v50  ;;  %v14398_v45 = vld [vmem:[#allocation27_spill] sm:$0xff] }
 0x32f   :  { %14391 = vst [vmem:[#allocation182_spill] sm:$0xff] %v10828_v15  ;;  %14393 = vst [vmem:[#allocation155_spill] sm:$0xff] %v10832_v63  ;;  %v10844_v38 = vmul.f32 %v10447_v25, %v14398_v45  ;;  %v14400_v60 = vld [vmem:[#allocation79_spill] sm:$0xff]  ;;  %v14402_v15 = vld [vmem:[#allocation80_spill] sm:$0xff] }
 0x330   :  { %14395 = vst [vmem:[#allocation175_spill] sm:$0xff] %v10836_v9  ;;  %14397 = vst [vmem:[#allocation149_spill] sm:$0xff] %v10840_v27  ;;  %v10848_v5 = vmul.f32 %v10475_v46, %v14400_v60  ;;  %v10852_v37 = vmul.f32 %v10472_v55, %v14402_v15  ;;  %v14404_v63 = vld [vmem:[#allocation81_spill] sm:$0xff]  ;;  %v14406_v9 = vld [vmem:[#allocation18_spill] sm:$0xff] }
 0x331   :  { %14399 = vst [vmem:[#allocation168_spill] sm:$0xff] %v10844_v38  ;;  %v10856_v43 = vmul.f32 %v10502_v29, %v14404_v63  ;;  %v10860_v50 = vmul.f32 %v10468_v10, %v14406_v9  ;;  %v14408_v27 = vld [vmem:[#allocation77_spill] sm:$0xff]  ;;  %v14410_v38 = vld [vmem:[#allocation76_spill] sm:$0xff] }
 0x332   :  { %14401 = vst [vmem:[#allocation190_spill] sm:$0xff] %v10848_v5  ;;  %14403 = vst [vmem:[#allocation161_spill] sm:$0xff] %v10852_v37  ;;  %v10864_v45 = vmul.f32 %v10505_v17, %v14408_v27  ;;  %v10868_v60 = vmul.f32 %v10499_v44, %v14410_v38  ;;  %v14412_v5 = vld [vmem:[#allocation78_spill] sm:$0xff]  ;;  %v14414_v37 = vld [vmem:[#allocation88_spill] sm:$0xff] }
 0x333   :  { %14405 = vst [vmem:[#allocation183_spill] sm:$0xff] %v10856_v43  ;;  %14407 = vst [vmem:[#allocation156_spill] sm:$0xff] %v10860_v50  ;;  %v10872_v15 = vmul.f32 %v10528_v18, %v14412_v5  ;;  %v10876_v63 = vmul.f32 %v10447_v25, %v14414_v37  ;;  %v14416_v43 = vld [vmem:[#allocation90_spill] sm:$0xff]  ;;  %v14418_v50 = vld [vmem:[#allocation89_spill] sm:$0xff] }
 0x334   :  { %14409 = vst [vmem:[#allocation176_spill] sm:$0xff] %v10864_v45  ;;  %14411 = vst [vmem:[#allocation169_spill] sm:$0xff] %v10868_v60  ;;  %v10880_v9 = vmul.f32 %v10475_v46, %v14416_v43  ;;  %v10884_v27 = vmul.f32 %v10472_v55, %v14418_v50  ;;  %v14420_v45 = vld [vmem:[#allocation91_spill] sm:$0xff] }
 0x335   :  { %14413 = vst [vmem:[#allocation191_spill] sm:$0xff] %v10872_v15  ;;  %14415 = vst [vmem:[#allocation162_spill] sm:$0xff] %v10876_v63  ;;  %v10888_v38 = vmul.f32 %v10502_v29, %v14420_v45  ;;  %v14422_v60 = vld [vmem:[#allocation23_spill] sm:$0xff]  ;;  %v14424_v15 = vld [vmem:[#allocation86_spill] sm:$0xff] }
 0x336   :  { %14417 = vst [vmem:[#allocation184_spill] sm:$0xff] %v10880_v9  ;;  %14419 = vst [vmem:[#allocation177_spill] sm:$0xff] %v10884_v27  ;;  %v10892_v5 = vmul.f32 %v10468_v10, %v14422_v60  ;;  %v10896_v37 = vmul.f32 %v10505_v17, %v14424_v15  ;;  %v14426_v63 = vld [vmem:[#allocation29_spill] sm:$0xff]  ;;  %v14428_v9 = vld [vmem:[#allocation87_spill] sm:$0xff] }
 0x337   :  { %14421 = vst [vmem:[#allocation224_spill] sm:$0xff] %v10888_v38  ;;  %v10900_v43 = vmul.f32 %v10499_v44, %v14426_v63  ;;  %v10904_v50 = vmul.f32 %v10528_v18, %v14428_v9  ;;  %v14430_v27 = vld [vmem:[#allocation98_spill] sm:$0xff]  ;;  %v14432_v38 = vld [vmem:[#allocation99_spill] sm:$0xff] }
 0x338   :  { %14423 = vst [vmem:[#allocation170_spill] sm:$0xff] %v10892_v5  ;;  %14425 = vst [vmem:[#allocation192_spill] sm:$0xff] %v10896_v37  ;;  %v10908_v45 = vmul.f32 %v10447_v25, %v14430_v27  ;;  %v10912_v60 = vmul.f32 %v10475_v46, %v14432_v38  ;;  %v14434_v5 = vld [vmem:[#allocation100_spill] sm:$0xff]  ;;  %v14436_v37 = vld [vmem:[#allocation101_spill] sm:$0xff] }
 0x339   :  { %14427 = vst [vmem:[#allocation185_spill] sm:$0xff] %v10900_v43  ;;  %14429 = vst [vmem:[#allocation209_spill] sm:$0xff] %v10904_v50  ;;  %v10916_v15 = vmul.f32 %v10472_v55, %v14434_v5  ;;  %v10920_v63 = vmul.f32 %v10502_v29, %v14436_v37  ;;  %v14438_v43 = vld [vmem:[#allocation94_spill] sm:$0xff]  ;;  %v14440_v50 = vld [vmem:[#allocation95_spill] sm:$0xff] }
 0x33a   :  { %14431 = vst [vmem:[#allocation178_spill] sm:$0xff] %v10908_v45  ;;  %14433 = vst [vmem:[#allocation218_spill] sm:$0xff] %v10912_v60  ;;  %v10924_v9 = vmul.f32 %v10468_v10, %v14438_v43  ;;  %v10928_v27 = vmul.f32 %v10505_v17, %v14440_v50  ;;  %v14442_v45 = vld [vmem:[#allocation96_spill] sm:$0xff]  ;;  %v14444_v60 = vld [vmem:[#allocation97_spill] sm:$0xff] }
 0x33b   :  { %14435 = vst [vmem:[#allocation193_spill] sm:$0xff] %v10916_v15  ;;  %14437 = vst [vmem:[#allocation215_spill] sm:$0xff] %v10920_v63  ;;  %v10932_v38 = vmul.f32 %v10499_v44, %v14442_v45  ;;  %v10936_v5 = vmul.f32 %v10528_v18, %v14444_v60  ;;  %v14446_v15 = vld [vmem:[#allocation19_spill] sm:$0xff]  ;;  %v14448_v63 = vld [vmem:[#allocation109_spill] sm:$0xff] }
 0x33c   :  { %14439 = vst [vmem:[#allocation186_spill] sm:$0xff] %v10924_v9  ;;  %14441 = vst [vmem:[#allocation225_spill] sm:$0xff] %v10928_v27  ;;  %v10940_v37 = vmul.f32 %v10447_v25, %v14446_v15  ;;  %v10944_v43 = vmul.f32 %v10475_v46, %v14448_v63  ;;  %v14450_v9 = vld [vmem:[#allocation75_spill] sm:$0xff]  ;;  %v14452_v27 = vld [vmem:[#allocation110_spill] sm:$0xff] }
 0x33d   :  { %14443 = vst [vmem:[#allocation201_spill] sm:$0xff] %v10932_v38  ;;  %14445 = vst [vmem:[#allocation202_spill] sm:$0xff] %v10936_v5  ;;  %v10948_v50 = vmul.f32 %v10472_v55, %v14450_v9  ;;  %v10952_v45 = vmul.f32 %v10502_v29, %v14452_v27  ;;  %v14454_v38 = vld [vmem:[#allocation105_spill] sm:$0xff]  ;;  %v14456_v5 = vld [vmem:[#allocation107_spill] sm:$0xff] }
 0x33e   :  { %14447 = vst [vmem:[#allocation219_spill] sm:$0xff] %v10940_v37  ;;  %14449 = vst [vmem:[#allocation194_spill] sm:$0xff] %v10944_v43  ;;  %v10956_v60 = vmul.f32 %v10468_v10, %v14454_v38  ;;  %v10960_v15 = vmul.f32 %v10505_v17, %v14456_v5  ;;  %v14458_v37 = vld [vmem:[#allocation106_spill] sm:$0xff]  ;;  %v14460_v43 = vld [vmem:[#allocation108_spill] sm:$0xff] }
 0x33f   :  { %14451 = vst [vmem:[#allocation216_spill] sm:$0xff] %v10948_v50  ;;  %14453 = vst [vmem:[#allocation210_spill] sm:$0xff] %v10952_v45  ;;  %v10964_v63 = vmul.f32 %v10499_v44, %v14458_v37  ;;  %v10968_v9 = vmul.f32 %v10528_v18, %v14460_v43  ;;  %v14462_v50 = vld [vmem:[#allocation127_spill] sm:$0xff]  ;;  %v14463_v45 = vld [vmem:[#allocation128_spill] sm:$0xff] }
 0x340   :  { %14455 = vst [vmem:[#allocation226_spill] sm:$0xff] %v10956_v60  ;;  %14457 = vst [vmem:[#allocation220_spill] sm:$0xff] %v10960_v15  ;;  %v10972_v27 = vmul.f32 %v10447_v25, %v14462_v50  ;;  %v10976_v38 = vmul.f32 %v10475_v46, %v14463_v45  ;;  %v14464_v60 = vld [vmem:[#allocation129_spill] sm:$0xff]  ;;  %v14465_v15 = vld [vmem:[#allocation130_spill] sm:$0xff] }
 0x341   :  { %14459 = vst [vmem:[#allocation134_spill] sm:$0xff] %v10964_v63  ;;  %14461 = vst [vmem:[#allocation217_spill] sm:$0xff] %v10968_v9  ;;  %v10980_v5 = vmul.f32 %v10472_v55, %v14464_v60  ;;  %v10984_v37 = vmul.f32 %v10502_v29, %v14465_v15  ;;  %v14466_v63 = vld [vmem:[#allocation131_spill] sm:$0xff]  ;;  %v14467_v9 = vld [vmem:[#allocation132_spill] sm:$0xff]  ;;  %v11000_v55 = vmul.f32 %v10528_v18, %v14245_v36 }
 0x342   :  { %v10988_v43 = vmul.f32 %v10468_v10, %v14466_v63  ;;  %v10992_v25 = vmul.f32 %v10505_v17, %v14467_v9  ;;  %v14468_v50 = vld [vmem:[#allocation133_spill] sm:$0xff]  ;;  %v11004_v29 = vmul.f32 %v10412_v14, %v10479_v6  ;;  %v11008_v10 = vmul.f32 %v10441_v41, %v10509_v32  ;;  %v14472_v60 = vld [vmem:[#allocation163_spill] sm:$0xff]  ;;  %v14474_v15 = vld [vmem:[#allocation164_spill] sm:$0xff] }
 0x343   :  { %v10996_v46 = vmul.f32 %v10499_v44, %v14468_v50  ;;  %v11012_v17 = vmul.f32 %v10425_v48, %v10513_v34  ;;  %v11016_v44 = vmul.f32 %v10450_v59, %v10532_v24  ;;  %v11020_v36 = vmul.f32 %v10415_v62, %v10517_v11  ;;  %v14470_v45 = vld [vmem:[#allocation157_spill] sm:$0xff]  ;;  %v14478_v9 = vld [vmem:[#allocation171_spill] sm:$0xff] }
 0x344   :  { %v11024_v6 = vmul.f32 %v10453_v39, %v10536_v0  ;;  %v11028_v32 = vmul.f32 %v10429_v42, %v10540_v49  ;;  %v11032_v34 = vmul.f32 %v10456_v7, %v10560_v13  ;;  %v11036_v18 = vmul.f32 %v10412_v14, %v10483_v1  ;;  %v14476_v63 = vld [vmem:[#allocation165_spill] sm:$0xff] }
 0x345   :  { %v11040_v11 = vmul.f32 %v10441_v41, %v10521_v21  ;;  %v11044_v24 = vmul.f32 %v10425_v48, %v10525_v57  ;;  %v11048_v0 = vmul.f32 %v10450_v59, %v10544_v26  ;;  %v11052_v49 = vmul.f32 %v10415_v62, %v10548_v20 }
 0x346   :  { %v11056_v1 = vmul.f32 %v10453_v39, %v10552_v35  ;;  %v11060_v21 = vmul.f32 %v10429_v42, %v10556_v19  ;;  %v11064_v57 = vmul.f32 %v10456_v7, %v10564_v56  ;;  %v11068_v26 = vmul.f32 %v10412_v14, %v10487_v3 }
 0x347   :  { %v11072_v20 = vmul.f32 %v10441_v41, %v10568_v31  ;;  %v11076_v35 = vmul.f32 %v10425_v48, %v10572_v23  ;;  %v11080_v19 = vmul.f32 %v10450_v59, %v10576_v61  ;;  %v11084_v13 = vmul.f32 %v10415_v62, %v10580_v4 }
 0x348   :  { %v11088_v3 = vmul.f32 %v10453_v39, %v10584_v33  ;;  %v11092_v56 = vmul.f32 %v10429_v42, %v10588_v30  ;;  %v11096_v31 = vmul.f32 %v10456_v7, %v10592_v54  ;;  %v11100_v23 = vmul.f32 %v10412_v14, %v10491_v51 }
 0x349   :  { %v11104_v61 = vmul.f32 %v10441_v41, %v10596_v22  ;;  %v11108_v4 = vmul.f32 %v10425_v48, %v10600_v12  ;;  %v11112_v33 = vmul.f32 %v10450_v59, %v10604_v52  ;;  %v11116_v30 = vmul.f32 %v10415_v62, %v10608_v2 }
 0x34a   :  { %v11120_v51 = vmul.f32 %v10453_v39, %v10612_v40  ;;  %v11124_v54 = vmul.f32 %v10429_v42, %v10616_v53  ;;  %v11128_v22 = vmul.f32 %v10456_v7, %v10620_v28  ;;  %v11132_v12 = vmul.f32 %v10412_v14, %v10495_v16  ;;  %v14469_v53 = vld [vmem:[#allocation152_spill] sm:$0xff] }
 0x34b   :  { %v11136_v52 = vmul.f32 %v10441_v41, %v10624_v8  ;;  %v11140_v2 = vmul.f32 %v10425_v48, %v10628_v58  ;;  %v11144_v40 = vmul.f32 %v10450_v59, %v10632_v47  ;;  %v11148_v28 = vmul.f32 %v10415_v62, %v14469_v53  ;;  %v14480_v53 = vld [vmem:[#allocation172_spill] sm:$0xff] }
 0x34c   :  { %v11152_v16 = vmul.f32 %v10453_v39, %v14470_v45  ;;  %v11156_v8 = vmul.f32 %v10429_v42, %v14472_v60  ;;  %v11160_v58 = vmul.f32 %v10456_v7, %v14474_v15  ;;  %v11164_v47 = vmul.f32 %v10412_v14, %v14476_v63 }
 0x34d   :  { %v11168_v50 = vmul.f32 %v10441_v41, %v14478_v9  ;;  %v11172_v45 = vmul.f32 %v10425_v48, %v14480_v53 }
 0x34e   :  { %14471 = vst [vmem:[#allocation227_spill] sm:$0xff] %v11152_v16  ;;  %14473 = vst [vmem:[#allocation221_spill] sm:$0xff] %v11156_v8  ;;  %v14482_v16 = vld [vmem:[#allocation179_spill] sm:$0xff]  ;;  %v14484_v8 = vld [vmem:[#allocation180_spill] sm:$0xff] }
 0x34f   :  { %14475 = vst [vmem:[#allocation5_spill] sm:$0xff] %v11160_v58  ;;  %14477 = vst [vmem:[#allocation17_spill] sm:$0xff] %v11164_v47  ;;  %v11176_v60 = vmul.f32 %v10450_v59, %v14482_v16  ;;  %v11180_v15 = vmul.f32 %v10415_v62, %v14484_v8  ;;  %v14486_v58 = vld [vmem:[#allocation187_spill] sm:$0xff]  ;;  %v14488_v47 = vld [vmem:[#allocation188_spill] sm:$0xff] }
 0x350   :  { %14479 = vst [vmem:[#allocation20_spill] sm:$0xff] %v11168_v50  ;;  %14481 = vst [vmem:[#allocation26_spill] sm:$0xff] %v11172_v45  ;;  %v11184_v63 = vmul.f32 %v10453_v39, %v14486_v58  ;;  %v11188_v9 = vmul.f32 %v10429_v42, %v14488_v47  ;;  %v14490_v50 = vld [vmem:[#allocation195_spill] sm:$0xff]  ;;  %v14492_v45 = vld [vmem:[#allocation196_spill] sm:$0xff] }
 0x351   :  { %14483 = vst [vmem:[#allocation39_spill] sm:$0xff] %v11176_v60  ;;  %14485 = vst [vmem:[#allocation55_spill] sm:$0xff] %v11180_v15  ;;  %v11192_v53 = vmul.f32 %v10456_v7, %v14490_v50  ;;  %v11196_v16 = vmul.f32 %v10412_v14, %v14492_v45  ;;  %v14494_v60 = vld [vmem:[#allocation197_spill] sm:$0xff]  ;;  %v14496_v15 = vld [vmem:[#allocation198_spill] sm:$0xff] }
 0x352   :  { %14487 = vst [vmem:[#allocation15_spill] sm:$0xff] %v11184_v63  ;;  %14489 = vst [vmem:[#allocation10_spill] sm:$0xff] %v11188_v9  ;;  %v11200_v8 = vmul.f32 %v10441_v41, %v14494_v60  ;;  %v11204_v58 = vmul.f32 %v10425_v48, %v14496_v15  ;;  %v14498_v63 = vld [vmem:[#allocation199_spill] sm:$0xff]  ;;  %v14500_v9 = vld [vmem:[#allocation200_spill] sm:$0xff] }
 0x353   :  { %14491 = vst [vmem:[#allocation38_spill] sm:$0xff] %v11192_v53  ;;  %14493 = vst [vmem:[#allocation56_spill] sm:$0xff] %v11196_v16  ;;  %v11208_v47 = vmul.f32 %v10450_v59, %v14498_v63  ;;  %v11212_v50 = vmul.f32 %v10415_v62, %v14500_v9  ;;  %v14502_v53 = vld [vmem:[#allocation203_spill] sm:$0xff]  ;;  %v14504_v16 = vld [vmem:[#allocation204_spill] sm:$0xff] }
 0x354   :  { %14495 = vst [vmem:[#allocation72_spill] sm:$0xff] %v11200_v8  ;;  %14497 = vst [vmem:[#allocation12_spill] sm:$0xff] %v11204_v58  ;;  %v11216_v45 = vmul.f32 %v10453_v39, %v14502_v53  ;;  %v11220_v60 = vmul.f32 %v10429_v42, %v14504_v16  ;;  %v14506_v8 = vld [vmem:[#allocation205_spill] sm:$0xff]  ;;  %v14508_v58 = vld [vmem:[#allocation206_spill] sm:$0xff] }
 0x355   :  { %14499 = vst [vmem:[#allocation13_spill] sm:$0xff] %v11208_v47  ;;  %14501 = vst [vmem:[#allocation7_spill] sm:$0xff] %v11212_v50  ;;  %v11224_v15 = vmul.f32 %v10456_v7, %v14506_v8  ;;  %v11228_v63 = vmul.f32 %v10412_v14, %v14508_v58  ;;  %v14510_v47 = vld [vmem:[#allocation207_spill] sm:$0xff]  ;;  %v14512_v50 = vld [vmem:[#allocation208_spill] sm:$0xff] }
 0x356   :  { %14503 = vst [vmem:[#allocation40_spill] sm:$0xff] %v11216_v45  ;;  %14505 = vst [vmem:[#allocation41_spill] sm:$0xff] %v11220_v60  ;;  %v11232_v9 = vmul.f32 %v10441_v41, %v14510_v47  ;;  %v11236_v53 = vmul.f32 %v10425_v48, %v14512_v50  ;;  %v14514_v45 = vld [vmem:[#allocation211_spill] sm:$0xff]  ;;  %v14516_v60 = vld [vmem:[#allocation212_spill] sm:$0xff] }
 0x357   :  { %14507 = vst [vmem:[#allocation14_spill] sm:$0xff] %v11224_v15  ;;  %14509 = vst [vmem:[#allocation9_spill] sm:$0xff] %v11228_v63  ;;  %v11240_v16 = vmul.f32 %v10450_v59, %v14514_v45  ;;  %v11244_v8 = vmul.f32 %v10415_v62, %v14516_v60  ;;  %v14518_v15 = vld [vmem:[#allocation213_spill] sm:$0xff]  ;;  %v14520_v63 = vld [vmem:[#allocation214_spill] sm:$0xff] }
 0x358   :  { %14511 = vst [vmem:[#allocation8_spill] sm:$0xff] %v11232_v9  ;;  %14513 = vst [vmem:[#allocation42_spill] sm:$0xff] %v11236_v53  ;;  %v11248_v58 = vmul.f32 %v10453_v39, %v14518_v15  ;;  %v11252_v47 = vmul.f32 %v10429_v42, %v14520_v63  ;;  %v14522_v9 = vld [vmem:[#allocation135_spill] sm:$0xff]  ;;  %v14524_v53 = vld [vmem:[#allocation136_spill] sm:$0xff] }
 0x359   :  { %14515 = vst [vmem:[#allocation32_spill] sm:$0xff] %v11240_v16  ;;  %14517 = vst [vmem:[#allocation35_spill] sm:$0xff] %v11244_v8  ;;  %v11256_v50 = vmul.f32 %v10456_v7, %v14522_v9  ;;  %v11260_v45 = vmul.f32 %v10412_v14, %v14524_v53  ;;  %v14526_v16 = vld [vmem:[#allocation158_spill] sm:$0xff] }
 0x35a   :  { %14519 = vst [vmem:[#allocation36_spill] sm:$0xff] %v11248_v58  ;;  %14521 = vst [vmem:[#allocation11_spill] sm:$0xff] %v11252_v47  ;;  %v11264_v60 = vmul.f32 %v10441_v41, %v14526_v16  ;;  %v14528_v8 = vld [vmem:[#allocation222_spill] sm:$0xff]  ;;  %v14530_v58 = vld [vmem:[#allocation137_spill] sm:$0xff] }
 0x35b   :  { %14523 = vst [vmem:[#allocation37_spill] sm:$0xff] %v11256_v50  ;;  %14525 = vst [vmem:[#allocation58_spill] sm:$0xff] %v11260_v45  ;;  %v11268_v15 = vmul.f32 %v10425_v48, %v14528_v8  ;;  %v11272_v63 = vmul.f32 %v10450_v59, %v14530_v58  ;;  %v14532_v47 = vld [vmem:[#allocation153_spill] sm:$0xff]  ;;  %v14536_v45 = vld [vmem:[#allocation223_spill] sm:$0xff] }
 0x35c   :  { %14527 = vst [vmem:[#allocation57_spill] sm:$0xff] %v11264_v60  ;;  %v11276_v9 = vmul.f32 %v10415_v62, %v14532_v47  ;;  %v14534_v50 = vld [vmem:[#allocation173_spill] sm:$0xff]  ;;  %v11284_v16 = vmul.f32 %v10429_v42, %v14536_v45  ;;  %v14538_v60 = vld [vmem:[#allocation147_spill] sm:$0xff] }
 0x35d   :  { %14529 = vst [vmem:[#allocation59_spill] sm:$0xff] %v11268_v15  ;;  %14531 = vst [vmem:[#allocation51_spill] sm:$0xff] %v11272_v63  ;;  %v11280_v53 = vmul.f32 %v10453_v39, %v14534_v50  ;;  %v11288_v8 = vmul.f32 %v10456_v7, %v14538_v60  ;;  %v14540_v15 = vld [vmem:[#allocation166_spill] sm:$0xff]  ;;  %v14542_v63 = vld [vmem:[#allocation143_spill] sm:$0xff] }
 0x35e   :  { %14533 = vst [vmem:[#allocation53_spill] sm:$0xff] %v11276_v9  ;;  %14537 = vst [vmem:[#allocation54_spill] sm:$0xff] %v11284_v16  ;;  %v11292_v58 = vmul.f32 %v10412_v14, %v14540_v15  ;;  %v11296_v47 = vmul.f32 %v10441_v41, %v14542_v63  ;;  %v14544_v9 = vld [vmem:[#allocation159_spill] sm:$0xff]  ;;  %v14548_v16 = vld [vmem:[#allocation138_spill] sm:$0xff] }
 0x35f   :  { %14535 = vst [vmem:[#allocation52_spill] sm:$0xff] %v11280_v53  ;;  %14539 = vst [vmem:[#allocation16_spill] sm:$0xff] %v11288_v8  ;;  %v11300_v50 = vmul.f32 %v10425_v48, %v14544_v9  ;;  %v14546_v53 = vld [vmem:[#allocation181_spill] sm:$0xff]  ;;  %v11308_v60 = vmul.f32 %v10415_v62, %v14548_v16  ;;  %v14550_v8 = vld [vmem:[#allocation154_spill] sm:$0xff] }
 0x360   :  { %14541 = vst [vmem:[#allocation73_spill] sm:$0xff] %v11292_v58  ;;  %14543 = vst [vmem:[#allocation74_spill] sm:$0xff] %v11296_v47  ;;  %v11304_v45 = vmul.f32 %v10450_v59, %v14546_v53  ;;  %v11312_v15 = vmul.f32 %v10453_v39, %v14550_v8  ;;  %v14552_v58 = vld [vmem:[#allocation174_spill] sm:$0xff]  ;;  %v14554_v47 = vld [vmem:[#allocation148_spill] sm:$0xff] }
 0x361   :  { %14545 = vst [vmem:[#allocation68_spill] sm:$0xff] %v11300_v50  ;;  %14549 = vst [vmem:[#allocation69_spill] sm:$0xff] %v11308_v60  ;;  %v11316_v63 = vmul.f32 %v10429_v42, %v14552_v58  ;;  %v11320_v9 = vmul.f32 %v10456_v7, %v14554_v47  ;;  %v14556_v50 = vld [vmem:[#allocation167_spill] sm:$0xff]  ;;  %v14560_v60 = vld [vmem:[#allocation144_spill] sm:$0xff] }
 0x362   :  { %14547 = vst [vmem:[#allocation70_spill] sm:$0xff] %v11304_v45  ;;  %14551 = vst [vmem:[#allocation71_spill] sm:$0xff] %v11312_v15  ;;  %v11324_v53 = vmul.f32 %v10412_v14, %v14556_v50  ;;  %v14558_v45 = vld [vmem:[#allocation189_spill] sm:$0xff]  ;;  %v11332_v8 = vmul.f32 %v10425_v48, %v14560_v60  ;;  %v14562_v15 = vld [vmem:[#allocation160_spill] sm:$0xff] }
 0x363   :  { %14553 = vst [vmem:[#allocation21_spill] sm:$0xff] %v11316_v63  ;;  %14555 = vst [vmem:[#allocation82_spill] sm:$0xff] %v11320_v9  ;;  %v11328_v16 = vmul.f32 %v10441_v41, %v14558_v45  ;;  %v11336_v58 = vmul.f32 %v10450_v59, %v14562_v15  ;;  %v14564_v63 = vld [vmem:[#allocation182_spill] sm:$0xff]  ;;  %v14566_v9 = vld [vmem:[#allocation155_spill] sm:$0xff] }
 0x364   :  { %14557 = vst [vmem:[#allocation83_spill] sm:$0xff] %v11324_v53  ;;  %14561 = vst [vmem:[#allocation85_spill] sm:$0xff] %v11332_v8  ;;  %v11340_v47 = vmul.f32 %v10415_v62, %v14564_v63  ;;  %v11344_v50 = vmul.f32 %v10453_v39, %v14566_v9  ;;  %v14568_v53 = vld [vmem:[#allocation175_spill] sm:$0xff]  ;;  %v14572_v8 = vld [vmem:[#allocation168_spill] sm:$0xff] }
 0x365   :  { %14559 = vst [vmem:[#allocation84_spill] sm:$0xff] %v11328_v16  ;;  %14563 = vst [vmem:[#allocation113_spill] sm:$0xff] %v11336_v58  ;;  %v11348_v45 = vmul.f32 %v10429_v42, %v14568_v53  ;;  %v14570_v16 = vld [vmem:[#allocation149_spill] sm:$0xff]  ;;  %v11356_v15 = vmul.f32 %v10412_v14, %v14572_v8  ;;  %v14574_v58 = vld [vmem:[#allocation190_spill] sm:$0xff] }
 0x366   :  { %14565 = vst [vmem:[#allocation114_spill] sm:$0xff] %v11340_v47  ;;  %14567 = vst [vmem:[#allocation115_spill] sm:$0xff] %v11344_v50  ;;  %v11352_v60 = vmul.f32 %v10456_v7, %v14570_v16  ;;  %v11360_v63 = vmul.f32 %v10441_v41, %v14574_v58  ;;  %v14576_v47 = vld [vmem:[#allocation161_spill] sm:$0xff]  ;;  %v14578_v50 = vld [vmem:[#allocation183_spill] sm:$0xff] }
 0x367   :  { %14569 = vst [vmem:[#allocation92_spill] sm:$0xff] %v11348_v45  ;;  %14573 = vst [vmem:[#allocation116_spill] sm:$0xff] %v11356_v15  ;;  %v11364_v9 = vmul.f32 %v10425_v48, %v14576_v47  ;;  %v11368_v53 = vmul.f32 %v10450_v59, %v14578_v50  ;;  %v14580_v45 = vld [vmem:[#allocation156_spill] sm:$0xff]  ;;  %v14584_v15 = vld [vmem:[#allocation169_spill] sm:$0xff] }
 0x368   :  { %14571 = vst [vmem:[#allocation93_spill] sm:$0xff] %v11352_v60  ;;  %14575 = vst [vmem:[#allocation117_spill] sm:$0xff] %v11360_v63  ;;  %v11372_v16 = vmul.f32 %v10415_v62, %v14580_v45  ;;  %v14582_v60 = vld [vmem:[#allocation176_spill] sm:$0xff]  ;;  %v11380_v58 = vmul.f32 %v10429_v42, %v14584_v15  ;;  %v14586_v63 = vld [vmem:[#allocation191_spill] sm:$0xff] }
 0x369   :  { %14577 = vst [vmem:[#allocation118_spill] sm:$0xff] %v11364_v9  ;;  %14579 = vst [vmem:[#allocation119_spill] sm:$0xff] %v11368_v53  ;;  %v11376_v8 = vmul.f32 %v10453_v39, %v14582_v60  ;;  %v11384_v47 = vmul.f32 %v10456_v7, %v14586_v63  ;;  %v14588_v9 = vld [vmem:[#allocation162_spill] sm:$0xff]  ;;  %v14590_v53 = vld [vmem:[#allocation184_spill] sm:$0xff] }
 0x36a   :  { %14581 = vst [vmem:[#allocation120_spill] sm:$0xff] %v11372_v16  ;;  %14585 = vst [vmem:[#allocation102_spill] sm:$0xff] %v11380_v58  ;;  %v11388_v50 = vmul.f32 %v10412_v14, %v14588_v9  ;;  %v11392_v45 = vmul.f32 %v10441_v41, %v14590_v53  ;;  %v14592_v16 = vld [vmem:[#allocation177_spill] sm:$0xff]  ;;  %v14596_v58 = vld [vmem:[#allocation170_spill] sm:$0xff] }
 0x36b   :  { %14583 = vst [vmem:[#allocation103_spill] sm:$0xff] %v11376_v8  ;;  %14587 = vst [vmem:[#allocation104_spill] sm:$0xff] %v11384_v47  ;;  %v11396_v60 = vmul.f32 %v10425_v48, %v14592_v16  ;;  %v14594_v8 = vld [vmem:[#allocation224_spill] sm:$0xff]  ;;  %v11404_v63 = vmul.f32 %v10415_v62, %v14596_v58 }
 0x36c   :  { %14589 = vst [vmem:[#allocation121_spill] sm:$0xff] %v11388_v50  ;;  %14591 = vst [vmem:[#allocation122_spill] sm:$0xff] %v11392_v45  ;;  %v11400_v15 = vmul.f32 %v10450_v59, %v14594_v8  ;;  %v14598_v47 = vld [vmem:[#allocation192_spill] sm:$0xff]  ;;  %v14600_v50 = vld [vmem:[#allocation185_spill] sm:$0xff] }
 0x36d   :  { %14593 = vst [vmem:[#allocation123_spill] sm:$0xff] %v11396_v60  ;;  %14597 = vst [vmem:[#allocation125_spill] sm:$0xff] %v11404_v63  ;;  %v11408_v9 = vmul.f32 %v10453_v39, %v14598_v47  ;;  %v11412_v53 = vmul.f32 %v10429_v42, %v14600_v50  ;;  %v14602_v45 = vld [vmem:[#allocation209_spill] sm:$0xff]  ;;  %v14604_v60 = vld [vmem:[#allocation178_spill] sm:$0xff] }
 0x36e   :  { %14595 = vst [vmem:[#allocation124_spill] sm:$0xff] %v11400_v15  ;;  %v11416_v16 = vmul.f32 %v10456_v7, %v14602_v45  ;;  %v11420_v8 = vmul.f32 %v10412_v14, %v14604_v60  ;;  %v14606_v15 = vld [vmem:[#allocation218_spill] sm:$0xff]  ;;  %v14608_v63 = vld [vmem:[#allocation193_spill] sm:$0xff] }
 0x36f   :  { %14599 = vst [vmem:[#allocation126_spill] sm:$0xff] %v11408_v9  ;;  %14601 = vst [vmem:[#allocation111_spill] sm:$0xff] %v11412_v53  ;;  %v11424_v58 = vmul.f32 %v10441_v41, %v14606_v15  ;;  %v11428_v47 = vmul.f32 %v10425_v48, %v14608_v63  ;;  %v14610_v9 = vld [vmem:[#allocation215_spill] sm:$0xff]  ;;  %v14612_v53 = vld [vmem:[#allocation186_spill] sm:$0xff] }
 0x370   :  { %14603 = vst [vmem:[#allocation112_spill] sm:$0xff] %v11416_v16  ;;  %14605 = vst [vmem:[#allocation30_spill] sm:$0xff] %v11420_v8  ;;  %v11432_v50 = vmul.f32 %v10450_v59, %v14610_v9  ;;  %v11436_v45 = vmul.f32 %v10415_v62, %v14612_v53  ;;  %v14614_v16 = vld [vmem:[#allocation225_spill] sm:$0xff] }
 0x371   :  { %14607 = vst [vmem:[#allocation33_spill] sm:$0xff] %v11424_v58  ;;  %14609 = vst [vmem:[#allocation31_spill] sm:$0xff] %v11428_v47  ;;  %v11440_v60 = vmul.f32 %v10453_v39, %v14614_v16  ;;  %v14616_v8 = vld [vmem:[#allocation201_spill] sm:$0xff]  ;;  %v14618_v58 = vld [vmem:[#allocation202_spill] sm:$0xff] }
 0x372   :  { %14611 = vst [vmem:[#allocation34_spill] sm:$0xff] %v11432_v50  ;;  %14613 = vst [vmem:[#allocation22_spill] sm:$0xff] %v11436_v45  ;;  %v11444_v15 = vmul.f32 %v10429_v42, %v14616_v8  ;;  %v11448_v63 = vmul.f32 %v10456_v7, %v14618_v58  ;;  %v14620_v47 = vld [vmem:[#allocation219_spill] sm:$0xff]  ;;  %v14622_v50 = vld [vmem:[#allocation194_spill] sm:$0xff] }
 0x373   :  { %14615 = vst [vmem:[#allocation24_spill] sm:$0xff] %v11440_v60  ;;  %v11452_v9 = vmul.f32 %v10412_v14, %v14620_v47  ;;  %v11456_v53 = vmul.f32 %v10441_v41, %v14622_v50  ;;  %v14624_v45 = vld [vmem:[#allocation216_spill] sm:$0xff]  ;;  %v14625_v60 = vld [vmem:[#allocation210_spill] sm:$0xff] }
 0x374   :  { %14617 = vst [vmem:[#allocation25_spill] sm:$0xff] %v11444_v15  ;;  %14619 = vst [vmem:[#allocation28_spill] sm:$0xff] %v11448_v63  ;;  %v11460_v16 = vmul.f32 %v10425_v48, %v14624_v45  ;;  %v11464_v8 = vmul.f32 %v10450_v59, %v14625_v60  ;;  %v14626_v15 = vld [vmem:[#allocation226_spill] sm:$0xff]  ;;  %v14627_v63 = vld [vmem:[#allocation220_spill] sm:$0xff]  ;;  %v11484_v60 = vmul.f32 %v10412_v14, %v10972_v27 }
 0x375   :  { %14621 = vst [vmem:[#allocation47_spill] sm:$0xff] %v11452_v9  ;;  %14623 = vst [vmem:[#allocation48_spill] sm:$0xff] %v11456_v53  ;;  %v11468_v58 = vmul.f32 %v10415_v62, %v14626_v15  ;;  %v11472_v47 = vmul.f32 %v10453_v39, %v14627_v63  ;;  %v14628_v9 = vld [vmem:[#allocation134_spill] sm:$0xff]  ;;  %v14629_v53 = vld [vmem:[#allocation217_spill] sm:$0xff]  ;;  %v11488_v15 = vmul.f32 %v10441_v41, %v10976_v38 }
 0x376   :  { %v11476_v50 = vmul.f32 %v10429_v42, %v14628_v9  ;;  %v11480_v45 = vmul.f32 %v10456_v7, %v14629_v53  ;;  %v11492_v63 = vmul.f32 %v10425_v48, %v10980_v5  ;;  %v11496_v9 = vmul.f32 %v10450_v59, %v10984_v37  ;;  %v14630_v27 = vld [vmem:[#allocation139_spill] sm:$0xff]  ;;  %v14631_v38 = vld [vmem:[#allocation145_spill] sm:$0xff]  ;;  %v14633_v37 = vld [vmem:[#allocation146_spill] sm:$0xff] }
 0x377   :  { %v11500_v53 = vmul.f32 %v10415_v62, %v10988_v43  ;;  %v11504_v14 = vmul.f32 %v10453_v39, %v10992_v25  ;;  %v11508_v41 = vmul.f32 %v10429_v42, %v10996_v46  ;;  %v11512_v48 = vmul.f32 %v10456_v7, %v11000_v55  ;;  %v14632_v5 = vld [vmem:[#allocation141_spill] sm:$0xff]  ;;  %v14634_v43 = vld [vmem:[#allocation140_spill] sm:$0xff]  ;;  %v14635_v25 = vld [vmem:[#allocation150_spill] sm:$0xff] }
 0x378   :  { %v11516_v59 = vadd.f32 %v14630_v27, %v11004_v29  ;;  %v11520_v62 = vadd.f32 %v14631_v38, %v11008_v10  ;;  %v11524_v39 = vadd.f32 %v14632_v5, %v11012_v17  ;;  %v11528_v42 = vadd.f32 %v14633_v37, %v11016_v44  ;;  %v14636_v55 = vld [vmem:[#allocation142_spill] sm:$0xff]  ;;  %v14637_v10 = vld [vmem:[#allocation151_spill] sm:$0xff] }
 0x379   :  { %v11532_v7 = vadd.f32 %v14634_v43, %v11020_v36  ;;  %v11536_v46 = vadd.f32 %v14635_v25, %v11024_v6  ;;  %v11540_v29 = vadd.f32 %v14636_v55, %v11028_v32  ;;  %v11544_v17 = vadd.f32 %v14637_v10, %v11032_v34 }
 0x37a   :  { %v11548_v44 = vadd.f32 %v14630_v27, %v11036_v18  ;;  %v11552_v36 = vadd.f32 %v14631_v38, %v11040_v11  ;;  %v11556_v6 = vadd.f32 %v14632_v5, %v11044_v24  ;;  %v11560_v32 = vadd.f32 %v14633_v37, %v11048_v0 }
 0x37b   :  { %v11564_v34 = vadd.f32 %v14634_v43, %v11052_v49  ;;  %v11568_v18 = vadd.f32 %v14635_v25, %v11056_v1  ;;  %v11572_v11 = vadd.f32 %v14636_v55, %v11060_v21  ;;  %v11576_v24 = vadd.f32 %v14637_v10, %v11064_v57 }
 0x37c   :  { %v11580_v0 = vadd.f32 %v14630_v27, %v11068_v26  ;;  %v11584_v49 = vadd.f32 %v14631_v38, %v11072_v20  ;;  %v11588_v1 = vadd.f32 %v14632_v5, %v11076_v35  ;;  %v11592_v21 = vadd.f32 %v14633_v37, %v11080_v19 }
 0x37d   :  { %v11596_v57 = vadd.f32 %v14634_v43, %v11084_v13  ;;  %v11600_v26 = vadd.f32 %v14635_v25, %v11088_v3  ;;  %v11604_v20 = vadd.f32 %v14636_v55, %v11092_v56  ;;  %v11608_v35 = vadd.f32 %v14637_v10, %v11096_v31 }
 0x37e   :  { %v11612_v19 = vadd.f32 %v14630_v27, %v11100_v23  ;;  %v11616_v13 = vadd.f32 %v14631_v38, %v11104_v61  ;;  %v11620_v3 = vadd.f32 %v14632_v5, %v11108_v4  ;;  %v11624_v56 = vadd.f32 %v14633_v37, %v11112_v33 }
 0x37f   :  { %14638 = vst [vmem:[#allocation49_spill] sm:$0xff] %v11608_v35  ;;  %v11628_v31 = vadd.f32 %v14634_v43, %v11116_v30  ;;  %v11632_v23 = vadd.f32 %v14635_v25, %v11120_v51  ;;  %v11636_v61 = vadd.f32 %v14636_v55, %v11124_v54  ;;  %v11640_v4 = vadd.f32 %v14637_v10, %v11128_v22 }
 0x380   :  { %14639 = vst [vmem:[#allocation50_spill] sm:$0xff] %v11612_v19  ;;  %14640 = vst [vmem:[#allocation43_spill] sm:$0xff] %v11616_v13  ;;  %v11644_v33 = vadd.f32 %v14630_v27, %v11132_v12  ;;  %v11648_v30 = vadd.f32 %v14631_v38, %v11136_v52  ;;  %v11652_v51 = vadd.f32 %v14632_v5, %v11140_v2 }
 0x381   :  { %14641 = vst [vmem:[#allocation45_spill] sm:$0xff] %v11620_v3  ;;  %14642 = vst [vmem:[#allocation44_spill] sm:$0xff] %v11624_v56  ;;  %v11656_v54 = vadd.f32 %v14633_v37, %v11144_v40  ;;  %v11660_v22 = vadd.f32 %v14634_v43, %v11148_v28 }
 0x382   :  { %14643 = vst [vmem:[#allocation46_spill] sm:$0xff] %v11628_v31  ;;  %14644 = vst [vmem:[#allocation64_spill] sm:$0xff] %v11632_v23 }
 0x383   :  { %14645 = vst [vmem:[#allocation65_spill] sm:$0xff] %v11636_v61  ;;  %14646 = vst [vmem:[#allocation66_spill] sm:$0xff] %v11640_v4  ;;  %v14652_v4 = vld [vmem:[#allocation227_spill] sm:$0xff] }
 0x384   :  { %14647 = vst [vmem:[#allocation67_spill] sm:$0xff] %v11644_v33  ;;  %14648 = vst [vmem:[#allocation60_spill] sm:$0xff] %v11648_v30  ;;  %v11664_v12 = vadd.f32 %v14635_v25, %v14652_v4  ;;  %v14654_v33 = vld [vmem:[#allocation221_spill] sm:$0xff] }
 0x385   :  { %14649 = vst [vmem:[#allocation62_spill] sm:$0xff] %v11652_v51  ;;  %14650 = vst [vmem:[#allocation61_spill] sm:$0xff] %v11656_v54  ;;  %v11668_v52 = vadd.f32 %v14636_v55, %v14654_v33  ;;  %v14656_v30 = vld [vmem:[#allocation5_spill] sm:$0xff]  ;;  %v14660_v54 = vld [vmem:[#allocation20_spill] sm:$0xff] }
 0x386   :  { %14651 = vst [vmem:[#allocation63_spill] sm:$0xff] %v11660_v22  ;;  %14653 = vst [vmem:[#allocation27_spill] sm:$0xff] %v11664_v12  ;;  %v11672_v2 = vadd.f32 %v14637_v10, %v14656_v30  ;;  %v14658_v51 = vld [vmem:[#allocation17_spill] sm:$0xff]  ;;  %v11680_v28 = vadd.f32 %v14631_v38, %v14660_v54  ;;  %v14662_v22 = vld [vmem:[#allocation26_spill] sm:$0xff] }
 0x387   :  { %14655 = vst [vmem:[#allocation79_spill] sm:$0xff] %v11668_v52  ;;  %v11676_v40 = vadd.f32 %v14630_v27, %v14658_v51  ;;  %v11684_v4 = vadd.f32 %v14632_v5, %v14662_v22  ;;  %v14664_v12 = vld [vmem:[#allocation39_spill] sm:$0xff] }
 0x388   :  { %14657 = vst [vmem:[#allocation80_spill] sm:$0xff] %v11672_v2  ;;  %14661 = vst [vmem:[#allocation18_spill] sm:$0xff] %v11680_v28  ;;  %v11688_v33 = vadd.f32 %v14633_v37, %v14664_v12  ;;  %v14666_v52 = vld [vmem:[#allocation55_spill] sm:$0xff]  ;;  %v14672_v28 = vld [vmem:[#allocation38_spill] sm:$0xff] }
 0x389   :  { %14659 = vst [vmem:[#allocation81_spill] sm:$0xff] %v11676_v40  ;;  %14663 = vst [vmem:[#allocation77_spill] sm:$0xff] %v11684_v4  ;;  %v11692_v30 = vadd.f32 %v14634_v43, %v14666_v52  ;;  %v14668_v2 = vld [vmem:[#allocation15_spill] sm:$0xff]  ;;  %v14670_v40 = vld [vmem:[#allocation10_spill] sm:$0xff]  ;;  %v11704_v22 = vadd.f32 %v14637_v10, %v14672_v28 }
 0x38a   :  { %14665 = vst [vmem:[#allocation76_spill] sm:$0xff] %v11688_v33  ;;  %v11696_v51 = vadd.f32 %v14635_v25, %v14668_v2  ;;  %v11700_v54 = vadd.f32 %v14636_v55, %v14670_v40  ;;  %v14674_v4 = vld [vmem:[#allocation56_spill] sm:$0xff] }
 0x38b   :  { %14667 = vst [vmem:[#allocation78_spill] sm:$0xff] %v11692_v30  ;;  %14673 = vst [vmem:[#allocation89_spill] sm:$0xff] %v11704_v22  ;;  %v11708_v12 = vadd.f32 %v14630_v27, %v14674_v4  ;;  %v14676_v33 = vld [vmem:[#allocation72_spill] sm:$0xff] }
 0x38c   :  { %14669 = vst [vmem:[#allocation88_spill] sm:$0xff] %v11696_v51  ;;  %14671 = vst [vmem:[#allocation90_spill] sm:$0xff] %v11700_v54  ;;  %v11712_v52 = vadd.f32 %v14631_v38, %v14676_v33  ;;  %v14678_v30 = vld [vmem:[#allocation12_spill] sm:$0xff]  ;;  %v14680_v51 = vld [vmem:[#allocation13_spill] sm:$0xff] }
 0x38d   :  { %14675 = vst [vmem:[#allocation91_spill] sm:$0xff] %v11708_v12  ;;  %v11716_v2 = vadd.f32 %v14632_v5, %v14678_v30  ;;  %v11720_v40 = vadd.f32 %v14633_v37, %v14680_v51  ;;  %v14682_v54 = vld [vmem:[#allocation7_spill] sm:$0xff]  ;;  %v14684_v22 = vld [vmem:[#allocation40_spill] sm:$0xff]  ;;  %v14686_v12 = vld [vmem:[#allocation41_spill] sm:$0xff] }
 0x38e   :  { %14677 = vst [vmem:[#allocation23_spill] sm:$0xff] %v11712_v52  ;;  %v11724_v28 = vadd.f32 %v14634_v43, %v14682_v54  ;;  %v11728_v4 = vadd.f32 %v14635_v25, %v14684_v22  ;;  %v11732_v33 = vadd.f32 %v14636_v55, %v14686_v12  ;;  %v14688_v52 = vld [vmem:[#allocation14_spill] sm:$0xff] }
 0x38f   :  { %14679 = vst [vmem:[#allocation86_spill] sm:$0xff] %v11716_v2  ;;  %14681 = vst [vmem:[#allocation29_spill] sm:$0xff] %v11720_v40  ;;  %v11736_v30 = vadd.f32 %v14637_v10, %v14688_v52  ;;  %v14690_v2 = vld [vmem:[#allocation9_spill] sm:$0xff]  ;;  %v14692_v40 = vld [vmem:[#allocation8_spill] sm:$0xff] }
 0x390   :  { %14683 = vst [vmem:[#allocation87_spill] sm:$0xff] %v11724_v28  ;;  %14685 = vst [vmem:[#allocation98_spill] sm:$0xff] %v11728_v4  ;;  %v11740_v51 = vadd.f32 %v14630_v27, %v14690_v2  ;;  %v11744_v54 = vadd.f32 %v14631_v38, %v14692_v40  ;;  %v14694_v28 = vld [vmem:[#allocation42_spill] sm:$0xff]  ;;  %v14696_v4 = vld [vmem:[#allocation32_spill] sm:$0xff] }
 0x391   :  { %14687 = vst [vmem:[#allocation99_spill] sm:$0xff] %v11732_v33  ;;  %14689 = vst [vmem:[#allocation100_spill] sm:$0xff] %v11736_v30  ;;  %v11748_v22 = vadd.f32 %v14632_v5, %v14694_v28  ;;  %v11752_v12 = vadd.f32 %v14633_v37, %v14696_v4  ;;  %v14698_v33 = vld [vmem:[#allocation35_spill] sm:$0xff]  ;;  %v14700_v30 = vld [vmem:[#allocation36_spill] sm:$0xff] }
 0x392   :  { %14691 = vst [vmem:[#allocation101_spill] sm:$0xff] %v11740_v51  ;;  %14693 = vst [vmem:[#allocation94_spill] sm:$0xff] %v11744_v54  ;;  %v11756_v52 = vadd.f32 %v14634_v43, %v14698_v33  ;;  %v11760_v2 = vadd.f32 %v14635_v25, %v14700_v30  ;;  %v14702_v51 = vld [vmem:[#allocation11_spill] sm:$0xff]  ;;  %v14704_v54 = vld [vmem:[#allocation37_spill] sm:$0xff] }
 0x393   :  { %14695 = vst [vmem:[#allocation95_spill] sm:$0xff] %v11748_v22  ;;  %14697 = vst [vmem:[#allocation96_spill] sm:$0xff] %v11752_v12  ;;  %v11764_v40 = vadd.f32 %v14636_v55, %v14702_v51  ;;  %v11768_v28 = vadd.f32 %v14637_v10, %v14704_v54  ;;  %v14706_v22 = vld [vmem:[#allocation58_spill] sm:$0xff]  ;;  %v14708_v12 = vld [vmem:[#allocation57_spill] sm:$0xff] }
 0x394   :  { %14699 = vst [vmem:[#allocation97_spill] sm:$0xff] %v11756_v52  ;;  %14701 = vst [vmem:[#allocation19_spill] sm:$0xff] %v11760_v2  ;;  %v11772_v4 = vadd.f32 %v14630_v27, %v14706_v22  ;;  %v11776_v33 = vadd.f32 %v14631_v38, %v14708_v12  ;;  %v14710_v52 = vld [vmem:[#allocation59_spill] sm:$0xff] }
 0x395   :  { %14703 = vst [vmem:[#allocation109_spill] sm:$0xff] %v11764_v40  ;;  %14705 = vst [vmem:[#allocation75_spill] sm:$0xff] %v11768_v28  ;;  %v11780_v30 = vadd.f32 %v14632_v5, %v14710_v52  ;;  %v14712_v2 = vld [vmem:[#allocation51_spill] sm:$0xff]  ;;  %v14714_v40 = vld [vmem:[#allocation53_spill] sm:$0xff] }
 0x396   :  { %14707 = vst [vmem:[#allocation110_spill] sm:$0xff] %v11772_v4  ;;  %14709 = vst [vmem:[#allocation105_spill] sm:$0xff] %v11776_v33  ;;  %v11784_v51 = vadd.f32 %v14633_v37, %v14712_v2  ;;  %v11788_v54 = vadd.f32 %v14634_v43, %v14714_v40  ;;  %v14716_v28 = vld [vmem:[#allocation52_spill] sm:$0xff]  ;;  %v14718_v4 = vld [vmem:[#allocation54_spill] sm:$0xff] }
 0x397   :  { %14711 = vst [vmem:[#allocation107_spill] sm:$0xff] %v11780_v30  ;;  %v11792_v22 = vadd.f32 %v14635_v25, %v14716_v28  ;;  %v11796_v12 = vadd.f32 %v14636_v55, %v14718_v4  ;;  %v14720_v33 = vld [vmem:[#allocation16_spill] sm:$0xff]  ;;  %v14722_v30 = vld [vmem:[#allocation73_spill] sm:$0xff] }
 0x398   :  { %14713 = vst [vmem:[#allocation106_spill] sm:$0xff] %v11784_v51  ;;  %14715 = vst [vmem:[#allocation108_spill] sm:$0xff] %v11788_v54  ;;  %v11800_v52 = vadd.f32 %v14637_v10, %v14720_v33  ;;  %v11804_v2 = vadd.f32 %v14630_v27, %v14722_v30  ;;  %v14724_v51 = vld [vmem:[#allocation74_spill] sm:$0xff]  ;;  %v14726_v54 = vld [vmem:[#allocation68_spill] sm:$0xff] }
 0x399   :  { %14717 = vst [vmem:[#allocation127_spill] sm:$0xff] %v11792_v22  ;;  %14719 = vst [vmem:[#allocation128_spill] sm:$0xff] %v11796_v12  ;;  %v11808_v40 = vadd.f32 %v14631_v38, %v14724_v51  ;;  %v11812_v28 = vadd.f32 %v14632_v5, %v14726_v54  ;;  %v14728_v22 = vld [vmem:[#allocation70_spill] sm:$0xff]  ;;  %v14730_v12 = vld [vmem:[#allocation69_spill] sm:$0xff] }
 0x39a   :  { %14721 = vst [vmem:[#allocation129_spill] sm:$0xff] %v11800_v52  ;;  %14723 = vst [vmem:[#allocation130_spill] sm:$0xff] %v11804_v2  ;;  %v11816_v4 = vadd.f32 %v14633_v37, %v14728_v22  ;;  %v11820_v33 = vadd.f32 %v14634_v43, %v14730_v12  ;;  %v14732_v52 = vld [vmem:[#allocation71_spill] sm:$0xff]  ;;  %v14734_v2 = vld [vmem:[#allocation21_spill] sm:$0xff] }
 0x39b   :  { %14725 = vst [vmem:[#allocation131_spill] sm:$0xff] %v11808_v40  ;;  %14727 = vst [vmem:[#allocation132_spill] sm:$0xff] %v11812_v28  ;;  %v11824_v30 = vadd.f32 %v14635_v25, %v14732_v52  ;;  %v11828_v51 = vadd.f32 %v14636_v55, %v14734_v2  ;;  %v14736_v40 = vld [vmem:[#allocation82_spill] sm:$0xff]  ;;  %v14738_v28 = vld [vmem:[#allocation83_spill] sm:$0xff] }
 0x39c   :  { %14729 = vst [vmem:[#allocation133_spill] sm:$0xff] %v11816_v4  ;;  %14731 = vst [vmem:[#allocation152_spill] sm:$0xff] %v11820_v33  ;;  %v11832_v54 = vadd.f32 %v14637_v10, %v14736_v40  ;;  %v11836_v22 = vadd.f32 %v14630_v27, %v14738_v28  ;;  %v14740_v4 = vld [vmem:[#allocation84_spill] sm:$0xff]  ;;  %v14742_v33 = vld [vmem:[#allocation85_spill] sm:$0xff] }
 0x39d   :  { %14733 = vst [vmem:[#allocation157_spill] sm:$0xff] %v11824_v30  ;;  %14735 = vst [vmem:[#allocation163_spill] sm:$0xff] %v11828_v51  ;;  %v11840_v12 = vadd.f32 %v14631_v38, %v14740_v4  ;;  %v11844_v52 = vadd.f32 %v14632_v5, %v14742_v33  ;;  %v14744_v30 = vld [vmem:[#allocation113_spill] sm:$0xff]  ;;  %v14746_v51 = vld [vmem:[#allocation114_spill] sm:$0xff] }
 0x39e   :  { %14737 = vst [vmem:[#allocation164_spill] sm:$0xff] %v11832_v54  ;;  %14739 = vst [vmem:[#allocation165_spill] sm:$0xff] %v11836_v22  ;;  %v11848_v2 = vadd.f32 %v14633_v37, %v14744_v30  ;;  %v11852_v40 = vadd.f32 %v14634_v43, %v14746_v51  ;;  %v14748_v54 = vld [vmem:[#allocation115_spill] sm:$0xff]  ;;  %v14750_v22 = vld [vmem:[#allocation92_spill] sm:$0xff] }
 0x39f   :  { %14741 = vst [vmem:[#allocation171_spill] sm:$0xff] %v11840_v12  ;;  %14743 = vst [vmem:[#allocation172_spill] sm:$0xff] %v11844_v52  ;;  %v11856_v28 = vadd.f32 %v14635_v25, %v14748_v54  ;;  %v11860_v4 = vadd.f32 %v14636_v55, %v14750_v22  ;;  %v14752_v12 = vld [vmem:[#allocation93_spill] sm:$0xff]  ;;  %v14754_v52 = vld [vmem:[#allocation116_spill] sm:$0xff] }
 0x3a0   :  { %14745 = vst [vmem:[#allocation179_spill] sm:$0xff] %v11848_v2  ;;  %14747 = vst [vmem:[#allocation180_spill] sm:$0xff] %v11852_v40  ;;  %v11864_v33 = vadd.f32 %v14637_v10, %v14752_v12  ;;  %v11868_v30 = vadd.f32 %v14630_v27, %v14754_v52  ;;  %v14756_v2 = vld [vmem:[#allocation117_spill] sm:$0xff]  ;;  %v14758_v40 = vld [vmem:[#allocation118_spill] sm:$0xff] }
 0x3a1   :  { %14749 = vst [vmem:[#allocation187_spill] sm:$0xff] %v11856_v28  ;;  %14751 = vst [vmem:[#allocation188_spill] sm:$0xff] %v11860_v4  ;;  %v11872_v51 = vadd.f32 %v14631_v38, %v14756_v2  ;;  %v11876_v54 = vadd.f32 %v14632_v5, %v14758_v40  ;;  %v14760_v28 = vld [vmem:[#allocation119_spill] sm:$0xff]  ;;  %v14762_v4 = vld [vmem:[#allocation120_spill] sm:$0xff] }
 0x3a2   :  { %14753 = vst [vmem:[#allocation195_spill] sm:$0xff] %v11864_v33  ;;  %14755 = vst [vmem:[#allocation196_spill] sm:$0xff] %v11868_v30  ;;  %v11880_v22 = vadd.f32 %v14633_v37, %v14760_v28  ;;  %v11884_v12 = vadd.f32 %v14634_v43, %v14762_v4  ;;  %v14764_v33 = vld [vmem:[#allocation103_spill] sm:$0xff]  ;;  %v14766_v30 = vld [vmem:[#allocation102_spill] sm:$0xff] }
 0x3a3   :  { %14757 = vst [vmem:[#allocation197_spill] sm:$0xff] %v11872_v51  ;;  %14759 = vst [vmem:[#allocation198_spill] sm:$0xff] %v11876_v54  ;;  %v11888_v52 = vadd.f32 %v14635_v25, %v14764_v33  ;;  %v11892_v2 = vadd.f32 %v14636_v55, %v14766_v30  ;;  %v14768_v51 = vld [vmem:[#allocation104_spill] sm:$0xff]  ;;  %v14770_v54 = vld [vmem:[#allocation121_spill] sm:$0xff] }
 0x3a4   :  { %14761 = vst [vmem:[#allocation199_spill] sm:$0xff] %v11880_v22  ;;  %14763 = vst [vmem:[#allocation200_spill] sm:$0xff] %v11884_v12  ;;  %v11896_v40 = vadd.f32 %v14637_v10, %v14768_v51  ;;  %v11900_v28 = vadd.f32 %v14630_v27, %v14770_v54  ;;  %v14772_v22 = vld [vmem:[#allocation122_spill] sm:$0xff]  ;;  %v14774_v12 = vld [vmem:[#allocation123_spill] sm:$0xff] }
 0x3a5   :  { %14765 = vst [vmem:[#allocation203_spill] sm:$0xff] %v11888_v52  ;;  %14767 = vst [vmem:[#allocation204_spill] sm:$0xff] %v11892_v2  ;;  %v11904_v4 = vadd.f32 %v14631_v38, %v14772_v22  ;;  %v11908_v33 = vadd.f32 %v14632_v5, %v14774_v12  ;;  %v14776_v52 = vld [vmem:[#allocation124_spill] sm:$0xff]  ;;  %v14778_v2 = vld [vmem:[#allocation125_spill] sm:$0xff] }
 0x3a6   :  { %14769 = vst [vmem:[#allocation205_spill] sm:$0xff] %v11896_v40  ;;  %14771 = vst [vmem:[#allocation206_spill] sm:$0xff] %v11900_v28  ;;  %v11912_v30 = vadd.f32 %v14633_v37, %v14776_v52  ;;  %v11916_v51 = vadd.f32 %v14634_v43, %v14778_v2  ;;  %v14780_v40 = vld [vmem:[#allocation126_spill] sm:$0xff]  ;;  %v14782_v28 = vld [vmem:[#allocation111_spill] sm:$0xff] }
 0x3a7   :  { %14773 = vst [vmem:[#allocation207_spill] sm:$0xff] %v11904_v4  ;;  %14775 = vst [vmem:[#allocation208_spill] sm:$0xff] %v11908_v33  ;;  %v11920_v54 = vadd.f32 %v14635_v25, %v14780_v40  ;;  %v11924_v22 = vadd.f32 %v14636_v55, %v14782_v28  ;;  %v14784_v4 = vld [vmem:[#allocation112_spill] sm:$0xff]  ;;  %v14786_v33 = vld [vmem:[#allocation30_spill] sm:$0xff] }
 0x3a8   :  { %14777 = vst [vmem:[#allocation211_spill] sm:$0xff] %v11912_v30  ;;  %14779 = vst [vmem:[#allocation212_spill] sm:$0xff] %v11916_v51  ;;  %v11928_v12 = vadd.f32 %v14637_v10, %v14784_v4  ;;  %v11932_v52 = vadd.f32 %v14630_v27, %v14786_v33  ;;  %v14788_v30 = vld [vmem:[#allocation33_spill] sm:$0xff]  ;;  %v14790_v51 = vld [vmem:[#allocation31_spill] sm:$0xff] }
 0x3a9   :  { %14781 = vst [vmem:[#allocation213_spill] sm:$0xff] %v11920_v54  ;;  %14783 = vst [vmem:[#allocation214_spill] sm:$0xff] %v11924_v22  ;;  %v11936_v2 = vadd.f32 %v14631_v38, %v14788_v30  ;;  %v11940_v40 = vadd.f32 %v14632_v5, %v14790_v51  ;;  %v14792_v54 = vld [vmem:[#allocation34_spill] sm:$0xff] }
 0x3aa   :  { %14785 = vst [vmem:[#allocation135_spill] sm:$0xff] %v11928_v12  ;;  %14787 = vst [vmem:[#allocation136_spill] sm:$0xff] %v11932_v52  ;;  %v11944_v28 = vadd.f32 %v14633_v37, %v14792_v54  ;;  %v14794_v22 = vld [vmem:[#allocation22_spill] sm:$0xff]  ;;  %v14795_v12 = vld [vmem:[#allocation24_spill] sm:$0xff] }
 0x3ab   :  { %14789 = vst [vmem:[#allocation158_spill] sm:$0xff] %v11936_v2  ;;  %14791 = vst [vmem:[#allocation222_spill] sm:$0xff] %v11940_v40  ;;  %v11948_v4 = vadd.f32 %v14634_v43, %v14794_v22  ;;  %v11952_v33 = vadd.f32 %v14635_v25, %v14795_v12  ;;  %v14796_v52 = vld [vmem:[#allocation25_spill] sm:$0xff]  ;;  %v14797_v2 = vld [vmem:[#allocation28_spill] sm:$0xff]  ;;  %v11972_v12 = vadd.f32 %v14632_v5, %v11460_v16 }
 0x3ac   :  { %14793 = vst [vmem:[#allocation137_spill] sm:$0xff] %v11944_v28  ;;  %v11956_v30 = vadd.f32 %v14636_v55, %v14796_v52  ;;  %v11960_v51 = vadd.f32 %v14637_v10, %v14797_v2  ;;  %v14798_v40 = vld [vmem:[#allocation47_spill] sm:$0xff]  ;;  %v14799_v28 = vld [vmem:[#allocation48_spill] sm:$0xff]  ;;  %v11976_v52 = vadd.f32 %v14633_v37, %v11464_v8  ;;  %v11980_v2 = vadd.f32 %v14634_v43, %v11468_v58 }
 0x3ad   :  { %v11964_v54 = vadd.f32 %v14630_v27, %v14798_v40  ;;  %v11968_v22 = vadd.f32 %v14631_v38, %v14799_v28  ;;  %v11984_v40 = vadd.f32 %v14635_v25, %v11472_v47  ;;  %v11988_v28 = vadd.f32 %v14636_v55, %v11476_v50 }
 0x3ae   :  { %v11992_v16 = vadd.f32 %v14637_v10, %v11480_v45  ;;  %v11996_v8 = vadd.f32 %v14630_v27, %v11484_v60  ;;  %v12000_v58 = vadd.f32 %v14631_v38, %v11488_v15  ;;  %v12004_v47 = vadd.f32 %v14632_v5, %v11492_v63  ;;  %v14867_v38 = vld [vmem:[#allocation207_spill] sm:$0xff] }
 0x3af   :  { %14800 = vst [vmem:[#allocation153_spill] sm:$0xff] %v11984_v40  ;;  %v12008_v50 = vadd.f32 %v14633_v37, %v11496_v9  ;;  %v12012_v45 = vadd.f32 %v14634_v43, %v11500_v53  ;;  %v12016_v60 = vadd.f32 %v14635_v25, %v11504_v14  ;;  %v12020_v15 = vadd.f32 %v14636_v55, %v11508_v41  ;;  %v14868_v9 = vld [vmem:[#allocation208_spill] sm:$0xff]  ;;  %v14869_v27 = vld [vmem:[#allocation211_spill] sm:$0xff]  ;;  %v14878_v40 = vld [vmem:[#allocation6_spill] sm:$0xff] }
 0x3b0   :  { %v12024_v63 = vadd.f32 %v14637_v10, %v11512_v48  ;;  %v14870_v35 = vld [vmem:[#allocation212_spill] sm:$0xff]  ;;  %v14871_v19 = vld [vmem:[#allocation213_spill] sm:$0xff]  ;;  %v14872_v13 = vld [vmem:[#allocation214_spill] sm:$0xff]  ;;  %v14879_v43 = vmax.f32 %v11516_v59, 0.0  ;;  %v14880_v55 = vmax.f32 %v11520_v62, 0.0  ;;  %v14881_v53 = vmax.f32 %v11524_v39, 0.0 }
 0x3b1   :  { %v14873_v3 = vld [vmem:[#allocation135_spill] sm:$0xff]  ;;  %v14874_v56 = vld [vmem:[#allocation136_spill] sm:$0xff]  ;;  %v14882_v37 = vmax.f32 %v11528_v42, 0.0  ;;  %v14883_v59 = vmax.f32 %v11532_v7, 0.0  ;;  %v14884_v62 = vmax.f32 %v11536_v46, 0.0  ;;  %v14885_v39 = vmax.f32 %v11540_v29, 0.0 }
 0x3b2   :  { %v14875_v31 = vld [vmem:[#allocation158_spill] sm:$0xff]  ;;  %v12157_v48 = vrot.slane %v14879_v43, %v14878_v40  ;;  %v12162_v25 = vrot.slane %v14880_v55, %v14878_v40  ;;  %v12167_v5 = vrot.slane %v14881_v53, %v14878_v40  ;;  %v14887_v42 = vmax.f32 %v11544_v17, 0.0  ;;  %v14909_v41 = vld [vmem:[#allocation49_spill] sm:$0xff] }
 0x3b3   :  { %v14876_v23 = vld [vmem:[#allocation222_spill] sm:$0xff]  ;;  %v14877_v61 = vld [vmem:[#allocation137_spill] sm:$0xff]  ;;  %v12172_v14 = vrot.slane %v14882_v37, %v14878_v40  ;;  %v12177_v43 = vrot.slane %v14883_v59, %v14878_v40  ;;  %v12182_v55 = vrot.slane %v14884_v62, %v14878_v40  ;;  %v12187_v53 = vrot.slane %v14885_v39, %v14878_v40 }
 0x3b4   :  { %v12192_v37 = vrot.slane %v14887_v42, %v14878_v40  ;;  %v14889_v7 = vmax.f32 %v11548_v44, 0.0  ;;  %v14890_v46 = vmax.f32 %v11552_v36, 0.0  ;;  %v14891_v29 = vmax.f32 %v11556_v6, 0.0  ;;  %v14912_v10 = vld [vmem:[#allocation50_spill] sm:$0xff] }
 0x3b5   :  { %14886 = vst [vmem:[#allocation173_spill] sm:$0xff] %v12187_v53  ;;  %v14892_v17 = vmax.f32 %v11560_v32, 0.0  ;;  %v14893_v44 = vmax.f32 %v11564_v34, 0.0  ;;  %v14894_v36 = vmax.f32 %v11568_v18, 0.0  ;;  %v14896_v6 = vmax.f32 %v11572_v11, 0.0  ;;  %v14932_v53 = vld [vmem:[#allocation67_spill] sm:$0xff] }
 0x3b6   :  { %14888 = vst [vmem:[#allocation223_spill] sm:$0xff] %v12192_v37  ;;  %v12197_v59 = vrot.slane %v14889_v7, %v14878_v40  ;;  %v12202_v62 = vrot.slane %v14890_v46, %v14878_v40  ;;  %v12207_v39 = vrot.slane %v14891_v29, %v14878_v40  ;;  %v14898_v32 = vmax.f32 %v11576_v24, 0.0  ;;  %v14923_v37 = vld [vmem:[#allocation64_spill] sm:$0xff] }
 0x3b7   :  { %v12212_v42 = vrot.slane %v14892_v17, %v14878_v40  ;;  %v12217_v7 = vrot.slane %v14893_v44, %v14878_v40  ;;  %v12222_v46 = vrot.slane %v14894_v36, %v14878_v40  ;;  %v12227_v29 = vrot.slane %v14896_v6, %v14878_v40 }
 0x3b8   :  { %v12232_v17 = vrot.slane %v14898_v32, %v14878_v40  ;;  %v14900_v34 = vmax.f32 %v11580_v0, 0.0  ;;  %v14901_v18 = vmax.f32 %v11584_v49, 0.0  ;;  %v14902_v11 = vmax.f32 %v11588_v1, 0.0 }
 0x3b9   :  { %14895 = vst [vmem:[#allocation147_spill] sm:$0xff] %v12222_v46  ;;  %14897 = vst [vmem:[#allocation166_spill] sm:$0xff] %v12227_v29  ;;  %v14903_v24 = vmax.f32 %v11592_v21, 0.0  ;;  %v14904_v0 = vmax.f32 %v11596_v57, 0.0  ;;  %v14905_v49 = vmax.f32 %v11600_v26, 0.0  ;;  %v14907_v1 = vmax.f32 %v11604_v20, 0.0 }
 0x3ba   :  { %14899 = vst [vmem:[#allocation143_spill] sm:$0xff] %v12232_v17  ;;  %v12237_v44 = vrot.slane %v14900_v34, %v14878_v40  ;;  %v12242_v36 = vrot.slane %v14901_v18, %v14878_v40  ;;  %v12247_v6 = vrot.slane %v14902_v11, %v14878_v40  ;;  %v14910_v21 = vmax.f32 %v14909_v41, 0.0  ;;  %v14914_v17 = vld [vmem:[#allocation43_spill] sm:$0xff]  ;;  %v14916_v29 = vld [vmem:[#allocation45_spill] sm:$0xff]  ;;  %v14929_v46 = vld [vmem:[#allocation66_spill] sm:$0xff] }
 0x3bb   :  { %v12252_v32 = vrot.slane %v14903_v24, %v14878_v40  ;;  %v12257_v34 = vrot.slane %v14904_v0, %v14878_v40  ;;  %v12262_v18 = vrot.slane %v14905_v49, %v14878_v40  ;;  %v12267_v11 = vrot.slane %v14907_v1, %v14878_v40 }
 0x3bc   :  { %v12272_v24 = vrot.slane %v14910_v21, %v14878_v40  ;;  %v14913_v57 = vmax.f32 %v14912_v10, 0.0  ;;  %v14915_v26 = vmax.f32 %v14914_v17, 0.0  ;;  %v14917_v20 = vmax.f32 %v14916_v29, 0.0 }
 0x3bd   :  { %14906 = vst [vmem:[#allocation159_spill] sm:$0xff] %v12262_v18  ;;  %14908 = vst [vmem:[#allocation181_spill] sm:$0xff] %v12267_v11  ;;  %v14918_v11 = vld [vmem:[#allocation44_spill] sm:$0xff]  ;;  %v14924_v17 = vmax.f32 %v14923_v37, 0.0  ;;  %v14926_v18 = vld [vmem:[#allocation65_spill] sm:$0xff] }
 0x3be   :  { %14911 = vst [vmem:[#allocation138_spill] sm:$0xff] %v12272_v24  ;;  %v12277_v0 = vrot.slane %v14913_v57, %v14878_v40  ;;  %v12282_v49 = vrot.slane %v14915_v26, %v14878_v40  ;;  %v12287_v1 = vrot.slane %v14917_v20, %v14878_v40  ;;  %v14919_v41 = vmax.f32 %v14918_v11, 0.0  ;;  %v14920_v24 = vld [vmem:[#allocation46_spill] sm:$0xff] }
 0x3bf   :  { %v14921_v10 = vmax.f32 %v14920_v24, 0.0  ;;  %v12302_v26 = vrot.slane %v14924_v17, %v14878_v40  ;;  %v14927_v29 = vmax.f32 %v14926_v18, 0.0  ;;  %v14930_v11 = vmax.f32 %v14929_v46, 0.0 }
 0x3c0   :  { %v12292_v21 = vrot.slane %v14919_v41, %v14878_v40  ;;  %v14933_v24 = vmax.f32 %v14932_v53, 0.0 }
 0x3c1   :  { %v12297_v57 = vrot.slane %v14921_v10, %v14878_v40  ;;  %14925 = vst [vmem:[#allocation174_spill] sm:$0xff] %v12302_v26  ;;  %v12307_v20 = vrot.slane %v14927_v29, %v14878_v40  ;;  %v12312_v41 = vrot.slane %v14930_v11, %v14878_v40  ;;  %v14938_v26 = vld [vmem:[#allocation62_spill] sm:$0xff] }
 0x3c2   :  { %v12317_v10 = vrot.slane %v14933_v24, %v14878_v40  ;;  %v14939_v18 = vmax.f32 %v14938_v26, 0.0 }
 0x3c3   :  { %14922 = vst [vmem:[#allocation154_spill] sm:$0xff] %v12297_v57  ;;  %14928 = vst [vmem:[#allocation148_spill] sm:$0xff] %v12307_v20  ;;  %v14935_v57 = vld [vmem:[#allocation60_spill] sm:$0xff]  ;;  %v14941_v20 = vld [vmem:[#allocation61_spill] sm:$0xff] }
 0x3c4   :  { %14931 = vst [vmem:[#allocation167_spill] sm:$0xff] %v12312_v41  ;;  %14934 = vst [vmem:[#allocation189_spill] sm:$0xff] %v12317_v10  ;;  %v14936_v37 = vmax.f32 %v14935_v57, 0.0  ;;  %v12327_v29 = vrot.slane %v14939_v18, %v14878_v40  ;;  %v14942_v46 = vmax.f32 %v14941_v20, 0.0  ;;  %v14944_v41 = vld [vmem:[#allocation63_spill] sm:$0xff] }
 0x3c5   :  { %v14945_v53 = vmax.f32 %v14944_v41, 0.0  ;;  %v14947_v10 = vld [vmem:[#allocation27_spill] sm:$0xff] }
 0x3c6   :  { %v12322_v17 = vrot.slane %v14936_v37, %v14878_v40  ;;  %14940 = vst [vmem:[#allocation160_spill] sm:$0xff] %v12327_v29  ;;  %v12332_v11 = vrot.slane %v14942_v46, %v14878_v40  ;;  %v14948_v57 = vmax.f32 %v14947_v10, 0.0  ;;  %v14953_v29 = vld [vmem:[#allocation80_spill] sm:$0xff] }
 0x3c7   :  { %v12337_v24 = vrot.slane %v14945_v53, %v14878_v40  ;;  %v14954_v20 = vmax.f32 %v14953_v29, 0.0 }
 0x3c8   :  { %14937 = vst [vmem:[#allocation144_spill] sm:$0xff] %v12322_v17  ;;  %14943 = vst [vmem:[#allocation182_spill] sm:$0xff] %v12332_v11  ;;  %v12342_v37 = vrot.slane %v14948_v57, %v14878_v40  ;;  %v14950_v17 = vld [vmem:[#allocation79_spill] sm:$0xff]  ;;  %v14956_v11 = vld [vmem:[#allocation81_spill] sm:$0xff] }
 0x3c9   :  { %14946 = vst [vmem:[#allocation155_spill] sm:$0xff] %v12337_v24  ;;  %v14951_v26 = vmax.f32 %v14950_v17, 0.0  ;;  %v12352_v46 = vrot.slane %v14954_v20, %v14878_v40  ;;  %v14957_v41 = vmax.f32 %v14956_v11, 0.0  ;;  %v14959_v24 = vld [vmem:[#allocation18_spill] sm:$0xff] }
 0x3ca   :  { %14949 = vst [vmem:[#allocation175_spill] sm:$0xff] %v12342_v37  ;;  %v14960_v10 = vmax.f32 %v14959_v24, 0.0  ;;  %v14962_v37 = vld [vmem:[#allocation77_spill] sm:$0xff] }
 0x3cb   :  { %v12347_v18 = vrot.slane %v14951_v26, %v14878_v40  ;;  %14955 = vst [vmem:[#allocation168_spill] sm:$0xff] %v12352_v46  ;;  %v12357_v53 = vrot.slane %v14957_v41, %v14878_v40  ;;  %v14963_v17 = vmax.f32 %v14962_v37, 0.0  ;;  %v14968_v46 = vld [vmem:[#allocation78_spill] sm:$0xff] }
 0x3cc   :  { %v12362_v57 = vrot.slane %v14960_v10, %v14878_v40  ;;  %v14969_v11 = vmax.f32 %v14968_v46, 0.0 }
 0x3cd   :  { %14952 = vst [vmem:[#allocation149_spill] sm:$0xff] %v12347_v18  ;;  %14958 = vst [vmem:[#allocation190_spill] sm:$0xff] %v12357_v53  ;;  %v12367_v26 = vrot.slane %v14963_v17, %v14878_v40  ;;  %v14965_v18 = vld [vmem:[#allocation76_spill] sm:$0xff] }
 0x3ce   :  { %14961 = vst [vmem:[#allocation161_spill] sm:$0xff] %v12362_v57  ;;  %v14966_v29 = vmax.f32 %v14965_v18, 0.0  ;;  %v12377_v41 = vrot.slane %v14969_v11, %v14878_v40  ;;  %v14971_v53 = vld [vmem:[#allocation88_spill] sm:$0xff]  ;;  %v14974_v57 = vld [vmem:[#allocation90_spill] sm:$0xff] }
 0x3cf   :  { %14964 = vst [vmem:[#allocation183_spill] sm:$0xff] %v12367_v26  ;;  %v14972_v24 = vmax.f32 %v14971_v53, 0.0  ;;  %v14975_v37 = vmax.f32 %v14974_v57, 0.0  ;;  %v14977_v26 = vld [vmem:[#allocation89_spill] sm:$0xff] }
 0x3d0   :  { %v12372_v20 = vrot.slane %v14966_v29, %v14878_v40  ;;  %14970 = vst [vmem:[#allocation176_spill] sm:$0xff] %v12377_v41  ;;  %v14978_v18 = vmax.f32 %v14977_v26, 0.0  ;;  %v14983_v41 = vld [vmem:[#allocation23_spill] sm:$0xff] }
 0x3d1   :  { %v12382_v10 = vrot.slane %v14972_v24, %v14878_v40  ;;  %v12387_v17 = vrot.slane %v14975_v37, %v14878_v40  ;;  %v14984_v53 = vmax.f32 %v14983_v41, 0.0 }
 0x3d2   :  { %14967 = vst [vmem:[#allocation156_spill] sm:$0xff] %v12372_v20  ;;  %v12392_v29 = vrot.slane %v14978_v18, %v14878_v40  ;;  %v14980_v20 = vld [vmem:[#allocation91_spill] sm:$0xff] }
 0x3d3   :  { %14973 = vst [vmem:[#allocation169_spill] sm:$0xff] %v12382_v10  ;;  %14976 = vst [vmem:[#allocation191_spill] sm:$0xff] %v12387_v17  ;;  %v14981_v46 = vmax.f32 %v14980_v20, 0.0  ;;  %v12402_v24 = vrot.slane %v14984_v53, %v14878_v40  ;;  %v14986_v10 = vld [vmem:[#allocation86_spill] sm:$0xff]  ;;  %v14989_v17 = vld [vmem:[#allocation29_spill] sm:$0xff] }
 0x3d4   :  { %14979 = vst [vmem:[#allocation162_spill] sm:$0xff] %v12392_v29  ;;  %v14987_v57 = vmax.f32 %v14986_v10, 0.0  ;;  %v14990_v26 = vmax.f32 %v14989_v17, 0.0  ;;  %v14992_v29 = vld [vmem:[#allocation87_spill] sm:$0xff] }
 0x3d5   :  { %v12397_v11 = vrot.slane %v14981_v46, %v14878_v40  ;;  %14985 = vst [vmem:[#allocation177_spill] sm:$0xff] %v12402_v24  ;;  %v14993_v20 = vmax.f32 %v14992_v29, 0.0  ;;  %v14998_v24 = vld [vmem:[#allocation99_spill] sm:$0xff] }
 0x3d6   :  { %v12407_v37 = vrot.slane %v14987_v57, %v14878_v40  ;;  %v12412_v18 = vrot.slane %v14990_v26, %v14878_v40  ;;  %v14999_v10 = vmax.f32 %v14998_v24, 0.0 }
 0x3d7   :  { %14982 = vst [vmem:[#allocation184_spill] sm:$0xff] %v12397_v11  ;;  %v12417_v46 = vrot.slane %v14993_v20, %v14878_v40  ;;  %v14995_v11 = vld [vmem:[#allocation98_spill] sm:$0xff] }
 0x3d8   :  { %14988 = vst [vmem:[#allocation224_spill] sm:$0xff] %v12407_v37  ;;  %14991 = vst [vmem:[#allocation170_spill] sm:$0xff] %v12412_v18  ;;  %v14996_v41 = vmax.f32 %v14995_v11, 0.0  ;;  %v12427_v57 = vrot.slane %v14999_v10, %v14878_v40  ;;  %v15001_v37 = vld [vmem:[#allocation100_spill] sm:$0xff]  ;;  %v15004_v18 = vld [vmem:[#allocation101_spill] sm:$0xff] }
 0x3d9   :  { %14994 = vst [vmem:[#allocation192_spill] sm:$0xff] %v12417_v46  ;;  %v15002_v17 = vmax.f32 %v15001_v37, 0.0  ;;  %v15005_v29 = vmax.f32 %v15004_v18, 0.0  ;;  %v15007_v46 = vld [vmem:[#allocation94_spill] sm:$0xff] }
 0x3da   :  { %v12422_v53 = vrot.slane %v14996_v41, %v14878_v40  ;;  %15000 = vst [vmem:[#allocation209_spill] sm:$0xff] %v12427_v57  ;;  %v15008_v11 = vmax.f32 %v15007_v46, 0.0  ;;  %v15013_v57 = vld [vmem:[#allocation96_spill] sm:$0xff] }
 0x3db   :  { %v12432_v26 = vrot.slane %v15002_v17, %v14878_v40  ;;  %v12437_v20 = vrot.slane %v15005_v29, %v14878_v40  ;;  %v15014_v37 = vmax.f32 %v15013_v57, 0.0 }
 0x3dc   :  { %14997 = vst [vmem:[#allocation185_spill] sm:$0xff] %v12422_v53  ;;  %v12442_v41 = vrot.slane %v15008_v11, %v14878_v40  ;;  %v15010_v53 = vld [vmem:[#allocation95_spill] sm:$0xff] }
 0x3dd   :  { %15003 = vst [vmem:[#allocation178_spill] sm:$0xff] %v12432_v26  ;;  %15006 = vst [vmem:[#allocation218_spill] sm:$0xff] %v12437_v20  ;;  %v15011_v24 = vmax.f32 %v15010_v53, 0.0  ;;  %v12452_v17 = vrot.slane %v15014_v37, %v14878_v40  ;;  %v15016_v26 = vld [vmem:[#allocation97_spill] sm:$0xff]  ;;  %v15019_v20 = vld [vmem:[#allocation19_spill] sm:$0xff] }
 0x3de   :  { %15009 = vst [vmem:[#allocation193_spill] sm:$0xff] %v12442_v41  ;;  %v15017_v18 = vmax.f32 %v15016_v26, 0.0  ;;  %v15020_v46 = vmax.f32 %v15019_v20, 0.0  ;;  %v15022_v41 = vld [vmem:[#allocation109_spill] sm:$0xff] }
 0x3df   :  { %v12447_v10 = vrot.slane %v15011_v24, %v14878_v40  ;;  %15015 = vst [vmem:[#allocation186_spill] sm:$0xff] %v12452_v17  ;;  %v15023_v53 = vmax.f32 %v15022_v41, 0.0  ;;  %v15028_v17 = vld [vmem:[#allocation110_spill] sm:$0xff] }
 0x3e0   :  { %v12457_v29 = vrot.slane %v15017_v18, %v14878_v40  ;;  %v12462_v11 = vrot.slane %v15020_v46, %v14878_v40  ;;  %v15029_v26 = vmax.f32 %v15028_v17, 0.0 }
 0x3e1   :  { %15012 = vst [vmem:[#allocation215_spill] sm:$0xff] %v12447_v10  ;;  %v12467_v24 = vrot.slane %v15023_v53, %v14878_v40  ;;  %v15025_v10 = vld [vmem:[#allocation75_spill] sm:$0xff] }
 0x3e2   :  { %15018 = vst [vmem:[#allocation225_spill] sm:$0xff] %v12457_v29  ;;  %15021 = vst [vmem:[#allocation201_spill] sm:$0xff] %v12462_v11  ;;  %v15026_v57 = vmax.f32 %v15025_v10, 0.0  ;;  %v12477_v18 = vrot.slane %v15029_v26, %v14878_v40  ;;  %v15031_v29 = vld [vmem:[#allocation105_spill] sm:$0xff]  ;;  %v15034_v11 = vld [vmem:[#allocation107_spill] sm:$0xff] }
 0x3e3   :  { %15024 = vst [vmem:[#allocation202_spill] sm:$0xff] %v12467_v24  ;;  %v15032_v20 = vmax.f32 %v15031_v29, 0.0  ;;  %v15035_v41 = vmax.f32 %v15034_v11, 0.0  ;;  %v15037_v24 = vld [vmem:[#allocation106_spill] sm:$0xff] }
 0x3e4   :  { %v12472_v37 = vrot.slane %v15026_v57, %v14878_v40  ;;  %15030 = vst [vmem:[#allocation194_spill] sm:$0xff] %v12477_v18  ;;  %v15038_v10 = vmax.f32 %v15037_v24, 0.0  ;;  %v15043_v18 = vld [vmem:[#allocation127_spill] sm:$0xff] }
 0x3e5   :  { %v12482_v46 = vrot.slane %v15032_v20, %v14878_v40  ;;  %v12487_v53 = vrot.slane %v15035_v41, %v14878_v40  ;;  %v15044_v29 = vmax.f32 %v15043_v18, 0.0 }
 0x3e6   :  { %15027 = vst [vmem:[#allocation219_spill] sm:$0xff] %v12472_v37  ;;  %v12492_v57 = vrot.slane %v15038_v10, %v14878_v40  ;;  %v15040_v37 = vld [vmem:[#allocation108_spill] sm:$0xff] }
 0x3e7   :  { %15033 = vst [vmem:[#allocation216_spill] sm:$0xff] %v12482_v46  ;;  %15036 = vst [vmem:[#allocation210_spill] sm:$0xff] %v12487_v53  ;;  %v15041_v17 = vmax.f32 %v15040_v37, 0.0  ;;  %v12502_v20 = vrot.slane %v15044_v29, %v14878_v40  ;;  %v15046_v46 = vld [vmem:[#allocation128_spill] sm:$0xff]  ;;  %v15049_v53 = vld [vmem:[#allocation129_spill] sm:$0xff] }
 0x3e8   :  { %15039 = vst [vmem:[#allocation226_spill] sm:$0xff] %v12492_v57  ;;  %v15047_v11 = vmax.f32 %v15046_v46, 0.0  ;;  %v15050_v24 = vmax.f32 %v15049_v53, 0.0  ;;  %v15052_v57 = vld [vmem:[#allocation130_spill] sm:$0xff] }
 0x3e9   :  { %v12497_v26 = vrot.slane %v15041_v17, %v14878_v40  ;;  %15045 = vst [vmem:[#allocation134_spill] sm:$0xff] %v12502_v20  ;;  %v15053_v37 = vmax.f32 %v15052_v57, 0.0  ;;  %v15058_v20 = vld [vmem:[#allocation132_spill] sm:$0xff] }
 0x3ea   :  { %v12507_v41 = vrot.slane %v15047_v11, %v14878_v40  ;;  %v12512_v10 = vrot.slane %v15050_v24, %v14878_v40  ;;  %v15059_v46 = vmax.f32 %v15058_v20, 0.0 }
 0x3eb   :  { %15042 = vst [vmem:[#allocation220_spill] sm:$0xff] %v12497_v26  ;;  %v12517_v17 = vrot.slane %v15053_v37, %v14878_v40  ;;  %v15055_v26 = vld [vmem:[#allocation131_spill] sm:$0xff] }
 0x3ec   :  { %15048 = vst [vmem:[#allocation217_spill] sm:$0xff] %v12507_v41  ;;  %15051 = vst [vmem:[#allocation139_spill] sm:$0xff] %v12512_v10  ;;  %v15056_v18 = vmax.f32 %v15055_v26, 0.0  ;;  %v12527_v11 = vrot.slane %v15059_v46, %v14878_v40  ;;  %v15061_v41 = vld [vmem:[#allocation133_spill] sm:$0xff]  ;;  %v15064_v10 = vld [vmem:[#allocation152_spill] sm:$0xff] }
 0x3ed   :  { %15054 = vst [vmem:[#allocation145_spill] sm:$0xff] %v12517_v17  ;;  %v15062_v53 = vmax.f32 %v15061_v41, 0.0  ;;  %v15065_v57 = vmax.f32 %v15064_v10, 0.0  ;;  %v15067_v17 = vld [vmem:[#allocation157_spill] sm:$0xff] }
 0x3ee   :  { %v12522_v29 = vrot.slane %v15056_v18, %v14878_v40  ;;  %15060 = vst [vmem:[#allocation146_spill] sm:$0xff] %v12527_v11  ;;  %v15068_v26 = vmax.f32 %v15067_v17, 0.0  ;;  %v15073_v11 = vld [vmem:[#allocation164_spill] sm:$0xff] }
 0x3ef   :  { %v12532_v24 = vrot.slane %v15062_v53, %v14878_v40  ;;  %v12537_v37 = vrot.slane %v15065_v57, %v14878_v40  ;;  %v15074_v41 = vmax.f32 %v15073_v11, 0.0 }
 0x3f0   :  { %15057 = vst [vmem:[#allocation141_spill] sm:$0xff] %v12522_v29  ;;  %v12542_v18 = vrot.slane %v15068_v26, %v14878_v40  ;;  %v15070_v29 = vld [vmem:[#allocation163_spill] sm:$0xff] }
 0x3f1   :  { %15063 = vst [vmem:[#allocation140_spill] sm:$0xff] %v12532_v24  ;;  %15066 = vst [vmem:[#allocation150_spill] sm:$0xff] %v12537_v37  ;;  %v15071_v20 = vmax.f32 %v15070_v29, 0.0  ;;  %v12552_v53 = vrot.slane %v15074_v41, %v14878_v40  ;;  %v15076_v24 = vld [vmem:[#allocation165_spill] sm:$0xff]  ;;  %v15079_v37 = vld [vmem:[#allocation171_spill] sm:$0xff] }
 0x3f2   :  { %15069 = vst [vmem:[#allocation142_spill] sm:$0xff] %v12542_v18  ;;  %v15077_v10 = vmax.f32 %v15076_v24, 0.0  ;;  %v15080_v17 = vmax.f32 %v15079_v37, 0.0  ;;  %v15082_v18 = vld [vmem:[#allocation172_spill] sm:$0xff] }
 0x3f3   :  { %v12547_v46 = vrot.slane %v15071_v20, %v14878_v40  ;;  %15075 = vst [vmem:[#allocation227_spill] sm:$0xff] %v12552_v53  ;;  %v15083_v29 = vmax.f32 %v15082_v18, 0.0  ;;  %v15088_v53 = vld [vmem:[#allocation180_spill] sm:$0xff] }
 0x3f4   :  { %v12557_v57 = vrot.slane %v15077_v10, %v14878_v40  ;;  %v12562_v26 = vrot.slane %v15080_v17, %v14878_v40  ;;  %v15089_v24 = vmax.f32 %v15088_v53, 0.0 }
 0x3f5   :  { %15072 = vst [vmem:[#allocation151_spill] sm:$0xff] %v12547_v46  ;;  %v12567_v20 = vrot.slane %v15083_v29, %v14878_v40  ;;  %v15085_v46 = vld [vmem:[#allocation179_spill] sm:$0xff] }
 0x3f6   :  { %15078 = vst [vmem:[#allocation221_spill] sm:$0xff] %v12557_v57  ;;  %15081 = vst [vmem:[#allocation5_spill] sm:$0xff] %v12562_v26  ;;  %v15086_v11 = vmax.f32 %v15085_v46, 0.0  ;;  %v12577_v10 = vrot.slane %v15089_v24, %v14878_v40  ;;  %v15091_v57 = vld [vmem:[#allocation187_spill] sm:$0xff]  ;;  %v15094_v26 = vld [vmem:[#allocation188_spill] sm:$0xff] }
 0x3f7   :  { %15084 = vst [vmem:[#allocation17_spill] sm:$0xff] %v12567_v20  ;;  %v15092_v37 = vmax.f32 %v15091_v57, 0.0  ;;  %v15095_v18 = vmax.f32 %v15094_v26, 0.0  ;;  %v15097_v20 = vld [vmem:[#allocation195_spill] sm:$0xff] }
 0x3f8   :  { %v12572_v41 = vrot.slane %v15086_v11, %v14878_v40  ;;  %15090 = vst [vmem:[#allocation26_spill] sm:$0xff] %v12577_v10  ;;  %v15098_v46 = vmax.f32 %v15097_v20, 0.0  ;;  %v15103_v10 = vld [vmem:[#allocation197_spill] sm:$0xff] }
 0x3f9   :  { %v12582_v17 = vrot.slane %v15092_v37, %v14878_v40  ;;  %v12587_v29 = vrot.slane %v15095_v18, %v14878_v40  ;;  %v15104_v57 = vmax.f32 %v15103_v10, 0.0 }
 0x3fa   :  { %15087 = vst [vmem:[#allocation20_spill] sm:$0xff] %v12572_v41  ;;  %v12592_v11 = vrot.slane %v15098_v46, %v14878_v40  ;;  %v15100_v41 = vld [vmem:[#allocation196_spill] sm:$0xff] }
 0x3fb   :  { %15093 = vst [vmem:[#allocation39_spill] sm:$0xff] %v12582_v17  ;;  %15096 = vst [vmem:[#allocation55_spill] sm:$0xff] %v12587_v29  ;;  %v15101_v53 = vmax.f32 %v15100_v41, 0.0  ;;  %v12602_v37 = vrot.slane %v15104_v57, %v14878_v40  ;;  %v15106_v17 = vld [vmem:[#allocation198_spill] sm:$0xff]  ;;  %v15109_v29 = vld [vmem:[#allocation199_spill] sm:$0xff] }
 0x3fc   :  { %15099 = vst [vmem:[#allocation15_spill] sm:$0xff] %v12592_v11  ;;  %v15107_v26 = vmax.f32 %v15106_v17, 0.0  ;;  %v15110_v20 = vmax.f32 %v15109_v29, 0.0  ;;  %v15112_v11 = vld [vmem:[#allocation200_spill] sm:$0xff] }
 0x3fd   :  { %v12597_v24 = vrot.slane %v15101_v53, %v14878_v40  ;;  %15105 = vst [vmem:[#allocation38_spill] sm:$0xff] %v12602_v37  ;;  %v15113_v41 = vmax.f32 %v15112_v11, 0.0  ;;  %v15116_v37 = vld [vmem:[#allocation204_spill] sm:$0xff] }
 0x3fe   :  { %v12607_v18 = vrot.slane %v15107_v26, %v14878_v40  ;;  %v12612_v46 = vrot.slane %v15110_v20, %v14878_v40  ;;  %v15117_v17 = vmax.f32 %v15116_v37, 0.0  ;;  %v15123_v37 = vmax.f32 %v14868_v9, 0.0 }
 0x3ff   :  { %15102 = vst [vmem:[#allocation10_spill] sm:$0xff] %v12597_v24  ;;  %v12617_v53 = vrot.slane %v15113_v41, %v14878_v40  ;;  %v15114_v24 = vld [vmem:[#allocation203_spill] sm:$0xff]  ;;  %v15127_v9 = vmax.f32 %v14872_v13, 0.0  ;;  %v15131_v13 = vmax.f32 %v14876_v23, 0.0  ;;  %v15135_v23 = vmax.f32 %v11956_v30, 0.0 }
 0x400   :  { %15108 = vst [vmem:[#allocation56_spill] sm:$0xff] %v12607_v18  ;;  %15111 = vst [vmem:[#allocation72_spill] sm:$0xff] %v12612_v46  ;;  %v15115_v10 = vmax.f32 %v15114_v24, 0.0  ;;  %v12627_v26 = vrot.slane %v15117_v17, %v14878_v40  ;;  %v15118_v18 = vld [vmem:[#allocation205_spill] sm:$0xff]  ;;  %v15120_v46 = vld [vmem:[#allocation206_spill] sm:$0xff]  ;;  %v15122_v24 = vmax.f32 %v14867_v38, 0.0  ;;  %v12647_v17 = vrot.slane %v15123_v37, %v14878_v40 }
 0x401   :  { %v15119_v29 = vmax.f32 %v15118_v18, 0.0  ;;  %v15121_v11 = vmax.f32 %v15120_v46, 0.0  ;;  %v15124_v18 = vmax.f32 %v14869_v27, 0.0  ;;  %v15125_v46 = vmax.f32 %v14870_v35, 0.0 }
 0x402   :  { %v12622_v57 = vrot.slane %v15115_v10, %v14878_v40  ;;  %v12642_v10 = vrot.slane %v15122_v24, %v14878_v40  ;;  %v15126_v38 = vmax.f32 %v14871_v19, 0.0  ;;  %v12667_v37 = vrot.slane %v15127_v9, %v14878_v40 }
 0x403   :  { %v12632_v20 = vrot.slane %v15119_v29, %v14878_v40  ;;  %v12637_v41 = vrot.slane %v15121_v11, %v14878_v40  ;;  %v12652_v29 = vrot.slane %v15124_v18, %v14878_v40  ;;  %v12657_v11 = vrot.slane %v15125_v46, %v14878_v40 }
 0x404   :  { %v12662_v24 = vrot.slane %v15126_v38, %v14878_v40  ;;  %v15128_v27 = vmax.f32 %v14873_v3, 0.0  ;;  %v15129_v35 = vmax.f32 %v14874_v56, 0.0  ;;  %v15130_v19 = vmax.f32 %v14875_v31, 0.0 }
 0x405   :  { %v12687_v9 = vrot.slane %v15131_v13, %v14878_v40  ;;  %v15132_v3 = vmax.f32 %v14877_v61, 0.0  ;;  %v15133_v56 = vmax.f32 %v11948_v4, 0.0  ;;  %v15134_v31 = vmax.f32 %v11952_v33, 0.0 }
 0x406   :  { %v12672_v18 = vrot.slane %v15128_v27, %v14878_v40  ;;  %v12677_v46 = vrot.slane %v15129_v35, %v14878_v40  ;;  %v12682_v38 = vrot.slane %v15130_v19, %v14878_v40  ;;  %v12707_v13 = vrot.slane %v15135_v23, %v14878_v40 }
 0x407   :  { %v12692_v27 = vrot.slane %v15132_v3, %v14878_v40  ;;  %v12697_v35 = vrot.slane %v15133_v56, %v14878_v40  ;;  %v12702_v19 = vrot.slane %v15134_v31, %v14878_v40  ;;  %v15136_v61 = vmax.f32 %v11960_v51, 0.0 }
 0x408   :  { %v15138_v4 = vmax.f32 %v11964_v54, 0.0  ;;  %v15139_v33 = vmax.f32 %v11968_v22, 0.0  ;;  %v15140_v30 = vmax.f32 %v11972_v12, 0.0  ;;  %v15141_v51 = vmax.f32 %v11976_v52, 0.0 }
 0x409   :  { %v12712_v3 = vrot.slane %v15136_v61, %v14878_v40  ;;  %v15142_v54 = vmax.f32 %v11980_v2, 0.0  ;;  %v15145_v12 = vmax.f32 %v11988_v28, 0.0  ;;  %v15146_v52 = vmax.f32 %v11992_v16, 0.0 }
 0x40a   :  { %v12717_v56 = vrot.slane %v15138_v4, %v14878_v40  ;;  %v12722_v31 = vrot.slane %v15139_v33, %v14878_v40  ;;  %v12727_v23 = vrot.slane %v15140_v30, %v14878_v40  ;;  %v12732_v61 = vrot.slane %v15141_v51, %v14878_v40 }
 0x40b   :  { %15137 = vst [vmem:[#allocation12_spill] sm:$0xff] %v12712_v3  ;;  %v12737_v4 = vrot.slane %v15142_v54, %v14878_v40  ;;  %v15143_v3 = vld [vmem:[#allocation153_spill] sm:$0xff]  ;;  %v12747_v30 = vrot.slane %v15145_v12, %v14878_v40  ;;  %v12752_v51 = vrot.slane %v15146_v52, %v14878_v40  ;;  %v15147_v2 = vmax.f32 %v11996_v8, 0.0 }
 0x40c   :  { %v15144_v22 = vmax.f32 %v15143_v3, 0.0  ;;  %v15148_v3 = vmax.f32 %v12000_v58, 0.0  ;;  %v15149_v28 = vmax.f32 %v12004_v47, 0.0  ;;  %v15150_v16 = vmax.f32 %v12008_v50, 0.0 }
 0x40d   :  { %v12757_v54 = vrot.slane %v15147_v2, %v14878_v40  ;;  %v15151_v8 = vmax.f32 %v12012_v45, 0.0  ;;  %v15152_v58 = vmax.f32 %v12016_v60, 0.0  ;;  %v15153_v47 = vmax.f32 %v12020_v15, 0.0 }
 0x40e   :  { %v12742_v33 = vrot.slane %v15144_v22, %v14878_v40  ;;  %v12762_v22 = vrot.slane %v15148_v3, %v14878_v40  ;;  %v12767_v12 = vrot.slane %v15149_v28, %v14878_v40  ;;  %v12772_v52 = vrot.slane %v15150_v16, %v14878_v40 }
 0x40f   :  { %v12777_v2 = vrot.slane %v15151_v8, %v14878_v40  ;;  %v12782_v3 = vrot.slane %v15152_v58, %v14878_v40  ;;  %v12787_v28 = vrot.slane %v15153_v47, %v14878_v40  ;;  %v15154_v50 = vmax.f32 %v12024_v63, 0.0  ;;  %v15158_v58 = vld [vmem:[#allocation159_spill] sm:$0xff]  ;;  %v15159_v47 = vld [vmem:[#allocation174_spill] sm:$0xff] }
 0x410   :  { %v6365_v45 = vsel %vm3869_vm2, %v12162_v25, %v12157_v48  ;;  %v6372_v60 = vsel %vm3869_vm2, %v12202_v62, %v12197_v59  ;;  %v6379_v15 = vsel %vm3869_vm2, %v12242_v36, %v12237_v44 }
 0x411   :  { %v12792_v16 = vrot.slane %v15154_v50, %v14878_v40  ;;  %v6366_v8 = vsel %vm3871_vm3, %v12167_v5, %v6365_v45  ;;  %v6386_v40 = vsel %vm3869_vm2, %v12282_v49, %v12277_v0  ;;  %v6373_v48 = vsel %vm3871_vm3, %v12207_v39, %v6372_v60  ;;  %v15155_v0 = vld [vmem:[#allocation154_spill] sm:$0xff]  ;;  %v15156_v49 = vld [vmem:[#allocation173_spill] sm:$0xff]  ;;  %v15160_v50 = vld [vmem:[#allocation223_spill] sm:$0xff] }
 0x412   :  { %v6367_v63 = vsel %vm3873_vm4, %v12172_v14, %v6366_v8  ;;  %v6380_v5 = vsel %vm3871_vm3, %v12247_v6, %v6379_v15  ;;  %v6387_v25 = vsel %vm3871_vm3, %v12287_v1, %v6386_v40  ;;  %v6374_v62 = vsel %vm3873_vm4, %v12212_v42, %v6373_v48  ;;  %v15157_v1 = vld [vmem:[#allocation147_spill] sm:$0xff]  ;;  %v15161_v45 = vld [vmem:[#allocation166_spill] sm:$0xff]  ;;  %v15162_v8 = vld [vmem:[#allocation181_spill] sm:$0xff] }
 0x413   :  { %v6368_v59 = vsel %vm3875_vm5, %v12177_v43, %v6367_v63  ;;  %v6381_v44 = vsel %vm3873_vm4, %v12252_v32, %v6380_v5  ;;  %v6388_v14 = vsel %vm3873_vm4, %v12292_v21, %v6387_v25  ;;  %v6375_v36 = vsel %vm3875_vm5, %v12217_v7, %v6374_v62  ;;  %v15163_v15 = vld [vmem:[#allocation148_spill] sm:$0xff]  ;;  %v15164_v63 = vld [vmem:[#allocation143_spill] sm:$0xff]  ;;  %v15165_v5 = vld [vmem:[#allocation138_spill] sm:$0xff] }
 0x414   :  { %v6369_v39 = vsel %vm3877_vm6, %v12182_v55, %v6368_v59  ;;  %v6382_v6 = vsel %vm3875_vm5, %v12257_v34, %v6381_v44  ;;  %v6389_v43 = vsel %vm3875_vm5, %v15155_v0, %v6388_v14  ;;  %v6376_v32 = vsel %vm3877_vm6, %v15157_v1, %v6375_v36  ;;  %v15166_v59 = vld [vmem:[#allocation167_spill] sm:$0xff]  ;;  %v15167_v44 = vld [vmem:[#allocation189_spill] sm:$0xff]  ;;  %v15168_v14 = vld [vmem:[#allocation144_spill] sm:$0xff] }
 0x415   :  { %v6370_v42 = vsel %vm3879_vm7, %v15156_v49, %v6369_v39  ;;  %v6383_v21 = vsel %vm3877_vm6, %v15158_v58, %v6382_v6  ;;  %v6390_v55 = vsel %vm3877_vm6, %v15159_v47, %v6389_v43  ;;  %v6377_v34 = vsel %vm3879_vm7, %v15161_v45, %v6376_v32  ;;  %v15169_v36 = vld [vmem:[#allocation160_spill] sm:$0xff]  ;;  %v15170_v0 = vld [vmem:[#allocation190_spill] sm:$0xff]  ;;  %v15171_v43 = vld [vmem:[#allocation161_spill] sm:$0xff] }
 0x416   :  { %v6371_v7 = vsel %vm3881_vm8, %v15160_v50, %v6370_v42  ;;  %v6384_v60 = vsel %vm3879_vm7, %v15162_v8, %v6383_v21  ;;  %v6391_v40 = vsel %vm3879_vm7, %v15163_v15, %v6390_v55  ;;  %v6378_v48 = vsel %vm3881_vm8, %v15164_v63, %v6377_v34  ;;  %v15172_v42 = vld [vmem:[#allocation184_spill] sm:$0xff]  ;;  %v15173_v1 = vld [vmem:[#allocation177_spill] sm:$0xff]  ;;  %v15174_v58 = vld [vmem:[#allocation218_spill] sm:$0xff] }
 0x417   :  { %v6385_v25 = vsel %vm3881_vm8, %v15165_v5, %v6384_v60  ;;  %v6392_v62 = vsel %vm3881_vm8, %v15166_v59, %v6391_v40  ;;  %v6393_v39 = vsel %vm3869_vm2, %v15168_v14, %v15167_v44  ;;  %6493 = vst [vmem:[#allocation2] sm:$0xff] %v6371_v7  ;;  %v6400_v49 = vsel %vm3869_vm2, %v15171_v43, %v15170_v0  ;;  %v15175_v21 = vld [vmem:[#allocation193_spill] sm:$0xff]  ;;  %v15176_v55 = vld [vmem:[#allocation182_spill] sm:$0xff]  ;;  %v15177_v7 = vld [vmem:[#allocation183_spill] sm:$0xff] }
 0x418   :  { %v6394_v6 = vsel %vm3871_vm3, %v15169_v36, %v6393_v39  ;;  %v6407_v32 = vsel %vm3869_vm2, %v15173_v1, %v15172_v42  ;;  %v6414_v47 = vsel %vm3869_vm2, %v15175_v21, %v15174_v58  ;;  %6494 = vst [vmem:[#allocation2 + $0x8] sm:$0xff] %v6378_v48  ;;  %6495 = vst [vmem:[#allocation2 + $0x10] sm:$0xff] %v6385_v25  ;;  %v15178_v34 = vld [vmem:[#allocation224_spill] sm:$0xff]  ;;  %v15179_v60 = vld [vmem:[#allocation215_spill] sm:$0xff] }
 0x419   :  { %6496 = vst [vmem:[#allocation2 + $0x18] sm:$0xff] %v6392_v62  ;;  %v6395_v50 = vsel %vm3873_vm4, %v15176_v55, %v6394_v6  ;;  %v6401_v45 = vsel %vm3871_vm3, %v15177_v7, %v6400_v49  ;;  %v6408_v8 = vsel %vm3871_vm3, %v15178_v34, %v6407_v32  ;;  %v6415_v15 = vsel %vm3871_vm3, %v15179_v60, %v6414_v47  ;;  %v15180_v40 = vld [vmem:[#allocation155_spill] sm:$0xff]  ;;  %v15181_v5 = vld [vmem:[#allocation156_spill] sm:$0xff]  ;;  %v15182_v25 = vld [vmem:[#allocation170_spill] sm:$0xff] }
 0x41a   :  { %v6396_v63 = vsel %vm3875_vm5, %v15180_v40, %v6395_v50  ;;  %v6402_v48 = vsel %vm3873_vm4, %v15181_v5, %v6401_v45  ;;  %v6409_v59 = vsel %vm3873_vm4, %v15182_v25, %v6408_v8  ;;  %v15183_v62 = vld [vmem:[#allocation186_spill] sm:$0xff]  ;;  %v15184_v14 = vld [vmem:[#allocation175_spill] sm:$0xff]  ;;  %v15185_v36 = vld [vmem:[#allocation176_spill] sm:$0xff] }
 0x41b   :  { %v6416_v44 = vsel %vm3873_vm4, %v15183_v62, %v6415_v15  ;;  %v6397_v39 = vsel %vm3877_vm6, %v15184_v14, %v6396_v63  ;;  %v6403_v6 = vsel %vm3875_vm5, %v15185_v36, %v6402_v48  ;;  %v15186_v0 = vld [vmem:[#allocation192_spill] sm:$0xff]  ;;  %v15187_v49 = vld [vmem:[#allocation225_spill] sm:$0xff]  ;;  %v15193_v8 = vld [vmem:[#allocation191_spill] sm:$0xff] }
 0x41c   :  { %v6410_v43 = vsel %vm3875_vm5, %v15186_v0, %v6409_v59  ;;  %v6417_v42 = vsel %vm3875_vm5, %v15187_v49, %v6416_v44  ;;  %v15188_v1 = vld [vmem:[#allocation149_spill] sm:$0xff]  ;;  %v15192_v45 = vld [vmem:[#allocation168_spill] sm:$0xff]  ;;  %v15195_v63 = vld [vmem:[#allocation202_spill] sm:$0xff] }
 0x41d   :  { %v6398_v32 = vsel %vm3879_vm7, %v15188_v1, %v6397_v39  ;;  %v15189_v58 = vld [vmem:[#allocation169_spill] sm:$0xff]  ;;  %v15196_v48 = vld [vmem:[#allocation162_spill] sm:$0xff]  ;;  %v15198_v44 = vld [vmem:[#allocation219_spill] sm:$0xff] }
 0x41e   :  { %v6404_v21 = vsel %vm3877_vm6, %v15189_v58, %v6403_v6  ;;  %v15190_v47 = vld [vmem:[#allocation185_spill] sm:$0xff]  ;;  %v6399_v34 = vsel %vm3881_vm8, %v15192_v45, %v6398_v32  ;;  %v15197_v59 = vld [vmem:[#allocation178_spill] sm:$0xff]  ;;  %v15200_v36 = vld [vmem:[#allocation216_spill] sm:$0xff] }
 0x41f   :  { %v6411_v55 = vsel %vm3877_vm6, %v15190_v47, %v6410_v43  ;;  %v15191_v50 = vld [vmem:[#allocation201_spill] sm:$0xff]  ;;  %v6405_v60 = vsel %vm3879_vm7, %v15193_v8, %v6404_v21  ;;  %v15199_v39 = vld [vmem:[#allocation194_spill] sm:$0xff]  ;;  %6497 = vst [vmem:[#allocation2 + $0x20] sm:$0xff] %v6399_v34 }
 0x420   :  { %v6418_v7 = vsel %vm3877_vm6, %v15191_v50, %v6417_v42  ;;  %v15194_v15 = vld [vmem:[#allocation209_spill] sm:$0xff]  ;;  %v6406_v25 = vsel %vm3881_vm8, %v15196_v48, %v6405_v60  ;;  %v6421_v6 = vsel %vm3869_vm2, %v15200_v36, %v15199_v39  ;;  %v15201_v0 = vld [vmem:[#allocation210_spill] sm:$0xff] }
 0x421   :  { %v6412_v40 = vsel %vm3879_vm7, %v15194_v15, %v6411_v55  ;;  %v6419_v5 = vsel %vm3879_vm7, %v15195_v63, %v6418_v7  ;;  %v6422_v43 = vsel %vm3871_vm3, %v15201_v0, %v6421_v6  ;;  %v15202_v49 = vld [vmem:[#allocation145_spill] sm:$0xff]  ;;  %v15206_v47 = vld [vmem:[#allocation10_spill] sm:$0xff]  ;;  %6498 = vst [vmem:[#allocation2 + $0x28] sm:$0xff] %v6406_v25 }
 0x422   :  { %v6413_v62 = vsel %vm3881_vm8, %v15197_v59, %v6412_v40  ;;  %v6420_v14 = vsel %vm3881_vm8, %v15198_v44, %v6419_v5  ;;  %v15203_v42 = vld [vmem:[#allocation141_spill] sm:$0xff]  ;;  %v15207_v55 = vld [vmem:[#allocation38_spill] sm:$0xff]  ;;  %v15211_v40 = vld [vmem:[#allocation56_spill] sm:$0xff] }
 0x423   :  { %v6428_v1 = vsel %vm3869_vm2, %v15203_v42, %v15202_v49  ;;  %v15204_v32 = vld [vmem:[#allocation221_spill] sm:$0xff]  ;;  %v6442_v50 = vsel %vm3869_vm2, %v15207_v55, %v15206_v47  ;;  %6499 = vst [vmem:[#allocation2 + $0x30] sm:$0xff] %v6413_v62  ;;  %6500 = vst [vmem:[#allocation2 + $0x38] sm:$0xff] %v6420_v14  ;;  %v15208_v7 = vld [vmem:[#allocation226_spill] sm:$0xff] }
 0x424   :  { %v15205_v58 = vld [vmem:[#allocation5_spill] sm:$0xff]  ;;  %v6423_v45 = vsel %vm3873_vm4, %v15208_v7, %v6422_v43  ;;  %v15209_v34 = vld [vmem:[#allocation146_spill] sm:$0xff]  ;;  %v6443_v63 = vsel %vm3871_vm3, %v15211_v40, %v6442_v50  ;;  %v15212_v5 = vld [vmem:[#allocation220_spill] sm:$0xff] }
 0x425   :  { %v6435_v21 = vsel %vm3869_vm2, %v15205_v58, %v15204_v32  ;;  %v6429_v8 = vsel %vm3871_vm3, %v15209_v34, %v6428_v1  ;;  %v15210_v60 = vld [vmem:[#allocation17_spill] sm:$0xff]  ;;  %v6424_v48 = vsel %vm3875_vm5, %v15212_v5, %v6423_v45  ;;  %v15213_v59 = vld [vmem:[#allocation140_spill] sm:$0xff]  ;;  %v15216_v36 = vld [vmem:[#allocation134_spill] sm:$0xff] }
 0x426   :  { %v6436_v15 = vsel %vm3871_vm3, %v15210_v60, %v6435_v21  ;;  %v6430_v25 = vsel %vm3873_vm4, %v15213_v59, %v6429_v8  ;;  %v15214_v62 = vld [vmem:[#allocation20_spill] sm:$0xff]  ;;  %v6425_v6 = vsel %vm3877_vm6, %v15216_v36, %v6424_v48  ;;  %v15217_v0 = vld [vmem:[#allocation150_spill] sm:$0xff]  ;;  %v15219_v32 = vld [vmem:[#allocation217_spill] sm:$0xff] }
 0x427   :  { %v6437_v44 = vsel %vm3873_vm4, %v15214_v62, %v6436_v15  ;;  %v15215_v14 = vld [vmem:[#allocation72_spill] sm:$0xff]  ;;  %v6431_v43 = vsel %vm3875_vm5, %v15217_v0, %v6430_v25  ;;  %v15218_v49 = vld [vmem:[#allocation26_spill] sm:$0xff]  ;;  %v6426_v58 = vsel %vm3879_vm7, %v15219_v32, %v6425_v6  ;;  %v15221_v55 = vld [vmem:[#allocation39_spill] sm:$0xff]  ;;  %v6449_v25 = vsel %vm3869_vm2, %v12642_v10, %v12637_v41 }
 0x428   :  { %v6444_v39 = vsel %vm3873_vm4, %v15215_v14, %v6443_v63  ;;  %v6438_v42 = vsel %vm3875_vm5, %v15218_v49, %v6437_v44  ;;  %v15220_v21 = vld [vmem:[#allocation142_spill] sm:$0xff]  ;;  %v15222_v45 = vld [vmem:[#allocation139_spill] sm:$0xff]  ;;  %v6450_v62 = vsel %vm3871_vm3, %v12647_v17, %v6449_v25  ;;  %v6463_v44 = vsel %vm3869_vm2, %v12722_v31, %v12717_v56 }
 0x429   :  { %v6445_v1 = vsel %vm3875_vm5, %v12617_v53, %v6444_v39  ;;  %v6432_v47 = vsel %vm3877_vm6, %v15220_v21, %v6431_v43  ;;  %v6439_v50 = vsel %vm3877_vm6, %v15221_v55, %v6438_v42  ;;  %v6427_v34 = vsel %vm3881_vm8, %v15222_v45, %v6426_v58  ;;  %v15223_v8 = vld [vmem:[#allocation151_spill] sm:$0xff] }
 0x42a   :  { %v6446_v7 = vsel %vm3877_vm6, %v12622_v57, %v6445_v1  ;;  %v6433_v60 = vsel %vm3879_vm7, %v15223_v8, %v6432_v47  ;;  %v15224_v15 = vld [vmem:[#allocation55_spill] sm:$0xff]  ;;  %6501 = vst [vmem:[#allocation2 + $0x40] sm:$0xff] %v6427_v34  ;;  %v6451_v41 = vsel %vm3873_vm4, %v12652_v29, %v6450_v62  ;;  %v6464_v17 = vsel %vm3871_vm3, %v12727_v23, %v6463_v44 }
 0x42b   :  { %v6440_v53 = vsel %vm3879_vm7, %v15224_v15, %v6439_v50  ;;  %v6447_v40 = vsel %vm3879_vm7, %v12627_v26, %v6446_v7  ;;  %v15225_v63 = vld [vmem:[#allocation227_spill] sm:$0xff]  ;;  %v6456_v26 = vsel %vm3869_vm2, %v12682_v38, %v12677_v46  ;;  %v6452_v38 = vsel %vm3875_vm5, %v12657_v11, %v6451_v41 }
 0x42c   :  { %v6434_v5 = vsel %vm3881_vm8, %v15225_v63, %v6433_v60  ;;  %v15226_v48 = vld [vmem:[#allocation15_spill] sm:$0xff]  ;;  %v6448_v57 = vsel %vm3881_vm8, %v12632_v20, %v6447_v40  ;;  %v6470_v20 = vsel %vm3869_vm2, %v12762_v22, %v12757_v54  ;;  %v6457_v10 = vsel %vm3871_vm3, %v12687_v9, %v6456_v26 }
 0x42d   :  { %v6441_v59 = vsel %vm3881_vm8, %v15226_v48, %v6440_v53  ;;  %6502 = vst [vmem:[#allocation2 + $0x48] sm:$0xff] %v6434_v5  ;;  %6504 = vst [vmem:[#allocation2 + $0x58] sm:$0xff] %v6448_v57  ;;  %v6471_v46 = vsel %vm3871_vm3, %v12767_v12, %v6470_v20  ;;  %v6458_v56 = vsel %vm3873_vm4, %v12692_v27, %v6457_v10 }
 0x42e   :  { %6503 = vst [vmem:[#allocation2 + $0x50] sm:$0xff] %v6441_v59  ;;  %v6465_v29 = vsel %vm3873_vm4, %v12732_v61, %v6464_v17  ;;  %v6472_v9 = vsel %vm3873_vm4, %v12772_v52, %v6471_v46  ;;  %v6453_v31 = vsel %vm3877_vm6, %v12662_v24, %v6452_v38  ;;  %v6459_v23 = vsel %vm3875_vm5, %v12697_v35, %v6458_v56 }
 0x42f   :  { %v6466_v54 = vsel %vm3875_vm5, %v12737_v4, %v6465_v29  ;;  %v6473_v11 = vsel %vm3875_vm5, %v12777_v2, %v6472_v9  ;;  %v6454_v27 = vsel %vm3879_vm7, %v12667_v37, %v6453_v31  ;;  %v6460_v61 = vsel %vm3877_vm6, %v12702_v19, %v6459_v23 }
 0x430   :  { %v6467_v22 = vsel %vm3877_vm6, %v12742_v33, %v6466_v54  ;;  %v6474_v24 = vsel %vm3877_vm6, %v12782_v3, %v6473_v11  ;;  %v6455_v35 = vsel %vm3881_vm8, %v12672_v18, %v6454_v27  ;;  %v6461_v37 = vsel %vm3879_vm7, %v12707_v13, %v6460_v61  ;;  %v15227_v33 = vld [vmem:[#allocation12_spill] sm:$0xff] }
 0x431   :  { %v6468_v19 = vsel %vm3879_vm7, %v12747_v30, %v6467_v22  ;;  %v6475_v4 = vsel %vm3879_vm7, %v12787_v28, %v6474_v24  ;;  %v6462_v12 = vsel %vm3881_vm8, %v15227_v33, %v6461_v37  ;;  %6505 = vst [vmem:[#allocation2 + $0x60] sm:$0xff] %v6455_v35 }
 0x432   :  { %v6469_v52 = vsel %vm3881_vm8, %v12752_v51, %v6468_v19  ;;  %v6476_v2 = vsel %vm3881_vm8, %v12792_v16, %v6475_v4  ;;  %6506 = vst [vmem:[#allocation2 + $0x68] sm:$0xff] %v6462_v12 }
 0x433   :  { %6507 = vst [vmem:[#allocation2 + $0x70] sm:$0xff] %v6469_v52  ;;  %6508 = vst [vmem:[#allocation2 + $0x78] sm:$0xff] %v6476_v2 }
 0x434   :  { %7054 = shalt.err (!%p7051_p4)
}
 0x435   :  { %s7055_s24 = scalar_lea.hbm %s13057_s4, 2048 }
 0x436   :  { %p7056_p5 = scmp.ne.s32.totalorder %s13057_s4, %s7055_s24  ;;  %p7059_p6 = scmp.lt.u32.totalorder %s7055_s24, %s13057_s4 }
 0x438   :  { %p7061_p7 = pnand %p7059_p6, %p7056_p5 }
 0x43a   :  { %7064 = shalt.err (!%p7061_p7)
}
 0x43b   :  { %s7069_s29 = smov 128   ;;  %s7070_s30 = smov 8  }
 0x43c   :  { %6520 = dma.vmem_to_hbm [thread:$0]  %s13020_s3, 2048, %s13057_s4, [#allocation3], %s7069_s29, %s7069_s29, %s7070_s30  }
 0x43d   :  { %7065 = dma.done.wait [#allocation3], 2048  }
 0x43e   :  { %7066 = vsyncadd [#allocation3], 4294965248 }
 0x43f   :  { %6524 = vsyncpa [#allocation3], 1 }

</bundles_post_ra>
